<compile_context>
chip_gen: v7x
topology: tpu7x:2x2x1
jax: 0.10.0
libtpu: 0.0.40
codegen_flags: <defaults>
</compile_context>

<pallas_src>
import math

import jax
import jax.numpy as jnp
from jax import lax
from jax.experimental import pallas as pl
from jax.experimental.pallas import tpu as pltpu

EMB = 11          # gpconv_L1_input_dim   (1024 in reference)
HID = 11          # gpconv_*_output_dim / bilin_input_dim (300 in reference)
SEQ_LEN = 4       # query / doc length
POOL = 8          # mf_model_pool_dim / mfcnn_*_pool_HW (40 in reference)
MF_CH = 6         # mfcnn_*_output_dim (50 in reference)
NEG_SAMPLES = 4
NUM_DOCS = 1 + NEG_SAMPLES


def ks_for(length):
    return [max(4, math.ceil(2 * length / 3)), max(4, math.ceil(length / 3)), 1]


KS = tuple(ks_for(SEQ_LEN))            # (4, 4, 1)
GP_ROWS = SEQ_LEN + sum(KS)            # 13 feature vectors per sequence


def vmem_spec():
    return pl.BlockSpec(memory_space=pltpu.MemorySpace.VMEM)


def smem_spec():
    return pl.BlockSpec(memory_space=pltpu.MemorySpace.SMEM)


# --------------------------------------------------------------------------
# In-kernel helpers (traced inside the fused kernels; everything stays in VMEM)
# --------------------------------------------------------------------------
def _tri_masks():
    r = lax.broadcasted_iota(jnp.int32, (HID, HID), 0)
    c = lax.broadcasted_iota(jnp.int32, (HID, HID), 1)
    lt = (c < r).astype(jnp.float32)   # lt[j, j'] = 1 iff j' < j
    ut = (r < c).astype(jnp.float32)   # ut[j', j] = 1 iff j' < j
    return lt, ut


def _gp_layer(s_r, s_c, w_cat, w_cat_t, b_row, b_col, k, lt, ut):
    """One conv_pooling layer, computed in both orientations (no transposes).

    s_r: (P, C) sequence rows (positions x channels);  s_c = s_r^T: (C, P).
    Returns (kp, pk):
      kp (k, P+7) = reference pooling output (rows = channel rank, cols = positions)
      pk (P+7, k) = kp^T (next layer's column-form input / G^T feature columns)
    """
    p_in, c_in = s_r.shape
    p_out = p_in + 7

    # Conv1d(kernel=2) + tanh, both taps fused into one MXU dot (per orientation).
    zr = jnp.zeros((4, c_in), jnp.float32)
    xr = jnp.concatenate([zr, s_r, zr], axis=0)                          # (P+8, C)
    lhs = jnp.concatenate([xr[0:p_out, :], xr[1:p_out + 1, :]], axis=1)  # (P+7, 2C)
    y_r = jnp.tanh(jnp.dot(lhs, w_cat, preferred_element_type=jnp.float32) + b_row)

    zc = jnp.zeros((c_in, 4), jnp.float32)
    xc = jnp.concatenate([zc, s_c, zc], axis=1)                          # (C, P+8)
    rhs = jnp.concatenate([xc[:, 0:p_out], xc[:, 1:p_out + 1]], axis=0)  # (2C, P+7)
    y_c = jnp.tanh(jnp.dot(w_cat_t, rhs, preferred_element_type=jnp.float32) + b_col)

    if k == 1:
        return (jnp.max(y_c, axis=0, keepdims=True),      # (1, P+7)
                jnp.max(y_r, axis=1, keepdims=True))      # (P+7, 1)

    # Order-preserving channel top-k (reference k_max_pooling): threshold = k-th
    # largest per position, then place each selected value at its selection rank
    # (exclusive prefix count of the selection mask via a triangular-mask matmul).
    # TODO(synk): exact ties at the threshold would select != k entries; measure-zero
    # for continuous activations (torch.topk tie order is also unspecified).
    cur_r, cur_c = y_r, y_c
    for _ in range(k):
        thr_r = jnp.max(cur_r, axis=1, keepdims=True)     # (P+7, 1)
        cur_r = jnp.where(cur_r >= thr_r, -jnp.inf, cur_r)
        thr_c = jnp.max(cur_c, axis=0, keepdims=True)     # (1, P+7)
        cur_c = jnp.where(cur_c >= thr_c, -jnp.inf, cur_c)
    sel_r = (y_r >= thr_r).astype(jnp.float32)
    sel_c = (y_c >= thr_c).astype(jnp.float32)
    cnt_r = jnp.dot(sel_r, ut, preferred_element_type=jnp.float32)
    cnt_c = jnp.dot(lt, sel_c, preferred_element_type=jnp.float32)

    rows, cols = [], []
    for c in range(k):
        m_c = sel_c * (cnt_c == c).astype(jnp.float32)
        m_r = sel_r * (cnt_r == c).astype(jnp.float32)
        rows.append(jnp.sum(y_c * m_c, axis=0, keepdims=True))   # (1, P+7)
        cols.append(jnp.sum(y_r * m_r, axis=1, keepdims=True))   # (P+7, 1)
    return jnp.concatenate(rows, axis=0), jnp.concatenate(cols, axis=1)


def _gp_branch(s_r, s_c, w_cat_ref, w_cat_t_ref, b_row_ref, b_col_ref, lt, ut):
    # feats[0] == the raw sequence: k_max_pooling(seq, dim=2, k=HID) is the identity
    # reorder when the channel count equals HID (as in the reference's own concat).
    kp_feats, pk_feats = [s_r], [s_c]
    cur_r, cur_c = s_r, s_c
    for l, k in enumerate(KS):
        kp, pk = _gp_layer(cur_r, cur_c, w_cat_ref[l], w_cat_t_ref[l],
                           b_row_ref[l], b_col_ref[l], k, lt, ut)
        kp_feats.append(kp)
        pk_feats.append(pk)
        cur_r, cur_c = kp, pk
    return kp_feats, pk_feats


def _adaptive_max_pool(x, out_h, out_w):
    # AdaptiveMaxPool2d, PyTorch window rule: [floor(i*I/O), ceil((i+1)*I/O)).
    h_in, w_in = x.shape
    rows = []
    for i in range(out_h):
        s = (i * h_in) // out_h
        e = -((-(i + 1) * h_in) // out_h)
        rows.append(jnp.max(x[s:e, :], axis=0, keepdims=True))
    xr = jnp.concatenate(rows, axis=0)
    cols = []
    for j in range(out_w):
        s = (j * w_in) // out_w
        e = -((-(j + 1) * w_in) // out_w)
        cols.append(jnp.max(xr[:, s:e], axis=1, keepdims=True))
    return jnp.concatenate(cols, axis=1)


def _mfcnn_layer(x, w_ref, b_ref, layer):
    # Conv2d(1->MF_CH, 2x2, padding=4) + sigmoid + channel max.  The channel max
    # (k_max_pooling over channels, k=1) commutes with the monotone sigmoid and the
    # adaptive max pool that follow, so fusing it here is exact.
    h, w = x.shape
    zc = jnp.zeros((h, 4), jnp.float32)
    xp = jnp.concatenate([zc, x, zc], axis=1)                  # (h, w+8)
    zr = jnp.zeros((4, w + 8), jnp.float32)
    xp = jnp.concatenate([zr, xp, zr], axis=0)                 # (h+8, w+8)
    ho, wo = h + 7, w + 7
    s00 = xp[0:ho, 0:wo]
    s01 = xp[0:ho, 1:wo + 1]
    s10 = xp[1:ho + 1, 0:wo]
    s11 = xp[1:ho + 1, 1:wo + 1]
    acc = None
    for c in range(MF_CH):
        i = layer * MF_CH + c
        z = (w_ref[i, 0] * s00 + w_ref[i, 1] * s01
             + w_ref[i, 2] * s10 + w_ref[i, 3] * s11 + b_ref[i])
        acc = z if acc is None else jnp.maximum(acc, z)
    return jax.nn.sigmoid(acc)


# --------------------------------------------------------------------------
# Pallas kernels
# --------------------------------------------------------------------------
def _query_kernel(q_r_ref, q_c_ref, w_cat_ref, w_cat_t_ref, b_row_ref, b_col_ref,
                  w_bil_ref, qw_ref):
    lt, ut = _tri_masks()
    kp_feats, _ = _gp_branch(q_r_ref[...], q_c_ref[...], w_cat_ref, w_cat_t_ref,
                             b_row_ref, b_col_ref, lt, ut)
    g_q = jnp.concatenate(kp_feats, axis=0)                    # (GP_ROWS, HID)
    # Pre-multiply by the bilinear weight once; every document reuses G_q @ W.
    qw_ref[...] = jnp.dot(g_q, w_bil_ref[...], preferred_element_type=jnp.float32)


def _doc_kernel(doc_r_ref, doc_c_ref, qw_ref, w_cat_ref, w_cat_t_ref, b_row_ref,
                b_col_ref, bil_b_ref, mf_w_ref, mf_b_ref, mlp_w_ref, mlp_b_ref,
                out_ref):
    lt, ut = _tri_masks()
    _, pk_feats = _gp_branch(doc_r_ref[0], doc_c_ref[0], w_cat_ref, w_cat_t_ref,
                             b_row_ref, b_col_ref, lt, ut)
    g_d_t = jnp.concatenate(pk_feats, axis=1)                  # (HID, GP_ROWS)

    # Pairwise bilinear match matrix: M[i,j] = sigmoid(q_i^T W d_j + b).
    m = jax.nn.sigmoid(
        jnp.dot(qw_ref[...], g_d_t, preferred_element_type=jnp.float32)
        + bil_b_ref[0, 0])                                     # (GP_ROWS, GP_ROWS)

    x = _adaptive_max_pool(m, POOL, POOL)                      # (POOL, POOL)
    for layer in range(3):
        y = _mfcnn_layer(x, mf_w_ref, mf_b_ref, layer)         # (POOL+7, POOL+7)
        x = _adaptive_max_pool(y, POOL, POOL)                  # (POOL, POOL)

    # TODO(synk): reference applies Linear(POOL->1) twice to a (POOL, POOL) map,
    # which is shape-inconsistent in PyTorch; implemented (as in the accepted
    # baseline) as matrix -> vector -> scalar, i.e. one score per document.
    w_mlp = mlp_w_ref[...]                                     # (POOL, 1)
    b_mlp = mlp_b_ref[0, 0]
    y1 = jax.nn.sigmoid(jnp.dot(x, w_mlp, preferred_element_type=jnp.float32) + b_mlp)
    s = jnp.sum(y1 * w_mlp, axis=(0, 1), keepdims=True) + b_mlp
    out_ref[0] = jax.nn.sigmoid(s)


# --------------------------------------------------------------------------
# JAX wrapper reproducing the module's forward structure (2 pallas_calls total)
# --------------------------------------------------------------------------
def _pack_conv_layers(layers):
    # (w0, w1, b) per layer with w0/w1: (EMB, HID), b: (1, HID).  Fuse the two conv
    # taps into one (2*EMB, HID) weight and provide both orientations + biases so
    # the kernels never transpose anything.
    w_cat = jnp.stack([jnp.concatenate([w0, w1], axis=0) for w0, w1, _ in layers])
    w_cat_t = jnp.stack([jnp.transpose(jnp.concatenate([w0, w1], axis=0))
                         for w0, w1, _ in layers])
    b_row = jnp.stack([b for _, _, b in layers])
    b_col = jnp.stack([jnp.transpose(b) for _, _, b in layers])
    return w_cat, w_cat_t, b_row, b_col


def multigrancnn_forward(params, query, pos_doc, neg_docs):
    # query / pos_doc / neg_docs[i]: (1, SEQ_LEN, EMB), batch of 1 as in the reference.
    q_r = query[0]
    q_c = jnp.transpose(q_r)
    docs_r = jnp.stack([pos_doc[0]] + [nd[0] for nd in neg_docs], axis=0)
    docs_c = jnp.transpose(docs_r, (0, 2, 1))

    # Query branch uses (L1, L2, L1) convs -- reproduces the reference's layer_num=1
    # quirk at query layer 3.  Doc branch uses (L1, L2, L3).
    q_layers = [params['q_conv'][0], params['q_conv'][1], params['q_conv'][0]]
    d_layers = [params['d_conv'][0], params['d_conv'][1], params['d_conv'][2]]
    q_w_cat, q_w_cat_t, q_b_row, q_b_col = _pack_conv_layers(q_layers)
    d_w_cat, d_w_cat_t, d_b_row, d_b_col = _pack_conv_layers(d_layers)

    w_bil, b_bil = params['bilinear']
    mf_w = jnp.concatenate([w for w, _ in params['mfcnn']], axis=0)   # (3*MF_CH, 4)
    mf_b = jnp.concatenate([b for _, b in params['mfcnn']], axis=0)   # (3*MF_CH,)
    w_mlp, b_mlp = params['mlp']

    # Kernel 1: query gp-branch + G_q @ W_bilinear, computed once.
    qw = pl.pallas_call(
        _query_kernel,
        out_shape=jax.ShapeDtypeStruct((GP_ROWS, HID), jnp.float32),
        in_specs=[vmem_spec()] * 7,
        out_specs=vmem_spec(),
    )(q_r, q_c, q_w_cat, q_w_cat_t, q_b_row, q_b_col, w_bil)

    # Kernel 2: one grid step per document, full pipeline fused in VMEM.  Weights
    # are un-blocked (VMEM/SMEM resident) so they are not re-fetched per doc.
    scores = pl.pallas_call(
        _doc_kernel,
        out_shape=jax.ShapeDtypeStruct((NUM_DOCS, 1, 1), jnp.float32),
        grid=(NUM_DOCS,),
        in_specs=[
            pl.BlockSpec((1, SEQ_LEN, EMB), lambda d: (d, 0, 0)),   # doc, row form
            pl.BlockSpec((1, EMB, SEQ_LEN), lambda d: (d, 0, 0)),   # doc, col form
            vmem_spec(),   # qW (constant across docs)
            vmem_spec(),   # d_w_cat
            vmem_spec(),   # d_w_cat_t
            vmem_spec(),   # d_b_row
            vmem_spec(),   # d_b_col
            smem_spec(),   # bilinear bias (1,1)
            smem_spec(),   # mfcnn weights (3*MF_CH, 4)
            smem_spec(),   # mfcnn biases (3*MF_CH,)
            vmem_spec(),   # mlp weight (POOL, 1)
            smem_spec(),   # mlp bias (1,1)
        ],
        out_specs=pl.BlockSpec((1, 1, 1), lambda d: (d, 0, 0)),
        compiler_params=pltpu.CompilerParams(
            dimension_semantics=("parallel",)),   # doc axis -> megacore on v7x
    )(docs_r, docs_c, qw, d_w_cat, d_w_cat_t, d_b_row, d_b_col,
      b_bil, mf_w, mf_b, w_mlp, b_mlp)

    return scores.reshape(NUM_DOCS, 1)   # (1 + neg_samples, 1)


# --------------------------------------------------------------------------
# Deterministic parameter init (synthetic — no checkpoint loading)
# --------------------------------------------------------------------------
def init_params(key):
    def conv1d_params(k):
        k0, k1, k2 = jax.random.split(k, 3)
        scale = 1.0 / math.sqrt(2 * EMB)
        return (jax.random.uniform(k0, (EMB, HID), jnp.float32, -scale, scale),
                jax.random.uniform(k1, (EMB, HID), jnp.float32, -scale, scale),
                jax.random.uniform(k2, (1, HID), jnp.float32, -scale, scale))

    keys = jax.random.split(key, 16)
    return {
        'q_conv': [conv1d_params(keys[i]) for i in range(3)],
        'd_conv': [conv1d_params(keys[3 + i]) for i in range(3)],
        'bilinear': (jax.random.normal(keys[6], (HID, HID), jnp.float32) / HID,
                     jnp.full((1, 1), 0.1, jnp.float32)),
        'mfcnn': [(jax.random.normal(keys[7 + i], (MF_CH, 4), jnp.float32) * 0.5,
                   jax.random.normal(keys[10 + i], (MF_CH,), jnp.float32) * 0.1)
                  for i in range(3)],
        'mlp': (jax.random.normal(keys[13], (POOL, 1), jnp.float32) * 0.5,
                jnp.full((1, 1), 0.05, jnp.float32)),
    }


if __name__ == "__main__":
    key = jax.random.PRNGKey(0)
    pkey, qkey, dkey, *nkeys = jax.random.split(key, 3 + NEG_SAMPLES)
    params = init_params(pkey)
    query = jax.random.normal(qkey, (1, SEQ_LEN, EMB), jnp.float32)
    pos_doc = jax.random.normal(dkey, (1, SEQ_LEN, EMB), jnp.float32)
    neg_docs = [jax.random.normal(k, (1, SEQ_LEN, EMB), jnp.float32) for k in nkeys]

    fwd = jax.jit(multigrancnn_forward)
    s = fwd(params, query, pos_doc, neg_docs)
    jax.block_until_ready(s)
    assert s.shape == (1 + NEG_SAMPLES, 1), s.shape
    assert bool(jnp.all(jnp.isfinite(s)))
    print("KERNEL_OK")
</pallas_src>

<mosaic_0001>
module attributes {stable_mosaic.version = 11 : i64} {
  func.func @_query_kernel(%arg0: memref<4x11xf32, #tpu.memory_space<vmem>>, %arg1: memref<11x4xf32, #tpu.memory_space<vmem>>, %arg2: memref<3x22x11xf32, #tpu.memory_space<vmem>>, %arg3: memref<3x11x22xf32, #tpu.memory_space<vmem>>, %arg4: memref<3x1x11xf32, #tpu.memory_space<vmem>>, %arg5: memref<3x11x1xf32, #tpu.memory_space<vmem>>, %arg6: memref<11x11xf32, #tpu.memory_space<vmem>>, %arg7: memref<13x11xf32, #tpu.memory_space<vmem>>) attributes {dimension_semantics = [], scalar_prefetch = 0 : i64, scratch_operands = 0 : i64, tpu.core_type = #tpu.core_type<tc>} {
    %0 = tpu.iota {dimensions = array<i32: 0>} : vector<11x11xi32>
    %1 = tpu.iota {dimensions = array<i32: 1>} : vector<11x11xi32>
    %2 = arith.cmpi slt, %1, %0 : vector<11x11xi32>
    %3 = arith.extui %2 : vector<11x11xi1> to vector<11x11xi32>
    %4 = arith.sitofp %3 : vector<11x11xi32> to vector<11x11xf32>
    %5 = arith.cmpi slt, %0, %1 : vector<11x11xi32>
    %6 = arith.extui %5 : vector<11x11xi1> to vector<11x11xi32>
    %7 = arith.sitofp %6 : vector<11x11xi32> to vector<11x11xf32>
    %c0 = arith.constant 0 : index
    %c0_0 = arith.constant 0 : index
    %8 = vector.load %arg0[%c0, %c0_0] : memref<4x11xf32, #tpu.memory_space<vmem>>, vector<4x11xf32>
    %c0_1 = arith.constant 0 : index
    %c0_2 = arith.constant 0 : index
    %9 = vector.load %arg1[%c0_1, %c0_2] : memref<11x4xf32, #tpu.memory_space<vmem>>, vector<11x4xf32>
    %c0_3 = arith.constant 0 : index
    %c0_4 = arith.constant 0 : index
    %c0_5 = arith.constant 0 : index
    %10 = vector.load %arg2[%c0_3, %c0_4, %c0_5] : memref<3x22x11xf32, #tpu.memory_space<vmem>>, vector<1x22x11xf32>
    %11 = vector.shape_cast %10 : vector<1x22x11xf32> to vector<22x11xf32>
    %c0_6 = arith.constant 0 : index
    %c0_7 = arith.constant 0 : index
    %c0_8 = arith.constant 0 : index
    %12 = vector.load %arg3[%c0_6, %c0_7, %c0_8] : memref<3x11x22xf32, #tpu.memory_space<vmem>>, vector<1x11x22xf32>
    %13 = vector.shape_cast %12 : vector<1x11x22xf32> to vector<11x22xf32>
    %c0_9 = arith.constant 0 : index
    %c0_10 = arith.constant 0 : index
    %c0_11 = arith.constant 0 : index
    %14 = vector.load %arg4[%c0_9, %c0_10, %c0_11] : memref<3x1x11xf32, #tpu.memory_space<vmem>>, vector<1x1x11xf32>
    %15 = vector.shape_cast %14 : vector<1x1x11xf32> to vector<1x11xf32>
    %c0_12 = arith.constant 0 : index
    %c0_13 = arith.constant 0 : index
    %c0_14 = arith.constant 0 : index
    %16 = vector.load %arg5[%c0_12, %c0_13, %c0_14] : memref<3x11x1xf32, #tpu.memory_space<vmem>>, vector<1x11x1xf32>
    %17 = vector.shape_cast %16 : vector<1x11x1xf32> to vector<11x1xf32>
    %cst = arith.constant 0.000000e+00 : f32
    %18 = vector.broadcast %cst : f32 to vector<4x11xf32>
    %19 = tpu.concatenate %18, %8, %18 in 0 : vector<4x11xf32>, vector<4x11xf32>, vector<4x11xf32> -> vector<12x11xf32>
    %20 = vector.extract_strided_slice %19 {offsets = [0, 0], sizes = [11, 11], strides = [1, 1]} : vector<12x11xf32> to vector<11x11xf32>
    %21 = vector.extract_strided_slice %19 {offsets = [1, 0], sizes = [11, 11], strides = [1, 1]} : vector<12x11xf32> to vector<11x11xf32>
    %22 = tpu.concatenate %20, %21 in 1 : vector<11x11xf32>, vector<11x11xf32> -> vector<11x22xf32>
    %cst_15 = arith.constant dense<0.000000e+00> : vector<11x11xf32>
    %23 = tpu.matmul %22, %11, %cst_15 {dimension_numbers = #tpu.dot_dimension_numbers<[1], [0], [0], [1], [0, 0, 1, 1], [], []>} : vector<11x22xf32>, vector<22x11xf32>, vector<11x11xf32> -> vector<11x11xf32>
    %24 = vector.broadcast %15 : vector<1x11xf32> to vector<11x11xf32>
    %25 = arith.addf %23, %24 : vector<11x11xf32>
    %26 = math.tanh %25 : vector<11x11xf32>
    %cst_16 = arith.constant 0.000000e+00 : f32
    %27 = vector.broadcast %cst_16 : f32 to vector<11x4xf32>
    %28 = tpu.concatenate %27, %9, %27 in 1 : vector<11x4xf32>, vector<11x4xf32>, vector<11x4xf32> -> vector<11x12xf32>
    %29 = vector.extract_strided_slice %28 {offsets = [0, 0], sizes = [11, 11], strides = [1, 1]} : vector<11x12xf32> to vector<11x11xf32>
    %30 = vector.extract_strided_slice %28 {offsets = [0, 1], sizes = [11, 11], strides = [1, 1]} : vector<11x12xf32> to vector<11x11xf32>
    %31 = tpu.concatenate %29, %30 in 0 : vector<11x11xf32>, vector<11x11xf32> -> vector<22x11xf32>
    %cst_17 = arith.constant dense<0.000000e+00> : vector<11x11xf32>
    %32 = tpu.matmul %13, %31, %cst_17 {dimension_numbers = #tpu.dot_dimension_numbers<[1], [0], [0], [1], [0, 0, 1, 1], [], []>} : vector<11x22xf32>, vector<22x11xf32>, vector<11x11xf32> -> vector<11x11xf32>
    %33 = vector.broadcast %17 : vector<11x1xf32> to vector<11x11xf32>
    %34 = arith.addf %32, %33 : vector<11x11xf32>
    %35 = math.tanh %34 : vector<11x11xf32>
    %cst_18 = arith.constant dense<0xFF800000> : vector<11xf32>
    %36 = vector.multi_reduction <maximumf>, %26, %cst_18 [1] : vector<11x11xf32> to vector<11xf32>
    %37 = vector.shape_cast %36 : vector<11xf32> to vector<11x1xf32>
    %38 = vector.broadcast %37 : vector<11x1xf32> to vector<11x11xf32>
    %39 = arith.cmpf oge, %26, %38 : vector<11x11xf32>
    %cst_19 = arith.constant 0xFF800000 : f32
    %40 = vector.broadcast %cst_19 : f32 to vector<11x11xf32>
    %41 = arith.select %39, %40, %26 : vector<11x11xi1>, vector<11x11xf32>
    %cst_20 = arith.constant dense<0xFF800000> : vector<11xf32>
    %42 = vector.multi_reduction <maximumf>, %35, %cst_20 [0] : vector<11x11xf32> to vector<11xf32>
    %43 = vector.shape_cast %42 : vector<11xf32> to vector<1x11xf32>
    %44 = vector.broadcast %43 : vector<1x11xf32> to vector<11x11xf32>
    %45 = arith.cmpf oge, %35, %44 : vector<11x11xf32>
    %cst_21 = arith.constant 0xFF800000 : f32
    %46 = vector.broadcast %cst_21 : f32 to vector<11x11xf32>
    %47 = arith.select %45, %46, %35 : vector<11x11xi1>, vector<11x11xf32>
    %cst_22 = arith.constant dense<0xFF800000> : vector<11xf32>
    %48 = vector.multi_reduction <maximumf>, %41, %cst_22 [1] : vector<11x11xf32> to vector<11xf32>
    %49 = vector.shape_cast %48 : vector<11xf32> to vector<11x1xf32>
    %50 = vector.broadcast %49 : vector<11x1xf32> to vector<11x11xf32>
    %51 = arith.cmpf oge, %41, %50 : vector<11x11xf32>
    %cst_23 = arith.constant 0xFF800000 : f32
    %52 = vector.broadcast %cst_23 : f32 to vector<11x11xf32>
    %53 = arith.select %51, %52, %41 : vector<11x11xi1>, vector<11x11xf32>
    %cst_24 = arith.constant dense<0xFF800000> : vector<11xf32>
    %54 = vector.multi_reduction <maximumf>, %47, %cst_24 [0] : vector<11x11xf32> to vector<11xf32>
    %55 = vector.shape_cast %54 : vector<11xf32> to vector<1x11xf32>
    %56 = vector.broadcast %55 : vector<1x11xf32> to vector<11x11xf32>
    %57 = arith.cmpf oge, %47, %56 : vector<11x11xf32>
    %cst_25 = arith.constant 0xFF800000 : f32
    %58 = vector.broadcast %cst_25 : f32 to vector<11x11xf32>
    %59 = arith.select %57, %58, %47 : vector<11x11xi1>, vector<11x11xf32>
    %cst_26 = arith.constant dense<0xFF800000> : vector<11xf32>
    %60 = vector.multi_reduction <maximumf>, %53, %cst_26 [1] : vector<11x11xf32> to vector<11xf32>
    %61 = vector.shape_cast %60 : vector<11xf32> to vector<11x1xf32>
    %62 = vector.broadcast %61 : vector<11x1xf32> to vector<11x11xf32>
    %63 = arith.cmpf oge, %53, %62 : vector<11x11xf32>
    %cst_27 = arith.constant 0xFF800000 : f32
    %64 = vector.broadcast %cst_27 : f32 to vector<11x11xf32>
    %65 = arith.select %63, %64, %53 : vector<11x11xi1>, vector<11x11xf32>
    %cst_28 = arith.constant dense<0xFF800000> : vector<11xf32>
    %66 = vector.multi_reduction <maximumf>, %59, %cst_28 [0] : vector<11x11xf32> to vector<11xf32>
    %67 = vector.shape_cast %66 : vector<11xf32> to vector<1x11xf32>
    %68 = vector.broadcast %67 : vector<1x11xf32> to vector<11x11xf32>
    %69 = arith.cmpf oge, %59, %68 : vector<11x11xf32>
    %cst_29 = arith.constant 0xFF800000 : f32
    %70 = vector.broadcast %cst_29 : f32 to vector<11x11xf32>
    %71 = arith.select %69, %70, %59 : vector<11x11xi1>, vector<11x11xf32>
    %cst_30 = arith.constant dense<0xFF800000> : vector<11xf32>
    %72 = vector.multi_reduction <maximumf>, %65, %cst_30 [1] : vector<11x11xf32> to vector<11xf32>
    %73 = vector.shape_cast %72 : vector<11xf32> to vector<11x1xf32>
    %cst_31 = arith.constant dense<0xFF800000> : vector<11xf32>
    %74 = vector.multi_reduction <maximumf>, %71, %cst_31 [0] : vector<11x11xf32> to vector<11xf32>
    %75 = vector.shape_cast %74 : vector<11xf32> to vector<1x11xf32>
    %76 = vector.broadcast %73 : vector<11x1xf32> to vector<11x11xf32>
    %77 = arith.cmpf oge, %26, %76 : vector<11x11xf32>
    %78 = arith.extui %77 : vector<11x11xi1> to vector<11x11xi32>
    %79 = arith.sitofp %78 : vector<11x11xi32> to vector<11x11xf32>
    %80 = vector.broadcast %75 : vector<1x11xf32> to vector<11x11xf32>
    %81 = arith.cmpf oge, %35, %80 : vector<11x11xf32>
    %82 = arith.extui %81 : vector<11x11xi1> to vector<11x11xi32>
    %83 = arith.sitofp %82 : vector<11x11xi32> to vector<11x11xf32>
    %cst_32 = arith.constant dense<0.000000e+00> : vector<11x11xf32>
    %84 = tpu.matmul %79, %7, %cst_32 {dimension_numbers = #tpu.dot_dimension_numbers<[1], [0], [0], [1], [0, 0, 1, 1], [], []>} : vector<11x11xf32>, vector<11x11xf32>, vector<11x11xf32> -> vector<11x11xf32>
    %cst_33 = arith.constant dense<0.000000e+00> : vector<11x11xf32>
    %85 = tpu.matmul %4, %83, %cst_33 {dimension_numbers = #tpu.dot_dimension_numbers<[1], [0], [0], [1], [0, 0, 1, 1], [], []>} : vector<11x11xf32>, vector<11x11xf32>, vector<11x11xf32> -> vector<11x11xf32>
    %cst_34 = arith.constant 0.000000e+00 : f32
    %86 = vector.broadcast %cst_34 : f32 to vector<11x11xf32>
    %87 = arith.cmpf oeq, %85, %86 : vector<11x11xf32>
    %88 = arith.extui %87 : vector<11x11xi1> to vector<11x11xi32>
    %89 = arith.sitofp %88 : vector<11x11xi32> to vector<11x11xf32>
    %90 = arith.mulf %83, %89 : vector<11x11xf32>
    %cst_35 = arith.constant 0.000000e+00 : f32
    %91 = vector.broadcast %cst_35 : f32 to vector<11x11xf32>
    %92 = arith.cmpf oeq, %84, %91 : vector<11x11xf32>
    %93 = arith.extui %92 : vector<11x11xi1> to vector<11x11xi32>
    %94 = arith.sitofp %93 : vector<11x11xi32> to vector<11x11xf32>
    %95 = arith.mulf %79, %94 : vector<11x11xf32>
    %96 = arith.mulf %35, %90 : vector<11x11xf32>
    %cst_36 = arith.constant dense<0.000000e+00> : vector<11xf32>
    %97 = vector.multi_reduction <add>, %96, %cst_36 [0] : vector<11x11xf32> to vector<11xf32>
    %98 = vector.shape_cast %97 : vector<11xf32> to vector<1x11xf32>
    %99 = arith.mulf %26, %95 : vector<11x11xf32>
    %cst_37 = arith.constant dense<0.000000e+00> : vector<11xf32>
    %100 = vector.multi_reduction <add>, %99, %cst_37 [1] : vector<11x11xf32> to vector<11xf32>
    %101 = vector.shape_cast %100 : vector<11xf32> to vector<11x1xf32>
    %cst_38 = arith.constant 1.000000e+00 : f32
    %102 = vector.broadcast %cst_38 : f32 to vector<11x11xf32>
    %103 = arith.cmpf oeq, %85, %102 : vector<11x11xf32>
    %104 = arith.extui %103 : vector<11x11xi1> to vector<11x11xi32>
    %105 = arith.sitofp %104 : vector<11x11xi32> to vector<11x11xf32>
    %106 = arith.mulf %83, %105 : vector<11x11xf32>
    %cst_39 = arith.constant 1.000000e+00 : f32
    %107 = vector.broadcast %cst_39 : f32 to vector<11x11xf32>
    %108 = arith.cmpf oeq, %84, %107 : vector<11x11xf32>
    %109 = arith.extui %108 : vector<11x11xi1> to vector<11x11xi32>
    %110 = arith.sitofp %109 : vector<11x11xi32> to vector<11x11xf32>
    %111 = arith.mulf %79, %110 : vector<11x11xf32>
    %112 = arith.mulf %35, %106 : vector<11x11xf32>
    %cst_40 = arith.constant dense<0.000000e+00> : vector<11xf32>
    %113 = vector.multi_reduction <add>, %112, %cst_40 [0] : vector<11x11xf32> to vector<11xf32>
    %114 = vector.shape_cast %113 : vector<11xf32> to vector<1x11xf32>
    %115 = arith.mulf %26, %111 : vector<11x11xf32>
    %cst_41 = arith.constant dense<0.000000e+00> : vector<11xf32>
    %116 = vector.multi_reduction <add>, %115, %cst_41 [1] : vector<11x11xf32> to vector<11xf32>
    %117 = vector.shape_cast %116 : vector<11xf32> to vector<11x1xf32>
    %cst_42 = arith.constant 2.000000e+00 : f32
    %118 = vector.broadcast %cst_42 : f32 to vector<11x11xf32>
    %119 = arith.cmpf oeq, %85, %118 : vector<11x11xf32>
    %120 = arith.extui %119 : vector<11x11xi1> to vector<11x11xi32>
    %121 = arith.sitofp %120 : vector<11x11xi32> to vector<11x11xf32>
    %122 = arith.mulf %83, %121 : vector<11x11xf32>
    %cst_43 = arith.constant 2.000000e+00 : f32
    %123 = vector.broadcast %cst_43 : f32 to vector<11x11xf32>
    %124 = arith.cmpf oeq, %84, %123 : vector<11x11xf32>
    %125 = arith.extui %124 : vector<11x11xi1> to vector<11x11xi32>
    %126 = arith.sitofp %125 : vector<11x11xi32> to vector<11x11xf32>
    %127 = arith.mulf %79, %126 : vector<11x11xf32>
    %128 = arith.mulf %35, %122 : vector<11x11xf32>
    %cst_44 = arith.constant dense<0.000000e+00> : vector<11xf32>
    %129 = vector.multi_reduction <add>, %128, %cst_44 [0] : vector<11x11xf32> to vector<11xf32>
    %130 = vector.shape_cast %129 : vector<11xf32> to vector<1x11xf32>
    %131 = arith.mulf %26, %127 : vector<11x11xf32>
    %cst_45 = arith.constant dense<0.000000e+00> : vector<11xf32>
    %132 = vector.multi_reduction <add>, %131, %cst_45 [1] : vector<11x11xf32> to vector<11xf32>
    %133 = vector.shape_cast %132 : vector<11xf32> to vector<11x1xf32>
    %cst_46 = arith.constant 3.000000e+00 : f32
    %134 = vector.broadcast %cst_46 : f32 to vector<11x11xf32>
    %135 = arith.cmpf oeq, %85, %134 : vector<11x11xf32>
    %136 = arith.extui %135 : vector<11x11xi1> to vector<11x11xi32>
    %137 = arith.sitofp %136 : vector<11x11xi32> to vector<11x11xf32>
    %138 = arith.mulf %83, %137 : vector<11x11xf32>
    %cst_47 = arith.constant 3.000000e+00 : f32
    %139 = vector.broadcast %cst_47 : f32 to vector<11x11xf32>
    %140 = arith.cmpf oeq, %84, %139 : vector<11x11xf32>
    %141 = arith.extui %140 : vector<11x11xi1> to vector<11x11xi32>
    %142 = arith.sitofp %141 : vector<11x11xi32> to vector<11x11xf32>
    %143 = arith.mulf %79, %142 : vector<11x11xf32>
    %144 = arith.mulf %35, %138 : vector<11x11xf32>
    %cst_48 = arith.constant dense<0.000000e+00> : vector<11xf32>
    %145 = vector.multi_reduction <add>, %144, %cst_48 [0] : vector<11x11xf32> to vector<11xf32>
    %146 = vector.shape_cast %145 : vector<11xf32> to vector<1x11xf32>
    %147 = arith.mulf %26, %143 : vector<11x11xf32>
    %cst_49 = arith.constant dense<0.000000e+00> : vector<11xf32>
    %148 = vector.multi_reduction <add>, %147, %cst_49 [1] : vector<11x11xf32> to vector<11xf32>
    %149 = vector.shape_cast %148 : vector<11xf32> to vector<11x1xf32>
    %150 = tpu.concatenate %98, %114, %130, %146 in 0 : vector<1x11xf32>, vector<1x11xf32>, vector<1x11xf32>, vector<1x11xf32> -> vector<4x11xf32>
    %151 = tpu.concatenate %101, %117, %133, %149 in 1 : vector<11x1xf32>, vector<11x1xf32>, vector<11x1xf32>, vector<11x1xf32> -> vector<11x4xf32>
    %c1 = arith.constant 1 : index
    %c0_50 = arith.constant 0 : index
    %c0_51 = arith.constant 0 : index
    %152 = vector.load %arg2[%c1, %c0_50, %c0_51] : memref<3x22x11xf32, #tpu.memory_space<vmem>>, vector<1x22x11xf32>
    %153 = vector.shape_cast %152 : vector<1x22x11xf32> to vector<22x11xf32>
    %c1_52 = arith.constant 1 : index
    %c0_53 = arith.constant 0 : index
    %c0_54 = arith.constant 0 : index
    %154 = vector.load %arg3[%c1_52, %c0_53, %c0_54] : memref<3x11x22xf32, #tpu.memory_space<vmem>>, vector<1x11x22xf32>
    %155 = vector.shape_cast %154 : vector<1x11x22xf32> to vector<11x22xf32>
    %c1_55 = arith.constant 1 : index
    %c0_56 = arith.constant 0 : index
    %c0_57 = arith.constant 0 : index
    %156 = vector.load %arg4[%c1_55, %c0_56, %c0_57] : memref<3x1x11xf32, #tpu.memory_space<vmem>>, vector<1x1x11xf32>
    %157 = vector.shape_cast %156 : vector<1x1x11xf32> to vector<1x11xf32>
    %c1_58 = arith.constant 1 : index
    %c0_59 = arith.constant 0 : index
    %c0_60 = arith.constant 0 : index
    %158 = vector.load %arg5[%c1_58, %c0_59, %c0_60] : memref<3x11x1xf32, #tpu.memory_space<vmem>>, vector<1x11x1xf32>
    %159 = vector.shape_cast %158 : vector<1x11x1xf32> to vector<11x1xf32>
    %cst_61 = arith.constant 0.000000e+00 : f32
    %160 = vector.broadcast %cst_61 : f32 to vector<4x11xf32>
    %161 = tpu.concatenate %160, %150, %160 in 0 : vector<4x11xf32>, vector<4x11xf32>, vector<4x11xf32> -> vector<12x11xf32>
    %162 = vector.extract_strided_slice %161 {offsets = [0, 0], sizes = [11, 11], strides = [1, 1]} : vector<12x11xf32> to vector<11x11xf32>
    %163 = vector.extract_strided_slice %161 {offsets = [1, 0], sizes = [11, 11], strides = [1, 1]} : vector<12x11xf32> to vector<11x11xf32>
    %164 = tpu.concatenate %162, %163 in 1 : vector<11x11xf32>, vector<11x11xf32> -> vector<11x22xf32>
    %cst_62 = arith.constant dense<0.000000e+00> : vector<11x11xf32>
    %165 = tpu.matmul %164, %153, %cst_62 {dimension_numbers = #tpu.dot_dimension_numbers<[1], [0], [0], [1], [0, 0, 1, 1], [], []>} : vector<11x22xf32>, vector<22x11xf32>, vector<11x11xf32> -> vector<11x11xf32>
    %166 = vector.broadcast %157 : vector<1x11xf32> to vector<11x11xf32>
    %167 = arith.addf %165, %166 : vector<11x11xf32>
    %168 = math.tanh %167 : vector<11x11xf32>
    %cst_63 = arith.constant 0.000000e+00 : f32
    %169 = vector.broadcast %cst_63 : f32 to vector<11x4xf32>
    %170 = tpu.concatenate %169, %151, %169 in 1 : vector<11x4xf32>, vector<11x4xf32>, vector<11x4xf32> -> vector<11x12xf32>
    %171 = vector.extract_strided_slice %170 {offsets = [0, 0], sizes = [11, 11], strides = [1, 1]} : vector<11x12xf32> to vector<11x11xf32>
    %172 = vector.extract_strided_slice %170 {offsets = [0, 1], sizes = [11, 11], strides = [1, 1]} : vector<11x12xf32> to vector<11x11xf32>
    %173 = tpu.concatenate %171, %172 in 0 : vector<11x11xf32>, vector<11x11xf32> -> vector<22x11xf32>
    %cst_64 = arith.constant dense<0.000000e+00> : vector<11x11xf32>
    %174 = tpu.matmul %155, %173, %cst_64 {dimension_numbers = #tpu.dot_dimension_numbers<[1], [0], [0], [1], [0, 0, 1, 1], [], []>} : vector<11x22xf32>, vector<22x11xf32>, vector<11x11xf32> -> vector<11x11xf32>
    %175 = vector.broadcast %159 : vector<11x1xf32> to vector<11x11xf32>
    %176 = arith.addf %174, %175 : vector<11x11xf32>
    %177 = math.tanh %176 : vector<11x11xf32>
    %cst_65 = arith.constant dense<0xFF800000> : vector<11xf32>
    %178 = vector.multi_reduction <maximumf>, %168, %cst_65 [1] : vector<11x11xf32> to vector<11xf32>
    %179 = vector.shape_cast %178 : vector<11xf32> to vector<11x1xf32>
    %180 = vector.broadcast %179 : vector<11x1xf32> to vector<11x11xf32>
    %181 = arith.cmpf oge, %168, %180 : vector<11x11xf32>
    %cst_66 = arith.constant 0xFF800000 : f32
    %182 = vector.broadcast %cst_66 : f32 to vector<11x11xf32>
    %183 = arith.select %181, %182, %168 : vector<11x11xi1>, vector<11x11xf32>
    %cst_67 = arith.constant dense<0xFF800000> : vector<11xf32>
    %184 = vector.multi_reduction <maximumf>, %177, %cst_67 [0] : vector<11x11xf32> to vector<11xf32>
    %185 = vector.shape_cast %184 : vector<11xf32> to vector<1x11xf32>
    %186 = vector.broadcast %185 : vector<1x11xf32> to vector<11x11xf32>
    %187 = arith.cmpf oge, %177, %186 : vector<11x11xf32>
    %cst_68 = arith.constant 0xFF800000 : f32
    %188 = vector.broadcast %cst_68 : f32 to vector<11x11xf32>
    %189 = arith.select %187, %188, %177 : vector<11x11xi1>, vector<11x11xf32>
    %cst_69 = arith.constant dense<0xFF800000> : vector<11xf32>
    %190 = vector.multi_reduction <maximumf>, %183, %cst_69 [1] : vector<11x11xf32> to vector<11xf32>
    %191 = vector.shape_cast %190 : vector<11xf32> to vector<11x1xf32>
    %192 = vector.broadcast %191 : vector<11x1xf32> to vector<11x11xf32>
    %193 = arith.cmpf oge, %183, %192 : vector<11x11xf32>
    %cst_70 = arith.constant 0xFF800000 : f32
    %194 = vector.broadcast %cst_70 : f32 to vector<11x11xf32>
    %195 = arith.select %193, %194, %183 : vector<11x11xi1>, vector<11x11xf32>
    %cst_71 = arith.constant dense<0xFF800000> : vector<11xf32>
    %196 = vector.multi_reduction <maximumf>, %189, %cst_71 [0] : vector<11x11xf32> to vector<11xf32>
    %197 = vector.shape_cast %196 : vector<11xf32> to vector<1x11xf32>
    %198 = vector.broadcast %197 : vector<1x11xf32> to vector<11x11xf32>
    %199 = arith.cmpf oge, %189, %198 : vector<11x11xf32>
    %cst_72 = arith.constant 0xFF800000 : f32
    %200 = vector.broadcast %cst_72 : f32 to vector<11x11xf32>
    %201 = arith.select %199, %200, %189 : vector<11x11xi1>, vector<11x11xf32>
    %cst_73 = arith.constant dense<0xFF800000> : vector<11xf32>
    %202 = vector.multi_reduction <maximumf>, %195, %cst_73 [1] : vector<11x11xf32> to vector<11xf32>
    %203 = vector.shape_cast %202 : vector<11xf32> to vector<11x1xf32>
    %204 = vector.broadcast %203 : vector<11x1xf32> to vector<11x11xf32>
    %205 = arith.cmpf oge, %195, %204 : vector<11x11xf32>
    %cst_74 = arith.constant 0xFF800000 : f32
    %206 = vector.broadcast %cst_74 : f32 to vector<11x11xf32>
    %207 = arith.select %205, %206, %195 : vector<11x11xi1>, vector<11x11xf32>
    %cst_75 = arith.constant dense<0xFF800000> : vector<11xf32>
    %208 = vector.multi_reduction <maximumf>, %201, %cst_75 [0] : vector<11x11xf32> to vector<11xf32>
    %209 = vector.shape_cast %208 : vector<11xf32> to vector<1x11xf32>
    %210 = vector.broadcast %209 : vector<1x11xf32> to vector<11x11xf32>
    %211 = arith.cmpf oge, %201, %210 : vector<11x11xf32>
    %cst_76 = arith.constant 0xFF800000 : f32
    %212 = vector.broadcast %cst_76 : f32 to vector<11x11xf32>
    %213 = arith.select %211, %212, %201 : vector<11x11xi1>, vector<11x11xf32>
    %cst_77 = arith.constant dense<0xFF800000> : vector<11xf32>
    %214 = vector.multi_reduction <maximumf>, %207, %cst_77 [1] : vector<11x11xf32> to vector<11xf32>
    %215 = vector.shape_cast %214 : vector<11xf32> to vector<11x1xf32>
    %cst_78 = arith.constant dense<0xFF800000> : vector<11xf32>
    %216 = vector.multi_reduction <maximumf>, %213, %cst_78 [0] : vector<11x11xf32> to vector<11xf32>
    %217 = vector.shape_cast %216 : vector<11xf32> to vector<1x11xf32>
    %218 = vector.broadcast %215 : vector<11x1xf32> to vector<11x11xf32>
    %219 = arith.cmpf oge, %168, %218 : vector<11x11xf32>
    %220 = arith.extui %219 : vector<11x11xi1> to vector<11x11xi32>
    %221 = arith.sitofp %220 : vector<11x11xi32> to vector<11x11xf32>
    %222 = vector.broadcast %217 : vector<1x11xf32> to vector<11x11xf32>
    %223 = arith.cmpf oge, %177, %222 : vector<11x11xf32>
    %224 = arith.extui %223 : vector<11x11xi1> to vector<11x11xi32>
    %225 = arith.sitofp %224 : vector<11x11xi32> to vector<11x11xf32>
    %cst_79 = arith.constant dense<0.000000e+00> : vector<11x11xf32>
    %226 = tpu.matmul %221, %7, %cst_79 {dimension_numbers = #tpu.dot_dimension_numbers<[1], [0], [0], [1], [0, 0, 1, 1], [], []>} : vector<11x11xf32>, vector<11x11xf32>, vector<11x11xf32> -> vector<11x11xf32>
    %cst_80 = arith.constant dense<0.000000e+00> : vector<11x11xf32>
    %227 = tpu.matmul %4, %225, %cst_80 {dimension_numbers = #tpu.dot_dimension_numbers<[1], [0], [0], [1], [0, 0, 1, 1], [], []>} : vector<11x11xf32>, vector<11x11xf32>, vector<11x11xf32> -> vector<11x11xf32>
    %cst_81 = arith.constant 0.000000e+00 : f32
    %228 = vector.broadcast %cst_81 : f32 to vector<11x11xf32>
    %229 = arith.cmpf oeq, %227, %228 : vector<11x11xf32>
    %230 = arith.extui %229 : vector<11x11xi1> to vector<11x11xi32>
    %231 = arith.sitofp %230 : vector<11x11xi32> to vector<11x11xf32>
    %232 = arith.mulf %225, %231 : vector<11x11xf32>
    %cst_82 = arith.constant 0.000000e+00 : f32
    %233 = vector.broadcast %cst_82 : f32 to vector<11x11xf32>
    %234 = arith.cmpf oeq, %226, %233 : vector<11x11xf32>
    %235 = arith.extui %234 : vector<11x11xi1> to vector<11x11xi32>
    %236 = arith.sitofp %235 : vector<11x11xi32> to vector<11x11xf32>
    %237 = arith.mulf %221, %236 : vector<11x11xf32>
    %238 = arith.mulf %177, %232 : vector<11x11xf32>
    %cst_83 = arith.constant dense<0.000000e+00> : vector<11xf32>
    %239 = vector.multi_reduction <add>, %238, %cst_83 [0] : vector<11x11xf32> to vector<11xf32>
    %240 = vector.shape_cast %239 : vector<11xf32> to vector<1x11xf32>
    %241 = arith.mulf %168, %237 : vector<11x11xf32>
    %cst_84 = arith.constant dense<0.000000e+00> : vector<11xf32>
    %242 = vector.multi_reduction <add>, %241, %cst_84 [1] : vector<11x11xf32> to vector<11xf32>
    %243 = vector.shape_cast %242 : vector<11xf32> to vector<11x1xf32>
    %cst_85 = arith.constant 1.000000e+00 : f32
    %244 = vector.broadcast %cst_85 : f32 to vector<11x11xf32>
    %245 = arith.cmpf oeq, %227, %244 : vector<11x11xf32>
    %246 = arith.extui %245 : vector<11x11xi1> to vector<11x11xi32>
    %247 = arith.sitofp %246 : vector<11x11xi32> to vector<11x11xf32>
    %248 = arith.mulf %225, %247 : vector<11x11xf32>
    %cst_86 = arith.constant 1.000000e+00 : f32
    %249 = vector.broadcast %cst_86 : f32 to vector<11x11xf32>
    %250 = arith.cmpf oeq, %226, %249 : vector<11x11xf32>
    %251 = arith.extui %250 : vector<11x11xi1> to vector<11x11xi32>
    %252 = arith.sitofp %251 : vector<11x11xi32> to vector<11x11xf32>
    %253 = arith.mulf %221, %252 : vector<11x11xf32>
    %254 = arith.mulf %177, %248 : vector<11x11xf32>
    %cst_87 = arith.constant dense<0.000000e+00> : vector<11xf32>
    %255 = vector.multi_reduction <add>, %254, %cst_87 [0] : vector<11x11xf32> to vector<11xf32>
    %256 = vector.shape_cast %255 : vector<11xf32> to vector<1x11xf32>
    %257 = arith.mulf %168, %253 : vector<11x11xf32>
    %cst_88 = arith.constant dense<0.000000e+00> : vector<11xf32>
    %258 = vector.multi_reduction <add>, %257, %cst_88 [1] : vector<11x11xf32> to vector<11xf32>
    %259 = vector.shape_cast %258 : vector<11xf32> to vector<11x1xf32>
    %cst_89 = arith.constant 2.000000e+00 : f32
    %260 = vector.broadcast %cst_89 : f32 to vector<11x11xf32>
    %261 = arith.cmpf oeq, %227, %260 : vector<11x11xf32>
    %262 = arith.extui %261 : vector<11x11xi1> to vector<11x11xi32>
    %263 = arith.sitofp %262 : vector<11x11xi32> to vector<11x11xf32>
    %264 = arith.mulf %225, %263 : vector<11x11xf32>
    %cst_90 = arith.constant 2.000000e+00 : f32
    %265 = vector.broadcast %cst_90 : f32 to vector<11x11xf32>
    %266 = arith.cmpf oeq, %226, %265 : vector<11x11xf32>
    %267 = arith.extui %266 : vector<11x11xi1> to vector<11x11xi32>
    %268 = arith.sitofp %267 : vector<11x11xi32> to vector<11x11xf32>
    %269 = arith.mulf %221, %268 : vector<11x11xf32>
    %270 = arith.mulf %177, %264 : vector<11x11xf32>
    %cst_91 = arith.constant dense<0.000000e+00> : vector<11xf32>
    %271 = vector.multi_reduction <add>, %270, %cst_91 [0] : vector<11x11xf32> to vector<11xf32>
    %272 = vector.shape_cast %271 : vector<11xf32> to vector<1x11xf32>
    %273 = arith.mulf %168, %269 : vector<11x11xf32>
    %cst_92 = arith.constant dense<0.000000e+00> : vector<11xf32>
    %274 = vector.multi_reduction <add>, %273, %cst_92 [1] : vector<11x11xf32> to vector<11xf32>
    %275 = vector.shape_cast %274 : vector<11xf32> to vector<11x1xf32>
    %cst_93 = arith.constant 3.000000e+00 : f32
    %276 = vector.broadcast %cst_93 : f32 to vector<11x11xf32>
    %277 = arith.cmpf oeq, %227, %276 : vector<11x11xf32>
    %278 = arith.extui %277 : vector<11x11xi1> to vector<11x11xi32>
    %279 = arith.sitofp %278 : vector<11x11xi32> to vector<11x11xf32>
    %280 = arith.mulf %225, %279 : vector<11x11xf32>
    %cst_94 = arith.constant 3.000000e+00 : f32
    %281 = vector.broadcast %cst_94 : f32 to vector<11x11xf32>
    %282 = arith.cmpf oeq, %226, %281 : vector<11x11xf32>
    %283 = arith.extui %282 : vector<11x11xi1> to vector<11x11xi32>
    %284 = arith.sitofp %283 : vector<11x11xi32> to vector<11x11xf32>
    %285 = arith.mulf %221, %284 : vector<11x11xf32>
    %286 = arith.mulf %177, %280 : vector<11x11xf32>
    %cst_95 = arith.constant dense<0.000000e+00> : vector<11xf32>
    %287 = vector.multi_reduction <add>, %286, %cst_95 [0] : vector<11x11xf32> to vector<11xf32>
    %288 = vector.shape_cast %287 : vector<11xf32> to vector<1x11xf32>
    %289 = arith.mulf %168, %285 : vector<11x11xf32>
    %cst_96 = arith.constant dense<0.000000e+00> : vector<11xf32>
    %290 = vector.multi_reduction <add>, %289, %cst_96 [1] : vector<11x11xf32> to vector<11xf32>
    %291 = vector.shape_cast %290 : vector<11xf32> to vector<11x1xf32>
    %292 = tpu.concatenate %240, %256, %272, %288 in 0 : vector<1x11xf32>, vector<1x11xf32>, vector<1x11xf32>, vector<1x11xf32> -> vector<4x11xf32>
    %293 = tpu.concatenate %243, %259, %275, %291 in 1 : vector<11x1xf32>, vector<11x1xf32>, vector<11x1xf32>, vector<11x1xf32> -> vector<11x4xf32>
    %c2 = arith.constant 2 : index
    %c0_97 = arith.constant 0 : index
    %c0_98 = arith.constant 0 : index
    %294 = vector.load %arg3[%c2, %c0_97, %c0_98] : memref<3x11x22xf32, #tpu.memory_space<vmem>>, vector<1x11x22xf32>
    %295 = vector.shape_cast %294 : vector<1x11x22xf32> to vector<11x22xf32>
    %c2_99 = arith.constant 2 : index
    %c0_100 = arith.constant 0 : index
    %c0_101 = arith.constant 0 : index
    %296 = vector.load %arg5[%c2_99, %c0_100, %c0_101] : memref<3x11x1xf32, #tpu.memory_space<vmem>>, vector<1x11x1xf32>
    %297 = vector.shape_cast %296 : vector<1x11x1xf32> to vector<11x1xf32>
    %cst_102 = arith.constant 0.000000e+00 : f32
    %298 = vector.broadcast %cst_102 : f32 to vector<11x4xf32>
    %299 = tpu.concatenate %298, %293, %298 in 1 : vector<11x4xf32>, vector<11x4xf32>, vector<11x4xf32> -> vector<11x12xf32>
    %300 = vector.extract_strided_slice %299 {offsets = [0, 0], sizes = [11, 11], strides = [1, 1]} : vector<11x12xf32> to vector<11x11xf32>
    %301 = vector.extract_strided_slice %299 {offsets = [0, 1], sizes = [11, 11], strides = [1, 1]} : vector<11x12xf32> to vector<11x11xf32>
    %302 = tpu.concatenate %300, %301 in 0 : vector<11x11xf32>, vector<11x11xf32> -> vector<22x11xf32>
    %cst_103 = arith.constant dense<0.000000e+00> : vector<11x11xf32>
    %303 = tpu.matmul %295, %302, %cst_103 {dimension_numbers = #tpu.dot_dimension_numbers<[1], [0], [0], [1], [0, 0, 1, 1], [], []>} : vector<11x22xf32>, vector<22x11xf32>, vector<11x11xf32> -> vector<11x11xf32>
    %304 = vector.broadcast %297 : vector<11x1xf32> to vector<11x11xf32>
    %305 = arith.addf %303, %304 : vector<11x11xf32>
    %306 = math.tanh %305 : vector<11x11xf32>
    %cst_104 = arith.constant dense<0xFF800000> : vector<11xf32>
    %307 = vector.multi_reduction <maximumf>, %306, %cst_104 [0] : vector<11x11xf32> to vector<11xf32>
    %308 = vector.shape_cast %307 : vector<11xf32> to vector<1x11xf32>
    %309 = tpu.concatenate %8, %150, %292, %308 in 0 : vector<4x11xf32>, vector<4x11xf32>, vector<4x11xf32>, vector<1x11xf32> -> vector<13x11xf32>
    %c0_105 = arith.constant 0 : index
    %c0_106 = arith.constant 0 : index
    %310 = vector.load %arg6[%c0_105, %c0_106] : memref<11x11xf32, #tpu.memory_space<vmem>>, vector<11x11xf32>
    %cst_107 = arith.constant dense<0.000000e+00> : vector<13x11xf32>
    %311 = tpu.matmul %309, %310, %cst_107 {dimension_numbers = #tpu.dot_dimension_numbers<[1], [0], [0], [1], [0, 0, 1, 1], [], []>} : vector<13x11xf32>, vector<11x11xf32>, vector<13x11xf32> -> vector<13x11xf32>
    %c0_108 = arith.constant 0 : index
    %c0_109 = arith.constant 0 : index
    %312 = vector.load %arg7[%c0_108, %c0_109] : memref<13x11xf32, #tpu.memory_space<vmem>>, vector<13x11xf32>
    tpu.vector_store %arg7[%c0_108, %c0_109], %311 {strides = array<i32>} : memref<13x11xf32, #tpu.memory_space<vmem>>, vector<13x11xf32>,
    return
  }
}

module attributes {stable_mosaic.version = 11 : i64} {
  func.func @_doc_kernel(%arg0: i32, %arg1: memref<1x4x11xf32, #tpu.memory_space<vmem>>, %arg2: memref<1x11x4xf32, #tpu.memory_space<vmem>>, %arg3: memref<13x11xf32, #tpu.memory_space<vmem>>, %arg4: memref<3x22x11xf32, #tpu.memory_space<vmem>>, %arg5: memref<3x11x22xf32, #tpu.memory_space<vmem>>, %arg6: memref<3x1x11xf32, #tpu.memory_space<vmem>>, %arg7: memref<3x11x1xf32, #tpu.memory_space<vmem>>, %arg8: memref<1x1xf32, #tpu.memory_space<smem>>, %arg9: memref<18x4xf32, #tpu.memory_space<smem>>, %arg10: memref<18xf32, #tpu.memory_space<smem>>, %arg11: memref<8x1xf32, #tpu.memory_space<vmem>>, %arg12: memref<1x1xf32, #tpu.memory_space<smem>>, %arg13: memref<1x1x1xf32, #tpu.memory_space<vmem>>) attributes {dimension_semantics = [#tpu.dimension_semantics<parallel>], iteration_bounds = array<i64: 5>, scalar_prefetch = 0 : i64, scratch_operands = 0 : i64, tpu.core_type = #tpu.core_type<tc>, window_params = [{transform_indices = @transform_0, window_bounds = array<i64: 1, 4, 11>}, {transform_indices = @transform_1, window_bounds = array<i64: 1, 11, 4>}, {pipeline_mode = #tpu.pipeline_mode<synchronous>, transform_indices = @transform_2, window_bounds = array<i64: 13, 11>}, {pipeline_mode = #tpu.pipeline_mode<synchronous>, transform_indices = @transform_3, window_bounds = array<i64: 3, 22, 11>}, {pipeline_mode = #tpu.pipeline_mode<synchronous>, transform_indices = @transform_4, window_bounds = array<i64: 3, 11, 22>}, {pipeline_mode = #tpu.pipeline_mode<synchronous>, transform_indices = @transform_5, window_bounds = array<i64: 3, 1, 11>}, {pipeline_mode = #tpu.pipeline_mode<synchronous>, transform_indices = @transform_6, window_bounds = array<i64: 3, 11, 1>}, {transform_indices = @transform_7, window_bounds = array<i64: 1, 1>}, {transform_indices = @transform_8, window_bounds = array<i64: 18, 4>}, {transform_indices = @transform_9, window_bounds = array<i64: 18>}, {pipeline_mode = #tpu.pipeline_mode<synchronous>, transform_indices = @transform_10, window_bounds = array<i64: 8, 1>}, {transform_indices = @transform_11, window_bounds = array<i64: 1, 1>}, {transform_indices = @transform_12, window_bounds = array<i64: 1, 1, 1>}]} {
    %0 = tpu.iota {dimensions = array<i32: 0>} : vector<11x11xi32>
    %1 = tpu.iota {dimensions = array<i32: 1>} : vector<11x11xi32>
    %2 = arith.cmpi slt, %1, %0 : vector<11x11xi32>
    %3 = arith.extui %2 : vector<11x11xi1> to vector<11x11xi32>
    %4 = arith.sitofp %3 : vector<11x11xi32> to vector<11x11xf32>
    %5 = arith.cmpi slt, %0, %1 : vector<11x11xi32>
    %6 = arith.extui %5 : vector<11x11xi1> to vector<11x11xi32>
    %7 = arith.sitofp %6 : vector<11x11xi32> to vector<11x11xf32>
    %c0 = arith.constant 0 : index
    %c0_0 = arith.constant 0 : index
    %c0_1 = arith.constant 0 : index
    %8 = vector.load %arg1[%c0, %c0_0, %c0_1] : memref<1x4x11xf32, #tpu.memory_space<vmem>>, vector<1x4x11xf32>
    %9 = vector.shape_cast %8 : vector<1x4x11xf32> to vector<4x11xf32>
    %c0_2 = arith.constant 0 : index
    %c0_3 = arith.constant 0 : index
    %c0_4 = arith.constant 0 : index
    %10 = vector.load %arg2[%c0_2, %c0_3, %c0_4] : memref<1x11x4xf32, #tpu.memory_space<vmem>>, vector<1x11x4xf32>
    %11 = vector.shape_cast %10 : vector<1x11x4xf32> to vector<11x4xf32>
    %c0_5 = arith.constant 0 : index
    %c0_6 = arith.constant 0 : index
    %c0_7 = arith.constant 0 : index
    %12 = vector.load %arg4[%c0_5, %c0_6, %c0_7] : memref<3x22x11xf32, #tpu.memory_space<vmem>>, vector<1x22x11xf32>
    %13 = vector.shape_cast %12 : vector<1x22x11xf32> to vector<22x11xf32>
    %c0_8 = arith.constant 0 : index
    %c0_9 = arith.constant 0 : index
    %c0_10 = arith.constant 0 : index
    %14 = vector.load %arg5[%c0_8, %c0_9, %c0_10] : memref<3x11x22xf32, #tpu.memory_space<vmem>>, vector<1x11x22xf32>
    %15 = vector.shape_cast %14 : vector<1x11x22xf32> to vector<11x22xf32>
    %c0_11 = arith.constant 0 : index
    %c0_12 = arith.constant 0 : index
    %c0_13 = arith.constant 0 : index
    %16 = vector.load %arg6[%c0_11, %c0_12, %c0_13] : memref<3x1x11xf32, #tpu.memory_space<vmem>>, vector<1x1x11xf32>
    %17 = vector.shape_cast %16 : vector<1x1x11xf32> to vector<1x11xf32>
    %c0_14 = arith.constant 0 : index
    %c0_15 = arith.constant 0 : index
    %c0_16 = arith.constant 0 : index
    %18 = vector.load %arg7[%c0_14, %c0_15, %c0_16] : memref<3x11x1xf32, #tpu.memory_space<vmem>>, vector<1x11x1xf32>
    %19 = vector.shape_cast %18 : vector<1x11x1xf32> to vector<11x1xf32>
    %cst = arith.constant 0.000000e+00 : f32
    %20 = vector.broadcast %cst : f32 to vector<4x11xf32>
    %21 = tpu.concatenate %20, %9, %20 in 0 : vector<4x11xf32>, vector<4x11xf32>, vector<4x11xf32> -> vector<12x11xf32>
    %22 = vector.extract_strided_slice %21 {offsets = [0, 0], sizes = [11, 11], strides = [1, 1]} : vector<12x11xf32> to vector<11x11xf32>
    %23 = vector.extract_strided_slice %21 {offsets = [1, 0], sizes = [11, 11], strides = [1, 1]} : vector<12x11xf32> to vector<11x11xf32>
    %24 = tpu.concatenate %22, %23 in 1 : vector<11x11xf32>, vector<11x11xf32> -> vector<11x22xf32>
    %cst_17 = arith.constant dense<0.000000e+00> : vector<11x11xf32>
    %25 = tpu.matmul %24, %13, %cst_17 {dimension_numbers = #tpu.dot_dimension_numbers<[1], [0], [0], [1], [0, 0, 1, 1], [], []>} : vector<11x22xf32>, vector<22x11xf32>, vector<11x11xf32> -> vector<11x11xf32>
    %26 = vector.broadcast %17 : vector<1x11xf32> to vector<11x11xf32>
    %27 = arith.addf %25, %26 : vector<11x11xf32>
    %28 = math.tanh %27 : vector<11x11xf32>
    %cst_18 = arith.constant 0.000000e+00 : f32
    %29 = vector.broadcast %cst_18 : f32 to vector<11x4xf32>
    %30 = tpu.concatenate %29, %11, %29 in 1 : vector<11x4xf32>, vector<11x4xf32>, vector<11x4xf32> -> vector<11x12xf32>
    %31 = vector.extract_strided_slice %30 {offsets = [0, 0], sizes = [11, 11], strides = [1, 1]} : vector<11x12xf32> to vector<11x11xf32>
    %32 = vector.extract_strided_slice %30 {offsets = [0, 1], sizes = [11, 11], strides = [1, 1]} : vector<11x12xf32> to vector<11x11xf32>
    %33 = tpu.concatenate %31, %32 in 0 : vector<11x11xf32>, vector<11x11xf32> -> vector<22x11xf32>
    %cst_19 = arith.constant dense<0.000000e+00> : vector<11x11xf32>
    %34 = tpu.matmul %15, %33, %cst_19 {dimension_numbers = #tpu.dot_dimension_numbers<[1], [0], [0], [1], [0, 0, 1, 1], [], []>} : vector<11x22xf32>, vector<22x11xf32>, vector<11x11xf32> -> vector<11x11xf32>
    %35 = vector.broadcast %19 : vector<11x1xf32> to vector<11x11xf32>
    %36 = arith.addf %34, %35 : vector<11x11xf32>
    %37 = math.tanh %36 : vector<11x11xf32>
    %cst_20 = arith.constant dense<0xFF800000> : vector<11xf32>
    %38 = vector.multi_reduction <maximumf>, %28, %cst_20 [1] : vector<11x11xf32> to vector<11xf32>
    %39 = vector.shape_cast %38 : vector<11xf32> to vector<11x1xf32>
    %40 = vector.broadcast %39 : vector<11x1xf32> to vector<11x11xf32>
    %41 = arith.cmpf oge, %28, %40 : vector<11x11xf32>
    %cst_21 = arith.constant 0xFF800000 : f32
    %42 = vector.broadcast %cst_21 : f32 to vector<11x11xf32>
    %43 = arith.select %41, %42, %28 : vector<11x11xi1>, vector<11x11xf32>
    %cst_22 = arith.constant dense<0xFF800000> : vector<11xf32>
    %44 = vector.multi_reduction <maximumf>, %37, %cst_22 [0] : vector<11x11xf32> to vector<11xf32>
    %45 = vector.shape_cast %44 : vector<11xf32> to vector<1x11xf32>
    %46 = vector.broadcast %45 : vector<1x11xf32> to vector<11x11xf32>
    %47 = arith.cmpf oge, %37, %46 : vector<11x11xf32>
    %cst_23 = arith.constant 0xFF800000 : f32
    %48 = vector.broadcast %cst_23 : f32 to vector<11x11xf32>
    %49 = arith.select %47, %48, %37 : vector<11x11xi1>, vector<11x11xf32>
    %cst_24 = arith.constant dense<0xFF800000> : vector<11xf32>
    %50 = vector.multi_reduction <maximumf>, %43, %cst_24 [1] : vector<11x11xf32> to vector<11xf32>
    %51 = vector.shape_cast %50 : vector<11xf32> to vector<11x1xf32>
    %52 = vector.broadcast %51 : vector<11x1xf32> to vector<11x11xf32>
    %53 = arith.cmpf oge, %43, %52 : vector<11x11xf32>
    %cst_25 = arith.constant 0xFF800000 : f32
    %54 = vector.broadcast %cst_25 : f32 to vector<11x11xf32>
    %55 = arith.select %53, %54, %43 : vector<11x11xi1>, vector<11x11xf32>
    %cst_26 = arith.constant dense<0xFF800000> : vector<11xf32>
    %56 = vector.multi_reduction <maximumf>, %49, %cst_26 [0] : vector<11x11xf32> to vector<11xf32>
    %57 = vector.shape_cast %56 : vector<11xf32> to vector<1x11xf32>
    %58 = vector.broadcast %57 : vector<1x11xf32> to vector<11x11xf32>
    %59 = arith.cmpf oge, %49, %58 : vector<11x11xf32>
    %cst_27 = arith.constant 0xFF800000 : f32
    %60 = vector.broadcast %cst_27 : f32 to vector<11x11xf32>
    %61 = arith.select %59, %60, %49 : vector<11x11xi1>, vector<11x11xf32>
    %cst_28 = arith.constant dense<0xFF800000> : vector<11xf32>
    %62 = vector.multi_reduction <maximumf>, %55, %cst_28 [1] : vector<11x11xf32> to vector<11xf32>
    %63 = vector.shape_cast %62 : vector<11xf32> to vector<11x1xf32>
    %64 = vector.broadcast %63 : vector<11x1xf32> to vector<11x11xf32>
    %65 = arith.cmpf oge, %55, %64 : vector<11x11xf32>
    %cst_29 = arith.constant 0xFF800000 : f32
    %66 = vector.broadcast %cst_29 : f32 to vector<11x11xf32>
    %67 = arith.select %65, %66, %55 : vector<11x11xi1>, vector<11x11xf32>
    %cst_30 = arith.constant dense<0xFF800000> : vector<11xf32>
    %68 = vector.multi_reduction <maximumf>, %61, %cst_30 [0] : vector<11x11xf32> to vector<11xf32>
    %69 = vector.shape_cast %68 : vector<11xf32> to vector<1x11xf32>
    %70 = vector.broadcast %69 : vector<1x11xf32> to vector<11x11xf32>
    %71 = arith.cmpf oge, %61, %70 : vector<11x11xf32>
    %cst_31 = arith.constant 0xFF800000 : f32
    %72 = vector.broadcast %cst_31 : f32 to vector<11x11xf32>
    %73 = arith.select %71, %72, %61 : vector<11x11xi1>, vector<11x11xf32>
    %cst_32 = arith.constant dense<0xFF800000> : vector<11xf32>
    %74 = vector.multi_reduction <maximumf>, %67, %cst_32 [1] : vector<11x11xf32> to vector<11xf32>
    %75 = vector.shape_cast %74 : vector<11xf32> to vector<11x1xf32>
    %cst_33 = arith.constant dense<0xFF800000> : vector<11xf32>
    %76 = vector.multi_reduction <maximumf>, %73, %cst_33 [0] : vector<11x11xf32> to vector<11xf32>
    %77 = vector.shape_cast %76 : vector<11xf32> to vector<1x11xf32>
    %78 = vector.broadcast %75 : vector<11x1xf32> to vector<11x11xf32>
    %79 = arith.cmpf oge, %28, %78 : vector<11x11xf32>
    %80 = arith.extui %79 : vector<11x11xi1> to vector<11x11xi32>
    %81 = arith.sitofp %80 : vector<11x11xi32> to vector<11x11xf32>
    %82 = vector.broadcast %77 : vector<1x11xf32> to vector<11x11xf32>
    %83 = arith.cmpf oge, %37, %82 : vector<11x11xf32>
    %84 = arith.extui %83 : vector<11x11xi1> to vector<11x11xi32>
    %85 = arith.sitofp %84 : vector<11x11xi32> to vector<11x11xf32>
    %cst_34 = arith.constant dense<0.000000e+00> : vector<11x11xf32>
    %86 = tpu.matmul %81, %7, %cst_34 {dimension_numbers = #tpu.dot_dimension_numbers<[1], [0], [0], [1], [0, 0, 1, 1], [], []>} : vector<11x11xf32>, vector<11x11xf32>, vector<11x11xf32> -> vector<11x11xf32>
    %cst_35 = arith.constant dense<0.000000e+00> : vector<11x11xf32>
    %87 = tpu.matmul %4, %85, %cst_35 {dimension_numbers = #tpu.dot_dimension_numbers<[1], [0], [0], [1], [0, 0, 1, 1], [], []>} : vector<11x11xf32>, vector<11x11xf32>, vector<11x11xf32> -> vector<11x11xf32>
    %cst_36 = arith.constant 0.000000e+00 : f32
    %88 = vector.broadcast %cst_36 : f32 to vector<11x11xf32>
    %89 = arith.cmpf oeq, %87, %88 : vector<11x11xf32>
    %90 = arith.extui %89 : vector<11x11xi1> to vector<11x11xi32>
    %91 = arith.sitofp %90 : vector<11x11xi32> to vector<11x11xf32>
    %92 = arith.mulf %85, %91 : vector<11x11xf32>
    %cst_37 = arith.constant 0.000000e+00 : f32
    %93 = vector.broadcast %cst_37 : f32 to vector<11x11xf32>
    %94 = arith.cmpf oeq, %86, %93 : vector<11x11xf32>
    %95 = arith.extui %94 : vector<11x11xi1> to vector<11x11xi32>
    %96 = arith.sitofp %95 : vector<11x11xi32> to vector<11x11xf32>
    %97 = arith.mulf %81, %96 : vector<11x11xf32>
    %98 = arith.mulf %37, %92 : vector<11x11xf32>
    %cst_38 = arith.constant dense<0.000000e+00> : vector<11xf32>
    %99 = vector.multi_reduction <add>, %98, %cst_38 [0] : vector<11x11xf32> to vector<11xf32>
    %100 = vector.shape_cast %99 : vector<11xf32> to vector<1x11xf32>
    %101 = arith.mulf %28, %97 : vector<11x11xf32>
    %cst_39 = arith.constant dense<0.000000e+00> : vector<11xf32>
    %102 = vector.multi_reduction <add>, %101, %cst_39 [1] : vector<11x11xf32> to vector<11xf32>
    %103 = vector.shape_cast %102 : vector<11xf32> to vector<11x1xf32>
    %cst_40 = arith.constant 1.000000e+00 : f32
    %104 = vector.broadcast %cst_40 : f32 to vector<11x11xf32>
    %105 = arith.cmpf oeq, %87, %104 : vector<11x11xf32>
    %106 = arith.extui %105 : vector<11x11xi1> to vector<11x11xi32>
    %107 = arith.sitofp %106 : vector<11x11xi32> to vector<11x11xf32>
    %108 = arith.mulf %85, %107 : vector<11x11xf32>
    %cst_41 = arith.constant 1.000000e+00 : f32
    %109 = vector.broadcast %cst_41 : f32 to vector<11x11xf32>
    %110 = arith.cmpf oeq, %86, %109 : vector<11x11xf32>
    %111 = arith.extui %110 : vector<11x11xi1> to vector<11x11xi32>
    %112 = arith.sitofp %111 : vector<11x11xi32> to vector<11x11xf32>
    %113 = arith.mulf %81, %112 : vector<11x11xf32>
    %114 = arith.mulf %37, %108 : vector<11x11xf32>
    %cst_42 = arith.constant dense<0.000000e+00> : vector<11xf32>
    %115 = vector.multi_reduction <add>, %114, %cst_42 [0] : vector<11x11xf32> to vector<11xf32>
    %116 = vector.shape_cast %115 : vector<11xf32> to vector<1x11xf32>
    %117 = arith.mulf %28, %113 : vector<11x11xf32>
    %cst_43 = arith.constant dense<0.000000e+00> : vector<11xf32>
    %118 = vector.multi_reduction <add>, %117, %cst_43 [1] : vector<11x11xf32> to vector<11xf32>
    %119 = vector.shape_cast %118 : vector<11xf32> to vector<11x1xf32>
    %cst_44 = arith.constant 2.000000e+00 : f32
    %120 = vector.broadcast %cst_44 : f32 to vector<11x11xf32>
    %121 = arith.cmpf oeq, %87, %120 : vector<11x11xf32>
    %122 = arith.extui %121 : vector<11x11xi1> to vector<11x11xi32>
    %123 = arith.sitofp %122 : vector<11x11xi32> to vector<11x11xf32>
    %124 = arith.mulf %85, %123 : vector<11x11xf32>
    %cst_45 = arith.constant 2.000000e+00 : f32
    %125 = vector.broadcast %cst_45 : f32 to vector<11x11xf32>
    %126 = arith.cmpf oeq, %86, %125 : vector<11x11xf32>
    %127 = arith.extui %126 : vector<11x11xi1> to vector<11x11xi32>
    %128 = arith.sitofp %127 : vector<11x11xi32> to vector<11x11xf32>
    %129 = arith.mulf %81, %128 : vector<11x11xf32>
    %130 = arith.mulf %37, %124 : vector<11x11xf32>
    %cst_46 = arith.constant dense<0.000000e+00> : vector<11xf32>
    %131 = vector.multi_reduction <add>, %130, %cst_46 [0] : vector<11x11xf32> to vector<11xf32>
    %132 = vector.shape_cast %131 : vector<11xf32> to vector<1x11xf32>
    %133 = arith.mulf %28, %129 : vector<11x11xf32>
    %cst_47 = arith.constant dense<0.000000e+00> : vector<11xf32>
    %134 = vector.multi_reduction <add>, %133, %cst_47 [1] : vector<11x11xf32> to vector<11xf32>
    %135 = vector.shape_cast %134 : vector<11xf32> to vector<11x1xf32>
    %cst_48 = arith.constant 3.000000e+00 : f32
    %136 = vector.broadcast %cst_48 : f32 to vector<11x11xf32>
    %137 = arith.cmpf oeq, %87, %136 : vector<11x11xf32>
    %138 = arith.extui %137 : vector<11x11xi1> to vector<11x11xi32>
    %139 = arith.sitofp %138 : vector<11x11xi32> to vector<11x11xf32>
    %140 = arith.mulf %85, %139 : vector<11x11xf32>
    %cst_49 = arith.constant 3.000000e+00 : f32
    %141 = vector.broadcast %cst_49 : f32 to vector<11x11xf32>
    %142 = arith.cmpf oeq, %86, %141 : vector<11x11xf32>
    %143 = arith.extui %142 : vector<11x11xi1> to vector<11x11xi32>
    %144 = arith.sitofp %143 : vector<11x11xi32> to vector<11x11xf32>
    %145 = arith.mulf %81, %144 : vector<11x11xf32>
    %146 = arith.mulf %37, %140 : vector<11x11xf32>
    %cst_50 = arith.constant dense<0.000000e+00> : vector<11xf32>
    %147 = vector.multi_reduction <add>, %146, %cst_50 [0] : vector<11x11xf32> to vector<11xf32>
    %148 = vector.shape_cast %147 : vector<11xf32> to vector<1x11xf32>
    %149 = arith.mulf %28, %145 : vector<11x11xf32>
    %cst_51 = arith.constant dense<0.000000e+00> : vector<11xf32>
    %150 = vector.multi_reduction <add>, %149, %cst_51 [1] : vector<11x11xf32> to vector<11xf32>
    %151 = vector.shape_cast %150 : vector<11xf32> to vector<11x1xf32>
    %152 = tpu.concatenate %100, %116, %132, %148 in 0 : vector<1x11xf32>, vector<1x11xf32>, vector<1x11xf32>, vector<1x11xf32> -> vector<4x11xf32>
    %153 = tpu.concatenate %103, %119, %135, %151 in 1 : vector<11x1xf32>, vector<11x1xf32>, vector<11x1xf32>, vector<11x1xf32> -> vector<11x4xf32>
    %c1 = arith.constant 1 : index
    %c0_52 = arith.constant 0 : index
    %c0_53 = arith.constant 0 : index
    %154 = vector.load %arg4[%c1, %c0_52, %c0_53] : memref<3x22x11xf32, #tpu.memory_space<vmem>>, vector<1x22x11xf32>
    %155 = vector.shape_cast %154 : vector<1x22x11xf32> to vector<22x11xf32>
    %c1_54 = arith.constant 1 : index
    %c0_55 = arith.constant 0 : index
    %c0_56 = arith.constant 0 : index
    %156 = vector.load %arg5[%c1_54, %c0_55, %c0_56] : memref<3x11x22xf32, #tpu.memory_space<vmem>>, vector<1x11x22xf32>
    %157 = vector.shape_cast %156 : vector<1x11x22xf32> to vector<11x22xf32>
    %c1_57 = arith.constant 1 : index
    %c0_58 = arith.constant 0 : index
    %c0_59 = arith.constant 0 : index
    %158 = vector.load %arg6[%c1_57, %c0_58, %c0_59] : memref<3x1x11xf32, #tpu.memory_space<vmem>>, vector<1x1x11xf32>
    %159 = vector.shape_cast %158 : vector<1x1x11xf32> to vector<1x11xf32>
    %c1_60 = arith.constant 1 : index
    %c0_61 = arith.constant 0 : index
    %c0_62 = arith.constant 0 : index
    %160 = vector.load %arg7[%c1_60, %c0_61, %c0_62] : memref<3x11x1xf32, #tpu.memory_space<vmem>>, vector<1x11x1xf32>
    %161 = vector.shape_cast %160 : vector<1x11x1xf32> to vector<11x1xf32>
    %cst_63 = arith.constant 0.000000e+00 : f32
    %162 = vector.broadcast %cst_63 : f32 to vector<4x11xf32>
    %163 = tpu.concatenate %162, %152, %162 in 0 : vector<4x11xf32>, vector<4x11xf32>, vector<4x11xf32> -> vector<12x11xf32>
    %164 = vector.extract_strided_slice %163 {offsets = [0, 0], sizes = [11, 11], strides = [1, 1]} : vector<12x11xf32> to vector<11x11xf32>
    %165 = vector.extract_strided_slice %163 {offsets = [1, 0], sizes = [11, 11], strides = [1, 1]} : vector<12x11xf32> to vector<11x11xf32>
    %166 = tpu.concatenate %164, %165 in 1 : vector<11x11xf32>, vector<11x11xf32> -> vector<11x22xf32>
    %cst_64 = arith.constant dense<0.000000e+00> : vector<11x11xf32>
    %167 = tpu.matmul %166, %155, %cst_64 {dimension_numbers = #tpu.dot_dimension_numbers<[1], [0], [0], [1], [0, 0, 1, 1], [], []>} : vector<11x22xf32>, vector<22x11xf32>, vector<11x11xf32> -> vector<11x11xf32>
    %168 = vector.broadcast %159 : vector<1x11xf32> to vector<11x11xf32>
    %169 = arith.addf %167, %168 : vector<11x11xf32>
    %170 = math.tanh %169 : vector<11x11xf32>
    %cst_65 = arith.constant 0.000000e+00 : f32
    %171 = vector.broadcast %cst_65 : f32 to vector<11x4xf32>
    %172 = tpu.concatenate %171, %153, %171 in 1 : vector<11x4xf32>, vector<11x4xf32>, vector<11x4xf32> -> vector<11x12xf32>
    %173 = vector.extract_strided_slice %172 {offsets = [0, 0], sizes = [11, 11], strides = [1, 1]} : vector<11x12xf32> to vector<11x11xf32>
    %174 = vector.extract_strided_slice %172 {offsets = [0, 1], sizes = [11, 11], strides = [1, 1]} : vector<11x12xf32> to vector<11x11xf32>
    %175 = tpu.concatenate %173, %174 in 0 : vector<11x11xf32>, vector<11x11xf32> -> vector<22x11xf32>
    %cst_66 = arith.constant dense<0.000000e+00> : vector<11x11xf32>
    %176 = tpu.matmul %157, %175, %cst_66 {dimension_numbers = #tpu.dot_dimension_numbers<[1], [0], [0], [1], [0, 0, 1, 1], [], []>} : vector<11x22xf32>, vector<22x11xf32>, vector<11x11xf32> -> vector<11x11xf32>
    %177 = vector.broadcast %161 : vector<11x1xf32> to vector<11x11xf32>
    %178 = arith.addf %176, %177 : vector<11x11xf32>
    %179 = math.tanh %178 : vector<11x11xf32>
    %cst_67 = arith.constant dense<0xFF800000> : vector<11xf32>
    %180 = vector.multi_reduction <maximumf>, %170, %cst_67 [1] : vector<11x11xf32> to vector<11xf32>
    %181 = vector.shape_cast %180 : vector<11xf32> to vector<11x1xf32>
    %182 = vector.broadcast %181 : vector<11x1xf32> to vector<11x11xf32>
    %183 = arith.cmpf oge, %170, %182 : vector<11x11xf32>
    %cst_68 = arith.constant 0xFF800000 : f32
    %184 = vector.broadcast %cst_68 : f32 to vector<11x11xf32>
    %185 = arith.select %183, %184, %170 : vector<11x11xi1>, vector<11x11xf32>
    %cst_69 = arith.constant dense<0xFF800000> : vector<11xf32>
    %186 = vector.multi_reduction <maximumf>, %179, %cst_69 [0] : vector<11x11xf32> to vector<11xf32>
    %187 = vector.shape_cast %186 : vector<11xf32> to vector<1x11xf32>
    %188 = vector.broadcast %187 : vector<1x11xf32> to vector<11x11xf32>
    %189 = arith.cmpf oge, %179, %188 : vector<11x11xf32>
    %cst_70 = arith.constant 0xFF800000 : f32
    %190 = vector.broadcast %cst_70 : f32 to vector<11x11xf32>
    %191 = arith.select %189, %190, %179 : vector<11x11xi1>, vector<11x11xf32>
    %cst_71 = arith.constant dense<0xFF800000> : vector<11xf32>
    %192 = vector.multi_reduction <maximumf>, %185, %cst_71 [1] : vector<11x11xf32> to vector<11xf32>
    %193 = vector.shape_cast %192 : vector<11xf32> to vector<11x1xf32>
    %194 = vector.broadcast %193 : vector<11x1xf32> to vector<11x11xf32>
    %195 = arith.cmpf oge, %185, %194 : vector<11x11xf32>
    %cst_72 = arith.constant 0xFF800000 : f32
    %196 = vector.broadcast %cst_72 : f32 to vector<11x11xf32>
    %197 = arith.select %195, %196, %185 : vector<11x11xi1>, vector<11x11xf32>
    %cst_73 = arith.constant dense<0xFF800000> : vector<11xf32>
    %198 = vector.multi_reduction <maximumf>, %191, %cst_73 [0] : vector<11x11xf32> to vector<11xf32>
    %199 = vector.shape_cast %198 : vector<11xf32> to vector<1x11xf32>
    %200 = vector.broadcast %199 : vector<1x11xf32> to vector<11x11xf32>
    %201 = arith.cmpf oge, %191, %200 : vector<11x11xf32>
    %cst_74 = arith.constant 0xFF800000 : f32
    %202 = vector.broadcast %cst_74 : f32 to vector<11x11xf32>
    %203 = arith.select %201, %202, %191 : vector<11x11xi1>, vector<11x11xf32>
    %cst_75 = arith.constant dense<0xFF800000> : vector<11xf32>
    %204 = vector.multi_reduction <maximumf>, %197, %cst_75 [1] : vector<11x11xf32> to vector<11xf32>
    %205 = vector.shape_cast %204 : vector<11xf32> to vector<11x1xf32>
    %206 = vector.broadcast %205 : vector<11x1xf32> to vector<11x11xf32>
    %207 = arith.cmpf oge, %197, %206 : vector<11x11xf32>
    %cst_76 = arith.constant 0xFF800000 : f32
    %208 = vector.broadcast %cst_76 : f32 to vector<11x11xf32>
    %209 = arith.select %207, %208, %197 : vector<11x11xi1>, vector<11x11xf32>
    %cst_77 = arith.constant dense<0xFF800000> : vector<11xf32>
    %210 = vector.multi_reduction <maximumf>, %203, %cst_77 [0] : vector<11x11xf32> to vector<11xf32>
    %211 = vector.shape_cast %210 : vector<11xf32> to vector<1x11xf32>
    %212 = vector.broadcast %211 : vector<1x11xf32> to vector<11x11xf32>
    %213 = arith.cmpf oge, %203, %212 : vector<11x11xf32>
    %cst_78 = arith.constant 0xFF800000 : f32
    %214 = vector.broadcast %cst_78 : f32 to vector<11x11xf32>
    %215 = arith.select %213, %214, %203 : vector<11x11xi1>, vector<11x11xf32>
    %cst_79 = arith.constant dense<0xFF800000> : vector<11xf32>
    %216 = vector.multi_reduction <maximumf>, %209, %cst_79 [1] : vector<11x11xf32> to vector<11xf32>
    %217 = vector.shape_cast %216 : vector<11xf32> to vector<11x1xf32>
    %cst_80 = arith.constant dense<0xFF800000> : vector<11xf32>
    %218 = vector.multi_reduction <maximumf>, %215, %cst_80 [0] : vector<11x11xf32> to vector<11xf32>
    %219 = vector.shape_cast %218 : vector<11xf32> to vector<1x11xf32>
    %220 = vector.broadcast %217 : vector<11x1xf32> to vector<11x11xf32>
    %221 = arith.cmpf oge, %170, %220 : vector<11x11xf32>
    %222 = arith.extui %221 : vector<11x11xi1> to vector<11x11xi32>
    %223 = arith.sitofp %222 : vector<11x11xi32> to vector<11x11xf32>
    %224 = vector.broadcast %219 : vector<1x11xf32> to vector<11x11xf32>
    %225 = arith.cmpf oge, %179, %224 : vector<11x11xf32>
    %226 = arith.extui %225 : vector<11x11xi1> to vector<11x11xi32>
    %227 = arith.sitofp %226 : vector<11x11xi32> to vector<11x11xf32>
    %cst_81 = arith.constant dense<0.000000e+00> : vector<11x11xf32>
    %228 = tpu.matmul %223, %7, %cst_81 {dimension_numbers = #tpu.dot_dimension_numbers<[1], [0], [0], [1], [0, 0, 1, 1], [], []>} : vector<11x11xf32>, vector<11x11xf32>, vector<11x11xf32> -> vector<11x11xf32>
    %cst_82 = arith.constant dense<0.000000e+00> : vector<11x11xf32>
    %229 = tpu.matmul %4, %227, %cst_82 {dimension_numbers = #tpu.dot_dimension_numbers<[1], [0], [0], [1], [0, 0, 1, 1], [], []>} : vector<11x11xf32>, vector<11x11xf32>, vector<11x11xf32> -> vector<11x11xf32>
    %cst_83 = arith.constant 0.000000e+00 : f32
    %230 = vector.broadcast %cst_83 : f32 to vector<11x11xf32>
    %231 = arith.cmpf oeq, %229, %230 : vector<11x11xf32>
    %232 = arith.extui %231 : vector<11x11xi1> to vector<11x11xi32>
    %233 = arith.sitofp %232 : vector<11x11xi32> to vector<11x11xf32>
    %234 = arith.mulf %227, %233 : vector<11x11xf32>
    %cst_84 = arith.constant 0.000000e+00 : f32
    %235 = vector.broadcast %cst_84 : f32 to vector<11x11xf32>
    %236 = arith.cmpf oeq, %228, %235 : vector<11x11xf32>
    %237 = arith.extui %236 : vector<11x11xi1> to vector<11x11xi32>
    %238 = arith.sitofp %237 : vector<11x11xi32> to vector<11x11xf32>
    %239 = arith.mulf %223, %238 : vector<11x11xf32>
    %240 = arith.mulf %179, %234 : vector<11x11xf32>
    %cst_85 = arith.constant dense<0.000000e+00> : vector<11xf32>
    %241 = vector.multi_reduction <add>, %240, %cst_85 [0] : vector<11x11xf32> to vector<11xf32>
    %242 = vector.shape_cast %241 : vector<11xf32> to vector<1x11xf32>
    %243 = arith.mulf %170, %239 : vector<11x11xf32>
    %cst_86 = arith.constant dense<0.000000e+00> : vector<11xf32>
    %244 = vector.multi_reduction <add>, %243, %cst_86 [1] : vector<11x11xf32> to vector<11xf32>
    %245 = vector.shape_cast %244 : vector<11xf32> to vector<11x1xf32>
    %cst_87 = arith.constant 1.000000e+00 : f32
    %246 = vector.broadcast %cst_87 : f32 to vector<11x11xf32>
    %247 = arith.cmpf oeq, %229, %246 : vector<11x11xf32>
    %248 = arith.extui %247 : vector<11x11xi1> to vector<11x11xi32>
    %249 = arith.sitofp %248 : vector<11x11xi32> to vector<11x11xf32>
    %250 = arith.mulf %227, %249 : vector<11x11xf32>
    %cst_88 = arith.constant 1.000000e+00 : f32
    %251 = vector.broadcast %cst_88 : f32 to vector<11x11xf32>
    %252 = arith.cmpf oeq, %228, %251 : vector<11x11xf32>
    %253 = arith.extui %252 : vector<11x11xi1> to vector<11x11xi32>
    %254 = arith.sitofp %253 : vector<11x11xi32> to vector<11x11xf32>
    %255 = arith.mulf %223, %254 : vector<11x11xf32>
    %256 = arith.mulf %179, %250 : vector<11x11xf32>
    %cst_89 = arith.constant dense<0.000000e+00> : vector<11xf32>
    %257 = vector.multi_reduction <add>, %256, %cst_89 [0] : vector<11x11xf32> to vector<11xf32>
    %258 = vector.shape_cast %257 : vector<11xf32> to vector<1x11xf32>
    %259 = arith.mulf %170, %255 : vector<11x11xf32>
    %cst_90 = arith.constant dense<0.000000e+00> : vector<11xf32>
    %260 = vector.multi_reduction <add>, %259, %cst_90 [1] : vector<11x11xf32> to vector<11xf32>
    %261 = vector.shape_cast %260 : vector<11xf32> to vector<11x1xf32>
    %cst_91 = arith.constant 2.000000e+00 : f32
    %262 = vector.broadcast %cst_91 : f32 to vector<11x11xf32>
    %263 = arith.cmpf oeq, %229, %262 : vector<11x11xf32>
    %264 = arith.extui %263 : vector<11x11xi1> to vector<11x11xi32>
    %265 = arith.sitofp %264 : vector<11x11xi32> to vector<11x11xf32>
    %266 = arith.mulf %227, %265 : vector<11x11xf32>
    %cst_92 = arith.constant 2.000000e+00 : f32
    %267 = vector.broadcast %cst_92 : f32 to vector<11x11xf32>
    %268 = arith.cmpf oeq, %228, %267 : vector<11x11xf32>
    %269 = arith.extui %268 : vector<11x11xi1> to vector<11x11xi32>
    %270 = arith.sitofp %269 : vector<11x11xi32> to vector<11x11xf32>
    %271 = arith.mulf %223, %270 : vector<11x11xf32>
    %272 = arith.mulf %179, %266 : vector<11x11xf32>
    %cst_93 = arith.constant dense<0.000000e+00> : vector<11xf32>
    %273 = vector.multi_reduction <add>, %272, %cst_93 [0] : vector<11x11xf32> to vector<11xf32>
    %274 = vector.shape_cast %273 : vector<11xf32> to vector<1x11xf32>
    %275 = arith.mulf %170, %271 : vector<11x11xf32>
    %cst_94 = arith.constant dense<0.000000e+00> : vector<11xf32>
    %276 = vector.multi_reduction <add>, %275, %cst_94 [1] : vector<11x11xf32> to vector<11xf32>
    %277 = vector.shape_cast %276 : vector<11xf32> to vector<11x1xf32>
    %cst_95 = arith.constant 3.000000e+00 : f32
    %278 = vector.broadcast %cst_95 : f32 to vector<11x11xf32>
    %279 = arith.cmpf oeq, %229, %278 : vector<11x11xf32>
    %280 = arith.extui %279 : vector<11x11xi1> to vector<11x11xi32>
    %281 = arith.sitofp %280 : vector<11x11xi32> to vector<11x11xf32>
    %282 = arith.mulf %227, %281 : vector<11x11xf32>
    %cst_96 = arith.constant 3.000000e+00 : f32
    %283 = vector.broadcast %cst_96 : f32 to vector<11x11xf32>
    %284 = arith.cmpf oeq, %228, %283 : vector<11x11xf32>
    %285 = arith.extui %284 : vector<11x11xi1> to vector<11x11xi32>
    %286 = arith.sitofp %285 : vector<11x11xi32> to vector<11x11xf32>
    %287 = arith.mulf %223, %286 : vector<11x11xf32>
    %288 = arith.mulf %179, %282 : vector<11x11xf32>
    %cst_97 = arith.constant dense<0.000000e+00> : vector<11xf32>
    %289 = vector.multi_reduction <add>, %288, %cst_97 [0] : vector<11x11xf32> to vector<11xf32>
    %290 = vector.shape_cast %289 : vector<11xf32> to vector<1x11xf32>
    %291 = arith.mulf %170, %287 : vector<11x11xf32>
    %cst_98 = arith.constant dense<0.000000e+00> : vector<11xf32>
    %292 = vector.multi_reduction <add>, %291, %cst_98 [1] : vector<11x11xf32> to vector<11xf32>
    %293 = vector.shape_cast %292 : vector<11xf32> to vector<11x1xf32>
    %294 = tpu.concatenate %242, %258, %274, %290 in 0 : vector<1x11xf32>, vector<1x11xf32>, vector<1x11xf32>, vector<1x11xf32> -> vector<4x11xf32>
    %295 = tpu.concatenate %245, %261, %277, %293 in 1 : vector<11x1xf32>, vector<11x1xf32>, vector<11x1xf32>, vector<11x1xf32> -> vector<11x4xf32>
    %c2 = arith.constant 2 : index
    %c0_99 = arith.constant 0 : index
    %c0_100 = arith.constant 0 : index
    %296 = vector.load %arg4[%c2, %c0_99, %c0_100] : memref<3x22x11xf32, #tpu.memory_space<vmem>>, vector<1x22x11xf32>
    %297 = vector.shape_cast %296 : vector<1x22x11xf32> to vector<22x11xf32>
    %c2_101 = arith.constant 2 : index
    %c0_102 = arith.constant 0 : index
    %c0_103 = arith.constant 0 : index
    %298 = vector.load %arg6[%c2_101, %c0_102, %c0_103] : memref<3x1x11xf32, #tpu.memory_space<vmem>>, vector<1x1x11xf32>
    %299 = vector.shape_cast %298 : vector<1x1x11xf32> to vector<1x11xf32>
    %cst_104 = arith.constant 0.000000e+00 : f32
    %300 = vector.broadcast %cst_104 : f32 to vector<4x11xf32>
    %301 = tpu.concatenate %300, %294, %300 in 0 : vector<4x11xf32>, vector<4x11xf32>, vector<4x11xf32> -> vector<12x11xf32>
    %302 = vector.extract_strided_slice %301 {offsets = [0, 0], sizes = [11, 11], strides = [1, 1]} : vector<12x11xf32> to vector<11x11xf32>
    %303 = vector.extract_strided_slice %301 {offsets = [1, 0], sizes = [11, 11], strides = [1, 1]} : vector<12x11xf32> to vector<11x11xf32>
    %304 = tpu.concatenate %302, %303 in 1 : vector<11x11xf32>, vector<11x11xf32> -> vector<11x22xf32>
    %cst_105 = arith.constant dense<0.000000e+00> : vector<11x11xf32>
    %305 = tpu.matmul %304, %297, %cst_105 {dimension_numbers = #tpu.dot_dimension_numbers<[1], [0], [0], [1], [0, 0, 1, 1], [], []>} : vector<11x22xf32>, vector<22x11xf32>, vector<11x11xf32> -> vector<11x11xf32>
    %306 = vector.broadcast %299 : vector<1x11xf32> to vector<11x11xf32>
    %307 = arith.addf %305, %306 : vector<11x11xf32>
    %308 = math.tanh %307 : vector<11x11xf32>
    %cst_106 = arith.constant dense<0xFF800000> : vector<11xf32>
    %309 = vector.multi_reduction <maximumf>, %308, %cst_106 [1] : vector<11x11xf32> to vector<11xf32>
    %310 = vector.shape_cast %309 : vector<11xf32> to vector<11x1xf32>
    %311 = tpu.concatenate %11, %153, %295, %310 in 1 : vector<11x4xf32>, vector<11x4xf32>, vector<11x4xf32>, vector<11x1xf32> -> vector<11x13xf32>
    %c0_107 = arith.constant 0 : index
    %c0_108 = arith.constant 0 : index
    %312 = vector.load %arg3[%c0_107, %c0_108] : memref<13x11xf32, #tpu.memory_space<vmem>>, vector<13x11xf32>
    %cst_109 = arith.constant dense<0.000000e+00> : vector<13x13xf32>
    %313 = tpu.matmul %312, %311, %cst_109 {dimension_numbers = #tpu.dot_dimension_numbers<[1], [0], [0], [1], [0, 0, 1, 1], [], []>} : vector<13x11xf32>, vector<11x13xf32>, vector<13x13xf32> -> vector<13x13xf32>
    %c0_110 = arith.constant 0 : index
    %c0_111 = arith.constant 0 : index
    %314 = memref.load %arg8[%c0_110, %c0_111] : memref<1x1xf32, #tpu.memory_space<smem>>
    %315 = vector.broadcast %314 : f32 to vector<13x13xf32>
    %316 = arith.addf %313, %315 : vector<13x13xf32>
    %317 = arith.negf %316 : vector<13x13xf32>
    %318 = math.exp %317 : vector<13x13xf32>
    %cst_112 = arith.constant 1.000000e+00 : f32
    %319 = vector.broadcast %cst_112 : f32 to vector<13x13xf32>
    %320 = arith.addf %319, %318 : vector<13x13xf32>
    %321 = arith.divf %319, %320 : vector<13x13xf32>
    %322 = vector.extract_strided_slice %321 {offsets = [0, 0], sizes = [2, 13], strides = [1, 1]} : vector<13x13xf32> to vector<2x13xf32>
    %cst_113 = arith.constant dense<0xFF800000> : vector<13xf32>
    %323 = vector.multi_reduction <maximumf>, %322, %cst_113 [0] : vector<2x13xf32> to vector<13xf32>
    %324 = vector.shape_cast %323 : vector<13xf32> to vector<1x13xf32>
    %325 = vector.extract_strided_slice %321 {offsets = [1, 0], sizes = [3, 13], strides = [1, 1]} : vector<13x13xf32> to vector<3x13xf32>
    %cst_114 = arith.constant dense<0xFF800000> : vector<13xf32>
    %326 = vector.multi_reduction <maximumf>, %325, %cst_114 [0] : vector<3x13xf32> to vector<13xf32>
    %327 = vector.shape_cast %326 : vector<13xf32> to vector<1x13xf32>
    %328 = vector.extract_strided_slice %321 {offsets = [3, 0], sizes = [2, 13], strides = [1, 1]} : vector<13x13xf32> to vector<2x13xf32>
    %cst_115 = arith.constant dense<0xFF800000> : vector<13xf32>
    %329 = vector.multi_reduction <maximumf>, %328, %cst_115 [0] : vector<2x13xf32> to vector<13xf32>
    %330 = vector.shape_cast %329 : vector<13xf32> to vector<1x13xf32>
    %331 = vector.extract_strided_slice %321 {offsets = [4, 0], sizes = [3, 13], strides = [1, 1]} : vector<13x13xf32> to vector<3x13xf32>
    %cst_116 = arith.constant dense<0xFF800000> : vector<13xf32>
    %332 = vector.multi_reduction <maximumf>, %331, %cst_116 [0] : vector<3x13xf32> to vector<13xf32>
    %333 = vector.shape_cast %332 : vector<13xf32> to vector<1x13xf32>
    %334 = vector.extract_strided_slice %321 {offsets = [6, 0], sizes = [3, 13], strides = [1, 1]} : vector<13x13xf32> to vector<3x13xf32>
    %cst_117 = arith.constant dense<0xFF800000> : vector<13xf32>
    %335 = vector.multi_reduction <maximumf>, %334, %cst_117 [0] : vector<3x13xf32> to vector<13xf32>
    %336 = vector.shape_cast %335 : vector<13xf32> to vector<1x13xf32>
    %337 = vector.extract_strided_slice %321 {offsets = [8, 0], sizes = [2, 13], strides = [1, 1]} : vector<13x13xf32> to vector<2x13xf32>
    %cst_118 = arith.constant dense<0xFF800000> : vector<13xf32>
    %338 = vector.multi_reduction <maximumf>, %337, %cst_118 [0] : vector<2x13xf32> to vector<13xf32>
    %339 = vector.shape_cast %338 : vector<13xf32> to vector<1x13xf32>
    %340 = vector.extract_strided_slice %321 {offsets = [9, 0], sizes = [3, 13], strides = [1, 1]} : vector<13x13xf32> to vector<3x13xf32>
    %cst_119 = arith.constant dense<0xFF800000> : vector<13xf32>
    %341 = vector.multi_reduction <maximumf>, %340, %cst_119 [0] : vector<3x13xf32> to vector<13xf32>
    %342 = vector.shape_cast %341 : vector<13xf32> to vector<1x13xf32>
    %343 = vector.extract_strided_slice %321 {offsets = [11, 0], sizes = [2, 13], strides = [1, 1]} : vector<13x13xf32> to vector<2x13xf32>
    %cst_120 = arith.constant dense<0xFF800000> : vector<13xf32>
    %344 = vector.multi_reduction <maximumf>, %343, %cst_120 [0] : vector<2x13xf32> to vector<13xf32>
    %345 = vector.shape_cast %344 : vector<13xf32> to vector<1x13xf32>
    %346 = tpu.concatenate %324, %327, %330, %333, %336, %339, %342, %345 in 0 : vector<1x13xf32>, vector<1x13xf32>, vector<1x13xf32>, vector<1x13xf32>, vector<1x13xf32>, vector<1x13xf32>, vector<1x13xf32>, vector<1x13xf32> -> vector<8x13xf32>
    %347 = vector.extract_strided_slice %346 {offsets = [0, 0], sizes = [8, 2], strides = [1, 1]} : vector<8x13xf32> to vector<8x2xf32>
    %cst_121 = arith.constant dense<0xFF800000> : vector<8xf32>
    %348 = vector.multi_reduction <maximumf>, %347, %cst_121 [1] : vector<8x2xf32> to vector<8xf32>
    %349 = vector.shape_cast %348 : vector<8xf32> to vector<8x1xf32>
    %350 = vector.extract_strided_slice %346 {offsets = [0, 1], sizes = [8, 3], strides = [1, 1]} : vector<8x13xf32> to vector<8x3xf32>
    %cst_122 = arith.constant dense<0xFF800000> : vector<8xf32>
    %351 = vector.multi_reduction <maximumf>, %350, %cst_122 [1] : vector<8x3xf32> to vector<8xf32>
    %352 = vector.shape_cast %351 : vector<8xf32> to vector<8x1xf32>
    %353 = vector.extract_strided_slice %346 {offsets = [0, 3], sizes = [8, 2], strides = [1, 1]} : vector<8x13xf32> to vector<8x2xf32>
    %cst_123 = arith.constant dense<0xFF800000> : vector<8xf32>
    %354 = vector.multi_reduction <maximumf>, %353, %cst_123 [1] : vector<8x2xf32> to vector<8xf32>
    %355 = vector.shape_cast %354 : vector<8xf32> to vector<8x1xf32>
    %356 = vector.extract_strided_slice %346 {offsets = [0, 4], sizes = [8, 3], strides = [1, 1]} : vector<8x13xf32> to vector<8x3xf32>
    %cst_124 = arith.constant dense<0xFF800000> : vector<8xf32>
    %357 = vector.multi_reduction <maximumf>, %356, %cst_124 [1] : vector<8x3xf32> to vector<8xf32>
    %358 = vector.shape_cast %357 : vector<8xf32> to vector<8x1xf32>
    %359 = vector.extract_strided_slice %346 {offsets = [0, 6], sizes = [8, 3], strides = [1, 1]} : vector<8x13xf32> to vector<8x3xf32>
    %cst_125 = arith.constant dense<0xFF800000> : vector<8xf32>
    %360 = vector.multi_reduction <maximumf>, %359, %cst_125 [1] : vector<8x3xf32> to vector<8xf32>
    %361 = vector.shape_cast %360 : vector<8xf32> to vector<8x1xf32>
    %362 = vector.extract_strided_slice %346 {offsets = [0, 8], sizes = [8, 2], strides = [1, 1]} : vector<8x13xf32> to vector<8x2xf32>
    %cst_126 = arith.constant dense<0xFF800000> : vector<8xf32>
    %363 = vector.multi_reduction <maximumf>, %362, %cst_126 [1] : vector<8x2xf32> to vector<8xf32>
    %364 = vector.shape_cast %363 : vector<8xf32> to vector<8x1xf32>
    %365 = vector.extract_strided_slice %346 {offsets = [0, 9], sizes = [8, 3], strides = [1, 1]} : vector<8x13xf32> to vector<8x3xf32>
    %cst_127 = arith.constant dense<0xFF800000> : vector<8xf32>
    %366 = vector.multi_reduction <maximumf>, %365, %cst_127 [1] : vector<8x3xf32> to vector<8xf32>
    %367 = vector.shape_cast %366 : vector<8xf32> to vector<8x1xf32>
    %368 = vector.extract_strided_slice %346 {offsets = [0, 11], sizes = [8, 2], strides = [1, 1]} : vector<8x13xf32> to vector<8x2xf32>
    %cst_128 = arith.constant dense<0xFF800000> : vector<8xf32>
    %369 = vector.multi_reduction <maximumf>, %368, %cst_128 [1] : vector<8x2xf32> to vector<8xf32>
    %370 = vector.shape_cast %369 : vector<8xf32> to vector<8x1xf32>
    %371 = tpu.concatenate %349, %352, %355, %358, %361, %364, %367, %370 in 1 : vector<8x1xf32>, vector<8x1xf32>, vector<8x1xf32>, vector<8x1xf32>, vector<8x1xf32>, vector<8x1xf32>, vector<8x1xf32>, vector<8x1xf32> -> vector<8x8xf32>
    %cst_129 = arith.constant 0.000000e+00 : f32
    %372 = vector.broadcast %cst_129 : f32 to vector<8x4xf32>
    %373 = tpu.concatenate %372, %371, %372 in 1 : vector<8x4xf32>, vector<8x8xf32>, vector<8x4xf32> -> vector<8x16xf32>
    %cst_130 = arith.constant 0.000000e+00 : f32
    %374 = vector.broadcast %cst_130 : f32 to vector<4x16xf32>
    %375 = tpu.concatenate %374, %373, %374 in 0 : vector<4x16xf32>, vector<8x16xf32>, vector<4x16xf32> -> vector<16x16xf32>
    %376 = vector.extract_strided_slice %375 {offsets = [0, 0], sizes = [15, 15], strides = [1, 1]} : vector<16x16xf32> to vector<15x15xf32>
    %377 = vector.extract_strided_slice %375 {offsets = [0, 1], sizes = [15, 15], strides = [1, 1]} : vector<16x16xf32> to vector<15x15xf32>
    %378 = vector.extract_strided_slice %375 {offsets = [1, 0], sizes = [15, 15], strides = [1, 1]} : vector<16x16xf32> to vector<15x15xf32>
    %379 = vector.extract_strided_slice %375 {offsets = [1, 1], sizes = [15, 15], strides = [1, 1]} : vector<16x16xf32> to vector<15x15xf32>
    %c0_131 = arith.constant 0 : index
    %c0_132 = arith.constant 0 : index
    %380 = memref.load %arg9[%c0_131, %c0_132] : memref<18x4xf32, #tpu.memory_space<smem>>
    %381 = vector.broadcast %380 : f32 to vector<15x15xf32>
    %382 = arith.mulf %381, %376 : vector<15x15xf32>
    %c0_133 = arith.constant 0 : index
    %c1_134 = arith.constant 1 : index
    %383 = memref.load %arg9[%c0_133, %c1_134] : memref<18x4xf32, #tpu.memory_space<smem>>
    %384 = vector.broadcast %383 : f32 to vector<15x15xf32>
    %385 = arith.mulf %384, %377 : vector<15x15xf32>
    %386 = arith.addf %382, %385 : vector<15x15xf32>
    %c0_135 = arith.constant 0 : index
    %c2_136 = arith.constant 2 : index
    %387 = memref.load %arg9[%c0_135, %c2_136] : memref<18x4xf32, #tpu.memory_space<smem>>
    %388 = vector.broadcast %387 : f32 to vector<15x15xf32>
    %389 = arith.mulf %388, %378 : vector<15x15xf32>
    %390 = arith.addf %386, %389 : vector<15x15xf32>
    %c0_137 = arith.constant 0 : index
    %c3 = arith.constant 3 : index
    %391 = memref.load %arg9[%c0_137, %c3] : memref<18x4xf32, #tpu.memory_space<smem>>
    %392 = vector.broadcast %391 : f32 to vector<15x15xf32>
    %393 = arith.mulf %392, %379 : vector<15x15xf32>
    %394 = arith.addf %390, %393 : vector<15x15xf32>
    %c0_138 = arith.constant 0 : index
    %395 = memref.load %arg10[%c0_138] : memref<18xf32, #tpu.memory_space<smem>>
    %396 = vector.broadcast %395 : f32 to vector<15x15xf32>
    %397 = arith.addf %394, %396 : vector<15x15xf32>
    %c1_139 = arith.constant 1 : index
    %c0_140 = arith.constant 0 : index
    %398 = memref.load %arg9[%c1_139, %c0_140] : memref<18x4xf32, #tpu.memory_space<smem>>
    %399 = vector.broadcast %398 : f32 to vector<15x15xf32>
    %400 = arith.mulf %399, %376 : vector<15x15xf32>
    %c1_141 = arith.constant 1 : index
    %c1_142 = arith.constant 1 : index
    %401 = memref.load %arg9[%c1_141, %c1_142] : memref<18x4xf32, #tpu.memory_space<smem>>
    %402 = vector.broadcast %401 : f32 to vector<15x15xf32>
    %403 = arith.mulf %402, %377 : vector<15x15xf32>
    %404 = arith.addf %400, %403 : vector<15x15xf32>
    %c1_143 = arith.constant 1 : index
    %c2_144 = arith.constant 2 : index
    %405 = memref.load %arg9[%c1_143, %c2_144] : memref<18x4xf32, #tpu.memory_space<smem>>
    %406 = vector.broadcast %405 : f32 to vector<15x15xf32>
    %407 = arith.mulf %406, %378 : vector<15x15xf32>
    %408 = arith.addf %404, %407 : vector<15x15xf32>
    %c1_145 = arith.constant 1 : index
    %c3_146 = arith.constant 3 : index
    %409 = memref.load %arg9[%c1_145, %c3_146] : memref<18x4xf32, #tpu.memory_space<smem>>
    %410 = vector.broadcast %409 : f32 to vector<15x15xf32>
    %411 = arith.mulf %410, %379 : vector<15x15xf32>
    %412 = arith.addf %408, %411 : vector<15x15xf32>
    %c1_147 = arith.constant 1 : index
    %413 = memref.load %arg10[%c1_147] : memref<18xf32, #tpu.memory_space<smem>>
    %414 = vector.broadcast %413 : f32 to vector<15x15xf32>
    %415 = arith.addf %412, %414 : vector<15x15xf32>
    %416 = arith.maximumf %397, %415 : vector<15x15xf32>
    %c2_148 = arith.constant 2 : index
    %c0_149 = arith.constant 0 : index
    %417 = memref.load %arg9[%c2_148, %c0_149] : memref<18x4xf32, #tpu.memory_space<smem>>
    %418 = vector.broadcast %417 : f32 to vector<15x15xf32>
    %419 = arith.mulf %418, %376 : vector<15x15xf32>
    %c2_150 = arith.constant 2 : index
    %c1_151 = arith.constant 1 : index
    %420 = memref.load %arg9[%c2_150, %c1_151] : memref<18x4xf32, #tpu.memory_space<smem>>
    %421 = vector.broadcast %420 : f32 to vector<15x15xf32>
    %422 = arith.mulf %421, %377 : vector<15x15xf32>
    %423 = arith.addf %419, %422 : vector<15x15xf32>
    %c2_152 = arith.constant 2 : index
    %c2_153 = arith.constant 2 : index
    %424 = memref.load %arg9[%c2_152, %c2_153] : memref<18x4xf32, #tpu.memory_space<smem>>
    %425 = vector.broadcast %424 : f32 to vector<15x15xf32>
    %426 = arith.mulf %425, %378 : vector<15x15xf32>
    %427 = arith.addf %423, %426 : vector<15x15xf32>
    %c2_154 = arith.constant 2 : index
    %c3_155 = arith.constant 3 : index
    %428 = memref.load %arg9[%c2_154, %c3_155] : memref<18x4xf32, #tpu.memory_space<smem>>
    %429 = vector.broadcast %428 : f32 to vector<15x15xf32>
    %430 = arith.mulf %429, %379 : vector<15x15xf32>
    %431 = arith.addf %427, %430 : vector<15x15xf32>
    %c2_156 = arith.constant 2 : index
    %432 = memref.load %arg10[%c2_156] : memref<18xf32, #tpu.memory_space<smem>>
    %433 = vector.broadcast %432 : f32 to vector<15x15xf32>
    %434 = arith.addf %431, %433 : vector<15x15xf32>
    %435 = arith.maximumf %416, %434 : vector<15x15xf32>
    %c3_157 = arith.constant 3 : index
    %c0_158 = arith.constant 0 : index
    %436 = memref.load %arg9[%c3_157, %c0_158] : memref<18x4xf32, #tpu.memory_space<smem>>
    %437 = vector.broadcast %436 : f32 to vector<15x15xf32>
    %438 = arith.mulf %437, %376 : vector<15x15xf32>
    %c3_159 = arith.constant 3 : index
    %c1_160 = arith.constant 1 : index
    %439 = memref.load %arg9[%c3_159, %c1_160] : memref<18x4xf32, #tpu.memory_space<smem>>
    %440 = vector.broadcast %439 : f32 to vector<15x15xf32>
    %441 = arith.mulf %440, %377 : vector<15x15xf32>
    %442 = arith.addf %438, %441 : vector<15x15xf32>
    %c3_161 = arith.constant 3 : index
    %c2_162 = arith.constant 2 : index
    %443 = memref.load %arg9[%c3_161, %c2_162] : memref<18x4xf32, #tpu.memory_space<smem>>
    %444 = vector.broadcast %443 : f32 to vector<15x15xf32>
    %445 = arith.mulf %444, %378 : vector<15x15xf32>
    %446 = arith.addf %442, %445 : vector<15x15xf32>
    %c3_163 = arith.constant 3 : index
    %c3_164 = arith.constant 3 : index
    %447 = memref.load %arg9[%c3_163, %c3_164] : memref<18x4xf32, #tpu.memory_space<smem>>
    %448 = vector.broadcast %447 : f32 to vector<15x15xf32>
    %449 = arith.mulf %448, %379 : vector<15x15xf32>
    %450 = arith.addf %446, %449 : vector<15x15xf32>
    %c3_165 = arith.constant 3 : index
    %451 = memref.load %arg10[%c3_165] : memref<18xf32, #tpu.memory_space<smem>>
    %452 = vector.broadcast %451 : f32 to vector<15x15xf32>
    %453 = arith.addf %450, %452 : vector<15x15xf32>
    %454 = arith.maximumf %435, %453 : vector<15x15xf32>
    %c4 = arith.constant 4 : index
    %c0_166 = arith.constant 0 : index
    %455 = memref.load %arg9[%c4, %c0_166] : memref<18x4xf32, #tpu.memory_space<smem>>
    %456 = vector.broadcast %455 : f32 to vector<15x15xf32>
    %457 = arith.mulf %456, %376 : vector<15x15xf32>
    %c4_167 = arith.constant 4 : index
    %c1_168 = arith.constant 1 : index
    %458 = memref.load %arg9[%c4_167, %c1_168] : memref<18x4xf32, #tpu.memory_space<smem>>
    %459 = vector.broadcast %458 : f32 to vector<15x15xf32>
    %460 = arith.mulf %459, %377 : vector<15x15xf32>
    %461 = arith.addf %457, %460 : vector<15x15xf32>
    %c4_169 = arith.constant 4 : index
    %c2_170 = arith.constant 2 : index
    %462 = memref.load %arg9[%c4_169, %c2_170] : memref<18x4xf32, #tpu.memory_space<smem>>
    %463 = vector.broadcast %462 : f32 to vector<15x15xf32>
    %464 = arith.mulf %463, %378 : vector<15x15xf32>
    %465 = arith.addf %461, %464 : vector<15x15xf32>
    %c4_171 = arith.constant 4 : index
    %c3_172 = arith.constant 3 : index
    %466 = memref.load %arg9[%c4_171, %c3_172] : memref<18x4xf32, #tpu.memory_space<smem>>
    %467 = vector.broadcast %466 : f32 to vector<15x15xf32>
    %468 = arith.mulf %467, %379 : vector<15x15xf32>
    %469 = arith.addf %465, %468 : vector<15x15xf32>
    %c4_173 = arith.constant 4 : index
    %470 = memref.load %arg10[%c4_173] : memref<18xf32, #tpu.memory_space<smem>>
    %471 = vector.broadcast %470 : f32 to vector<15x15xf32>
    %472 = arith.addf %469, %471 : vector<15x15xf32>
    %473 = arith.maximumf %454, %472 : vector<15x15xf32>
    %c5 = arith.constant 5 : index
    %c0_174 = arith.constant 0 : index
    %474 = memref.load %arg9[%c5, %c0_174] : memref<18x4xf32, #tpu.memory_space<smem>>
    %475 = vector.broadcast %474 : f32 to vector<15x15xf32>
    %476 = arith.mulf %475, %376 : vector<15x15xf32>
    %c5_175 = arith.constant 5 : index
    %c1_176 = arith.constant 1 : index
    %477 = memref.load %arg9[%c5_175, %c1_176] : memref<18x4xf32, #tpu.memory_space<smem>>
    %478 = vector.broadcast %477 : f32 to vector<15x15xf32>
    %479 = arith.mulf %478, %377 : vector<15x15xf32>
    %480 = arith.addf %476, %479 : vector<15x15xf32>
    %c5_177 = arith.constant 5 : index
    %c2_178 = arith.constant 2 : index
    %481 = memref.load %arg9[%c5_177, %c2_178] : memref<18x4xf32, #tpu.memory_space<smem>>
    %482 = vector.broadcast %481 : f32 to vector<15x15xf32>
    %483 = arith.mulf %482, %378 : vector<15x15xf32>
    %484 = arith.addf %480, %483 : vector<15x15xf32>
    %c5_179 = arith.constant 5 : index
    %c3_180 = arith.constant 3 : index
    %485 = memref.load %arg9[%c5_179, %c3_180] : memref<18x4xf32, #tpu.memory_space<smem>>
    %486 = vector.broadcast %485 : f32 to vector<15x15xf32>
    %487 = arith.mulf %486, %379 : vector<15x15xf32>
    %488 = arith.addf %484, %487 : vector<15x15xf32>
    %c5_181 = arith.constant 5 : index
    %489 = memref.load %arg10[%c5_181] : memref<18xf32, #tpu.memory_space<smem>>
    %490 = vector.broadcast %489 : f32 to vector<15x15xf32>
    %491 = arith.addf %488, %490 : vector<15x15xf32>
    %492 = arith.maximumf %473, %491 : vector<15x15xf32>
    %493 = arith.negf %492 : vector<15x15xf32>
    %494 = math.exp %493 : vector<15x15xf32>
    %cst_182 = arith.constant 1.000000e+00 : f32
    %495 = vector.broadcast %cst_182 : f32 to vector<15x15xf32>
    %496 = arith.addf %495, %494 : vector<15x15xf32>
    %497 = arith.divf %495, %496 : vector<15x15xf32>
    %498 = vector.extract_strided_slice %497 {offsets = [0, 0], sizes = [2, 15], strides = [1, 1]} : vector<15x15xf32> to vector<2x15xf32>
    %cst_183 = arith.constant dense<0xFF800000> : vector<15xf32>
    %499 = vector.multi_reduction <maximumf>, %498, %cst_183 [0] : vector<2x15xf32> to vector<15xf32>
    %500 = vector.shape_cast %499 : vector<15xf32> to vector<1x15xf32>
    %501 = vector.extract_strided_slice %497 {offsets = [1, 0], sizes = [3, 15], strides = [1, 1]} : vector<15x15xf32> to vector<3x15xf32>
    %cst_184 = arith.constant dense<0xFF800000> : vector<15xf32>
    %502 = vector.multi_reduction <maximumf>, %501, %cst_184 [0] : vector<3x15xf32> to vector<15xf32>
    %503 = vector.shape_cast %502 : vector<15xf32> to vector<1x15xf32>
    %504 = vector.extract_strided_slice %497 {offsets = [3, 0], sizes = [3, 15], strides = [1, 1]} : vector<15x15xf32> to vector<3x15xf32>
    %cst_185 = arith.constant dense<0xFF800000> : vector<15xf32>
    %505 = vector.multi_reduction <maximumf>, %504, %cst_185 [0] : vector<3x15xf32> to vector<15xf32>
    %506 = vector.shape_cast %505 : vector<15xf32> to vector<1x15xf32>
    %507 = vector.extract_strided_slice %497 {offsets = [5, 0], sizes = [3, 15], strides = [1, 1]} : vector<15x15xf32> to vector<3x15xf32>
    %cst_186 = arith.constant dense<0xFF800000> : vector<15xf32>
    %508 = vector.multi_reduction <maximumf>, %507, %cst_186 [0] : vector<3x15xf32> to vector<15xf32>
    %509 = vector.shape_cast %508 : vector<15xf32> to vector<1x15xf32>
    %510 = vector.extract_strided_slice %497 {offsets = [7, 0], sizes = [3, 15], strides = [1, 1]} : vector<15x15xf32> to vector<3x15xf32>
    %cst_187 = arith.constant dense<0xFF800000> : vector<15xf32>
    %511 = vector.multi_reduction <maximumf>, %510, %cst_187 [0] : vector<3x15xf32> to vector<15xf32>
    %512 = vector.shape_cast %511 : vector<15xf32> to vector<1x15xf32>
    %513 = vector.extract_strided_slice %497 {offsets = [9, 0], sizes = [3, 15], strides = [1, 1]} : vector<15x15xf32> to vector<3x15xf32>
    %cst_188 = arith.constant dense<0xFF800000> : vector<15xf32>
    %514 = vector.multi_reduction <maximumf>, %513, %cst_188 [0] : vector<3x15xf32> to vector<15xf32>
    %515 = vector.shape_cast %514 : vector<15xf32> to vector<1x15xf32>
    %516 = vector.extract_strided_slice %497 {offsets = [11, 0], sizes = [3, 15], strides = [1, 1]} : vector<15x15xf32> to vector<3x15xf32>
    %cst_189 = arith.constant dense<0xFF800000> : vector<15xf32>
    %517 = vector.multi_reduction <maximumf>, %516, %cst_189 [0] : vector<3x15xf32> to vector<15xf32>
    %518 = vector.shape_cast %517 : vector<15xf32> to vector<1x15xf32>
    %519 = vector.extract_strided_slice %497 {offsets = [13, 0], sizes = [2, 15], strides = [1, 1]} : vector<15x15xf32> to vector<2x15xf32>
    %cst_190 = arith.constant dense<0xFF800000> : vector<15xf32>
    %520 = vector.multi_reduction <maximumf>, %519, %cst_190 [0] : vector<2x15xf32> to vector<15xf32>
    %521 = vector.shape_cast %520 : vector<15xf32> to vector<1x15xf32>
    %522 = tpu.concatenate %500, %503, %506, %509, %512, %515, %518, %521 in 0 : vector<1x15xf32>, vector<1x15xf32>, vector<1x15xf32>, vector<1x15xf32>, vector<1x15xf32>, vector<1x15xf32>, vector<1x15xf32>, vector<1x15xf32> -> vector<8x15xf32>
    %523 = vector.extract_strided_slice %522 {offsets = [0, 0], sizes = [8, 2], strides = [1, 1]} : vector<8x15xf32> to vector<8x2xf32>
    %cst_191 = arith.constant dense<0xFF800000> : vector<8xf32>
    %524 = vector.multi_reduction <maximumf>, %523, %cst_191 [1] : vector<8x2xf32> to vector<8xf32>
    %525 = vector.shape_cast %524 : vector<8xf32> to vector<8x1xf32>
    %526 = vector.extract_strided_slice %522 {offsets = [0, 1], sizes = [8, 3], strides = [1, 1]} : vector<8x15xf32> to vector<8x3xf32>
    %cst_192 = arith.constant dense<0xFF800000> : vector<8xf32>
    %527 = vector.multi_reduction <maximumf>, %526, %cst_192 [1] : vector<8x3xf32> to vector<8xf32>
    %528 = vector.shape_cast %527 : vector<8xf32> to vector<8x1xf32>
    %529 = vector.extract_strided_slice %522 {offsets = [0, 3], sizes = [8, 3], strides = [1, 1]} : vector<8x15xf32> to vector<8x3xf32>
    %cst_193 = arith.constant dense<0xFF800000> : vector<8xf32>
    %530 = vector.multi_reduction <maximumf>, %529, %cst_193 [1] : vector<8x3xf32> to vector<8xf32>
    %531 = vector.shape_cast %530 : vector<8xf32> to vector<8x1xf32>
    %532 = vector.extract_strided_slice %522 {offsets = [0, 5], sizes = [8, 3], strides = [1, 1]} : vector<8x15xf32> to vector<8x3xf32>
    %cst_194 = arith.constant dense<0xFF800000> : vector<8xf32>
    %533 = vector.multi_reduction <maximumf>, %532, %cst_194 [1] : vector<8x3xf32> to vector<8xf32>
    %534 = vector.shape_cast %533 : vector<8xf32> to vector<8x1xf32>
    %535 = vector.extract_strided_slice %522 {offsets = [0, 7], sizes = [8, 3], strides = [1, 1]} : vector<8x15xf32> to vector<8x3xf32>
    %cst_195 = arith.constant dense<0xFF800000> : vector<8xf32>
    %536 = vector.multi_reduction <maximumf>, %535, %cst_195 [1] : vector<8x3xf32> to vector<8xf32>
    %537 = vector.shape_cast %536 : vector<8xf32> to vector<8x1xf32>
    %538 = vector.extract_strided_slice %522 {offsets = [0, 9], sizes = [8, 3], strides = [1, 1]} : vector<8x15xf32> to vector<8x3xf32>
    %cst_196 = arith.constant dense<0xFF800000> : vector<8xf32>
    %539 = vector.multi_reduction <maximumf>, %538, %cst_196 [1] : vector<8x3xf32> to vector<8xf32>
    %540 = vector.shape_cast %539 : vector<8xf32> to vector<8x1xf32>
    %541 = vector.extract_strided_slice %522 {offsets = [0, 11], sizes = [8, 3], strides = [1, 1]} : vector<8x15xf32> to vector<8x3xf32>
    %cst_197 = arith.constant dense<0xFF800000> : vector<8xf32>
    %542 = vector.multi_reduction <maximumf>, %541, %cst_197 [1] : vector<8x3xf32> to vector<8xf32>
    %543 = vector.shape_cast %542 : vector<8xf32> to vector<8x1xf32>
    %544 = vector.extract_strided_slice %522 {offsets = [0, 13], sizes = [8, 2], strides = [1, 1]} : vector<8x15xf32> to vector<8x2xf32>
    %cst_198 = arith.constant dense<0xFF800000> : vector<8xf32>
    %545 = vector.multi_reduction <maximumf>, %544, %cst_198 [1] : vector<8x2xf32> to vector<8xf32>
    %546 = vector.shape_cast %545 : vector<8xf32> to vector<8x1xf32>
    %547 = tpu.concatenate %525, %528, %531, %534, %537, %540, %543, %546 in 1 : vector<8x1xf32>, vector<8x1xf32>, vector<8x1xf32>, vector<8x1xf32>, vector<8x1xf32>, vector<8x1xf32>, vector<8x1xf32>, vector<8x1xf32> -> vector<8x8xf32>
    %cst_199 = arith.constant 0.000000e+00 : f32
    %548 = vector.broadcast %cst_199 : f32 to vector<8x4xf32>
    %549 = tpu.concatenate %548, %547, %548 in 1 : vector<8x4xf32>, vector<8x8xf32>, vector<8x4xf32> -> vector<8x16xf32>
    %cst_200 = arith.constant 0.000000e+00 : f32
    %550 = vector.broadcast %cst_200 : f32 to vector<4x16xf32>
    %551 = tpu.concatenate %550, %549, %550 in 0 : vector<4x16xf32>, vector<8x16xf32>, vector<4x16xf32> -> vector<16x16xf32>
    %552 = vector.extract_strided_slice %551 {offsets = [0, 0], sizes = [15, 15], strides = [1, 1]} : vector<16x16xf32> to vector<15x15xf32>
    %553 = vector.extract_strided_slice %551 {offsets = [0, 1], sizes = [15, 15], strides = [1, 1]} : vector<16x16xf32> to vector<15x15xf32>
    %554 = vector.extract_strided_slice %551 {offsets = [1, 0], sizes = [15, 15], strides = [1, 1]} : vector<16x16xf32> to vector<15x15xf32>
    %555 = vector.extract_strided_slice %551 {offsets = [1, 1], sizes = [15, 15], strides = [1, 1]} : vector<16x16xf32> to vector<15x15xf32>
    %c6 = arith.constant 6 : index
    %c0_201 = arith.constant 0 : index
    %556 = memref.load %arg9[%c6, %c0_201] : memref<18x4xf32, #tpu.memory_space<smem>>
    %557 = vector.broadcast %556 : f32 to vector<15x15xf32>
    %558 = arith.mulf %557, %552 : vector<15x15xf32>
    %c6_202 = arith.constant 6 : index
    %c1_203 = arith.constant 1 : index
    %559 = memref.load %arg9[%c6_202, %c1_203] : memref<18x4xf32, #tpu.memory_space<smem>>
    %560 = vector.broadcast %559 : f32 to vector<15x15xf32>
    %561 = arith.mulf %560, %553 : vector<15x15xf32>
    %562 = arith.addf %558, %561 : vector<15x15xf32>
    %c6_204 = arith.constant 6 : index
    %c2_205 = arith.constant 2 : index
    %563 = memref.load %arg9[%c6_204, %c2_205] : memref<18x4xf32, #tpu.memory_space<smem>>
    %564 = vector.broadcast %563 : f32 to vector<15x15xf32>
    %565 = arith.mulf %564, %554 : vector<15x15xf32>
    %566 = arith.addf %562, %565 : vector<15x15xf32>
    %c6_206 = arith.constant 6 : index
    %c3_207 = arith.constant 3 : index
    %567 = memref.load %arg9[%c6_206, %c3_207] : memref<18x4xf32, #tpu.memory_space<smem>>
    %568 = vector.broadcast %567 : f32 to vector<15x15xf32>
    %569 = arith.mulf %568, %555 : vector<15x15xf32>
    %570 = arith.addf %566, %569 : vector<15x15xf32>
    %c6_208 = arith.constant 6 : index
    %571 = memref.load %arg10[%c6_208] : memref<18xf32, #tpu.memory_space<smem>>
    %572 = vector.broadcast %571 : f32 to vector<15x15xf32>
    %573 = arith.addf %570, %572 : vector<15x15xf32>
    %c7 = arith.constant 7 : index
    %c0_209 = arith.constant 0 : index
    %574 = memref.load %arg9[%c7, %c0_209] : memref<18x4xf32, #tpu.memory_space<smem>>
    %575 = vector.broadcast %574 : f32 to vector<15x15xf32>
    %576 = arith.mulf %575, %552 : vector<15x15xf32>
    %c7_210 = arith.constant 7 : index
    %c1_211 = arith.constant 1 : index
    %577 = memref.load %arg9[%c7_210, %c1_211] : memref<18x4xf32, #tpu.memory_space<smem>>
    %578 = vector.broadcast %577 : f32 to vector<15x15xf32>
    %579 = arith.mulf %578, %553 : vector<15x15xf32>
    %580 = arith.addf %576, %579 : vector<15x15xf32>
    %c7_212 = arith.constant 7 : index
    %c2_213 = arith.constant 2 : index
    %581 = memref.load %arg9[%c7_212, %c2_213] : memref<18x4xf32, #tpu.memory_space<smem>>
    %582 = vector.broadcast %581 : f32 to vector<15x15xf32>
    %583 = arith.mulf %582, %554 : vector<15x15xf32>
    %584 = arith.addf %580, %583 : vector<15x15xf32>
    %c7_214 = arith.constant 7 : index
    %c3_215 = arith.constant 3 : index
    %585 = memref.load %arg9[%c7_214, %c3_215] : memref<18x4xf32, #tpu.memory_space<smem>>
    %586 = vector.broadcast %585 : f32 to vector<15x15xf32>
    %587 = arith.mulf %586, %555 : vector<15x15xf32>
    %588 = arith.addf %584, %587 : vector<15x15xf32>
    %c7_216 = arith.constant 7 : index
    %589 = memref.load %arg10[%c7_216] : memref<18xf32, #tpu.memory_space<smem>>
    %590 = vector.broadcast %589 : f32 to vector<15x15xf32>
    %591 = arith.addf %588, %590 : vector<15x15xf32>
    %592 = arith.maximumf %573, %591 : vector<15x15xf32>
    %c8 = arith.constant 8 : index
    %c0_217 = arith.constant 0 : index
    %593 = memref.load %arg9[%c8, %c0_217] : memref<18x4xf32, #tpu.memory_space<smem>>
    %594 = vector.broadcast %593 : f32 to vector<15x15xf32>
    %595 = arith.mulf %594, %552 : vector<15x15xf32>
    %c8_218 = arith.constant 8 : index
    %c1_219 = arith.constant 1 : index
    %596 = memref.load %arg9[%c8_218, %c1_219] : memref<18x4xf32, #tpu.memory_space<smem>>
    %597 = vector.broadcast %596 : f32 to vector<15x15xf32>
    %598 = arith.mulf %597, %553 : vector<15x15xf32>
    %599 = arith.addf %595, %598 : vector<15x15xf32>
    %c8_220 = arith.constant 8 : index
    %c2_221 = arith.constant 2 : index
    %600 = memref.load %arg9[%c8_220, %c2_221] : memref<18x4xf32, #tpu.memory_space<smem>>
    %601 = vector.broadcast %600 : f32 to vector<15x15xf32>
    %602 = arith.mulf %601, %554 : vector<15x15xf32>
    %603 = arith.addf %599, %602 : vector<15x15xf32>
    %c8_222 = arith.constant 8 : index
    %c3_223 = arith.constant 3 : index
    %604 = memref.load %arg9[%c8_222, %c3_223] : memref<18x4xf32, #tpu.memory_space<smem>>
    %605 = vector.broadcast %604 : f32 to vector<15x15xf32>
    %606 = arith.mulf %605, %555 : vector<15x15xf32>
    %607 = arith.addf %603, %606 : vector<15x15xf32>
    %c8_224 = arith.constant 8 : index
    %608 = memref.load %arg10[%c8_224] : memref<18xf32, #tpu.memory_space<smem>>
    %609 = vector.broadcast %608 : f32 to vector<15x15xf32>
    %610 = arith.addf %607, %609 : vector<15x15xf32>
    %611 = arith.maximumf %592, %610 : vector<15x15xf32>
    %c9 = arith.constant 9 : index
    %c0_225 = arith.constant 0 : index
    %612 = memref.load %arg9[%c9, %c0_225] : memref<18x4xf32, #tpu.memory_space<smem>>
    %613 = vector.broadcast %612 : f32 to vector<15x15xf32>
    %614 = arith.mulf %613, %552 : vector<15x15xf32>
    %c9_226 = arith.constant 9 : index
    %c1_227 = arith.constant 1 : index
    %615 = memref.load %arg9[%c9_226, %c1_227] : memref<18x4xf32, #tpu.memory_space<smem>>
    %616 = vector.broadcast %615 : f32 to vector<15x15xf32>
    %617 = arith.mulf %616, %553 : vector<15x15xf32>
    %618 = arith.addf %614, %617 : vector<15x15xf32>
    %c9_228 = arith.constant 9 : index
    %c2_229 = arith.constant 2 : index
    %619 = memref.load %arg9[%c9_228, %c2_229] : memref<18x4xf32, #tpu.memory_space<smem>>
    %620 = vector.broadcast %619 : f32 to vector<15x15xf32>
    %621 = arith.mulf %620, %554 : vector<15x15xf32>
    %622 = arith.addf %618, %621 : vector<15x15xf32>
    %c9_230 = arith.constant 9 : index
    %c3_231 = arith.constant 3 : index
    %623 = memref.load %arg9[%c9_230, %c3_231] : memref<18x4xf32, #tpu.memory_space<smem>>
    %624 = vector.broadcast %623 : f32 to vector<15x15xf32>
    %625 = arith.mulf %624, %555 : vector<15x15xf32>
    %626 = arith.addf %622, %625 : vector<15x15xf32>
    %c9_232 = arith.constant 9 : index
    %627 = memref.load %arg10[%c9_232] : memref<18xf32, #tpu.memory_space<smem>>
    %628 = vector.broadcast %627 : f32 to vector<15x15xf32>
    %629 = arith.addf %626, %628 : vector<15x15xf32>
    %630 = arith.maximumf %611, %629 : vector<15x15xf32>
    %c10 = arith.constant 10 : index
    %c0_233 = arith.constant 0 : index
    %631 = memref.load %arg9[%c10, %c0_233] : memref<18x4xf32, #tpu.memory_space<smem>>
    %632 = vector.broadcast %631 : f32 to vector<15x15xf32>
    %633 = arith.mulf %632, %552 : vector<15x15xf32>
    %c10_234 = arith.constant 10 : index
    %c1_235 = arith.constant 1 : index
    %634 = memref.load %arg9[%c10_234, %c1_235] : memref<18x4xf32, #tpu.memory_space<smem>>
    %635 = vector.broadcast %634 : f32 to vector<15x15xf32>
    %636 = arith.mulf %635, %553 : vector<15x15xf32>
    %637 = arith.addf %633, %636 : vector<15x15xf32>
    %c10_236 = arith.constant 10 : index
    %c2_237 = arith.constant 2 : index
    %638 = memref.load %arg9[%c10_236, %c2_237] : memref<18x4xf32, #tpu.memory_space<smem>>
    %639 = vector.broadcast %638 : f32 to vector<15x15xf32>
    %640 = arith.mulf %639, %554 : vector<15x15xf32>
    %641 = arith.addf %637, %640 : vector<15x15xf32>
    %c10_238 = arith.constant 10 : index
    %c3_239 = arith.constant 3 : index
    %642 = memref.load %arg9[%c10_238, %c3_239] : memref<18x4xf32, #tpu.memory_space<smem>>
    %643 = vector.broadcast %642 : f32 to vector<15x15xf32>
    %644 = arith.mulf %643, %555 : vector<15x15xf32>
    %645 = arith.addf %641, %644 : vector<15x15xf32>
    %c10_240 = arith.constant 10 : index
    %646 = memref.load %arg10[%c10_240] : memref<18xf32, #tpu.memory_space<smem>>
    %647 = vector.broadcast %646 : f32 to vector<15x15xf32>
    %648 = arith.addf %645, %647 : vector<15x15xf32>
    %649 = arith.maximumf %630, %648 : vector<15x15xf32>
    %c11 = arith.constant 11 : index
    %c0_241 = arith.constant 0 : index
    %650 = memref.load %arg9[%c11, %c0_241] : memref<18x4xf32, #tpu.memory_space<smem>>
    %651 = vector.broadcast %650 : f32 to vector<15x15xf32>
    %652 = arith.mulf %651, %552 : vector<15x15xf32>
    %c11_242 = arith.constant 11 : index
    %c1_243 = arith.constant 1 : index
    %653 = memref.load %arg9[%c11_242, %c1_243] : memref<18x4xf32, #tpu.memory_space<smem>>
    %654 = vector.broadcast %653 : f32 to vector<15x15xf32>
    %655 = arith.mulf %654, %553 : vector<15x15xf32>
    %656 = arith.addf %652, %655 : vector<15x15xf32>
    %c11_244 = arith.constant 11 : index
    %c2_245 = arith.constant 2 : index
    %657 = memref.load %arg9[%c11_244, %c2_245] : memref<18x4xf32, #tpu.memory_space<smem>>
    %658 = vector.broadcast %657 : f32 to vector<15x15xf32>
    %659 = arith.mulf %658, %554 : vector<15x15xf32>
    %660 = arith.addf %656, %659 : vector<15x15xf32>
    %c11_246 = arith.constant 11 : index
    %c3_247 = arith.constant 3 : index
    %661 = memref.load %arg9[%c11_246, %c3_247] : memref<18x4xf32, #tpu.memory_space<smem>>
    %662 = vector.broadcast %661 : f32 to vector<15x15xf32>
    %663 = arith.mulf %662, %555 : vector<15x15xf32>
    %664 = arith.addf %660, %663 : vector<15x15xf32>
    %c11_248 = arith.constant 11 : index
    %665 = memref.load %arg10[%c11_248] : memref<18xf32, #tpu.memory_space<smem>>
    %666 = vector.broadcast %665 : f32 to vector<15x15xf32>
    %667 = arith.addf %664, %666 : vector<15x15xf32>
    %668 = arith.maximumf %649, %667 : vector<15x15xf32>
    %669 = arith.negf %668 : vector<15x15xf32>
    %670 = math.exp %669 : vector<15x15xf32>
    %cst_249 = arith.constant 1.000000e+00 : f32
    %671 = vector.broadcast %cst_249 : f32 to vector<15x15xf32>
    %672 = arith.addf %671, %670 : vector<15x15xf32>
    %673 = arith.divf %671, %672 : vector<15x15xf32>
    %674 = vector.extract_strided_slice %673 {offsets = [0, 0], sizes = [2, 15], strides = [1, 1]} : vector<15x15xf32> to vector<2x15xf32>
    %cst_250 = arith.constant dense<0xFF800000> : vector<15xf32>
    %675 = vector.multi_reduction <maximumf>, %674, %cst_250 [0] : vector<2x15xf32> to vector<15xf32>
    %676 = vector.shape_cast %675 : vector<15xf32> to vector<1x15xf32>
    %677 = vector.extract_strided_slice %673 {offsets = [1, 0], sizes = [3, 15], strides = [1, 1]} : vector<15x15xf32> to vector<3x15xf32>
    %cst_251 = arith.constant dense<0xFF800000> : vector<15xf32>
    %678 = vector.multi_reduction <maximumf>, %677, %cst_251 [0] : vector<3x15xf32> to vector<15xf32>
    %679 = vector.shape_cast %678 : vector<15xf32> to vector<1x15xf32>
    %680 = vector.extract_strided_slice %673 {offsets = [3, 0], sizes = [3, 15], strides = [1, 1]} : vector<15x15xf32> to vector<3x15xf32>
    %cst_252 = arith.constant dense<0xFF800000> : vector<15xf32>
    %681 = vector.multi_reduction <maximumf>, %680, %cst_252 [0] : vector<3x15xf32> to vector<15xf32>
    %682 = vector.shape_cast %681 : vector<15xf32> to vector<1x15xf32>
    %683 = vector.extract_strided_slice %673 {offsets = [5, 0], sizes = [3, 15], strides = [1, 1]} : vector<15x15xf32> to vector<3x15xf32>
    %cst_253 = arith.constant dense<0xFF800000> : vector<15xf32>
    %684 = vector.multi_reduction <maximumf>, %683, %cst_253 [0] : vector<3x15xf32> to vector<15xf32>
    %685 = vector.shape_cast %684 : vector<15xf32> to vector<1x15xf32>
    %686 = vector.extract_strided_slice %673 {offsets = [7, 0], sizes = [3, 15], strides = [1, 1]} : vector<15x15xf32> to vector<3x15xf32>
    %cst_254 = arith.constant dense<0xFF800000> : vector<15xf32>
    %687 = vector.multi_reduction <maximumf>, %686, %cst_254 [0] : vector<3x15xf32> to vector<15xf32>
    %688 = vector.shape_cast %687 : vector<15xf32> to vector<1x15xf32>
    %689 = vector.extract_strided_slice %673 {offsets = [9, 0], sizes = [3, 15], strides = [1, 1]} : vector<15x15xf32> to vector<3x15xf32>
    %cst_255 = arith.constant dense<0xFF800000> : vector<15xf32>
    %690 = vector.multi_reduction <maximumf>, %689, %cst_255 [0] : vector<3x15xf32> to vector<15xf32>
    %691 = vector.shape_cast %690 : vector<15xf32> to vector<1x15xf32>
    %692 = vector.extract_strided_slice %673 {offsets = [11, 0], sizes = [3, 15], strides = [1, 1]} : vector<15x15xf32> to vector<3x15xf32>
    %cst_256 = arith.constant dense<0xFF800000> : vector<15xf32>
    %693 = vector.multi_reduction <maximumf>, %692, %cst_256 [0] : vector<3x15xf32> to vector<15xf32>
    %694 = vector.shape_cast %693 : vector<15xf32> to vector<1x15xf32>
    %695 = vector.extract_strided_slice %673 {offsets = [13, 0], sizes = [2, 15], strides = [1, 1]} : vector<15x15xf32> to vector<2x15xf32>
    %cst_257 = arith.constant dense<0xFF800000> : vector<15xf32>
    %696 = vector.multi_reduction <maximumf>, %695, %cst_257 [0] : vector<2x15xf32> to vector<15xf32>
    %697 = vector.shape_cast %696 : vector<15xf32> to vector<1x15xf32>
    %698 = tpu.concatenate %676, %679, %682, %685, %688, %691, %694, %697 in 0 : vector<1x15xf32>, vector<1x15xf32>, vector<1x15xf32>, vector<1x15xf32>, vector<1x15xf32>, vector<1x15xf32>, vector<1x15xf32>, vector<1x15xf32> -> vector<8x15xf32>
    %699 = vector.extract_strided_slice %698 {offsets = [0, 0], sizes = [8, 2], strides = [1, 1]} : vector<8x15xf32> to vector<8x2xf32>
    %cst_258 = arith.constant dense<0xFF800000> : vector<8xf32>
    %700 = vector.multi_reduction <maximumf>, %699, %cst_258 [1] : vector<8x2xf32> to vector<8xf32>
    %701 = vector.shape_cast %700 : vector<8xf32> to vector<8x1xf32>
    %702 = vector.extract_strided_slice %698 {offsets = [0, 1], sizes = [8, 3], strides = [1, 1]} : vector<8x15xf32> to vector<8x3xf32>
    %cst_259 = arith.constant dense<0xFF800000> : vector<8xf32>
    %703 = vector.multi_reduction <maximumf>, %702, %cst_259 [1] : vector<8x3xf32> to vector<8xf32>
    %704 = vector.shape_cast %703 : vector<8xf32> to vector<8x1xf32>
    %705 = vector.extract_strided_slice %698 {offsets = [0, 3], sizes = [8, 3], strides = [1, 1]} : vector<8x15xf32> to vector<8x3xf32>
    %cst_260 = arith.constant dense<0xFF800000> : vector<8xf32>
    %706 = vector.multi_reduction <maximumf>, %705, %cst_260 [1] : vector<8x3xf32> to vector<8xf32>
    %707 = vector.shape_cast %706 : vector<8xf32> to vector<8x1xf32>
    %708 = vector.extract_strided_slice %698 {offsets = [0, 5], sizes = [8, 3], strides = [1, 1]} : vector<8x15xf32> to vector<8x3xf32>
    %cst_261 = arith.constant dense<0xFF800000> : vector<8xf32>
    %709 = vector.multi_reduction <maximumf>, %708, %cst_261 [1] : vector<8x3xf32> to vector<8xf32>
    %710 = vector.shape_cast %709 : vector<8xf32> to vector<8x1xf32>
    %711 = vector.extract_strided_slice %698 {offsets = [0, 7], sizes = [8, 3], strides = [1, 1]} : vector<8x15xf32> to vector<8x3xf32>
    %cst_262 = arith.constant dense<0xFF800000> : vector<8xf32>
    %712 = vector.multi_reduction <maximumf>, %711, %cst_262 [1] : vector<8x3xf32> to vector<8xf32>
    %713 = vector.shape_cast %712 : vector<8xf32> to vector<8x1xf32>
    %714 = vector.extract_strided_slice %698 {offsets = [0, 9], sizes = [8, 3], strides = [1, 1]} : vector<8x15xf32> to vector<8x3xf32>
    %cst_263 = arith.constant dense<0xFF800000> : vector<8xf32>
    %715 = vector.multi_reduction <maximumf>, %714, %cst_263 [1] : vector<8x3xf32> to vector<8xf32>
    %716 = vector.shape_cast %715 : vector<8xf32> to vector<8x1xf32>
    %717 = vector.extract_strided_slice %698 {offsets = [0, 11], sizes = [8, 3], strides = [1, 1]} : vector<8x15xf32> to vector<8x3xf32>
    %cst_264 = arith.constant dense<0xFF800000> : vector<8xf32>
    %718 = vector.multi_reduction <maximumf>, %717, %cst_264 [1] : vector<8x3xf32> to vector<8xf32>
    %719 = vector.shape_cast %718 : vector<8xf32> to vector<8x1xf32>
    %720 = vector.extract_strided_slice %698 {offsets = [0, 13], sizes = [8, 2], strides = [1, 1]} : vector<8x15xf32> to vector<8x2xf32>
    %cst_265 = arith.constant dense<0xFF800000> : vector<8xf32>
    %721 = vector.multi_reduction <maximumf>, %720, %cst_265 [1] : vector<8x2xf32> to vector<8xf32>
    %722 = vector.shape_cast %721 : vector<8xf32> to vector<8x1xf32>
    %723 = tpu.concatenate %701, %704, %707, %710, %713, %716, %719, %722 in 1 : vector<8x1xf32>, vector<8x1xf32>, vector<8x1xf32>, vector<8x1xf32>, vector<8x1xf32>, vector<8x1xf32>, vector<8x1xf32>, vector<8x1xf32> -> vector<8x8xf32>
    %cst_266 = arith.constant 0.000000e+00 : f32
    %724 = vector.broadcast %cst_266 : f32 to vector<8x4xf32>
    %725 = tpu.concatenate %724, %723, %724 in 1 : vector<8x4xf32>, vector<8x8xf32>, vector<8x4xf32> -> vector<8x16xf32>
    %cst_267 = arith.constant 0.000000e+00 : f32
    %726 = vector.broadcast %cst_267 : f32 to vector<4x16xf32>
    %727 = tpu.concatenate %726, %725, %726 in 0 : vector<4x16xf32>, vector<8x16xf32>, vector<4x16xf32> -> vector<16x16xf32>
    %728 = vector.extract_strided_slice %727 {offsets = [0, 0], sizes = [15, 15], strides = [1, 1]} : vector<16x16xf32> to vector<15x15xf32>
    %729 = vector.extract_strided_slice %727 {offsets = [0, 1], sizes = [15, 15], strides = [1, 1]} : vector<16x16xf32> to vector<15x15xf32>
    %730 = vector.extract_strided_slice %727 {offsets = [1, 0], sizes = [15, 15], strides = [1, 1]} : vector<16x16xf32> to vector<15x15xf32>
    %731 = vector.extract_strided_slice %727 {offsets = [1, 1], sizes = [15, 15], strides = [1, 1]} : vector<16x16xf32> to vector<15x15xf32>
    %c12 = arith.constant 12 : index
    %c0_268 = arith.constant 0 : index
    %732 = memref.load %arg9[%c12, %c0_268] : memref<18x4xf32, #tpu.memory_space<smem>>
    %733 = vector.broadcast %732 : f32 to vector<15x15xf32>
    %734 = arith.mulf %733, %728 : vector<15x15xf32>
    %c12_269 = arith.constant 12 : index
    %c1_270 = arith.constant 1 : index
    %735 = memref.load %arg9[%c12_269, %c1_270] : memref<18x4xf32, #tpu.memory_space<smem>>
    %736 = vector.broadcast %735 : f32 to vector<15x15xf32>
    %737 = arith.mulf %736, %729 : vector<15x15xf32>
    %738 = arith.addf %734, %737 : vector<15x15xf32>
    %c12_271 = arith.constant 12 : index
    %c2_272 = arith.constant 2 : index
    %739 = memref.load %arg9[%c12_271, %c2_272] : memref<18x4xf32, #tpu.memory_space<smem>>
    %740 = vector.broadcast %739 : f32 to vector<15x15xf32>
    %741 = arith.mulf %740, %730 : vector<15x15xf32>
    %742 = arith.addf %738, %741 : vector<15x15xf32>
    %c12_273 = arith.constant 12 : index
    %c3_274 = arith.constant 3 : index
    %743 = memref.load %arg9[%c12_273, %c3_274] : memref<18x4xf32, #tpu.memory_space<smem>>
    %744 = vector.broadcast %743 : f32 to vector<15x15xf32>
    %745 = arith.mulf %744, %731 : vector<15x15xf32>
    %746 = arith.addf %742, %745 : vector<15x15xf32>
    %c12_275 = arith.constant 12 : index
    %747 = memref.load %arg10[%c12_275] : memref<18xf32, #tpu.memory_space<smem>>
    %748 = vector.broadcast %747 : f32 to vector<15x15xf32>
    %749 = arith.addf %746, %748 : vector<15x15xf32>
    %c13 = arith.constant 13 : index
    %c0_276 = arith.constant 0 : index
    %750 = memref.load %arg9[%c13, %c0_276] : memref<18x4xf32, #tpu.memory_space<smem>>
    %751 = vector.broadcast %750 : f32 to vector<15x15xf32>
    %752 = arith.mulf %751, %728 : vector<15x15xf32>
    %c13_277 = arith.constant 13 : index
    %c1_278 = arith.constant 1 : index
    %753 = memref.load %arg9[%c13_277, %c1_278] : memref<18x4xf32, #tpu.memory_space<smem>>
    %754 = vector.broadcast %753 : f32 to vector<15x15xf32>
    %755 = arith.mulf %754, %729 : vector<15x15xf32>
    %756 = arith.addf %752, %755 : vector<15x15xf32>
    %c13_279 = arith.constant 13 : index
    %c2_280 = arith.constant 2 : index
    %757 = memref.load %arg9[%c13_279, %c2_280] : memref<18x4xf32, #tpu.memory_space<smem>>
    %758 = vector.broadcast %757 : f32 to vector<15x15xf32>
    %759 = arith.mulf %758, %730 : vector<15x15xf32>
    %760 = arith.addf %756, %759 : vector<15x15xf32>
    %c13_281 = arith.constant 13 : index
    %c3_282 = arith.constant 3 : index
    %761 = memref.load %arg9[%c13_281, %c3_282] : memref<18x4xf32, #tpu.memory_space<smem>>
    %762 = vector.broadcast %761 : f32 to vector<15x15xf32>
    %763 = arith.mulf %762, %731 : vector<15x15xf32>
    %764 = arith.addf %760, %763 : vector<15x15xf32>
    %c13_283 = arith.constant 13 : index
    %765 = memref.load %arg10[%c13_283] : memref<18xf32, #tpu.memory_space<smem>>
    %766 = vector.broadcast %765 : f32 to vector<15x15xf32>
    %767 = arith.addf %764, %766 : vector<15x15xf32>
    %768 = arith.maximumf %749, %767 : vector<15x15xf32>
    %c14 = arith.constant 14 : index
    %c0_284 = arith.constant 0 : index
    %769 = memref.load %arg9[%c14, %c0_284] : memref<18x4xf32, #tpu.memory_space<smem>>
    %770 = vector.broadcast %769 : f32 to vector<15x15xf32>
    %771 = arith.mulf %770, %728 : vector<15x15xf32>
    %c14_285 = arith.constant 14 : index
    %c1_286 = arith.constant 1 : index
    %772 = memref.load %arg9[%c14_285, %c1_286] : memref<18x4xf32, #tpu.memory_space<smem>>
    %773 = vector.broadcast %772 : f32 to vector<15x15xf32>
    %774 = arith.mulf %773, %729 : vector<15x15xf32>
    %775 = arith.addf %771, %774 : vector<15x15xf32>
    %c14_287 = arith.constant 14 : index
    %c2_288 = arith.constant 2 : index
    %776 = memref.load %arg9[%c14_287, %c2_288] : memref<18x4xf32, #tpu.memory_space<smem>>
    %777 = vector.broadcast %776 : f32 to vector<15x15xf32>
    %778 = arith.mulf %777, %730 : vector<15x15xf32>
    %779 = arith.addf %775, %778 : vector<15x15xf32>
    %c14_289 = arith.constant 14 : index
    %c3_290 = arith.constant 3 : index
    %780 = memref.load %arg9[%c14_289, %c3_290] : memref<18x4xf32, #tpu.memory_space<smem>>
    %781 = vector.broadcast %780 : f32 to vector<15x15xf32>
    %782 = arith.mulf %781, %731 : vector<15x15xf32>
    %783 = arith.addf %779, %782 : vector<15x15xf32>
    %c14_291 = arith.constant 14 : index
    %784 = memref.load %arg10[%c14_291] : memref<18xf32, #tpu.memory_space<smem>>
    %785 = vector.broadcast %784 : f32 to vector<15x15xf32>
    %786 = arith.addf %783, %785 : vector<15x15xf32>
    %787 = arith.maximumf %768, %786 : vector<15x15xf32>
    %c15 = arith.constant 15 : index
    %c0_292 = arith.constant 0 : index
    %788 = memref.load %arg9[%c15, %c0_292] : memref<18x4xf32, #tpu.memory_space<smem>>
    %789 = vector.broadcast %788 : f32 to vector<15x15xf32>
    %790 = arith.mulf %789, %728 : vector<15x15xf32>
    %c15_293 = arith.constant 15 : index
    %c1_294 = arith.constant 1 : index
    %791 = memref.load %arg9[%c15_293, %c1_294] : memref<18x4xf32, #tpu.memory_space<smem>>
    %792 = vector.broadcast %791 : f32 to vector<15x15xf32>
    %793 = arith.mulf %792, %729 : vector<15x15xf32>
    %794 = arith.addf %790, %793 : vector<15x15xf32>
    %c15_295 = arith.constant 15 : index
    %c2_296 = arith.constant 2 : index
    %795 = memref.load %arg9[%c15_295, %c2_296] : memref<18x4xf32, #tpu.memory_space<smem>>
    %796 = vector.broadcast %795 : f32 to vector<15x15xf32>
    %797 = arith.mulf %796, %730 : vector<15x15xf32>
    %798 = arith.addf %794, %797 : vector<15x15xf32>
    %c15_297 = arith.constant 15 : index
    %c3_298 = arith.constant 3 : index
    %799 = memref.load %arg9[%c15_297, %c3_298] : memref<18x4xf32, #tpu.memory_space<smem>>
    %800 = vector.broadcast %799 : f32 to vector<15x15xf32>
    %801 = arith.mulf %800, %731 : vector<15x15xf32>
    %802 = arith.addf %798, %801 : vector<15x15xf32>
    %c15_299 = arith.constant 15 : index
    %803 = memref.load %arg10[%c15_299] : memref<18xf32, #tpu.memory_space<smem>>
    %804 = vector.broadcast %803 : f32 to vector<15x15xf32>
    %805 = arith.addf %802, %804 : vector<15x15xf32>
    %806 = arith.maximumf %787, %805 : vector<15x15xf32>
    %c16 = arith.constant 16 : index
    %c0_300 = arith.constant 0 : index
    %807 = memref.load %arg9[%c16, %c0_300] : memref<18x4xf32, #tpu.memory_space<smem>>
    %808 = vector.broadcast %807 : f32 to vector<15x15xf32>
    %809 = arith.mulf %808, %728 : vector<15x15xf32>
    %c16_301 = arith.constant 16 : index
    %c1_302 = arith.constant 1 : index
    %810 = memref.load %arg9[%c16_301, %c1_302] : memref<18x4xf32, #tpu.memory_space<smem>>
    %811 = vector.broadcast %810 : f32 to vector<15x15xf32>
    %812 = arith.mulf %811, %729 : vector<15x15xf32>
    %813 = arith.addf %809, %812 : vector<15x15xf32>
    %c16_303 = arith.constant 16 : index
    %c2_304 = arith.constant 2 : index
    %814 = memref.load %arg9[%c16_303, %c2_304] : memref<18x4xf32, #tpu.memory_space<smem>>
    %815 = vector.broadcast %814 : f32 to vector<15x15xf32>
    %816 = arith.mulf %815, %730 : vector<15x15xf32>
    %817 = arith.addf %813, %816 : vector<15x15xf32>
    %c16_305 = arith.constant 16 : index
    %c3_306 = arith.constant 3 : index
    %818 = memref.load %arg9[%c16_305, %c3_306] : memref<18x4xf32, #tpu.memory_space<smem>>
    %819 = vector.broadcast %818 : f32 to vector<15x15xf32>
    %820 = arith.mulf %819, %731 : vector<15x15xf32>
    %821 = arith.addf %817, %820 : vector<15x15xf32>
    %c16_307 = arith.constant 16 : index
    %822 = memref.load %arg10[%c16_307] : memref<18xf32, #tpu.memory_space<smem>>
    %823 = vector.broadcast %822 : f32 to vector<15x15xf32>
    %824 = arith.addf %821, %823 : vector<15x15xf32>
    %825 = arith.maximumf %806, %824 : vector<15x15xf32>
    %c17 = arith.constant 17 : index
    %c0_308 = arith.constant 0 : index
    %826 = memref.load %arg9[%c17, %c0_308] : memref<18x4xf32, #tpu.memory_space<smem>>
    %827 = vector.broadcast %826 : f32 to vector<15x15xf32>
    %828 = arith.mulf %827, %728 : vector<15x15xf32>
    %c17_309 = arith.constant 17 : index
    %c1_310 = arith.constant 1 : index
    %829 = memref.load %arg9[%c17_309, %c1_310] : memref<18x4xf32, #tpu.memory_space<smem>>
    %830 = vector.broadcast %829 : f32 to vector<15x15xf32>
    %831 = arith.mulf %830, %729 : vector<15x15xf32>
    %832 = arith.addf %828, %831 : vector<15x15xf32>
    %c17_311 = arith.constant 17 : index
    %c2_312 = arith.constant 2 : index
    %833 = memref.load %arg9[%c17_311, %c2_312] : memref<18x4xf32, #tpu.memory_space<smem>>
    %834 = vector.broadcast %833 : f32 to vector<15x15xf32>
    %835 = arith.mulf %834, %730 : vector<15x15xf32>
    %836 = arith.addf %832, %835 : vector<15x15xf32>
    %c17_313 = arith.constant 17 : index
    %c3_314 = arith.constant 3 : index
    %837 = memref.load %arg9[%c17_313, %c3_314] : memref<18x4xf32, #tpu.memory_space<smem>>
    %838 = vector.broadcast %837 : f32 to vector<15x15xf32>
    %839 = arith.mulf %838, %731 : vector<15x15xf32>
    %840 = arith.addf %836, %839 : vector<15x15xf32>
    %c17_315 = arith.constant 17 : index
    %841 = memref.load %arg10[%c17_315] : memref<18xf32, #tpu.memory_space<smem>>
    %842 = vector.broadcast %841 : f32 to vector<15x15xf32>
    %843 = arith.addf %840, %842 : vector<15x15xf32>
    %844 = arith.maximumf %825, %843 : vector<15x15xf32>
    %845 = arith.negf %844 : vector<15x15xf32>
    %846 = math.exp %845 : vector<15x15xf32>
    %cst_316 = arith.constant 1.000000e+00 : f32
    %847 = vector.broadcast %cst_316 : f32 to vector<15x15xf32>
    %848 = arith.addf %847, %846 : vector<15x15xf32>
    %849 = arith.divf %847, %848 : vector<15x15xf32>
    %850 = vector.extract_strided_slice %849 {offsets = [0, 0], sizes = [2, 15], strides = [1, 1]} : vector<15x15xf32> to vector<2x15xf32>
    %cst_317 = arith.constant dense<0xFF800000> : vector<15xf32>
    %851 = vector.multi_reduction <maximumf>, %850, %cst_317 [0] : vector<2x15xf32> to vector<15xf32>
    %852 = vector.shape_cast %851 : vector<15xf32> to vector<1x15xf32>
    %853 = vector.extract_strided_slice %849 {offsets = [1, 0], sizes = [3, 15], strides = [1, 1]} : vector<15x15xf32> to vector<3x15xf32>
    %cst_318 = arith.constant dense<0xFF800000> : vector<15xf32>
    %854 = vector.multi_reduction <maximumf>, %853, %cst_318 [0] : vector<3x15xf32> to vector<15xf32>
    %855 = vector.shape_cast %854 : vector<15xf32> to vector<1x15xf32>
    %856 = vector.extract_strided_slice %849 {offsets = [3, 0], sizes = [3, 15], strides = [1, 1]} : vector<15x15xf32> to vector<3x15xf32>
    %cst_319 = arith.constant dense<0xFF800000> : vector<15xf32>
    %857 = vector.multi_reduction <maximumf>, %856, %cst_319 [0] : vector<3x15xf32> to vector<15xf32>
    %858 = vector.shape_cast %857 : vector<15xf32> to vector<1x15xf32>
    %859 = vector.extract_strided_slice %849 {offsets = [5, 0], sizes = [3, 15], strides = [1, 1]} : vector<15x15xf32> to vector<3x15xf32>
    %cst_320 = arith.constant dense<0xFF800000> : vector<15xf32>
    %860 = vector.multi_reduction <maximumf>, %859, %cst_320 [0] : vector<3x15xf32> to vector<15xf32>
    %861 = vector.shape_cast %860 : vector<15xf32> to vector<1x15xf32>
    %862 = vector.extract_strided_slice %849 {offsets = [7, 0], sizes = [3, 15], strides = [1, 1]} : vector<15x15xf32> to vector<3x15xf32>
    %cst_321 = arith.constant dense<0xFF800000> : vector<15xf32>
    %863 = vector.multi_reduction <maximumf>, %862, %cst_321 [0] : vector<3x15xf32> to vector<15xf32>
    %864 = vector.shape_cast %863 : vector<15xf32> to vector<1x15xf32>
    %865 = vector.extract_strided_slice %849 {offsets = [9, 0], sizes = [3, 15], strides = [1, 1]} : vector<15x15xf32> to vector<3x15xf32>
    %cst_322 = arith.constant dense<0xFF800000> : vector<15xf32>
    %866 = vector.multi_reduction <maximumf>, %865, %cst_322 [0] : vector<3x15xf32> to vector<15xf32>
    %867 = vector.shape_cast %866 : vector<15xf32> to vector<1x15xf32>
    %868 = vector.extract_strided_slice %849 {offsets = [11, 0], sizes = [3, 15], strides = [1, 1]} : vector<15x15xf32> to vector<3x15xf32>
    %cst_323 = arith.constant dense<0xFF800000> : vector<15xf32>
    %869 = vector.multi_reduction <maximumf>, %868, %cst_323 [0] : vector<3x15xf32> to vector<15xf32>
    %870 = vector.shape_cast %869 : vector<15xf32> to vector<1x15xf32>
    %871 = vector.extract_strided_slice %849 {offsets = [13, 0], sizes = [2, 15], strides = [1, 1]} : vector<15x15xf32> to vector<2x15xf32>
    %cst_324 = arith.constant dense<0xFF800000> : vector<15xf32>
    %872 = vector.multi_reduction <maximumf>, %871, %cst_324 [0] : vector<2x15xf32> to vector<15xf32>
    %873 = vector.shape_cast %872 : vector<15xf32> to vector<1x15xf32>
    %874 = tpu.concatenate %852, %855, %858, %861, %864, %867, %870, %873 in 0 : vector<1x15xf32>, vector<1x15xf32>, vector<1x15xf32>, vector<1x15xf32>, vector<1x15xf32>, vector<1x15xf32>, vector<1x15xf32>, vector<1x15xf32> -> vector<8x15xf32>
    %875 = vector.extract_strided_slice %874 {offsets = [0, 0], sizes = [8, 2], strides = [1, 1]} : vector<8x15xf32> to vector<8x2xf32>
    %cst_325 = arith.constant dense<0xFF800000> : vector<8xf32>
    %876 = vector.multi_reduction <maximumf>, %875, %cst_325 [1] : vector<8x2xf32> to vector<8xf32>
    %877 = vector.shape_cast %876 : vector<8xf32> to vector<8x1xf32>
    %878 = vector.extract_strided_slice %874 {offsets = [0, 1], sizes = [8, 3], strides = [1, 1]} : vector<8x15xf32> to vector<8x3xf32>
    %cst_326 = arith.constant dense<0xFF800000> : vector<8xf32>
    %879 = vector.multi_reduction <maximumf>, %878, %cst_326 [1] : vector<8x3xf32> to vector<8xf32>
    %880 = vector.shape_cast %879 : vector<8xf32> to vector<8x1xf32>
    %881 = vector.extract_strided_slice %874 {offsets = [0, 3], sizes = [8, 3], strides = [1, 1]} : vector<8x15xf32> to vector<8x3xf32>
    %cst_327 = arith.constant dense<0xFF800000> : vector<8xf32>
    %882 = vector.multi_reduction <maximumf>, %881, %cst_327 [1] : vector<8x3xf32> to vector<8xf32>
    %883 = vector.shape_cast %882 : vector<8xf32> to vector<8x1xf32>
    %884 = vector.extract_strided_slice %874 {offsets = [0, 5], sizes = [8, 3], strides = [1, 1]} : vector<8x15xf32> to vector<8x3xf32>
    %cst_328 = arith.constant dense<0xFF800000> : vector<8xf32>
    %885 = vector.multi_reduction <maximumf>, %884, %cst_328 [1] : vector<8x3xf32> to vector<8xf32>
    %886 = vector.shape_cast %885 : vector<8xf32> to vector<8x1xf32>
    %887 = vector.extract_strided_slice %874 {offsets = [0, 7], sizes = [8, 3], strides = [1, 1]} : vector<8x15xf32> to vector<8x3xf32>
    %cst_329 = arith.constant dense<0xFF800000> : vector<8xf32>
    %888 = vector.multi_reduction <maximumf>, %887, %cst_329 [1] : vector<8x3xf32> to vector<8xf32>
    %889 = vector.shape_cast %888 : vector<8xf32> to vector<8x1xf32>
    %890 = vector.extract_strided_slice %874 {offsets = [0, 9], sizes = [8, 3], strides = [1, 1]} : vector<8x15xf32> to vector<8x3xf32>
    %cst_330 = arith.constant dense<0xFF800000> : vector<8xf32>
    %891 = vector.multi_reduction <maximumf>, %890, %cst_330 [1] : vector<8x3xf32> to vector<8xf32>
    %892 = vector.shape_cast %891 : vector<8xf32> to vector<8x1xf32>
    %893 = vector.extract_strided_slice %874 {offsets = [0, 11], sizes = [8, 3], strides = [1, 1]} : vector<8x15xf32> to vector<8x3xf32>
    %cst_331 = arith.constant dense<0xFF800000> : vector<8xf32>
    %894 = vector.multi_reduction <maximumf>, %893, %cst_331 [1] : vector<8x3xf32> to vector<8xf32>
    %895 = vector.shape_cast %894 : vector<8xf32> to vector<8x1xf32>
    %896 = vector.extract_strided_slice %874 {offsets = [0, 13], sizes = [8, 2], strides = [1, 1]} : vector<8x15xf32> to vector<8x2xf32>
    %cst_332 = arith.constant dense<0xFF800000> : vector<8xf32>
    %897 = vector.multi_reduction <maximumf>, %896, %cst_332 [1] : vector<8x2xf32> to vector<8xf32>
    %898 = vector.shape_cast %897 : vector<8xf32> to vector<8x1xf32>
    %899 = tpu.concatenate %877, %880, %883, %886, %889, %892, %895, %898 in 1 : vector<8x1xf32>, vector<8x1xf32>, vector<8x1xf32>, vector<8x1xf32>, vector<8x1xf32>, vector<8x1xf32>, vector<8x1xf32>, vector<8x1xf32> -> vector<8x8xf32>
    %c0_333 = arith.constant 0 : index
    %c0_334 = arith.constant 0 : index
    %900 = vector.load %arg11[%c0_333, %c0_334] : memref<8x1xf32, #tpu.memory_space<vmem>>, vector<8x1xf32>
    %c0_335 = arith.constant 0 : index
    %c0_336 = arith.constant 0 : index
    %901 = memref.load %arg12[%c0_335, %c0_336] : memref<1x1xf32, #tpu.memory_space<smem>>
    %cst_337 = arith.constant dense<0.000000e+00> : vector<8x1xf32>
    %902 = tpu.matmul %899, %900, %cst_337 {dimension_numbers = #tpu.dot_dimension_numbers<[1], [0], [0], [1], [0, 0, 1, 1], [], []>} : vector<8x8xf32>, vector<8x1xf32>, vector<8x1xf32> -> vector<8x1xf32>
    %903 = vector.broadcast %901 : f32 to vector<8x1xf32>
    %904 = arith.addf %902, %903 : vector<8x1xf32>
    %905 = arith.negf %904 : vector<8x1xf32>
    %906 = math.exp %905 : vector<8x1xf32>
    %cst_338 = arith.constant 1.000000e+00 : f32
    %907 = vector.broadcast %cst_338 : f32 to vector<8x1xf32>
    %908 = arith.addf %907, %906 : vector<8x1xf32>
    %909 = arith.divf %907, %908 : vector<8x1xf32>
    %910 = arith.mulf %909, %900 : vector<8x1xf32>
    %911 = vector.shape_cast %910 : vector<8x1xf32> to vector<1x8x1xf32>
    %cst_339 = arith.constant dense<0.000000e+00> : vector<1xf32>
    %912 = vector.multi_reduction <add>, %911, %cst_339 [1, 2] : vector<1x8x1xf32> to vector<1xf32>
    %913 = vector.shape_cast %912 : vector<1xf32> to vector<1x1x1xf32>
    %914 = vector.extract %913[0, 0, 0] : f32 from vector<1x1x1xf32>
    %915 = vector.broadcast %914 : f32 to vector<1x1xf32>
    %916 = vector.broadcast %901 : f32 to vector<1x1xf32>
    %917 = arith.addf %915, %916 : vector<1x1xf32>
    %918 = arith.negf %917 : vector<1x1xf32>
    %919 = math.exp %918 : vector<1x1xf32>
    %cst_340 = arith.constant 1.000000e+00 : f32
    %920 = vector.broadcast %cst_340 : f32 to vector<1x1xf32>
    %921 = arith.addf %920, %919 : vector<1x1xf32>
    %922 = arith.divf %920, %921 : vector<1x1xf32>
    %c0_341 = arith.constant 0 : index
    %c0_342 = arith.constant 0 : index
    %c0_343 = arith.constant 0 : index
    %923 = vector.load %arg13[%c0_341, %c0_342, %c0_343] : memref<1x1x1xf32, #tpu.memory_space<vmem>>, vector<1x1x1xf32>
    %924 = vector.shape_cast %923 : vector<1x1x1xf32> to vector<1x1xf32>
    %925 = vector.shape_cast %922 : vector<1x1xf32> to vector<1x1x1xf32>
    tpu.vector_store %arg13[%c0_341, %c0_342, %c0_343], %925 {strides = array<i32>} : memref<1x1x1xf32, #tpu.memory_space<vmem>>, vector<1x1x1xf32>,
    return
  }
  func.func @transform_0(%arg0: i32) -> (i32, i32, i32) {
    %c0_i32 = arith.constant 0 : i32
    %c0_i32_0 = arith.constant 0 : i32
    %c0_i32_1 = arith.constant 0 : i32
    return %arg0, %c0_i32, %c0_i32_0 : i32, i32, i32
  }
  func.func @transform_1(%arg0: i32) -> (i32, i32, i32) {
    %c0_i32 = arith.constant 0 : i32
    %c0_i32_0 = arith.constant 0 : i32
    %c0_i32_1 = arith.constant 0 : i32
    return %arg0, %c0_i32, %c0_i32_0 : i32, i32, i32
  }
  func.func @transform_2(%arg0: i32) -> (i32, i32) {
    %c0_i32 = arith.constant 0 : i32
    %c0_i32_0 = arith.constant 0 : i32
    %c0_i32_1 = arith.constant 0 : i32
    return %c0_i32, %c0_i32_0 : i32, i32
  }
  func.func @transform_3(%arg0: i32) -> (i32, i32, i32) {
    %c0_i32 = arith.constant 0 : i32
    %c0_i32_0 = arith.constant 0 : i32
    %c0_i32_1 = arith.constant 0 : i32
    %c0_i32_2 = arith.constant 0 : i32
    return %c0_i32, %c0_i32_0, %c0_i32_1 : i32, i32, i32
  }
  func.func @transform_4(%arg0: i32) -> (i32, i32, i32) {
    %c0_i32 = arith.constant 0 : i32
    %c0_i32_0 = arith.constant 0 : i32
    %c0_i32_1 = arith.constant 0 : i32
    %c0_i32_2 = arith.constant 0 : i32
    return %c0_i32, %c0_i32_0, %c0_i32_1 : i32, i32, i32
  }
  func.func @transform_5(%arg0: i32) -> (i32, i32, i32) {
    %c0_i32 = arith.constant 0 : i32
    %c0_i32_0 = arith.constant 0 : i32
    %c0_i32_1 = arith.constant 0 : i32
    %c0_i32_2 = arith.constant 0 : i32
    return %c0_i32, %c0_i32_0, %c0_i32_1 : i32, i32, i32
  }
  func.func @transform_6(%arg0: i32) -> (i32, i32, i32) {
    %c0_i32 = arith.constant 0 : i32
    %c0_i32_0 = arith.constant 0 : i32
    %c0_i32_1 = arith.constant 0 : i32
    %c0_i32_2 = arith.constant 0 : i32
    return %c0_i32, %c0_i32_0, %c0_i32_1 : i32, i32, i32
  }
  func.func @transform_7(%arg0: i32) -> (i32, i32) {
    %c0_i32 = arith.constant 0 : i32
    %c0_i32_0 = arith.constant 0 : i32
    %c0_i32_1 = arith.constant 0 : i32
    return %c0_i32, %c0_i32_0 : i32, i32
  }
  func.func @transform_8(%arg0: i32) -> (i32, i32) {
    %c0_i32 = arith.constant 0 : i32
    %c0_i32_0 = arith.constant 0 : i32
    %c0_i32_1 = arith.constant 0 : i32
    return %c0_i32, %c0_i32_0 : i32, i32
  }
  func.func @transform_9(%arg0: i32) -> i32 {
    %c0_i32 = arith.constant 0 : i32
    %c0_i32_0 = arith.constant 0 : i32
    return %c0_i32 : i32
  }
  func.func @transform_10(%arg0: i32) -> (i32, i32) {
    %c0_i32 = arith.constant 0 : i32
    %c0_i32_0 = arith.constant 0 : i32
    %c0_i32_1 = arith.constant 0 : i32
    return %c0_i32, %c0_i32_0 : i32, i32
  }
  func.func @transform_11(%arg0: i32) -> (i32, i32) {
    %c0_i32 = arith.constant 0 : i32
    %c0_i32_0 = arith.constant 0 : i32
    %c0_i32_1 = arith.constant 0 : i32
    return %c0_i32, %c0_i32_0 : i32, i32
  }
  func.func @transform_12(%arg0: i32) -> (i32, i32, i32) {
    %c0_i32 = arith.constant 0 : i32
    %c0_i32_0 = arith.constant 0 : i32
    %c0_i32_1 = arith.constant 0 : i32
    return %arg0, %c0_i32, %c0_i32_0 : i32, i32, i32
  }
}

</mosaic_0001>

<bundles_post_ra>
// kernel: multigrancnn_forward.2
= control target key start
LH: loop header
LB: loop body
LE: loop exit
PB: predicated region body
PF: predicated region fallthrough
CT: control target
= control target key end

     0   :  { %vm57_vm0 = vcmask 1043456   ;;  %s1876_s28 = smov 4   ;;  %v1877_v4 = vmov 0.0   ;;  %vm61_vm1 = vcmask 1046528   ;;  %s1878_s8 = smov 11   ;;  %vm2416_vm2 = vcmask 1045504   ;;  %s2405_s1 = inlined_call_operand.vmem [shape: f32[11,4], index: 1, kind: input, shape index: {}]   ;;  %s2406_s0 = inlined_call_operand.vmem [shape: f32[4,11], index: 0, kind: input, shape index: {}]   ;;  %s2407_s2 = inlined_call_operand.vmem [shape: f32[3,22,11], index: 2, kind: input, shape index: {}]   ;;  %s2408_s3 = inlined_call_operand.vmem [shape: f32[3,11,22], index: 3, kind: input, shape index: {}]   ;;  %s2409_s5 = inlined_call_operand.vmem [shape: f32[3,11,1], index: 5, kind: input, shape index: {}]   ;;  %s2410_s4 = inlined_call_operand.vmem [shape: f32[3,1,11], index: 4, kind: input, shape index: {}]   ;;  %s2411_s6 = inlined_call_operand.vmem [shape: f32[11,11], index: 6, kind: input, shape index: {}]   ;;  %s2412_s7 = inlined_call_operand.vmem [shape: f32[13,11], index: 7, kind: output, shape index: {}]  }
   0x1   :  { %v44_v0 = vld [vmem:[%s2405_s1] sm:$0xff]  ;;  %v45_v3 = vld [vmem:[%s2405_s1 + $0x8] sm:$0x7]  ;;  %v1934_v5 = vrot.slane %v1877_v4, 1  ;;  %v48_v12 = vld [vmem:[%s2407_s2 + $0x10] sm:$0x3f]  ;;  %v26_v36 = vlaneseq }
   0x2   :  { %v43_v1 = vld [vmem:[%s2406_s0] sm:$0xf]  ;;  %170 = vrot.lane.b32.xlu0 %v44_v0, %s1876_s28  ;;  %v47_v10 = vld [vmem:[%s2407_s2 + $0x8] sm:$0xff]  ;;  %vm2415_vm3 = vcmask 31744   ;;  %vm2414_vm4 = vcmask 64512   ;;  %vm80_vm5 = vcmask 179200  }
   0x3   :  { %v55_v2 = vrot.slane %v43_v1, 4  ;;  %v46_v9 = vld [vmem:[%s2407_s2] sm:$0xff]  ;;  %v1879_v18 = vmov 0   ;;  %s1880_s18 = smov 127   ;;  %vm184_vm6 = vcmask 1042432   ;;  %vm71_vm7 = vcmask 89088  }
   0x4   :  { %v1790_v11 = vpack.c.bf16 %v47_v10, %v46_v9  ;;  %v49_v13 = vld [vmem:[%s2408_s3] sm:$0xff]  ;;  %1854 = vset.pattern.permute.xlu1 %v1879_v18  ;;  %1853 = vset.pattern.permute.xlu0 %v1879_v18  ;;  %v53_v27 = vld [vmem:[%s2409_s5 + $0x8] sm:$0x7]  ;;  %vm2413_vm8 = vmmov 1   ;;  %v1995_v37 = vshrl.u32 %v26_v36, 7  ;;  %v1997_v38 = vand.u32 127, %v26_v36 }
   0x5   :  { %v58_v6 = vsel %vm57_vm0, 0.0, %v55_v2  ;;  %1725 = vmatprep.mubr.msk.f32.mxu1 %vm80_vm5, %v49_v13  ;;  %v52_v19 = vld [vmem:[%s2409_s5] sm:$0xff]  ;;  %vm1976_vm9 = vmpackc.low %vm2413_vm8, %vm2414_vm4  ;;  %v50_v33 = vld [vmem:[%s2408_s3 + $0x8] sm:$0x7]  ;;  %vm292_vm11 = vcmask 83968  }
   0x6   :  { %v62_v7 = vrot.slane %v58_v6, 1  ;;  %172 = vrot.lane.b32.xlu0 %v45_v3, %s1876_s28  ;;  %1791 = vmatprep.subr.bf16.mxu0 %v1790_v11  ;;  %vm31_vm10 = vcmp.lt.s32.totalorder %v1997_v38, %v1995_v37  ;;  %v1574_v41 = vld [vmem:[%s2410_s4] ss:$0 sm:$0xff]  ;;  %v1478_v30 = vld [vmem:[%s2411_s6 + $0x8] sm:$0x7] }
   0x7   :  { %1793 = vmatpush3.bf16.msra.mxu0 %v1790_v11  ;;  %v2002_v39 = vsel %vm31_vm10, 1.0, %v1877_v4 }
   0x8   :  { %v64_v8 = vsel %vm61_vm1, %v62_v7, %v1934_v5  ;;  %1714 = vmatprep.subr.msk.mxu0 %vm2416_vm2, %v48_v12 }
   0xa   :  { %65 = vrot.lane.b32.xlu0 %v64_v8, %s1878_s8 }
   0xb   :  { %1715 = vmatpush3.msk.msra.mxu0 %vm2416_vm2, %v48_v12 }
   0xe   :  { %196 = vperm.xlu0 %1853, %v52_v19  }
  0x74   :  { %v171_v14 = vpop.permute.xlu0 %170 }
  0x75   :  { %v177_v15 = vsel %vm2415_vm3, 0.0, %v171_v14 }
  0x76   :  { %v180_v16 = vsel %vm2414_vm4, %v177_v15, 0.0 }
  0x77   :  { %v185_v17 = vrot.slane %v180_v16, 5 }
  0x78   :  { %v173_v20 = vpop.permute.xlu0 %172 }
  0x79   :  { %v178_v21 = vsel %vm2415_vm3, 0.0, %v173_v20  ;;  %188 = vrot.lane.b32.xlu1 %v185_v17, %s1880_s18 }
  0x7a   :  { %v181_v22 = vsel %vm2414_vm4, %v178_v21, 0.0 }
  0x7b   :  { %v186_v23 = vrot.slane %v181_v22, 5 }
  0x7c   :  { %v66_v24 = vpop.permute.xlu0 %65 }
  0x7d   :  { %v187_v25 = vsel %vm184_vm6, %v185_v17, %v186_v23  ;;  %v72_v26 = vsel %vm71_vm7, %v58_v6, %v66_v24 }
  0x7e   :  { %190 = vrot.lane.b32.xlu1 %v187_v25, %s1880_s18  ;;  %1716 = vmatprep.mubr.msk.f32.mxu0 %vm80_vm5, %v72_v26 }
  0x82   :  { %67 = vrot.lane.b32.xlu1 %v1934_v5, %s1878_s8 }
  0x86   :  { %201 = vperm.xlu1 %1854, %v53_v27  }
  0x8d   :  { %v197_v42 = vpop.permute.xlu0 %196 }
  0xeb   :  { %v189_v28 = vpop.permute.xlu1 %188 }
  0xec   :  { %v193_v29 = vsel %vm184_vm6, %v181_v22, %v189_v28 }
  0xed   :  { %v1794_v31 = vpack.c.bf16 %v193_v29, %v177_v15 }
  0xef   :  { %1796 = vmatprep.subr.msk.bf16.mxu1 %vm1976_vm9, %v1794_v31 }
  0xf0   :  { %1799 = vmatpush3.bf16.msk.msra.mxu1 %vm1976_vm9, %v1794_v31  ;;  %v191_v32 = vpop.permute.xlu1 %190 }
  0xf1   :  { %1723 = vmatprep.subr.msk.mxu1 %vm2416_vm2, %v191_v32 }
  0xf4   :  { %1724 = vmatpush3.msk.msra.mxu1 %vm2416_vm2, %v191_v32  ;;  %v68_v34 = vpop.permute.xlu1 %67 }
  0xf5   :  { %v1990_v35 = vsel %vm71_vm7, 0.0, %v68_v34  ;;  %1726 = vmatmul.mubr.msk.f32.vlgmr.msra.gmra.mrb[0].mxu1 %vm80_vm5, %v50_v33 }
  0xf6   :  { %1717 = vmatmul.mubr.msk.f32.vlgmr.msra.gmra.mrb[0].mxu0 %vm80_vm5, %v1990_v35  ;;  %1739 = vmatprep.mubr.msk.f32.mxu1 %vm71_vm7, %v2002_v39 }
 0x105   :  { %v202_v40 = vpop.permute.xlu1 %201 }
 0x1c8   :  { %v1727_v43 = vpop.f32.mrb[0].mxu1 }
 0x1c9   :  { %v278_v44 = vpop.f32.mrb[1].mxu1  ;;  %v284_v45 = vadd.f32 %v1727_v43, %v202_v40  ;;  %v1718_v46 = vpop.f32.mrb[0].mxu0 }
 0x1ca   :  { %v163_v47 = vadd.f32 %v1718_v46, %v1574_v41  ;;  %v279_v48 = vadd.f32 %v278_v44, %v197_v42  ;;  %v157_v49 = vpop.f32.mrb[1].mxu0  ;;  %v2036_v42 = vadd.s32 8, %v1995_v37  ;;  %v1882_v44 = vmov 1.0  }
 0x1cb   :  { %1855 = vtanh.f32 %v284_v45  ;;  %v158_v50 = vadd.f32 %v1574_v41, %v157_v49 }
 0x1cc   :  { %1857 = vtanh.f32 %v163_v47 }
 0x1cd   :  { %1859 = vtanh.f32 %v279_v48 }
 0x1ce   :  { %1861 = vtanh.f32 %v158_v50 }
 0x1d5   :  { %v2009_v51 = vpop.eup %1855 }
 0x1d6   :  { %v2011_v52 = vpop.eup %1857  ;;  %v301_v53 = vsel %vm292_vm11, %v2009_v51, -inf }
 0x1d7   :  { %v2015_v54 = vpop.eup %1859  ;;  %v293_v55 = vsel %vm292_vm11, %v2011_v52, -inf }
 0x1d8   :  { %v2019_v56 = vpop.eup %1861  ;;  %294 = vmax.xlane.f32.xlu0 %v293_v55  ;;  %v300_v57 = vsel %vm71_vm7, %v2015_v54, -inf }
 0x1d9   :  { %v289_v58 = vsel %vm71_vm7, %v2019_v56, -inf  ;;  %v302_v59 = vmax.f32 %v300_v57, %v301_v53 }
 0x1da   :  { %290 = vmax.xlane.f32.xlu1 %v289_v58 }
 0x1db   :  { %v303_v60 = vrot.slane %v302_v59, 4 }
 0x1dd   :  { %v304_v61 = vmax.f32 %v302_v59, %v303_v60 }
 0x1df   :  { %v305_v62 = vrot.slane %v304_v61, 2 }
 0x1e1   :  { %v306_v63 = vmax.f32 %v304_v61, %v305_v62 }
 0x1e3   :  { %v307_v0 = vrot.slane %v306_v63, 1 }
 0x1e5   :  { %v308_v1 = vmax.f32 %v306_v63, %v307_v0 }
 0x1e7   :  { %vm309_vm12 = vcmp.ge.f32.partialorder %v2015_v54, %v308_v1  ;;  %vm310_vm13 = vcmp.ge.f32.partialorder %v2009_v51, %v308_v1 }
 0x1e8   :  { %v311_v2 = vsel %vm309_vm12, -inf, %v2015_v54  ;;  %v312_v3 = vsel %vm310_vm13, -inf, %v2009_v51 }
 0x1e9   :  { %v323_v6 = vsel %vm71_vm7, %v311_v2, -inf  ;;  %v324_v7 = vsel %vm292_vm11, %v312_v3, -inf }
 0x1ea   :  { %v325_v8 = vmax.f32 %v323_v6, %v324_v7 }
 0x1ec   :  { %v326_v9 = vrot.slane %v325_v8, 4 }
 0x1ee   :  { %v327_v10 = vmax.f32 %v325_v8, %v326_v9 }
 0x1f0   :  { %v328_v11 = vrot.slane %v327_v10, 2 }
 0x1f2   :  { %v329_v12 = vmax.f32 %v327_v10, %v328_v11 }
 0x1f4   :  { %v330_v13 = vrot.slane %v329_v12, 1 }
 0x1f6   :  { %v331_v14 = vmax.f32 %v329_v12, %v330_v13 }
 0x1f8   :  { %vm332_vm14 = vcmp.ge.f32.partialorder %v311_v2, %v331_v14  ;;  %vm333_vm15 = vcmp.ge.f32.partialorder %v312_v3, %v331_v14 }
 0x1f9   :  { %v334_v15 = vsel %vm332_vm14, -inf, %v311_v2  ;;  %v335_v16 = vsel %vm333_vm15, -inf, %v312_v3 }
 0x1fa   :  { %v346_v17 = vsel %vm71_vm7, %v334_v15, -inf  ;;  %v347_v18 = vsel %vm292_vm11, %v335_v16, -inf }
 0x1fb   :  { %v348_v19 = vmax.f32 %v346_v17, %v347_v18 }
 0x1fd   :  { %v349_v20 = vrot.slane %v348_v19, 4 }
 0x1ff   :  { %v350_v21 = vmax.f32 %v348_v19, %v349_v20 }
 0x201   :  { %v351_v22 = vrot.slane %v350_v21, 2 }
 0x203   :  { %v352_v23 = vmax.f32 %v350_v21, %v351_v22 }
 0x205   :  { %v353_v24 = vrot.slane %v352_v23, 1 }
 0x207   :  { %v354_v25 = vmax.f32 %v352_v23, %v353_v24 }
 0x209   :  { %vm355_vm10 = vcmp.ge.f32.partialorder %v334_v15, %v354_v25  ;;  %vm356_vm12 = vcmp.ge.f32.partialorder %v335_v16, %v354_v25 }
 0x20a   :  { %v357_v26 = vsel %vm355_vm10, -inf, %v334_v15  ;;  %v358_v27 = vsel %vm356_vm12, -inf, %v335_v16  ;;  %vm32_vm10 = vcmp.lt.s32.totalorder %v1997_v38, %v2036_v42 }
 0x20b   :  { %v365_v28 = vsel %vm71_vm7, %v357_v26, -inf  ;;  %v366_v29 = vsel %vm292_vm11, %v358_v27, -inf  ;;  %v2048_v46 = vsel %vm32_vm10, 1.0, %v1877_v4 }
 0x20c   :  { %v367_v31 = vmax.f32 %v365_v28, %v366_v29 }
 0x20e   :  { %v368_v32 = vrot.slane %v367_v31, 4 }
 0x210   :  { %v369_v33 = vmax.f32 %v367_v31, %v368_v32 }
 0x212   :  { %v370_v34 = vrot.slane %v369_v33, 2 }
 0x214   :  { %v371_v36 = vmax.f32 %v369_v33, %v370_v34 }
 0x216   :  { %v372_v40 = vrot.slane %v371_v36, 1 }
 0x218   :  { %v373_v41 = vmax.f32 %v371_v36, %v372_v40 }
 0x21a   :  { %vm380_vm13 = vcmp.ge.f32.partialorder %v2015_v54, %v373_v41  ;;  %vm381_vm14 = vcmp.ge.f32.partialorder %v2009_v51, %v373_v41 }
 0x21b   :  { %v1585_v43 = vsel %vm381_vm14, 1.0, %v1877_v4  ;;  %vm1807_vm15 = vmpackc.low %vm184_vm6, %vm380_vm13  ;;  %v1584_v15 = vsel %vm380_vm13, 1.0, %v1877_v4  ;;  %vm37_vm13 = vcmp.lt.s32.totalorder %v1995_v37, %v1997_v38 }
 0x21c   :  { %v1806_v45 = vpack.c.bf16 %v1585_v43, %v1882_v44 }
 0x21e   :  { %1808 = vmatprep.subr.msk.bf16.mxu1 %vm1807_vm15, %v1806_v45 }
 0x21f   :  { %1811 = vmatpush3.bf16.msk.msra.mxu1 %vm1807_vm15, %v1806_v45 }
 0x222   :  { %1740 = vmatmul.mubr.msk.f32.vlgmr.msra.gmra.mrb[2].mxu1 %vm71_vm7, %v2048_v46 }
 0x265   :  { %v295_v47 = vpop.xlane.xlu0 %294 }
 0x266   :  { %vm297_vm12 = vcmp.ge.f32.partialorder %v2011_v52, %v295_v47 }
 0x267   :  { %v299_v48 = vsel %vm297_vm12, -inf, %v2011_v52  ;;  %v291_v49 = vpop.xlane.xlu1 %290 }
 0x268   :  { %vm296_vm14 = vcmp.ge.f32.partialorder %v2019_v56, %v291_v49  ;;  %v316_v50 = vsel %vm292_vm11, %v299_v48, -inf }
 0x269   :  { %v298_v53 = vsel %vm296_vm14, -inf, %v2019_v56  ;;  %317 = vmax.xlane.f32.xlu1 %v316_v50 }
 0x26a   :  { %v313_v55 = vsel %vm71_vm7, %v298_v53, -inf }
 0x26b   :  { %314 = vmax.xlane.f32.xlu0 %v313_v55 }
 0x2f5   :  { %v1741_v57 = vpop.f32.mrb[2].mxu1 }
 0x2f6   :  { %vm555_vm15 = vcmp.eq.f32.partialorder %v1741_v57, 0.0  ;;  %vm590_vm10 = vcmp.eq.f32.partialorder %v1741_v57, 1.0  ;;  %vm625_vm8 = vcmp.eq.f32.partialorder %v1741_v57, 2.0  ;;  %vm660_vm4 = vcmp.eq.f32.partialorder %v1741_v57, 3.0  ;;  %v545_v58 = vpop.f32.mrb[3].mxu1  ;;  %v318_v13 = vpop.xlane.xlu1 %317 }
 0x2f7   :  { %v1595_v59 = vsel %vm555_vm15, 1.0, %v1877_v4  ;;  %v1599_v60 = vsel %vm590_vm10, 1.0, %v1877_v4  ;;  %v1603_v61 = vsel %vm625_vm8, 1.0, %v1877_v4  ;;  %v1607_v62 = vsel %vm660_vm4, 1.0, %v1877_v4  ;;  %vm2098_vm10 = vmpackc.low %vm184_vm6, %vm37_vm13 }
 0x2f8   :  { %v561_v63 = vmul.f32 %v1595_v59, %v1585_v43  ;;  %v596_v0 = vmul.f32 %v1599_v60, %v1585_v43  ;;  %v631_v1 = vmul.f32 %v1603_v61, %v1585_v43  ;;  %v666_v2 = vmul.f32 %v1607_v62, %v1585_v43  ;;  %v315_v14 = vpop.xlane.xlu0 %314 }
 0x2f9   :  { %vm554_vm12 = vcmp.eq.f32.partialorder %v545_v58, 0.0  ;;  %vm589_vm14 = vcmp.eq.f32.partialorder %v545_v58, 1.0  ;;  %vm624_vm3 = vcmp.eq.f32.partialorder %v545_v58, 2.0  ;;  %vm659_vm2 = vcmp.eq.f32.partialorder %v545_v58, 3.0 }
 0x2fa   :  { %v571_v3 = vmul.f32 %v2009_v51, %v561_v63  ;;  %v606_v6 = vmul.f32 %v2009_v51, %v596_v0  ;;  %v641_v7 = vmul.f32 %v2009_v51, %v631_v1  ;;  %v676_v8 = vmul.f32 %v2009_v51, %v666_v2 }
 0x2fb   :  { %v1594_v9 = vsel %vm554_vm12, 1.0, %v1877_v4  ;;  %v1598_v10 = vsel %vm589_vm14, 1.0, %v1877_v4  ;;  %v1602_v11 = vsel %vm624_vm3, 1.0, %v1877_v4  ;;  %v1606_v12 = vsel %vm659_vm2, 1.0, %v1877_v4 }
 0x2fc   :  { %v573_v16 = vsel %vm292_vm11, %v571_v3, 0.0  ;;  %v608_v17 = vsel %vm292_vm11, %v606_v6, 0.0  ;;  %v560_v18 = vmul.f32 %v1594_v9, %v1584_v15  ;;  %v595_v51 = vmul.f32 %v1598_v10, %v1584_v15 }
 0x2fd   :  { %v630_v19 = vmul.f32 %v1602_v11, %v1584_v15  ;;  %v665_v20 = vmul.f32 %v1606_v12, %v1584_v15  ;;  %v643_v21 = vsel %vm292_vm11, %v641_v7, 0.0  ;;  %v678_v22 = vsel %vm292_vm11, %v676_v8, 0.0 }
 0x2fe   :  { %vm320_vm3 = vcmp.ge.f32.partialorder %v299_v48, %v318_v13  ;;  %vm319_vm2 = vcmp.ge.f32.partialorder %v298_v53, %v315_v14  ;;  %v570_v23 = vmul.f32 %v2015_v54, %v560_v18  ;;  %v605_v24 = vmul.f32 %v2015_v54, %v595_v51 }
 0x2ff   :  { %v640_v25 = vmul.f32 %v2015_v54, %v630_v19  ;;  %v675_v26 = vmul.f32 %v2015_v54, %v665_v20  ;;  %v322_v27 = vsel %vm320_vm3, -inf, %v299_v48  ;;  %v321_v28 = vsel %vm319_vm2, -inf, %v298_v53 }
 0x300   :  { %v572_v29 = vsel %vm71_vm7, %v570_v23, 0.0  ;;  %v607_v31 = vsel %vm71_vm7, %v605_v24, 0.0  ;;  %v339_v43 = vsel %vm292_vm11, %v322_v27, -inf  ;;  %v336_v45 = vsel %vm71_vm7, %v321_v28, -inf  ;;  %v1611_v23 = vld [vmem:[%s2407_s2 + $0x20] sm:$0xff] }
 0x301   :  { %v642_v32 = vsel %vm71_vm7, %v640_v25, 0.0  ;;  %v677_v33 = vsel %vm71_vm7, %v675_v26, 0.0  ;;  %v574_v34 = vadd.f32 %v573_v16, %v572_v29  ;;  %v609_v36 = vadd.f32 %v608_v17, %v607_v31  ;;  %340 = vmax.xlane.f32.xlu1 %v339_v43  ;;  %337 = vmax.xlane.f32.xlu0 %v336_v45  ;;  %v1618_v45 = vld [vmem:[%s2410_s4 + $0x1] ss:$0 sm:$0xff] }
 0x302   :  { %v644_v40 = vadd.f32 %v643_v21, %v642_v32  ;;  %v679_v41 = vadd.f32 %v678_v22, %v677_v33  ;;  %vm2418_vm4 = vcmask 1040384   ;;  %vm2417_vm8 = vcmask 1041408   ;;  %v1610_v22 = vld [vmem:[%s2407_s2 + $0x18] sm:$0xff] }
 0x303   :  { %v575_v47 = vrot.slane %v574_v34, 4  ;;  %v610_v54 = vrot.slane %v609_v36, 4  ;;  %vm38_vm15 = vcmp.lt.s32.totalorder %v2036_v42, %v1997_v38  ;;  %v1812_v24 = vpack.c.bf16 %v1611_v23, %v1610_v22 }
 0x304   :  { %v645_v48 = vrot.slane %v644_v40, 4  ;;  %v680_v49 = vrot.slane %v679_v41, 4  ;;  %v1573_v15 = vsel %vm38_vm15, 1.0, %v1877_v4 }
 0x305   :  { %v576_v50 = vadd.f32 %v575_v47, %v574_v34  ;;  %v611_v53 = vadd.f32 %v610_v54, %v609_v36  ;;  %v1800_v17 = vpack.c.bf16 %v1573_v15, %v1882_v44 }
 0x306   :  { %v646_v55 = vadd.f32 %v645_v48, %v644_v40  ;;  %v681_v57 = vadd.f32 %v680_v49, %v679_v41 }
 0x307   :  { %v577_v58 = vrot.slane %v576_v50, 2  ;;  %v612_v59 = vrot.slane %v611_v53, 2  ;;  %1802 = vmatprep.subr.msk.bf16.mxu0 %vm2098_vm10, %v1800_v17 }
 0x308   :  { %v647_v60 = vrot.slane %v646_v55, 2  ;;  %v682_v61 = vrot.slane %v681_v57, 2  ;;  %1805 = vmatpush3.bf16.msk.msra.mxu0 %vm2098_vm10, %v1800_v17 }
 0x309   :  { %v578_v62 = vadd.f32 %v577_v58, %v576_v50  ;;  %v613_v63 = vadd.f32 %v612_v59, %v611_v53  ;;  %1813 = vmatprep.subr.bf16.mxu0 %v1812_v24 }
 0x30a   :  { %v648_v0 = vadd.f32 %v647_v60, %v646_v55  ;;  %v683_v1 = vadd.f32 %v682_v61, %v681_v57 }
 0x30b   :  { %v579_v2 = vrot.slane %v578_v62, 1  ;;  %v614_v3 = vrot.slane %v613_v63, 1 }
 0x30c   :  { %v649_v6 = vrot.slane %v648_v0, 1  ;;  %v684_v7 = vrot.slane %v683_v1, 1 }
 0x30d   :  { %v580_v8 = vadd.f32 %v579_v2, %v578_v62  ;;  %v615_v9 = vadd.f32 %v614_v3, %v613_v63 }
 0x30e   :  { %v650_v10 = vadd.f32 %v649_v6, %v648_v0  ;;  %v685_v11 = vadd.f32 %v684_v7, %v683_v1 }
 0x30f   :  { %v695_v12 = vsel %vm2418_vm4, %v580_v8, %v615_v9 }
 0x310   :  { %v697_v13 = vsel %vm2417_vm8, %v695_v12, %v650_v10 }
 0x311   :  { %v2090_v14 = vsel %vm184_vm6, %v697_v13, %v685_v11 }
 0x312   :  { %v721_v20 = vrot.slane %v2090_v14, 4  ;;  %v1655_v14 = vld [vmem:[%s2408_s3 + $0x28] sm:$0x7] }
 0x314   :  { %v723_v21 = vsel %vm57_vm0, 0.0, %v721_v20 }
 0x315   :  { %v725_v25 = vrot.slane %v723_v21, 1 }
 0x317   :  { %v726_v26 = vsel %vm61_vm1, %v725_v25, %v1934_v5  ;;  %v1612_v5 = vld [vmem:[%s2407_s2 + $0x28] sm:$0x3f]  ;;  %vm2423_vm1 = vcmask 1045504  }
 0x318   :  { %vm2424_vm13 = vmmov %vm2423_vm1 }
 0x38e   :  { %v341_v18 = vpop.xlane.xlu1 %340  ;;  %v338_v37 = vpop.xlane.xlu0 %337 }
 0x38f   :  { %vm343_vm12 = vcmp.ge.f32.partialorder %v322_v27, %v341_v18  ;;  %vm342_vm14 = vcmp.ge.f32.partialorder %v321_v28, %v338_v37 }
 0x390   :  { %v345_v38 = vsel %vm343_vm12, -inf, %v322_v27  ;;  %v344_v42 = vsel %vm342_vm14, -inf, %v321_v28 }
 0x391   :  { %v362_v51 = vsel %vm292_vm11, %v345_v38, -inf  ;;  %v359_v19 = vsel %vm71_vm7, %v344_v42, -inf }
 0x392   :  { %363 = vmax.xlane.f32.xlu1 %v362_v51  ;;  %360 = vmax.xlane.f32.xlu0 %v359_v19 }
 0x3a8   :  { %727 = vrot.lane.b32.xlu0 %v726_v26, %s1878_s8 }
 0x41f   :  { %v364_v27 = vpop.xlane.xlu1 %363  ;;  %v361_v28 = vpop.xlane.xlu0 %360 }
 0x420   :  { %vm375_vm3 = vcmp.ge.f32.partialorder %v2011_v52, %v364_v27  ;;  %vm374_vm2 = vcmp.ge.f32.partialorder %v2019_v56, %v361_v28 }
 0x421   :  { %v2125_v29 = vsel %vm374_vm2, 1.0, %v1877_v4  ;;  %v2128_v31 = vsel %vm375_vm3, 1.0, %v1877_v4 }
 0x422   :  { %1732 = vmatprep.mubr.msk.f32.mxu0 %vm71_vm7, %v2125_v29 }
 0x423   :  { %1733 = vmatmul.mubr.msk.f32.vlgmr.msra.gmra.mrb[2].mxu0 %vm71_vm7, %v2128_v31  ;;  %v728_v32 = vpop.permute.xlu0 %727 }
 0x424   :  { %1815 = vmatpush3.bf16.msra.mxu0 %v1812_v24  ;;  %v730_v33 = vsel %vm71_vm7, %v723_v21, %v728_v32 }
 0x425   :  { %1748 = vmatprep.mubr.msk.f32.mxu0 %vm80_vm5, %v730_v33  ;;  %1746 = vmatprep.subr.msk.mxu0 %vm2423_vm1, %v1612_v5 }
 0x428   :  { %1747 = vmatpush3.msk.msra.mxu0 %vm2424_vm13, %v1612_v5 }
 0x429   :  { %1749 = vmatmul.mubr.msk.f32.vlgmr.msra.gmra.mrb[4].mxu0 %vm80_vm5, %v1990_v35  ;;  %1824 = vmatprep.subr.msk.bf16.mxu0 %vm2098_vm10, %v1800_v17 }
 0x42a   :  { %1827 = vmatpush3.bf16.msk.msra.mxu0 %vm2098_vm10, %v1800_v17 }
 0x4f6   :  { %v2147_v34 = vpop.f32.mrb[2].mxu0 }
 0x4f7   :  { %vm633_vm15 = vcmp.eq.f32.partialorder %v2147_v34, 2.0  ;;  %v461_v36 = vpop.f32.mrb[3].mxu0 }
 0x4f8   :  { %vm562_vm12 = vcmp.eq.f32.partialorder %v461_v36, 0.0  ;;  %v1605_v41 = vsel %vm633_vm15, 1.0, %v1877_v4  ;;  %vm597_vm3 = vcmp.eq.f32.partialorder %v461_v36, 1.0  ;;  %vm632_vm2 = vcmp.eq.f32.partialorder %v461_v36, 2.0 }
 0x4f9   :  { %v1596_v40 = vsel %vm562_vm12, 1.0, %v1877_v4  ;;  %v639_v35 = vmul.f32 %v1605_v41, %v2128_v31  ;;  %v1600_v7 = vsel %vm597_vm3, 1.0, %v1877_v4  ;;  %v1604_v12 = vsel %vm632_vm2, 1.0, %v1877_v4 }
 0x4fa   :  { %v568_v43 = vmul.f32 %v1596_v40, %v2125_v29  ;;  %v603_v10 = vmul.f32 %v1600_v7, %v2125_v29  ;;  %vm667_vm13 = vcmp.eq.f32.partialorder %v461_v36, 3.0  ;;  %v638_v17 = vmul.f32 %v1604_v12, %v2125_v29 }
 0x4fb   :  { %v652_v55 = vmul.f32 %v2011_v52, %v639_v35  ;;  %v1608_v18 = vsel %vm667_vm13, 1.0, %v1877_v4  ;;  %vm563_vm12 = vcmp.eq.f32.partialorder %v2147_v34, 0.0  ;;  %vm702_vm13 = vcmask 15360  }
 0x4fc   :  { %v1750_v47 = vpop.f32.mrb[4].mxu0  ;;  %v581_v54 = vmul.f32 %v2019_v56, %v568_v43  ;;  %v616_v16 = vmul.f32 %v2019_v56, %v603_v10  ;;  %v651_v38 = vmul.f32 %v2019_v56, %v638_v17  ;;  %v673_v42 = vmul.f32 %v1608_v18, %v2125_v29 }
 0x4fd   :  { %v809_v48 = vpop.f32.mrb[5].mxu0  ;;  %v815_v49 = vadd.f32 %v1750_v47, %v1618_v45  ;;  %v656_v57 = vsel %vm292_vm11, %v652_v55, 0.0  ;;  %v1597_v51 = vsel %vm563_vm12, 1.0, %v1877_v4 }
 0x4fe   :  { %v810_v50 = vadd.f32 %v1618_v45, %v809_v48  ;;  %v583_v53 = vsel %vm71_vm7, %v581_v54, 0.0  ;;  %v618_v37 = vsel %vm71_vm7, %v616_v16, 0.0  ;;  %v653_v19 = vsel %vm71_vm7, %v651_v38, 0.0 }
 0x4ff   :  { %584 = vadd.xlane.f32.xlu0 %v583_v53  ;;  %v686_v21 = vmul.f32 %v2019_v56, %v673_v42  ;;  %v569_v22 = vmul.f32 %v1597_v51, %v2128_v31 }
 0x500   :  { %1863 = vtanh.f32 %v810_v50 }
 0x501   :  { %1865 = vtanh.f32 %v815_v49  ;;  %v688_v23 = vsel %vm71_vm7, %v686_v21, 0.0  ;;  %v582_v24 = vmul.f32 %v2011_v52, %v569_v22 }
 0x503   :  { %657 = vadd.xlane.f32.xlu0 %v656_v57  ;;  %v586_v25 = vsel %vm292_vm11, %v582_v24, 0.0 }
 0x50a   :  { %v2161_v58 = vpop.eup %1863 }
 0x50b   :  { %v938_v59 = vsel %vm71_vm7, %v2161_v58, -inf  ;;  %v2165_v60 = vpop.eup %1865 }
 0x50c   :  { %939 = vmax.xlane.f32.xlu1 %v938_v59  ;;  %v941_v61 = vsel %vm292_vm11, %v2165_v60, -inf }
 0x510   :  { %942 = vmax.xlane.f32.xlu1 %v941_v61 }
 0x58c   :  { %v585_v35 = vpop.xlane.xlu0 %584 }
 0x590   :  { %v658_v57 = vpop.xlane.xlu0 %657 }
 0x599   :  { %v940_v62 = vpop.xlane.xlu1 %939 }
 0x59a   :  { %vm944_vm10 = vcmp.ge.f32.partialorder %v2161_v58, %v940_v62 }
 0x59b   :  { %v946_v63 = vsel %vm944_vm10, -inf, %v2161_v58  ;;  %vm598_vm10 = vcmp.eq.f32.partialorder %v2147_v34, 1.0 }
 0x59c   :  { %v961_v0 = vsel %vm71_vm7, %v946_v63, -inf  ;;  %v1601_v28 = vsel %vm598_vm10, 1.0, %v1877_v4 }
 0x59d   :  { %962 = vmax.xlane.f32.xlu1 %v961_v0  ;;  %v943_v1 = vpop.xlane.xlu1 %942  ;;  %v604_v5 = vmul.f32 %v1601_v28, %v2128_v31 }
 0x59e   :  { %vm945_vm14 = vcmp.ge.f32.partialorder %v2165_v60, %v943_v1 }
 0x59f   :  { %v947_v2 = vsel %vm945_vm14, -inf, %v2165_v60  ;;  %vm668_vm14 = vcmp.eq.f32.partialorder %v2147_v34, 3.0  ;;  %v617_v41 = vmul.f32 %v2011_v52, %v604_v5 }
 0x5a0   :  { %v964_v3 = vsel %vm292_vm11, %v947_v2, -inf  ;;  %v1609_v36 = vsel %vm668_vm14, 1.0, %v1877_v4  ;;  %vm2425_vm14 = vcmask 31744  }
 0x5a1   :  { %965 = vmax.xlane.f32.xlu1 %v964_v3  ;;  %v674_v43 = vmul.f32 %v1609_v36, %v2128_v31  ;;  %v621_v47 = vsel %vm292_vm11, %v617_v41, 0.0 }
 0x5a3   :  { %v687_v54 = vmul.f32 %v2011_v52, %v674_v43 }
 0x5a5   :  { %v691_v31 = vsel %vm292_vm11, %v687_v54, 0.0 }
 0x62a   :  { %v963_v6 = vpop.xlane.xlu1 %962 }
 0x62b   :  { %vm967_vm1 = vcmp.ge.f32.partialorder %v946_v63, %v963_v6 }
 0x62c   :  { %v969_v8 = vsel %vm967_vm1, -inf, %v946_v63  ;;  %vm699_vm1 = vcmask 7168  }
 0x62d   :  { %v984_v9 = vsel %vm71_vm7, %v969_v8, -inf }
 0x62e   :  { %985 = vmax.xlane.f32.xlu1 %v984_v9  ;;  %v966_v11 = vpop.xlane.xlu1 %965  ;;  %v1613_v9 = vld [vmem:[%s2408_s3 + $0x10] sm:$0xff] }
 0x62f   :  { %vm968_vm15 = vcmp.ge.f32.partialorder %v947_v2, %v966_v11  ;;  %1757 = vmatprep.mubr.msk.f32.mxu1 %vm80_vm5, %v1613_v9 }
 0x630   :  { %v970_v13 = vsel %vm968_vm15, -inf, %v947_v2  ;;  %vm705_vm15 = vcmask 23552  }
 0x631   :  { %v987_v15 = vsel %vm292_vm11, %v970_v13, -inf }
 0x632   :  { %988 = vmax.xlane.f32.xlu1 %v987_v15 }
 0x636   :  { %619 = vadd.xlane.f32.xlu1 %v618_v37 }
 0x63a   :  { %654 = vadd.xlane.f32.xlu1 %v653_v19 }
 0x63e   :  { %689 = vadd.xlane.f32.xlu1 %v688_v23 }
 0x642   :  { %587 = vadd.xlane.f32.xlu1 %v586_v25 }
 0x6bb   :  { %v986_v26 = vpop.xlane.xlu1 %985 }
 0x6bc   :  { %vm990_vm3 = vcmp.ge.f32.partialorder %v969_v8, %v986_v26 }
 0x6bd   :  { %v992_v33 = vsel %vm990_vm3, -inf, %v969_v8  ;;  %vm2426_vm3 = vcmask 64512  }
 0x6be   :  { %v1007_v40 = vsel %vm71_vm7, %v992_v33, -inf }
 0x6bf   :  { %v989_v27 = vpop.xlane.xlu1 %988 }
 0x6c0   :  { %vm991_vm2 = vcmp.ge.f32.partialorder %v970_v13, %v989_v27 }
 0x6c1   :  { %v993_v56 = vsel %vm991_vm2, -inf, %v970_v13  ;;  %vm2427_vm2 = vmmov %vm2425_vm14 }
 0x6c2   :  { %v1010_v29 = vsel %vm292_vm11, %v993_v56, -inf }
 0x6c3   :  { %1011 = vmax.xlane.f32.xlu1 %v1010_v29  ;;  %v620_v32 = vpop.xlane.xlu1 %619 }
 0x6c4   :  { %v700_v45 = vsel %vm699_vm1, %v585_v35, %v620_v32 }
 0x6c7   :  { %1008 = vmax.xlane.f32.xlu1 %v1007_v40  ;;  %v655_v34 = vpop.xlane.xlu1 %654 }
 0x6c8   :  { %v703_v48 = vsel %vm702_vm13, %v700_v45, %v655_v34 }
 0x6cb   :  { %622 = vadd.xlane.f32.xlu1 %v621_v47  ;;  %v690_v49 = vpop.xlane.xlu1 %689 }
 0x6cc   :  { %v706_v50 = vsel %vm705_vm15, %v703_v48, %v690_v49 }
 0x6cd   :  { %822 = vrot.lane.b32.xlu0 %v706_v50, %s1876_s28 }
 0x6cf   :  { %692 = vadd.xlane.f32.xlu1 %v691_v31  ;;  %v588_v53 = vpop.xlane.xlu1 %587 }
 0x73f   :  { %v823_v61 = vpop.permute.xlu0 %822 }
 0x740   :  { %v828_v1 = vsel %vm2425_vm14, 0.0, %v823_v61 }
 0x741   :  { %v830_v6 = vsel %vm2426_vm3, %v828_v1, 0.0 }
 0x742   :  { %v834_v8 = vrot.slane %v830_v6, 5 }
 0x750   :  { %v1012_v55 = vpop.xlane.xlu1 %1011 }
 0x751   :  { %vm1023_vm12 = vcmp.ge.f32.partialorder %v2165_v60, %v1012_v55 }
 0x752   :  { %v2214_v62 = vsel %vm1023_vm12, 1.0, %v1877_v4  ;;  %vm2428_vm12 = vmmov %vm2426_vm3 }
 0x754   :  { %v1009_v59 = vpop.xlane.xlu1 %1008 }
 0x755   :  { %vm1022_vm10 = vcmp.ge.f32.partialorder %v2161_v58, %v1009_v59  ;;  %v1614_v59 = vld [vmem:[%s2408_s3 + $0x18] sm:$0x7] }
 0x756   :  { %v1626_v52 = vsel %vm1022_vm10, 1.0, %v1877_v4 }
 0x757   :  { %1764 = vmatprep.mubr.msk.f32.mxu0 %vm71_vm7, %v1626_v52 }
 0x758   :  { %1765 = vmatmul.mubr.msk.f32.vlgmr.msra.gmra.mrb[6].mxu0 %vm71_vm7, %v2214_v62  ;;  %v623_v63 = vpop.xlane.xlu1 %622 }
 0x759   :  { %v701_v0 = vsel %vm699_vm1, %v588_v53, %v623_v63 }
 0x75a   :  { %v704_v3 = vsel %vm702_vm13, %v701_v0, %v658_v57 }
 0x75c   :  { %v693_v2 = vpop.xlane.xlu1 %692 }
 0x75d   :  { %v707_v7 = vsel %vm705_vm15, %v704_v3, %v693_v2 }
 0x75e   :  { %824 = vrot.lane.b32.xlu1 %v707_v7, %s1876_s28 }
 0x762   :  { %837 = vrot.lane.b32.xlu1 %v834_v8, %s1880_s18 }
 0x7d0   :  { %v825_v10 = vpop.permute.xlu1 %824 }
 0x7d1   :  { %v829_v11 = vsel %vm2427_vm2, 0.0, %v825_v10 }
 0x7d2   :  { %v831_v12 = vsel %vm2428_vm12, %v829_v11, 0.0 }
 0x7d3   :  { %v835_v13 = vrot.slane %v831_v12, 5 }
 0x7d4   :  { %v838_v15 = vpop.permute.xlu1 %837 }
 0x7d5   :  { %v842_v16 = vsel %vm184_vm6, %v831_v12, %v838_v15  ;;  %v836_v17 = vsel %vm184_vm6, %v834_v8, %v835_v13 }
 0x7d6   :  { %v1816_v18 = vpack.c.bf16 %v842_v16, %v828_v1  ;;  %839 = vrot.lane.b32.xlu1 %v836_v17, %s1880_s18 }
 0x7d8   :  { %1818 = vmatprep.subr.msk.bf16.mxu1 %vm1976_vm9, %v1816_v18 }
 0x7d9   :  { %1821 = vmatpush3.bf16.msk.msra.mxu1 %vm1976_vm9, %v1816_v18 }
 0x82b   :  { %v1766_v37 = vpop.f32.mrb[6].mxu0 }
 0x82c   :  { %vm1202_vm10 = vcmp.eq.f32.partialorder %v1766_v37, 0.0  ;;  %vm1237_vm14 = vcmp.eq.f32.partialorder %v1766_v37, 1.0  ;;  %vm1307_vm3 = vcmp.eq.f32.partialorder %v1766_v37, 3.0  ;;  %v1106_v38 = vpop.f32.mrb[7].mxu0 }
 0x82d   :  { %vm1201_vm2 = vcmp.eq.f32.partialorder %v1106_v38, 0.0  ;;  %vm1236_vm12 = vcmp.eq.f32.partialorder %v1106_v38, 1.0  ;;  %vm1271_vm8 = vcmp.eq.f32.partialorder %v1106_v38, 2.0  ;;  %vm1306_vm4 = vcmp.eq.f32.partialorder %v1106_v38, 3.0 }
 0x82e   :  { %v1640_v42 = vsel %vm1201_vm2, 1.0, %v1877_v4  ;;  %v1644_v51 = vsel %vm1236_vm12, 1.0, %v1877_v4  ;;  %v1648_v19 = vsel %vm1271_vm8, 1.0, %v1877_v4  ;;  %v1645_v21 = vsel %vm1237_vm14, 1.0, %v1877_v4 }
 0x82f   :  { %v1207_v22 = vmul.f32 %v1640_v42, %v1626_v52  ;;  %v1242_v23 = vmul.f32 %v1644_v51, %v1626_v52  ;;  %v1277_v24 = vmul.f32 %v1648_v19, %v1626_v52  ;;  %v1243_v25 = vmul.f32 %v1645_v21, %v2214_v62 }
 0x830   :  { %v1652_v26 = vsel %vm1306_vm4, 1.0, %v1877_v4  ;;  %v1653_v27 = vsel %vm1307_vm3, 1.0, %v1877_v4  ;;  %v1641_v32 = vsel %vm1202_vm10, 1.0, %v1877_v4  ;;  %vm1272_vm4 = vcmp.eq.f32.partialorder %v1766_v37, 2.0 }
 0x831   :  { %v1220_v28 = vmul.f32 %v2161_v58, %v1207_v22  ;;  %v1255_v56 = vmul.f32 %v2161_v58, %v1242_v23  ;;  %v1290_v29 = vmul.f32 %v2161_v58, %v1277_v24  ;;  %v1256_v5 = vmul.f32 %v2165_v60, %v1243_v25 }
 0x832   :  { %v1312_v40 = vmul.f32 %v1652_v26, %v1626_v52  ;;  %v1313_v41 = vmul.f32 %v1653_v27, %v2214_v62  ;;  %v1208_v43 = vmul.f32 %v1641_v32, %v2214_v62  ;;  %v1649_v54 = vsel %vm1272_vm4, 1.0, %v1877_v4  ;;  %v1617_v52 = vld [vmem:[%s2409_s5 + $0x18] sm:$0x7] }
 0x833   :  { %v1222_v33 = vsel %vm71_vm7, %v1220_v28, 0.0  ;;  %v1257_v36 = vsel %vm71_vm7, %v1255_v56, 0.0  ;;  %v1292_v34 = vsel %vm71_vm7, %v1290_v29, 0.0  ;;  %v1260_v35 = vsel %vm292_vm11, %v1256_v5, 0.0 }
 0x834   :  { %1223 = vadd.xlane.f32.xlu0 %v1222_v33  ;;  %1258 = vadd.xlane.f32.xlu1 %v1257_v36  ;;  %v1325_v45 = vmul.f32 %v2161_v58, %v1312_v40  ;;  %v1326_v47 = vmul.f32 %v2165_v60, %v1313_v41  ;;  %v1221_v50 = vmul.f32 %v2165_v60, %v1208_v43  ;;  %vm2429_vm8 = vcmask 1045504   ;;  %v1654_v41 = vld [vmem:[%s2408_s3 + $0x20] sm:$0xff] }
 0x835   :  { %v1278_v31 = vmul.f32 %v1649_v54, %v2214_v62  ;;  %vm2430_vm10 = vmmov %vm2429_vm8  ;;  %vm2432_vm14 = vcmask 64512   ;;  %1780 = vmatprep.mubr.msk.f32.mxu0 %vm80_vm5, %v1654_v41 }
 0x836   :  { %v1327_v48 = vsel %vm71_vm7, %v1325_v45, 0.0  ;;  %v1330_v49 = vsel %vm292_vm11, %v1326_v47, 0.0  ;;  %v1225_v53 = vsel %vm292_vm11, %v1221_v50, 0.0  ;;  %vm2434_vm2 = vmmov %vm2432_vm14 }
 0x837   :  { %v1291_v58 = vmul.f32 %v2165_v60, %v1278_v31  ;;  %v1616_v60 = vld [vmem:[%s2409_s5 + $0x10] sm:$0xff] }
 0x838   :  { %1293 = vadd.xlane.f32.xlu0 %v1292_v34  ;;  %1261 = vadd.xlane.f32.xlu1 %v1260_v35  ;;  %v1656_v34 = vld [vmem:[%s2409_s5 + $0x20] sm:$0xff] }
 0x839   :  { %v1295_v55 = vsel %vm292_vm11, %v1291_v58, 0.0 }
 0x83c   :  { %1328 = vadd.xlane.f32.xlu0 %v1327_v48  ;;  %1331 = vadd.xlane.f32.xlu1 %v1330_v49 }
 0x840   :  { %1226 = vadd.xlane.f32.xlu0 %v1225_v53 }
 0x844   :  { %1296 = vadd.xlane.f32.xlu0 %v1295_v55  ;;  %v1657_v55 = vld [vmem:[%s2409_s5 + $0x28] sm:$0x7] }
 0x848   :  { %v840_v57 = vpop.permute.xlu1 %839 }
 0x849   :  { %1755 = vmatprep.subr.msk.mxu1 %vm2429_vm8, %v840_v57 }
 0x84a   :  { %1756 = vmatpush3.msk.msra.mxu1 %vm2430_vm10, %v840_v57 }
 0x84b   :  { %1758 = vmatmul.mubr.msk.f32.vlgmr.msra.gmra.mrb[4].mxu1 %vm80_vm5, %v1614_v59 }
 0x84c   :  { %1771 = vmatprep.mubr.msk.f32.mxu1 %vm71_vm7, %v2002_v39 }
 0x84d   :  { %850 = vperm.xlu1 %1854, %v1617_v52  }
 0x85a   :  { %845 = vperm.xlu0 %1853, %v1616_v60  }
 0x8c1   :  { %v1224_v61 = vpop.xlane.xlu0 %1223  ;;  %v1259_v62 = vpop.xlane.xlu1 %1258 }
 0x8c2   :  { %v1336_v0 = vsel %vm699_vm1, %v1224_v61, %v1259_v62 }
 0x8c5   :  { %v1294_v63 = vpop.xlane.xlu0 %1293  ;;  %v1262_v6 = vpop.xlane.xlu1 %1261 }
 0x8c6   :  { %v1338_v1 = vsel %vm702_vm13, %v1336_v0, %v1294_v63 }
 0x8c9   :  { %v1329_v2 = vpop.xlane.xlu0 %1328  ;;  %v1332_v9 = vpop.xlane.xlu1 %1331 }
 0x8ca   :  { %v1340_v3 = vsel %vm705_vm15, %v1338_v1, %v1329_v2 }
 0x8cb   :  { %1350 = vrot.lane.b32.xlu1 %v1340_v3, %s1876_s28 }
 0x8cd   :  { %v1227_v39 = vpop.xlane.xlu0 %1226  ;;  %v851_v12 = vpop.permute.xlu1 %850 }
 0x8ce   :  { %v1337_v7 = vsel %vm699_vm1, %v1227_v39, %v1262_v6 }
 0x8d1   :  { %v1297_v8 = vpop.xlane.xlu0 %1296 }
 0x8d2   :  { %v1339_v10 = vsel %vm702_vm13, %v1337_v7, %v1297_v8 }
 0x8d3   :  { %v1341_v11 = vsel %vm705_vm15, %v1339_v10, %v1332_v9  ;;  %vm2431_vm15 = vcmask 31744  }
 0x8d4   :  { %1352 = vrot.lane.b32.xlu1 %v1341_v11, %s1876_s28  ;;  %vm2433_vm3 = vmmov %vm2431_vm15 }
 0x8d9   :  { %v846_v15 = vpop.permute.xlu0 %845 }
 0x91e   :  { %v1759_v13 = vpop.f32.mrb[4].mxu1 }
 0x91f   :  { %v933_v16 = vadd.f32 %v1759_v13, %v851_v12  ;;  %v927_v17 = vpop.f32.mrb[5].mxu1 }
 0x920   :  { %v928_v18 = vadd.f32 %v927_v17, %v846_v15 }
 0x921   :  { %1867 = vtanh.f32 %v933_v16 }
 0x922   :  { %1869 = vtanh.f32 %v928_v18 }
 0x92b   :  { %v2290_v37 = vpop.eup %1867 }
 0x92c   :  { %v2292_v38 = vpop.eup %1869  ;;  %v949_v42 = vsel %vm292_vm11, %v2290_v37, -inf }
 0x92d   :  { %v948_v51 = vsel %vm71_vm7, %v2292_v38, -inf }
 0x92e   :  { %v950_v19 = vmax.f32 %v948_v51, %v949_v42  ;;  %v1875_v42 = vld [vmem:[%s2406_s0] sm:$0xf] }
 0x92f   :  { %v1475_v51 = vsel %vm57_vm0, %v1875_v42, %v721_v20  ;;  %v1477_v20 = vld [vmem:[%s2411_s6] sm:$0xff] }
 0x930   :  { %v951_v21 = vrot.slane %v950_v19, 4 }
 0x932   :  { %v952_v22 = vmax.f32 %v950_v19, %v951_v21 }
 0x934   :  { %v953_v23 = vrot.slane %v952_v22, 2 }
 0x936   :  { %v954_v24 = vmax.f32 %v952_v22, %v953_v23  ;;  %v1840_v22 = vpack.c.bf16 %v1478_v30, %v1477_v20 }
 0x938   :  { %v955_v25 = vrot.slane %v954_v24, 1 }
 0x93a   :  { %v956_v26 = vmax.f32 %v954_v24, %v955_v25 }
 0x93c   :  { %vm957_vm1 = vcmp.ge.f32.partialorder %v2292_v38, %v956_v26  ;;  %vm958_vm13 = vcmp.ge.f32.partialorder %v2290_v37, %v956_v26 }
 0x93d   :  { %v1351_v27 = vpop.permute.xlu1 %1350  ;;  %v959_v28 = vsel %vm957_vm1, -inf, %v2292_v38  ;;  %v960_v56 = vsel %vm958_vm13, -inf, %v2290_v37 }
 0x93e   :  { %v2303_v29 = vsel %vm2431_vm15, 0.0, %v1351_v27  ;;  %v971_v5 = vsel %vm71_vm7, %v959_v28, -inf  ;;  %v972_v32 = vsel %vm292_vm11, %v960_v56, -inf }
 0x93f   :  { %v1358_v33 = vsel %vm2432_vm14, %v2303_v29, 0.0  ;;  %v973_v36 = vmax.f32 %v971_v5, %v972_v32  ;;  %vm2435_vm14 = vcmask 1045504  }
 0x940   :  { %v1362_v40 = vrot.slane %v1358_v33, 5 }
 0x941   :  { %v974_v43 = vrot.slane %v973_v36, 4 }
 0x942   :  { %1365 = vrot.lane.b32.xlu0 %v1362_v40, %s1880_s18 }
 0x943   :  { %v975_v35 = vmax.f32 %v973_v36, %v974_v43 }
 0x945   :  { %v976_v45 = vrot.slane %v975_v35, 2 }
 0x946   :  { %1373 = vperm.xlu0 %1853, %v1656_v34   ;;  %v1353_v47 = vpop.permute.xlu1 %1352 }
 0x947   :  { %v1357_v54 = vsel %vm2433_vm3, 0.0, %v1353_v47  ;;  %v977_v48 = vmax.f32 %v975_v35, %v976_v45  ;;  %vm2436_vm3 = vmmov %vm2435_vm14 }
 0x948   :  { %v1359_v49 = vsel %vm2434_vm2, %v1357_v54, 0.0 }
 0x949   :  { %v1363_v50 = vrot.slane %v1359_v49, 5  ;;  %v978_v31 = vrot.slane %v977_v48, 1 }
 0x94b   :  { %v1364_v53 = vsel %vm184_vm6, %v1362_v40, %v1363_v50  ;;  %v979_v58 = vmax.f32 %v977_v48, %v978_v31 }
 0x94c   :  { %1367 = vrot.lane.b32.xlu1 %v1364_v53, %s1880_s18 }
 0x94d   :  { %vm980_vm12 = vcmp.ge.f32.partialorder %v959_v28, %v979_v58  ;;  %vm981_vm4 = vcmp.ge.f32.partialorder %v960_v56, %v979_v58 }
 0x94e   :  { %v982_v57 = vsel %vm980_vm12, -inf, %v959_v28  ;;  %v983_v59 = vsel %vm981_vm4, -inf, %v960_v56 }
 0x94f   :  { %v994_v52 = vsel %vm71_vm7, %v982_v57, -inf  ;;  %v995_v60 = vsel %vm292_vm11, %v983_v59, -inf }
 0x950   :  { %1378 = vperm.xlu1 %1854, %v1657_v55   ;;  %v996_v61 = vmax.f32 %v994_v52, %v995_v60 }
 0x952   :  { %v997_v62 = vrot.slane %v996_v61, 4 }
 0x954   :  { %v998_v63 = vmax.f32 %v996_v61, %v997_v62 }
 0x956   :  { %v999_v0 = vrot.slane %v998_v63, 2 }
 0x958   :  { %v1000_v1 = vmax.f32 %v998_v63, %v999_v0 }
 0x95a   :  { %v1001_v2 = vrot.slane %v1000_v1, 1 }
 0x95c   :  { %v1002_v3 = vmax.f32 %v1000_v1, %v1001_v2 }
 0x95e   :  { %vm1003_vm8 = vcmp.ge.f32.partialorder %v982_v57, %v1002_v3  ;;  %vm1004_vm10 = vcmp.ge.f32.partialorder %v983_v59, %v1002_v3 }
 0x95f   :  { %v1005_v6 = vsel %vm1003_vm8, -inf, %v982_v57  ;;  %v1006_v39 = vsel %vm1004_vm10, -inf, %v983_v59 }
 0x960   :  { %v1013_v7 = vsel %vm71_vm7, %v1005_v6, -inf  ;;  %v1014_v8 = vsel %vm292_vm11, %v1006_v39, -inf }
 0x961   :  { %v1015_v9 = vmax.f32 %v1013_v7, %v1014_v8 }
 0x963   :  { %v1016_v10 = vrot.slane %v1015_v9, 4 }
 0x965   :  { %v1017_v11 = vmax.f32 %v1015_v9, %v1016_v10 }
 0x967   :  { %v1018_v12 = vrot.slane %v1017_v11, 2 }
 0x969   :  { %v1019_v13 = vmax.f32 %v1017_v11, %v1018_v12 }
 0x96b   :  { %v1020_v15 = vrot.slane %v1019_v13, 1 }
 0x96d   :  { %v1021_v16 = vmax.f32 %v1019_v13, %v1020_v15 }
 0x96f   :  { %vm1028_vm1 = vcmp.ge.f32.partialorder %v2292_v38, %v1021_v16  ;;  %vm1029_vm13 = vcmp.ge.f32.partialorder %v2290_v37, %v1021_v16 }
 0x970   :  { %v1629_v17 = vsel %vm1029_vm13, 1.0, %v1877_v4  ;;  %vm1829_vm15 = vmpackc.low %vm184_vm6, %vm1028_vm1  ;;  %v1628_v47 = vsel %vm1028_vm1, 1.0, %v1877_v4  ;;  %vm2438_vm1 = vcmask 1040384  }
 0x971   :  { %v1828_v18 = vpack.c.bf16 %v1629_v17, %v1882_v44 }
 0x973   :  { %1830 = vmatprep.subr.msk.bf16.mxu1 %vm1829_vm15, %v1828_v18 }
 0x974   :  { %1833 = vmatpush3.bf16.msk.msra.mxu1 %vm1829_vm15, %v1828_v18 }
 0x977   :  { %1772 = vmatmul.mubr.msk.f32.vlgmr.msra.gmra.mrb[6].mxu1 %vm71_vm7, %v2048_v46 }
 0x978   :  { %1787 = vmatprep.mubr.msk.f32.mxu1 %vm71_vm7, %v1475_v51 }
 0x9b4   :  { %v1366_v44 = vpop.permute.xlu0 %1365 }
 0x9b5   :  { %v1370_v19 = vsel %vm184_vm6, %v1359_v49, %v1366_v44 }
 0x9b6   :  { %v1834_v21 = vpack.c.bf16 %v1370_v19, %v2303_v29 }
 0x9b8   :  { %1836 = vmatprep.subr.msk.bf16.mxu0 %vm1976_vm9, %v1834_v21 }
 0x9b9   :  { %1839 = vmatpush3.bf16.msk.msra.mxu0 %vm1976_vm9, %v1834_v21  ;;  %vm2437_vm9 = vmmov 1  }
 0x9ba   :  { %vm1841_vm2 = vmpackc.low %vm184_vm6, %vm2437_vm9 }
 0x9bb   :  { %1842 = vmatprep.subr.msk.bf16.mxu1 %vm1841_vm2, %v1840_v22 }
 0x9bc   :  { %1845 = vmatpush3.bf16.msk.msra.mxu1 %vm1841_vm2, %v1840_v22 }
 0x9be   :  { %v1368_v46 = vpop.permute.xlu1 %1367 }
 0x9bf   :  { %1778 = vmatprep.subr.msk.mxu0 %vm2435_vm14, %v1368_v46 }
 0x9c0   :  { %1779 = vmatpush3.msk.msra.mxu0 %vm2436_vm3, %v1368_v46  ;;  %vm2439_vm3 = vcmask 1041408  }
 0x9c1   :  { %1781 = vmatmul.mubr.msk.f32.vlgmr.msra.gmra.mrb[8].mxu0 %vm80_vm5, %v1655_v14 }
 0xa4a   :  { %v1773_v23 = vpop.f32.mrb[6].mxu1 }
 0xa4b   :  { %vm1194_vm12 = vcmp.eq.f32.partialorder %v1773_v23, 0.0  ;;  %vm1229_vm4 = vcmp.eq.f32.partialorder %v1773_v23, 1.0  ;;  %vm1264_vm8 = vcmp.eq.f32.partialorder %v1773_v23, 2.0  ;;  %vm1299_vm10 = vcmp.eq.f32.partialorder %v1773_v23, 3.0  ;;  %v1184_v24 = vpop.f32.mrb[7].mxu1 }
 0xa4c   :  { %v1639_v25 = vsel %vm1194_vm12, 1.0, %v1877_v4  ;;  %v1643_v26 = vsel %vm1229_vm4, 1.0, %v1877_v4  ;;  %v1647_v27 = vsel %vm1264_vm8, 1.0, %v1877_v4  ;;  %v1651_v28 = vsel %vm1299_vm10, 1.0, %v1877_v4 }
 0xa4d   :  { %v1200_v56 = vmul.f32 %v1639_v25, %v1629_v17  ;;  %v1235_v29 = vmul.f32 %v1643_v26, %v1629_v17  ;;  %v1270_v5 = vmul.f32 %v1647_v27, %v1629_v17  ;;  %v1305_v32 = vmul.f32 %v1651_v28, %v1629_v17  ;;  %v1379_v25 = vpop.permute.xlu1 %1378  ;;  %v1374_v27 = vpop.permute.xlu0 %1373 }
 0xa4e   :  { %vm1193_vm5 = vcmp.eq.f32.partialorder %v1184_v24, 0.0  ;;  %vm1228_vm13 = vcmp.eq.f32.partialorder %v1184_v24, 1.0  ;;  %vm1263_vm15 = vcmp.eq.f32.partialorder %v1184_v24, 2.0  ;;  %vm1298_vm14 = vcmp.eq.f32.partialorder %v1184_v24, 3.0 }
 0xa4f   :  { %v1210_v33 = vmul.f32 %v2290_v37, %v1200_v56  ;;  %v1245_v36 = vmul.f32 %v2290_v37, %v1235_v29  ;;  %v1280_v40 = vmul.f32 %v2290_v37, %v1270_v5  ;;  %v1315_v41 = vmul.f32 %v2290_v37, %v1305_v32 }
 0xa50   :  { %v1638_v43 = vsel %vm1193_vm5, 1.0, %v1877_v4  ;;  %v1642_v34 = vsel %vm1228_vm13, 1.0, %v1877_v4  ;;  %v1646_v35 = vsel %vm1263_vm15, 1.0, %v1877_v4  ;;  %v1650_v45 = vsel %vm1298_vm14, 1.0, %v1877_v4 }
 0xa51   :  { %v1199_v54 = vmul.f32 %v1638_v43, %v1628_v47  ;;  %v1234_v48 = vmul.f32 %v1642_v34, %v1628_v47  ;;  %v1269_v49 = vmul.f32 %v1646_v35, %v1628_v47  ;;  %v1304_v50 = vmul.f32 %v1650_v45, %v1628_v47 }
 0xa52   :  { %v1212_v31 = vsel %vm292_vm11, %v1210_v33, 0.0  ;;  %v1247_v37 = vsel %vm292_vm11, %v1245_v36, 0.0  ;;  %v1282_v53 = vsel %vm292_vm11, %v1280_v40, 0.0  ;;  %v1317_v58 = vsel %vm292_vm11, %v1315_v41, 0.0 }
 0xa53   :  { %v1209_v55 = vmul.f32 %v2292_v38, %v1199_v54  ;;  %v1244_v57 = vmul.f32 %v2292_v38, %v1234_v48  ;;  %v1279_v59 = vmul.f32 %v2292_v38, %v1269_v49  ;;  %v1314_v4 = vmul.f32 %v2292_v38, %v1304_v50 }
 0xa55   :  { %v1211_v52 = vsel %vm71_vm7, %v1209_v55, 0.0  ;;  %v1246_v60 = vsel %vm71_vm7, %v1244_v57, 0.0  ;;  %v1281_v61 = vsel %vm71_vm7, %v1279_v59, 0.0  ;;  %v1316_v62 = vsel %vm71_vm7, %v1314_v4, 0.0 }
 0xa56   :  { %v1213_v63 = vadd.f32 %v1212_v31, %v1211_v52  ;;  %v1248_v0 = vadd.f32 %v1247_v37, %v1246_v60  ;;  %v1283_v1 = vadd.f32 %v1282_v53, %v1281_v61  ;;  %v1318_v2 = vadd.f32 %v1317_v58, %v1316_v62 }
 0xa58   :  { %v1214_v3 = vrot.slane %v1213_v63, 4  ;;  %v1249_v6 = vrot.slane %v1248_v0, 4  ;;  %v1284_v39 = vrot.slane %v1283_v1, 4  ;;  %v1319_v7 = vrot.slane %v1318_v2, 4 }
 0xa5a   :  { %v1215_v8 = vadd.f32 %v1214_v3, %v1213_v63  ;;  %v1250_v9 = vadd.f32 %v1249_v6, %v1248_v0  ;;  %v1285_v10 = vadd.f32 %v1284_v39, %v1283_v1  ;;  %v1320_v38 = vadd.f32 %v1319_v7, %v1318_v2 }
 0xa5c   :  { %v1216_v11 = vrot.slane %v1215_v8, 2  ;;  %v1251_v12 = vrot.slane %v1250_v9, 2  ;;  %v1286_v13 = vrot.slane %v1285_v10, 2  ;;  %v1321_v15 = vrot.slane %v1320_v38, 2 }
 0xa5e   :  { %v1217_v16 = vadd.f32 %v1216_v11, %v1215_v8  ;;  %v1252_v17 = vadd.f32 %v1251_v12, %v1250_v9  ;;  %v1287_v18 = vadd.f32 %v1286_v13, %v1285_v10  ;;  %v1322_v42 = vadd.f32 %v1321_v15, %v1320_v38 }
 0xa60   :  { %v1218_v51 = vrot.slane %v1217_v16, 1  ;;  %v1253_v44 = vrot.slane %v1252_v17, 1  ;;  %v1288_v19 = vrot.slane %v1287_v18, 1  ;;  %v1323_v21 = vrot.slane %v1322_v42, 1 }
 0xa62   :  { %v1219_v46 = vadd.f32 %v1218_v51, %v1217_v16  ;;  %v1254_v14 = vadd.f32 %v1253_v44, %v1252_v17  ;;  %v1289_v20 = vadd.f32 %v1288_v19, %v1287_v18  ;;  %v1324_v30 = vadd.f32 %v1323_v21, %v1322_v42 }
 0xa64   :  { %v1333_v22 = vsel %vm2438_vm1, %v1219_v46, %v1254_v14 }
 0xa65   :  { %v1334_v23 = vsel %vm2439_vm3, %v1333_v22, %v1289_v20 }
 0xa66   :  { %v1335_v24 = vsel %vm184_vm6, %v1334_v23, %v1324_v30  ;;  %vm1564_vm6 = vcmask 86016  }
 0xa94   :  { %v1782_v26 = vpop.f32.mrb[8].mxu0 }
 0xa95   :  { %v1461_v28 = vadd.f32 %v1782_v26, %v1379_v25  ;;  %v1455_v56 = vpop.f32.mrb[9].mxu0 }
 0xa96   :  { %v1456_v29 = vadd.f32 %v1455_v56, %v1374_v27 }
 0xa97   :  { %1871 = vtanh.f32 %v1461_v28 }
 0xa98   :  { %1873 = vtanh.f32 %v1456_v29 }
 0xaa1   :  { %v1872_v5 = vpop.eup %1871 }
 0xaa2   :  { %v1874_v32 = vpop.eup %1873  ;;  %v1467_v33 = vsel %vm292_vm11, %v1872_v5, -inf }
 0xaa3   :  { %v1466_v36 = vsel %vm71_vm7, %v1874_v32, -inf }
 0xaa4   :  { %v1468_v40 = vmax.f32 %v1466_v36, %v1467_v33 }
 0xaa6   :  { %v1469_v41 = vrot.slane %v1468_v40, 4 }
 0xaa8   :  { %v1470_v43 = vmax.f32 %v1468_v40, %v1469_v41 }
 0xaaa   :  { %v1471_v34 = vrot.slane %v1470_v43, 2 }
 0xaac   :  { %v1472_v35 = vmax.f32 %v1470_v43, %v1471_v34 }
 0xaae   :  { %v1473_v45 = vrot.slane %v1472_v35, 1 }
 0xab0   :  { %v1474_v47 = vmax.f32 %v1472_v35, %v1473_v45 }
 0xab2   :  { %v1476_v54 = vsel %vm57_vm0, %v1335_v24, %v1474_v47 }
 0xab3   :  { %1788 = vmatmul.mubr.msk.f32.vlgmr.msra.gmra.mrb[8].mxu1 %vm71_vm7, %v1476_v54 }
 0xb86   :  { %v1789_v48 = vpop.f32.mrb[8].mxu1 }
 0xb87   :  { %1565 = vst.msk [vmem:[%s2412_s7 + $0x8] sm:$0x1f] %vm1564_vm6, %v1789_v48  ;;  %v1554_v49 = vpop.f32.mrb[9].mxu1 }
 0xb88   :  { %1563 = vst.msk [vmem:[%s2412_s7] sm:$0xff] %vm71_vm7, %v1554_v49 }

// kernel: multigrancnn_forward.3
= control target key start
LH: loop header
LB: loop body
LE: loop exit
PB: predicated region body
PF: predicated region fallthrough
CT: control target
= control target key end

     0   :  { %s5688_s0 = inlined_call_operand.vmem [shape: f32[5,4,11], index: 0, kind: input, shape index: {}]   ;;  %s5689_s1 = inlined_call_operand.vmem [shape: f32[5,11,4], index: 1, kind: input, shape index: {}]   ;;  %s5690_s2 = inlined_call_operand.vmem [shape: f32[13,11], index: 2, kind: input, shape index: {}]   ;;  %s5691_s3 = inlined_call_operand.vmem [shape: f32[3,22,11], index: 3, kind: input, shape index: {}]   ;;  %s5692_s4 = inlined_call_operand.vmem [shape: f32[3,11,22], index: 4, kind: input, shape index: {}]   ;;  %s5693_s5 = inlined_call_operand.vmem [shape: f32[3,1,11], index: 5, kind: input, shape index: {}]   ;;  %s5694_s6 = inlined_call_operand.vmem [shape: f32[3,11,1], index: 6, kind: input, shape index: {}]   ;;  %s5695_s7 = inlined_call_operand.<no memory space> [shape: f32[1,1], index: 7, kind: input, shape index: {}]   ;;  %s5696_s8 = inlined_call_operand.vmem [shape: f32[18,4], index: 8, kind: input, shape index: {}]   ;;  %s5697_s9 = inlined_call_operand.vmem [shape: f32[18], index: 9, kind: input, shape index: {}]   ;;  %s5698_s10 = inlined_call_operand.vmem [shape: f32[8,1], index: 10, kind: input, shape index: {}]   ;;  %s5699_s11 = inlined_call_operand.<no memory space> [shape: f32[1,1], index: 11, kind: input, shape index: {}]   ;;  %s5700_s12 = inlined_call_operand.vmem [shape: f32[5,1,1], index: 12, kind: output, shape index: {}]  }
   0x1   :  { %17 = sst [smem:[#allocation2]] %s5695_s7 }
   0x2   :  { %18 = sst [smem:[#allocation3]] %s5699_s11 }
   0x3   :  { %19 = vsyncpa [#allocation5], 0 }
   0x4   :  { %20 = vsyncpa [#allocation7], 0  ;;  %s4268_s25 = smov 0  }
   0x5 LB: > { %s349_s7 = sshll.u32 %s5696_s8, 4  ;;  %s4277_s28 = sadd.s32 4294967295, %s4182_s25   ;;  %s4182_s25 = sphi %s4268_s25, %s26_s25   ;;  %s350_s7 = int_to_ptr.vmem [resolvable:$true] %s349_s7 }
   0x6   : > { %p3634_p0 = scmp.ge.s32.totalorder %s4182_s25, 1  ;;  %p319_p1 = scmp.lt.s32.totalorder %s4182_s25, 6 }
   0x7   : > { %p5701_p3 = scmp.eq.s32.totalorder %s4277_s28, 0  ;;  %s363_s13 = sshll.u32 %s5697_s9, 4  ;;  %s364_s13 = int_to_ptr.vmem [resolvable:$true] %s363_s13 }
   0x8   : > { %p4281_p2 = pnand %p3634_p0, %p319_p1  ;;  %s4138_s15 = scalar_lea.vmem %s350_s7, 384 }
   0x9   : > { %p4139_p6 = scmp.ne.s32.totalorder %s350_s7, %s4138_s15  ;;  %p4146_p10 = scmp.lt.s32.totalorder %s350_s7, %s350_s7 }
   0xa   : > { %s5724_s11 = scalar_select %p4281_p2, 1, 0 }
   0xb   : > { %p4037_p4 = pneg %p4281_p2  ;;  %p4147_p11 = scmp.lt.s32.totalorder %s4138_s15, %s4138_s15 }
   0xd   : > { %p4293_p5 = pnand %p5701_p3, %p4037_p4  ;;  %p4148_p12 = por %p4147_p11, %p4146_p10 }
   0xf   : > { %p4140_p7 = pneg %p4293_p5 }
  0x11   : > { %p4141_p8 = pnand %p4140_p7, %p4139_p6 }
  0x13   : > { %p4142_p9 = pneg %p4141_p8 }
  0x15   : > { %p4149_p13 = pnand %p4148_p12, %p4142_p9 }
  0x17   : > { %4152 = shalt.err (!%p4149_p13)
}
  0x18   : > { %s4184_s16 = smov [#allocation4]   ;;  %s4185_s17 = smov 128  }
  0x19   : > { %s4186_s18 = smov 8   ;;  %s4153_s19 = scalar_lea.vmem %s364_s13, 16 }
  0x1a   : > { %4040 = dma.vmem_to_smem (!%p4293_p5), %s350_s7, 384, %s4184_s16, [#allocation5], %s4185_s17, %s4185_s17, %s4186_s18  }
  0x1b   : > { %p4154_p0 = scmp.ne.s32.totalorder %s364_s13, %s4153_s19  ;;  %p4161_p6 = scmp.lt.s32.totalorder %s364_s13, %s364_s13 }
  0x1c   : > { %p4162_p8 = scmp.lt.s32.totalorder %s4153_s19, %s4153_s19 }
  0x1d   : > { %p4156_p1 = pnand %p4154_p0, %p4140_p7 }
  0x1e   : > { %p4163_p3 = por %p4162_p8, %p4161_p6 }
  0x1f   : > { %p4157_p4 = pneg %p4156_p1 }
  0x21   : > { %p4164_p2 = pnand %p4163_p3, %p4157_p4 }
  0x23   : > { %4167 = shalt.err (!%p4164_p2)
}
  0x24   : > { %s4187_s20 = smov [#allocation6]   ;;  %p5726_p9 = scmp.ne.s32.totalorder %s5724_s11, 0 }
  0x25   : > { %4043 = dma.vmem_to_smem (!%p4293_p5), %s364_s13, 16, %s4187_s20, [#allocation7]  }
  0x26   : > { %397 = sbr.rel (%p5726_p9) target bundleno = 5328 (0x14d0), region = 68  ;;  %p5727_p10 = scmp.eq.s32.totalorder (!%p5726_p9), %s4277_s28, 0 }
  0x2d   : > { %4173 = dma.done.wait (%p5727_p10), [#allocation5], 384   ;;  %p5728_p11 = pmov %p5727_p10 }
  0x2e   : > { %p5729_p7 = pmov %p5727_p10 }
  0x2f   : > { %4175 = vsyncadd (%p5728_p11), [#allocation5], 4294966912 }
  0x30   : > { %4177 = dma.done.wait (%p5729_p7), [#allocation7], 16   ;;  %p5730_p12 = pmov %p5729_p7 }
  0x32   : > { %4179 = vsyncadd (%p5730_p12), [#allocation7], 4294967280 }
  0x33   : > { %407 = sfence }
  0x34   : > { %p446_p2 = scmp.lt.s32.totalorder %s4277_s28, 4  ;;  %v478_v0 = vld [vmem:[%s5691_s3] sm:$0xff]  ;;  %v479_v1 = vld [vmem:[%s5691_s3 + $0x8] sm:$0xff]  ;;  %v480_v3 = vld [vmem:[%s5691_s3 + $0x10] sm:$0x3f]  ;;  %vm519_vm0 = vcmask 1045504   ;;  %v458_v61 = vlaneseq }
  0x35   : > { %v3973_v2 = vpack.c.bf16 %v479_v1, %v478_v0  ;;  %vm5707_vm1 = vcmask 1043456   ;;  %v4188_v6 = vmov 0.0   ;;  %vm5704_vm2 = vcmask 1046528   ;;  %s4189_s14 = smov 11   ;;  %s4190_s18 = smov 4   ;;  %v481_v45 = vld [vmem:[%s5692_s4] sm:$0xff] }
  0x36   : > { %s5848_s28 = smov (!%p446_p2, %s4277_s28), 4  ;;  %v4338_v7 = vrot.slane %v4188_v6, 1  ;;  %vm503_vm3 = vcmask 89088   ;;  %vm5705_vm4 = vcmask 179200   ;;  %vm5708_vm5 = vcmask 31744   ;;  %s4191_s19 = smov 127  }
  0x37   : > { %s3641_s7 = sshll.u32 %s5848_s28, 2  ;;  %3974 = vmatprep.subr.bf16.mxu0 %v3973_v2  ;;  %s3840_s13 = sshll.u32 %s5848_s28, 4  ;;  %vm5706_vm6 = vcmask 64512   ;;  %v3648_v20 = vld [vmem:[%s5693_s5] ss:$0 sm:$0xff]  ;;  %vm724_vm7 = vcmask 83968   ;;  %3903 = vmatprep.mubr.msk.f32.mxu1 %vm5705_vm4, %v481_v45 }
  0x38   : > { %s449_s30 = scalar_lea.vmem %s5688_s0, %s3641_s7  ;;  %3976 = vmatpush3.bf16.msra.mxu0 %v3973_v2  ;;  %s4349_s17 = scalar_lea.vmem %s5689_s1, %s3840_s13  ;;  %vm616_vm10 = vcmask 1042432   ;;  %vm5703_vm11 = vmmov 1   ;;  %v482_v52 = vld [vmem:[%s5692_s4 + $0x8] sm:$0x7]  ;;  %v4193_v54 = vmov 0   ;;  %v459_v62 = vshrl.u32 %v458_v61, 7 }
  0x39   : > { %v475_v4 = vld [vmem:[%s449_s30] sm:$0xf]  ;;  %3892 = vmatprep.subr.msk.mxu0 %vm519_vm0, %v480_v3  ;;  %v477_v29 = vld [vmem:[%s4349_s17 + $0x8] sm:$0x7]  ;;  %vm4389_vm12 = vmpackc.low %vm5703_vm11, %vm5706_vm6  ;;  %4069 = vset.pattern.permute.xlu1 %v4193_v54  ;;  %v4415_v0 = vand.u32 127, %v458_v61  ;;  %v4194_v2 = vmov 1.0  }
  0x3a   : > { %v487_v5 = vrot.slane %v475_v4, 4  ;;  %v476_v11 = vld [vmem:[%s4349_s17] sm:$0xff]  ;;  %4070 = vset.pattern.permute.xlu0 %v4193_v54  ;;  %v4413_v63 = vadd.s32 8, %v459_v62  ;;  %s4195_s7 = smov 8   ;;  %s3745_s30 = sld [smem:[#allocation4 + $0x81]] }
  0x3b   : > { %v3692_v41 = vld [vmem:[%s5693_s5 + $0x1] ss:$0 sm:$0xff]  ;;  %s3741_s13 = sld [smem:[#allocation4 + $0x1]]  ;;  %s4829_s20 = sld [smem:[#allocation4 + $0x83]] }
  0x3c   : > { %v490_v8 = vsel %vm5707_vm1, 0.0, %v487_v5  ;;  %3893 = vmatpush3.msk.msra.mxu0 %vm519_vm0, %v480_v3  ;;  %v484_v5 = vld [vmem:[%s5694_s6] sm:$0xff]  ;;  %s3750_s15 = sld [smem:[#allocation4 + $0x101]]  ;;  %s4835_s22 = sld [smem:[#allocation4 + $0x103]] }
  0x3d   : > { %v494_v9 = vrot.slane %v490_v8, 1  ;;  %s4824_s16 = sld [smem:[#allocation4 + $0x181]]  ;;  %s4837_s23 = sld [smem:[#allocation4 + $0x183]] }
  0x3e   : > { %s4831_s21 = sld [smem:[#allocation4 + $0x201]]  ;;  %s4844_s24 = sld [smem:[#allocation4 + $0x82]] }
  0x3f   : > { %v496_v10 = vsel %vm5704_vm2, %v494_v9, %v4338_v7  ;;  %s4848_s26 = sld [smem:[#allocation4 + $0x3]]  ;;  %s4850_s27 = sld [smem:[#allocation4 + $0x102]] }
  0x40   : > { %497 = vrot.lane.b32.xlu0 %v496_v10, %s4189_s14  ;;  %s4854_s11 = sld [smem:[#allocation4 + $0x2]] }
  0x41   : > { %s4858_s29 = sld [smem:[#allocation4 + $0x202]] }
  0x44   : > { %499 = vrot.lane.b32.xlu0 %v4338_v7, %s4189_s14 }
  0x48   : > { %602 = vrot.lane.b32.xlu0 %v476_v11, %s4190_s18 }
  0xb2   : > { %v498_v12 = vpop.permute.xlu0 %497 }
  0xb3   : > { %v504_v13 = vsel %vm503_vm3, %v490_v8, %v498_v12  ;;  %v485_v8 = vld [vmem:[%s5694_s6 + $0x8] sm:$0x7] }
  0xb4   : > { %3894 = vmatprep.mubr.msk.f32.mxu0 %vm5705_vm4, %v504_v13 }
  0xb6   : > { %v500_v14 = vpop.permute.xlu0 %499 }
  0xb7   : > { %v4358_v15 = vsel %vm503_vm3, 0.0, %v500_v14 }
  0xb8   : > { %3895 = vmatmul.mubr.msk.f32.vlgmr.msra.gmra.mrb[0].mxu0 %vm5705_vm4, %v4358_v15 }
  0xba   : > { %v603_v16 = vpop.permute.xlu0 %602 }
  0xbb   : > { %v609_v17 = vsel %vm5708_vm5, 0.0, %v603_v16 }
  0xbc   : > { %v612_v18 = vsel %vm5706_vm6, %v609_v17, 0.0 }
  0xbd   : > { %v617_v19 = vrot.slane %v612_v18, 5 }
  0xbf   : > { %620 = vrot.lane.b32.xlu0 %v617_v19, %s4191_s19 }
 0x131   : > { %v621_v37 = vpop.permute.xlu0 %620 }
 0x18b   : > { %v3896_v21 = vpop.f32.mrb[0].mxu0 }
 0x18c   : > { %v595_v22 = vadd.f32 %v3896_v21, %v3648_v20  ;;  %v589_v23 = vpop.f32.mrb[1].mxu0 }
 0x18d   : > { %v590_v24 = vadd.f32 %v3648_v20, %v589_v23 }
 0x18e   : > { %4076 = vtanh.f32 %v595_v22 }
 0x18f   : > { %4078 = vtanh.f32 %v590_v24 }
 0x198   : > { %v4368_v25 = vpop.eup %4076 }
 0x199   : > { %v725_v26 = vsel %vm724_vm7, %v4368_v25, -inf  ;;  %v4372_v27 = vpop.eup %4078 }
 0x19a   : > { %726 = vmax.xlane.f32.xlu1 %v725_v26  ;;  %v721_v28 = vsel %vm503_vm3, %v4372_v27, -inf }
 0x19e   : > { %722 = vmax.xlane.f32.xlu1 %v721_v28 }
 0x1af   : > { %604 = vrot.lane.b32.xlu1 %v477_v29, %s4190_s18 }
 0x227   : > { %v727_v30 = vpop.xlane.xlu1 %726 }
 0x228   : > { %vm729_vm8 = vcmp.ge.f32.partialorder %v4368_v25, %v727_v30 }
 0x229   : > { %v731_v31 = vsel %vm729_vm8, -inf, %v4368_v25 }
 0x22a   : > { %v748_v32 = vsel %vm724_vm7, %v731_v31, -inf }
 0x22b   : > { %749 = vmax.xlane.f32.xlu1 %v748_v32  ;;  %v723_v33 = vpop.xlane.xlu1 %722 }
 0x22c   : > { %vm728_vm9 = vcmp.ge.f32.partialorder %v4372_v27, %v723_v33 }
 0x22d   : > { %v730_v34 = vsel %vm728_vm9, -inf, %v4372_v27  ;;  %vm470_vm9 = vcmp.lt.s32.totalorder %v4413_v63, %v4415_v0 }
 0x22e   : > { %v745_v35 = vsel %vm503_vm3, %v730_v34, -inf  ;;  %v3647_v1 = vsel %vm470_vm9, 1.0, %v4188_v6 }
 0x22f   : > { %v605_v36 = vpop.permute.xlu1 %604  ;;  %746 = vmax.xlane.f32.xlu0 %v745_v35  ;;  %v4422_v3 = vpack.c.bf16 %v3647_v1, %v4194_v2 }
 0x230   : > { %v610_v38 = vsel %vm5708_vm5, 0.0, %v605_v36 }
 0x231   : > { %v613_v39 = vsel %vm5706_vm6, %v610_v38, 0.0 }
 0x232   : > { %v625_v40 = vsel %vm616_vm10, %v613_v39, %v621_v37  ;;  %v618_v43 = vrot.slane %v613_v39, 5 }
 0x233   : > { %v3977_v42 = vpack.c.bf16 %v625_v40, %v609_v17 }
 0x234   : > { %v619_v44 = vsel %vm616_vm10, %v617_v19, %v618_v43 }
 0x235   : > { %3979 = vmatprep.subr.msk.bf16.mxu1 %vm4389_vm12, %v3977_v42 }
 0x236   : > { %3982 = vmatpush3.bf16.msk.msra.mxu1 %vm4389_vm12, %v3977_v42 }
 0x245   : > { %622 = vrot.lane.b32.xlu0 %v619_v44, %s4191_s19 }
 0x2b8   : > { %v750_v46 = vpop.xlane.xlu1 %749 }
 0x2b9   : > { %vm752_vm13 = vcmp.ge.f32.partialorder %v731_v31, %v750_v46 }
 0x2ba   : > { %v754_v51 = vsel %vm752_vm13, -inf, %v731_v31  ;;  %vm469_vm13 = vcmp.lt.s32.totalorder %v459_v62, %v4415_v0 }
 0x2bb   : > { %v771_v53 = vsel %vm724_vm7, %v754_v51, -inf }
 0x2bc   : > { %v747_v47 = vpop.xlane.xlu0 %746 }
 0x2bd   : > { %vm751_vm14 = vcmp.ge.f32.partialorder %v730_v34, %v747_v47 }
 0x2be   : > { %v753_v48 = vsel %vm751_vm14, -inf, %v730_v34  ;;  %vm4425_vm14 = vmpackc.low %vm616_vm10, %vm469_vm13 }
 0x2bf   : > { %v768_v49 = vsel %vm503_vm3, %v753_v48, -inf  ;;  %3985 = vmatprep.subr.msk.bf16.mxu0 %vm4425_vm14, %v4422_v3 }
 0x2c0   : > { %769 = vmax.xlane.f32.xlu1 %v768_v49  ;;  %v623_v50 = vpop.permute.xlu0 %622  ;;  %3988 = vmatpush3.bf16.msk.msra.mxu0 %vm4425_vm14, %v4422_v3 }
 0x2c1   : > { %3901 = vmatprep.subr.msk.mxu1 %vm519_vm0, %v623_v50 }
 0x2c2   : > { %3902 = vmatpush3.msk.msra.mxu1 %vm519_vm0, %v623_v50 }
 0x2c3   : > { %3904 = vmatmul.mubr.msk.f32.vlgmr.msra.gmra.mrb[0].mxu1 %vm5705_vm4, %v482_v52 }
 0x2c4   : > { %772 = vmax.xlane.f32.xlu1 %v771_v53 }
 0x34d   : > { %v770_v55 = vpop.xlane.xlu1 %769 }
 0x34e   : > { %vm774_vm15 = vcmp.ge.f32.partialorder %v753_v48, %v770_v55 }
 0x34f   : > { %v776_v56 = vsel %vm774_vm15, -inf, %v753_v48  ;;  %vm463_vm15 = vcmp.lt.s32.totalorder %v4415_v0, %v459_v62 }
 0x350   : > { %v791_v57 = vsel %vm503_vm3, %v776_v56, -inf  ;;  %v4443_v11 = vsel %vm463_vm15, 1.0, %v4188_v6 }
 0x351   : > { %v773_v58 = vpop.xlane.xlu1 %772  ;;  %792 = vmax.xlane.f32.xlu0 %v791_v57  ;;  %3917 = vmatprep.mubr.msk.f32.mxu1 %vm503_vm3, %v4443_v11 }
 0x352   : > { %vm775_vm8 = vcmp.ge.f32.partialorder %v754_v51, %v773_v58 }
 0x353   : > { %v777_v59 = vsel %vm775_vm8, -inf, %v754_v51 }
 0x354   : > { %v794_v60 = vsel %vm724_vm7, %v777_v59, -inf }
 0x355   : > { %795 = vmax.xlane.f32.xlu1 %v794_v60 }
 0x366   : > { %628 = vperm.xlu1 %4069, %v484_v5  }
 0x36a   : > { %633 = vperm.xlu1 %4069, %v485_v8  }
 0x396   : > { %v3905_v9 = vpop.f32.mrb[0].mxu1 }
 0x397   : > { %v710_v10 = vpop.f32.mrb[1].mxu1 }
 0x3de   : > { %v793_v12 = vpop.xlane.xlu0 %792 }
 0x3df   : > { %vm806_vm8 = vcmp.ge.f32.partialorder %v4372_v27, %v793_v12 }
 0x3e0   : > { %v4449_v13 = vsel %vm806_vm8, 1.0, %v4188_v6 }
 0x3e1   : > { %3910 = vmatprep.mubr.msk.f32.mxu0 %vm503_vm3, %v4449_v13 }
 0x3e2   : > { %v796_v14 = vpop.xlane.xlu1 %795 }
 0x3e3   : > { %vm807_vm9 = vcmp.ge.f32.partialorder %v4368_v25, %v796_v14 }
 0x3e4   : > { %v4455_v16 = vsel %vm807_vm9, 1.0, %v4188_v6 }
 0x3e5   : > { %3911 = vmatmul.mubr.msk.f32.vlgmr.msra.gmra.mrb[2].mxu0 %vm503_vm3, %v4455_v16 }
 0x3e6   : > { %v629_v17 = vpop.permute.xlu1 %628 }
 0x3e7   : > { %v711_v18 = vadd.f32 %v710_v10, %v629_v17 }
 0x3e9   : > { %4080 = vtanh.f32 %v711_v18 }
 0x3ea   : > { %v634_v19 = vpop.permute.xlu1 %633 }
 0x3eb   : > { %v716_v20 = vadd.f32 %v3905_v9, %v634_v19 }
 0x3ed   : > { %4082 = vtanh.f32 %v716_v20 }
 0x3f3   : > { %v4459_v21 = vpop.eup %4080 }
 0x3f4   : > { %v732_v22 = vsel %vm503_vm3, %v4459_v21, -inf }
 0x3f7   : > { %v4463_v23 = vpop.eup %4082 }
 0x3f8   : > { %v733_v24 = vsel %vm724_vm7, %v4463_v23, -inf }
 0x3f9   : > { %v734_v26 = vmax.f32 %v732_v22, %v733_v24 }
 0x3fb   : > { %v735_v28 = vrot.slane %v734_v26, 4 }
 0x3fd   : > { %v736_v29 = vmax.f32 %v734_v26, %v735_v28 }
 0x3ff   : > { %v737_v30 = vrot.slane %v736_v29, 2 }
 0x401   : > { %v738_v31 = vmax.f32 %v736_v29, %v737_v30 }
 0x403   : > { %v739_v32 = vrot.slane %v738_v31, 1 }
 0x405   : > { %v740_v33 = vmax.f32 %v738_v31, %v739_v32 }
 0x407   : > { %vm741_vm13 = vcmp.ge.f32.partialorder %v4459_v21, %v740_v33  ;;  %vm742_vm15 = vcmp.ge.f32.partialorder %v4463_v23, %v740_v33 }
 0x408   : > { %v743_v34 = vsel %vm741_vm13, -inf, %v4459_v21  ;;  %v744_v35 = vsel %vm742_vm15, -inf, %v4463_v23 }
 0x409   : > { %v755_v36 = vsel %vm503_vm3, %v743_v34, -inf  ;;  %v756_v37 = vsel %vm724_vm7, %v744_v35, -inf }
 0x40a   : > { %v757_v38 = vmax.f32 %v755_v36, %v756_v37 }
 0x40c   : > { %v758_v39 = vrot.slane %v757_v38, 4 }
 0x40e   : > { %v759_v40 = vmax.f32 %v757_v38, %v758_v39 }
 0x410   : > { %v760_v42 = vrot.slane %v759_v40, 2 }
 0x412   : > { %v761_v43 = vmax.f32 %v759_v40, %v760_v42 }
 0x414   : > { %v762_v44 = vrot.slane %v761_v43, 1 }
 0x416   : > { %v763_v45 = vmax.f32 %v761_v43, %v762_v44 }
 0x418   : > { %vm764_vm8 = vcmp.ge.f32.partialorder %v743_v34, %v763_v45  ;;  %vm765_vm9 = vcmp.ge.f32.partialorder %v744_v35, %v763_v45 }
 0x419   : > { %v766_v46 = vsel %vm764_vm8, -inf, %v743_v34  ;;  %v767_v47 = vsel %vm765_vm9, -inf, %v744_v35 }
 0x41a   : > { %v778_v48 = vsel %vm503_vm3, %v766_v46, -inf  ;;  %v779_v49 = vsel %vm724_vm7, %v767_v47, -inf }
 0x41b   : > { %v780_v50 = vmax.f32 %v778_v48, %v779_v49 }
 0x41d   : > { %v781_v51 = vrot.slane %v780_v50, 4 }
 0x41f   : > { %v782_v52 = vmax.f32 %v780_v50, %v781_v51 }
 0x421   : > { %v783_v53 = vrot.slane %v782_v52, 2 }
 0x423   : > { %v784_v54 = vmax.f32 %v782_v52, %v783_v53 }
 0x425   : > { %v785_v55 = vrot.slane %v784_v54, 1 }
 0x427   : > { %v786_v56 = vmax.f32 %v784_v54, %v785_v55 }
 0x429   : > { %vm787_vm13 = vcmp.ge.f32.partialorder %v766_v46, %v786_v56  ;;  %vm788_vm15 = vcmp.ge.f32.partialorder %v767_v47, %v786_v56 }
 0x42a   : > { %v789_v57 = vsel %vm787_vm13, -inf, %v766_v46  ;;  %v790_v58 = vsel %vm788_vm15, -inf, %v767_v47  ;;  %vm464_vm15 = vcmp.lt.s32.totalorder %v4415_v0, %v4413_v63 }
 0x42b   : > { %v797_v59 = vsel %vm503_vm3, %v789_v57, -inf  ;;  %v798_v60 = vsel %vm724_vm7, %v790_v58, -inf  ;;  %v4495_v17 = vsel %vm464_vm15, 1.0, %v4188_v6 }
 0x42c   : > { %v799_v61 = vmax.f32 %v797_v59, %v798_v60 }
 0x42e   : > { %v800_v62 = vrot.slane %v799_v61, 4 }
 0x430   : > { %v801_v1 = vmax.f32 %v799_v61, %v800_v62 }
 0x432   : > { %v802_v5 = vrot.slane %v801_v1, 2 }
 0x434   : > { %v803_v8 = vmax.f32 %v801_v1, %v802_v5 }
 0x436   : > { %v804_v9 = vrot.slane %v803_v8, 1 }
 0x438   : > { %v4477_v10 = vmax.f32 %v803_v8, %v804_v9 }
 0x43a   : > { %vm812_vm8 = vcmp.ge.f32.partialorder %v4459_v21, %v4477_v10  ;;  %vm813_vm9 = vcmp.ge.f32.partialorder %v4463_v23, %v4477_v10 }
 0x43b   : > { %v4484_v12 = vsel %vm813_vm9, 1.0, %v4188_v6  ;;  %vm3990_vm13 = vmpackc.low %vm616_vm10, %vm812_vm8 }
 0x43c   : > { %v3989_v14 = vpack.c.bf16 %v4484_v12, %v4194_v2 }
 0x43e   : > { %3991 = vmatprep.subr.msk.bf16.mxu1 %vm3990_vm13, %v3989_v14 }
 0x43f   : > { %3994 = vmatpush3.bf16.msk.msra.mxu1 %vm3990_vm13, %v3989_v14 }
 0x442   : > { %3918 = vmatmul.mubr.msk.f32.vlgmr.msra.gmra.mrb[2].mxu1 %vm503_vm3, %v4495_v17 }
 0x4b8   : > { %v3912_v18 = vpop.f32.mrb[2].mxu0 }
 0x4b9   : > { %vm995_vm9 = vcmp.eq.f32.partialorder %v3912_v18, 0.0  ;;  %vm1030_vm11 = vcmp.eq.f32.partialorder %v3912_v18, 1.0  ;;  %v893_v19 = vpop.f32.mrb[3].mxu0 }
 0x4ba   : > { %vm994_vm2 = vcmp.eq.f32.partialorder %v893_v19, 0.0  ;;  %vm1029_vm4 = vcmp.eq.f32.partialorder %v893_v19, 1.0  ;;  %v3671_v20 = vsel %vm995_vm9, 1.0, %v4188_v6  ;;  %v3675_v63 = vsel %vm1030_vm11, 1.0, %v4188_v6 }
 0x4bb   : > { %v3670_v22 = vsel %vm994_vm2, 1.0, %v4188_v6  ;;  %v1001_v0 = vmul.f32 %v3671_v20, %v4455_v16  ;;  %v1036_v26 = vmul.f32 %v3675_v63, %v4455_v16  ;;  %v3674_v28 = vsel %vm1029_vm4, 1.0, %v4188_v6 }
 0x4bc   : > { %v1000_v24 = vmul.f32 %v3670_v22, %v4449_v13  ;;  %vm1064_vm13 = vcmp.eq.f32.partialorder %v893_v19, 2.0  ;;  %v1035_v34 = vmul.f32 %v3674_v28, %v4449_v13  ;;  %vm1099_vm2 = vcmp.eq.f32.partialorder %v893_v19, 3.0 }
 0x4bd   : > { %v1014_v29 = vmul.f32 %v4368_v25, %v1001_v0  ;;  %v1049_v33 = vmul.f32 %v4368_v25, %v1036_v26  ;;  %v3678_v35 = vsel %vm1064_vm13, 1.0, %v4188_v6  ;;  %v3682_v39 = vsel %vm1099_vm2, 1.0, %v4188_v6 }
 0x4be   : > { %v1013_v30 = vmul.f32 %v4372_v27, %v1000_v24  ;;  %v1048_v37 = vmul.f32 %v4372_v27, %v1035_v34  ;;  %v1070_v38 = vmul.f32 %v3678_v35, %v4449_v13  ;;  %vm1065_vm4 = vcmp.eq.f32.partialorder %v3912_v18, 2.0 }
 0x4bf   : > { %v1018_v31 = vsel %vm724_vm7, %v1014_v29, 0.0  ;;  %v1053_v36 = vsel %vm724_vm7, %v1049_v33, 0.0  ;;  %v1105_v43 = vmul.f32 %v3682_v39, %v4449_v13  ;;  %v3679_v44 = vsel %vm1065_vm4, 1.0, %v4188_v6 }
 0x4c0   : > { %v1015_v32 = vsel %vm503_vm3, %v1013_v30, 0.0  ;;  %1019 = vadd.xlane.f32.xlu0 %v1018_v31  ;;  %v1050_v40 = vsel %vm503_vm3, %v1048_v37, 0.0  ;;  %v1083_v42 = vmul.f32 %v4372_v27, %v1070_v38  ;;  %vm1100_vm11 = vcmp.eq.f32.partialorder %v3912_v18, 3.0 }
 0x4c1   : > { %1016 = vadd.xlane.f32.xlu1 %v1015_v32  ;;  %v1118_v46 = vmul.f32 %v4372_v27, %v1105_v43  ;;  %v1071_v47 = vmul.f32 %v3679_v44, %v4455_v16  ;;  %v3683_v48 = vsel %vm1100_vm11, 1.0, %v4188_v6  ;;  %v3658_v18 = vsel %vm812_vm8, 1.0, %v4188_v6 }
 0x4c2   : > { %v1085_v45 = vsel %vm503_vm3, %v1083_v42, 0.0  ;;  %v1106_v51 = vmul.f32 %v3683_v48, %v4455_v16  ;;  %vm5710_vm8 = vcmask 15360  }
 0x4c3   : > { %v1120_v49 = vsel %vm503_vm3, %v1118_v46, 0.0  ;;  %v1084_v50 = vmul.f32 %v4368_v25, %v1071_v47 }
 0x4c4   : > { %1054 = vadd.xlane.f32.xlu0 %v1053_v36  ;;  %v1119_v52 = vmul.f32 %v4368_v25, %v1106_v51 }
 0x4c5   : > { %v1088_v13 = vsel %vm724_vm7, %v1084_v50, 0.0 }
 0x4c6   : > { %v1123_v53 = vsel %vm724_vm7, %v1119_v52, 0.0 }
 0x4c8   : > { %1051 = vadd.xlane.f32.xlu0 %v1050_v40 }
 0x4cc   : > { %1086 = vadd.xlane.f32.xlu0 %v1085_v45 }
 0x4d0   : > { %1121 = vadd.xlane.f32.xlu0 %v1120_v49 }
 0x4d4   : > { %1089 = vadd.xlane.f32.xlu0 %v1088_v13 }
 0x4d8   : > { %1124 = vadd.xlane.f32.xlu0 %v1123_v53 }
 0x515   : > { %v3919_v27 = vpop.f32.mrb[2].mxu1 }
 0x516   : > { %vm987_vm15 = vcmp.eq.f32.partialorder %v3919_v27, 0.0  ;;  %vm1022_vm9 = vcmp.eq.f32.partialorder %v3919_v27, 1.0  ;;  %vm1057_vm13 = vcmp.eq.f32.partialorder %v3919_v27, 2.0  ;;  %vm1092_vm2 = vcmp.eq.f32.partialorder %v3919_v27, 3.0  ;;  %v977_v54 = vpop.f32.mrb[3].mxu1 }
 0x517   : > { %v3669_v55 = vsel %vm987_vm15, 1.0, %v4188_v6  ;;  %v3673_v56 = vsel %vm1022_vm9, 1.0, %v4188_v6  ;;  %v3677_v16 = vsel %vm1057_vm13, 1.0, %v4188_v6  ;;  %v3681_v57 = vsel %vm1092_vm2, 1.0, %v4188_v6 }
 0x518   : > { %v993_v25 = vmul.f32 %v3669_v55, %v4484_v12  ;;  %v1028_v58 = vmul.f32 %v3673_v56, %v4484_v12  ;;  %v1063_v59 = vmul.f32 %v3677_v16, %v4484_v12  ;;  %v1098_v60 = vmul.f32 %v3681_v57, %v4484_v12 }
 0x519   : > { %vm986_vm4 = vcmp.eq.f32.partialorder %v977_v54, 0.0  ;;  %vm1021_vm11 = vcmp.eq.f32.partialorder %v977_v54, 1.0  ;;  %vm1056_vm6 = vcmp.eq.f32.partialorder %v977_v54, 2.0  ;;  %vm1091_vm1 = vcmp.eq.f32.partialorder %v977_v54, 3.0 }
 0x51a   : > { %v1003_v61 = vmul.f32 %v4463_v23, %v993_v25  ;;  %v1038_v62 = vmul.f32 %v4463_v23, %v1028_v58  ;;  %v1073_v1 = vmul.f32 %v4463_v23, %v1063_v59  ;;  %v1108_v5 = vmul.f32 %v4463_v23, %v1098_v60 }
 0x51b   : > { %v3668_v8 = vsel %vm986_vm4, 1.0, %v4188_v6  ;;  %v3672_v9 = vsel %vm1021_vm11, 1.0, %v4188_v6  ;;  %v3676_v14 = vsel %vm1056_vm6, 1.0, %v4188_v6  ;;  %v3680_v12 = vsel %vm1091_vm1, 1.0, %v4188_v6 }
 0x51c   : > { %v992_v19 = vmul.f32 %v3668_v8, %v3658_v18  ;;  %v1027_v20 = vmul.f32 %v3672_v9, %v3658_v18  ;;  %v1062_v22 = vmul.f32 %v3676_v14, %v3658_v18  ;;  %v1097_v63 = vmul.f32 %v3680_v12, %v3658_v18 }
 0x51d   : > { %v1005_v0 = vsel %vm724_vm7, %v1003_v61, 0.0  ;;  %v1040_v23 = vsel %vm724_vm7, %v1038_v62, 0.0  ;;  %v1075_v24 = vsel %vm724_vm7, %v1073_v1, 0.0  ;;  %v1110_v26 = vsel %vm724_vm7, %v1108_v5, 0.0 }
 0x51e   : > { %v1002_v28 = vmul.f32 %v4459_v21, %v992_v19  ;;  %v1037_v29 = vmul.f32 %v4459_v21, %v1027_v20  ;;  %v1072_v30 = vmul.f32 %v4459_v21, %v1062_v22  ;;  %v1107_v10 = vmul.f32 %v4459_v21, %v1097_v63 }
 0x51f   : > { %vm5715_vm1 = vcmask 1040384   ;;  %vm5716_vm6 = vcmask 1041408   ;;  %vm5722_vm15 = vcmask 7168   ;;  %vm5709_vm9 = vcmask 23552  }
 0x520   : > { %v1004_v31 = vsel %vm503_vm3, %v1002_v28, 0.0  ;;  %v1039_v32 = vsel %vm503_vm3, %v1037_v29, 0.0  ;;  %v1074_v33 = vsel %vm503_vm3, %v1072_v30, 0.0  ;;  %v1109_v34 = vsel %vm503_vm3, %v1107_v10, 0.0  ;;  %v3686_v29 = vld [vmem:[%s5691_s3 + $0x28] sm:$0x3f] }
 0x521   : > { %v1006_v35 = vadd.f32 %v1005_v0, %v1004_v31  ;;  %v1041_v36 = vadd.f32 %v1040_v23, %v1039_v32  ;;  %v1076_v37 = vadd.f32 %v1075_v24, %v1074_v33  ;;  %v1111_v38 = vadd.f32 %v1110_v26, %v1109_v34  ;;  %v3684_v24 = vld [vmem:[%s5691_s3 + $0x18] sm:$0xff]  ;;  %v3685_v26 = vld [vmem:[%s5691_s3 + $0x20] sm:$0xff]  ;;  %v3687_v34 = vld [vmem:[%s5692_s4 + $0x10] sm:$0xff] }
 0x522   : > { %v3995_v28 = vpack.c.bf16 %v3685_v26, %v3684_v24  ;;  %vm5735_vm13 = vcmask 1043456   ;;  %vm5736_vm2 = vcmask 64512   ;;  %vm5737_vm4 = vcmask 179200  }
 0x523   : > { %v1007_v39 = vrot.slane %v1006_v35, 4  ;;  %v1042_v40 = vrot.slane %v1041_v36, 4  ;;  %v1077_v42 = vrot.slane %v1076_v37, 4  ;;  %v1112_v43 = vrot.slane %v1111_v38, 4  ;;  %3935 = vmatprep.mubr.msk.f32.mxu1 %vm5737_vm4, %v3687_v34 }
 0x524   : > { %3996 = vmatprep.subr.bf16.mxu0 %v3995_v28  ;;  %vm5738_vm11 = vcmask 1046528  }
 0x525   : > { %v1008_v44 = vadd.f32 %v1007_v39, %v1006_v35  ;;  %v1043_v45 = vadd.f32 %v1042_v40, %v1041_v36  ;;  %v1078_v46 = vadd.f32 %v1077_v42, %v1076_v37  ;;  %v1113_v21 = vadd.f32 %v1112_v43, %v1111_v38  ;;  %3998 = vmatpush3.bf16.msra.mxu0 %v3995_v28  ;;  %v3691_v42 = vld [vmem:[%s5694_s6 + $0x18] sm:$0x7] }
 0x526   : > { %3924 = vmatprep.subr.msk.mxu0 %vm519_vm0, %v3686_v29 }
 0x527   : > { %v1009_v47 = vrot.slane %v1008_v44, 2  ;;  %v1044_v48 = vrot.slane %v1043_v45, 2  ;;  %v1079_v49 = vrot.slane %v1078_v46, 2  ;;  %v1114_v50 = vrot.slane %v1113_v21, 2 }
 0x529   : > { %v1010_v51 = vadd.f32 %v1009_v47, %v1008_v44  ;;  %v1045_v13 = vadd.f32 %v1044_v48, %v1043_v45  ;;  %v1080_v52 = vadd.f32 %v1079_v49, %v1078_v46  ;;  %v1115_v53 = vadd.f32 %v1114_v50, %v1113_v21  ;;  %3925 = vmatpush3.msk.msra.mxu0 %vm519_vm0, %v3686_v29  ;;  %v3690_v45 = vld [vmem:[%s5694_s6 + $0x10] sm:$0xff] }
 0x52a   : > { %4007 = vmatprep.subr.msk.bf16.mxu0 %vm4425_vm14, %v4422_v3 }
 0x52b   : > { %v1011_v27 = vrot.slane %v1010_v51, 1  ;;  %v1046_v54 = vrot.slane %v1045_v13, 1  ;;  %v1081_v55 = vrot.slane %v1080_v52, 1  ;;  %v1116_v56 = vrot.slane %v1115_v53, 1 }
 0x52d   : > { %v1012_v16 = vadd.f32 %v1011_v27, %v1010_v51  ;;  %v1047_v57 = vadd.f32 %v1046_v54, %v1045_v13  ;;  %v1082_v25 = vadd.f32 %v1081_v55, %v1080_v52  ;;  %v1117_v58 = vadd.f32 %v1116_v56, %v1115_v53  ;;  %v3688_v51 = vld [vmem:[%s5692_s4 + $0x18] sm:$0x7] }
 0x52f   : > { %v1127_v59 = vsel %vm5715_vm1, %v1012_v16, %v1047_v57 }
 0x530   : > { %v1129_v60 = vsel %vm5716_vm6, %v1127_v59, %v1082_v25 }
 0x531   : > { %v1130_v61 = vsel %vm616_vm10, %v1129_v60, %v1117_v58 }
 0x532   : > { %v1153_v30 = vrot.slane %v1130_v61, 4 }
 0x534   : > { %v1155_v32 = vsel %vm5735_vm13, 0.0, %v1153_v30  ;;  %vm5739_vm13 = vmmov %vm5736_vm2 }
 0x535   : > { %v1157_v36 = vrot.slane %v1155_v32, 1 }
 0x537   : > { %v1158_v38 = vsel %vm5738_vm11, %v1157_v36, %v4338_v7 }
 0x54d   : > { %v1020_v62 = vpop.xlane.xlu0 %1019 }
 0x54e   : > { %v1017_v9 = vpop.xlane.xlu1 %1016 }
 0x551   : > { %v1055_v1 = vpop.xlane.xlu0 %1054 }
 0x552   : > { %v1133_v22 = vsel %vm5722_vm15, %v1020_v62, %v1055_v1 }
 0x555   : > { %v1052_v5 = vpop.xlane.xlu0 %1051 }
 0x556   : > { %v1132_v14 = vsel %vm5722_vm15, %v1017_v9, %v1052_v5 }
 0x559   : > { %v1087_v8 = vpop.xlane.xlu0 %1086 }
 0x55a   : > { %v1135_v12 = vsel %vm5710_vm8, %v1132_v14, %v1087_v8 }
 0x55d   : > { %v1122_v18 = vpop.xlane.xlu0 %1121 }
 0x55e   : > { %v1138_v19 = vsel %vm5709_vm9, %v1135_v12, %v1122_v18 }
 0x55f   : > { %1254 = vrot.lane.b32.xlu0 %v1138_v19, %s4190_s18 }
 0x561   : > { %v1090_v20 = vpop.xlane.xlu0 %1089 }
 0x562   : > { %v1136_v63 = vsel %vm5710_vm8, %v1133_v22, %v1090_v20 }
 0x565   : > { %v1125_v0 = vpop.xlane.xlu0 %1124 }
 0x566   : > { %v1139_v23 = vsel %vm5709_vm9, %v1136_v63, %v1125_v0 }
 0x567   : > { %1256 = vrot.lane.b32.xlu1 %v1139_v23, %s4190_s18 }
 0x5d1   : > { %v4584_v10 = vpop.permute.xlu0 %1254 }
 0x5d2   : > { %v1260_v31 = vsel %vm5708_vm5, 0.0, %v4584_v10 }
 0x5d3   : > { %v1262_v33 = vsel %vm5736_vm2, %v1260_v31, 0.0  ;;  %vm5740_vm2 = vmmov %vm5737_vm4 }
 0x5d4   : > { %v1266_v35 = vrot.slane %v1262_v33, 5  ;;  %vm5741_vm4 = vmmov %vm5740_vm2 }
 0x5d5   : > { %vm5742_vm11 = vmmov %vm5740_vm2 }
 0x5d6   : > { %1269 = vrot.lane.b32.xlu1 %v1266_v35, %s4191_s19 }
 0x5d9   : > { %v4599_v37 = vpop.permute.xlu1 %1256 }
 0x5da   : > { %v1261_v39 = vsel %vm5708_vm5, 0.0, %v4599_v37  ;;  %1159 = vrot.lane.b32.xlu1 %v1158_v38, %s4189_s14 }
 0x5db   : > { %v1263_v40 = vsel %vm5739_vm13, %v1261_v39, 0.0 }
 0x5dc   : > { %v1267_v43 = vrot.slane %v1263_v40, 5 }
 0x5de   : > { %1282 = vperm.xlu1 %4069, %v3691_v42   ;;  %v1268_v44 = vsel %vm616_vm10, %v1266_v35, %v1267_v43 }
 0x5df   : > { %1271 = vrot.lane.b32.xlu0 %v1268_v44, %s4191_s19 }
 0x5e3   : > { %1277 = vperm.xlu0 %4070, %v3690_v45  }
 0x648   : > { %v1270_v46 = vpop.permute.xlu1 %1269 }
 0x649   : > { %v1274_v21 = vsel %vm616_vm10, %v1263_v40, %v1270_v46 }
 0x64a   : > { %v3999_v47 = vpack.c.bf16 %v1274_v21, %v1260_v31 }
 0x64c   : > { %4001 = vmatprep.subr.msk.bf16.mxu1 %vm4389_vm12, %v3999_v47  ;;  %v1160_v48 = vpop.permute.xlu1 %1159 }
 0x64d   : > { %v1162_v49 = vsel %vm503_vm3, %v1155_v32, %v1160_v48  ;;  %4004 = vmatpush3.bf16.msk.msra.mxu1 %vm4389_vm12, %v3999_v47 }
 0x64e   : > { %3926 = vmatprep.mubr.msk.f32.mxu0 %vm5740_vm2, %v1162_v49 }
 0x64f   : > { %3927 = vmatmul.mubr.msk.f32.vlgmr.msra.gmra.mrb[4].mxu0 %vm5741_vm4, %v4358_v15 }
 0x650   : > { %4010 = vmatpush3.bf16.msk.msra.mxu0 %vm4425_vm14, %v4422_v3 }
 0x651   : > { %v1272_v50 = vpop.permute.xlu0 %1271 }
 0x652   : > { %3933 = vmatprep.subr.msk.mxu1 %vm519_vm0, %v1272_v50 }
 0x653   : > { %3934 = vmatpush3.msk.msra.mxu1 %vm519_vm0, %v1272_v50 }
 0x654   : > { %3936 = vmatmul.mubr.msk.f32.vlgmr.msra.gmra.mrb[4].mxu1 %vm5742_vm11, %v3688_v51 }
 0x655   : > { %3949 = vmatprep.mubr.msk.f32.mxu1 %vm503_vm3, %v4443_v11 }
 0x65d   : > { %v1283_v27 = vpop.permute.xlu1 %1282 }
 0x662   : > { %v1278_v53 = vpop.permute.xlu0 %1277 }
 0x722   : > { %v3928_v4 = vpop.f32.mrb[4].mxu0 }
 0x723   : > { %v1247_v3 = vadd.f32 %v3928_v4, %v3692_v41  ;;  %v1241_v13 = vpop.f32.mrb[5].mxu0 }
 0x724   : > { %v1242_v52 = vadd.f32 %v3692_v41, %v1241_v13 }
 0x725   : > { %4084 = vtanh.f32 %v1247_v3 }
 0x726   : > { %4086 = vtanh.f32 %v1242_v52 }
 0x727   : > { %v3937_v54 = vpop.f32.mrb[4].mxu1 }
 0x728   : > { %v1365_v55 = vadd.f32 %v3937_v54, %v1283_v27  ;;  %v1359_v56 = vpop.f32.mrb[5].mxu1 }
 0x729   : > { %v1360_v16 = vadd.f32 %v1359_v56, %v1278_v53 }
 0x72a   : > { %4088 = vtanh.f32 %v1365_v55 }
 0x72b   : > { %4090 = vtanh.f32 %v1360_v16 }
 0x72f   : > { %v4638_v57 = vpop.eup %4084 }
 0x730   : > { %v4640_v11 = vpop.eup %4086  ;;  %v1373_v25 = vsel %vm724_vm7, %v4638_v57, -inf }
 0x731   : > { %1374 = vmax.xlane.f32.xlu0 %v1373_v25  ;;  %v1370_v58 = vsel %vm503_vm3, %v4640_v11, -inf }
 0x732   : > { %1371 = vmax.xlane.f32.xlu1 %v1370_v58 }
 0x734   : > { %v4646_v59 = vpop.eup %4088 }
 0x735   : > { %v4648_v60 = vpop.eup %4090  ;;  %v1381_v61 = vsel %vm724_vm7, %v4646_v59, -inf }
 0x736   : > { %v1380_v62 = vsel %vm503_vm3, %v4648_v60, -inf }
 0x737   : > { %v1382_v1 = vmax.f32 %v1380_v62, %v1381_v61 }
 0x739   : > { %v1383_v5 = vrot.slane %v1382_v1, 4 }
 0x73b   : > { %v1384_v8 = vmax.f32 %v1382_v1, %v1383_v5 }
 0x73d   : > { %v1385_v9 = vrot.slane %v1384_v8, 2 }
 0x73f   : > { %v1386_v14 = vmax.f32 %v1384_v8, %v1385_v9 }
 0x741   : > { %v1387_v12 = vrot.slane %v1386_v14, 1 }
 0x743   : > { %v1388_v18 = vmax.f32 %v1386_v14, %v1387_v12 }
 0x745   : > { %vm1389_vm12 = vcmp.ge.f32.partialorder %v4648_v60, %v1388_v18  ;;  %vm1390_vm14 = vcmp.ge.f32.partialorder %v4646_v59, %v1388_v18 }
 0x746   : > { %v1391_v19 = vsel %vm1389_vm12, -inf, %v4648_v60  ;;  %v1392_v20 = vsel %vm1390_vm14, -inf, %v4646_v59 }
 0x747   : > { %v1403_v22 = vsel %vm503_vm3, %v1391_v19, -inf  ;;  %v1404_v63 = vsel %vm724_vm7, %v1392_v20, -inf }
 0x748   : > { %v1405_v0 = vmax.f32 %v1403_v22, %v1404_v63 }
 0x74a   : > { %v1406_v23 = vrot.slane %v1405_v0, 4 }
 0x74c   : > { %v1407_v24 = vmax.f32 %v1405_v0, %v1406_v23 }
 0x74e   : > { %v1408_v26 = vrot.slane %v1407_v24, 2 }
 0x750   : > { %v1409_v28 = vmax.f32 %v1407_v24, %v1408_v26 }
 0x752   : > { %v1410_v29 = vrot.slane %v1409_v28, 1 }
 0x754   : > { %v1411_v30 = vmax.f32 %v1409_v28, %v1410_v29 }
 0x756   : > { %vm1412_vm13 = vcmp.ge.f32.partialorder %v1391_v19, %v1411_v30  ;;  %vm1413_vm2 = vcmp.ge.f32.partialorder %v1392_v20, %v1411_v30 }
 0x757   : > { %v1414_v31 = vsel %vm1412_vm13, -inf, %v1391_v19  ;;  %v1415_v32 = vsel %vm1413_vm2, -inf, %v1392_v20 }
 0x758   : > { %v1426_v33 = vsel %vm503_vm3, %v1414_v31, -inf  ;;  %v1427_v34 = vsel %vm724_vm7, %v1415_v32, -inf }
 0x759   : > { %v1428_v35 = vmax.f32 %v1426_v33, %v1427_v34 }
 0x75b   : > { %v1429_v36 = vrot.slane %v1428_v35, 4 }
 0x75d   : > { %v1430_v38 = vmax.f32 %v1428_v35, %v1429_v36 }
 0x75f   : > { %v1431_v39 = vrot.slane %v1430_v38, 2 }
 0x761   : > { %v1432_v40 = vmax.f32 %v1430_v38, %v1431_v39 }
 0x763   : > { %v1433_v42 = vrot.slane %v1432_v40, 1 }
 0x765   : > { %v1434_v43 = vmax.f32 %v1432_v40, %v1433_v42 }
 0x767   : > { %vm1435_vm4 = vcmp.ge.f32.partialorder %v1414_v31, %v1434_v43  ;;  %vm1436_vm11 = vcmp.ge.f32.partialorder %v1415_v32, %v1434_v43 }
 0x768   : > { %v1437_v44 = vsel %vm1435_vm4, -inf, %v1414_v31  ;;  %v1438_v45 = vsel %vm1436_vm11, -inf, %v1415_v32 }
 0x769   : > { %v1445_v46 = vsel %vm503_vm3, %v1437_v44, -inf  ;;  %v1446_v21 = vsel %vm724_vm7, %v1438_v45, -inf }
 0x76a   : > { %v1447_v47 = vmax.f32 %v1445_v46, %v1446_v21 }
 0x76c   : > { %v1448_v48 = vrot.slane %v1447_v47, 4 }
 0x76e   : > { %v1449_v49 = vmax.f32 %v1447_v47, %v1448_v48 }
 0x770   : > { %v1450_v50 = vrot.slane %v1449_v49, 2 }
 0x772   : > { %v1451_v51 = vmax.f32 %v1449_v49, %v1450_v50 }
 0x774   : > { %v1452_v41 = vrot.slane %v1451_v51, 1 }
 0x776   : > { %v1453_v4 = vmax.f32 %v1451_v51, %v1452_v41 }
 0x778   : > { %vm1460_vm12 = vcmp.ge.f32.partialorder %v4648_v60, %v1453_v4  ;;  %vm1461_vm14 = vcmp.ge.f32.partialorder %v4646_v59, %v1453_v4 }
 0x779   : > { %v3703_v3 = vsel %vm1461_vm14, 1.0, %v4188_v6  ;;  %vm4012_vm13 = vmpackc.low %vm616_vm10, %vm1460_vm12  ;;  %v3702_v30 = vsel %vm1460_vm12, 1.0, %v4188_v6  ;;  %vm5744_vm12 = vcmask 1046528  }
 0x77a   : > { %v4011_v13 = vpack.c.bf16 %v3703_v3, %v4194_v2 }
 0x77c   : > { %4013 = vmatprep.subr.msk.bf16.mxu1 %vm4012_vm13, %v4011_v13 }
 0x77d   : > { %4016 = vmatpush3.bf16.msk.msra.mxu1 %vm4012_vm13, %v4011_v13 }
 0x780   : > { %3950 = vmatmul.mubr.msk.f32.vlgmr.msra.gmra.mrb[6].mxu1 %vm503_vm3, %v4495_v17 }
 0x7be   : > { %v1375_v52 = vpop.xlane.xlu0 %1374 }
 0x7bf   : > { %vm1377_vm2 = vcmp.ge.f32.partialorder %v4638_v57, %v1375_v52  ;;  %v1372_v53 = vpop.xlane.xlu1 %1371 }
 0x7c0   : > { %vm1376_vm4 = vcmp.ge.f32.partialorder %v4640_v11, %v1372_v53  ;;  %v1379_v27 = vsel %vm1377_vm2, -inf, %v4638_v57 }
 0x7c1   : > { %v1396_v54 = vsel %vm724_vm7, %v1379_v27, -inf  ;;  %v1378_v2 = vsel %vm1376_vm4, -inf, %v4640_v11 }
 0x7c2   : > { %1397 = vmax.xlane.f32.xlu1 %v1396_v54  ;;  %v1393_v55 = vsel %vm503_vm3, %v1378_v2, -inf }
 0x7c3   : > { %1394 = vmax.xlane.f32.xlu0 %v1393_v55 }
 0x84f   : > { %v1398_v56 = vpop.xlane.xlu1 %1397 }
 0x850   : > { %vm1400_vm11 = vcmp.ge.f32.partialorder %v1379_v27, %v1398_v56  ;;  %v1395_v16 = vpop.xlane.xlu0 %1394 }
 0x851   : > { %vm1399_vm14 = vcmp.ge.f32.partialorder %v1378_v2, %v1395_v16  ;;  %v4679_v17 = vsel %vm1400_vm11, -inf, %v1379_v27 }
 0x852   : > { %v1419_v25 = vsel %vm724_vm7, %v4679_v17, -inf  ;;  %v4683_v58 = vsel %vm1399_vm14, -inf, %v1378_v2 }
 0x853   : > { %v3951_v61 = vpop.f32.mrb[6].mxu1  ;;  %1420 = vmax.xlane.f32.xlu1 %v1419_v25  ;;  %v1416_v62 = vsel %vm503_vm3, %v4683_v58, -inf }
 0x854   : > { %vm1626_vm13 = vcmp.eq.f32.partialorder %v3951_v61, 0.0  ;;  %vm1661_vm2 = vcmp.eq.f32.partialorder %v3951_v61, 1.0  ;;  %vm1696_vm4 = vcmp.eq.f32.partialorder %v3951_v61, 2.0  ;;  %vm1731_vm5 = vcmp.eq.f32.partialorder %v3951_v61, 3.0  ;;  %v1616_v1 = vpop.f32.mrb[7].mxu1  ;;  %1417 = vmax.xlane.f32.xlu0 %v1416_v62 }
 0x855   : > { %v3713_v5 = vsel %vm1626_vm13, 1.0, %v4188_v6  ;;  %v3717_v8 = vsel %vm1661_vm2, 1.0, %v4188_v6  ;;  %v3721_v9 = vsel %vm1696_vm4, 1.0, %v4188_v6  ;;  %v3725_v14 = vsel %vm1731_vm5, 1.0, %v4188_v6 }
 0x856   : > { %v1632_v12 = vmul.f32 %v3713_v5, %v3703_v3  ;;  %v1667_v18 = vmul.f32 %v3717_v8, %v3703_v3  ;;  %v1702_v19 = vmul.f32 %v3721_v9, %v3703_v3  ;;  %v1737_v20 = vmul.f32 %v3725_v14, %v3703_v3 }
 0x857   : > { %vm1625_vm11 = vcmp.eq.f32.partialorder %v1616_v1, 0.0  ;;  %vm1660_vm14 = vcmp.eq.f32.partialorder %v1616_v1, 1.0  ;;  %vm1695_vm9 = vcmp.eq.f32.partialorder %v1616_v1, 2.0  ;;  %vm1730_vm8 = vcmp.eq.f32.partialorder %v1616_v1, 3.0 }
 0x858   : > { %v1642_v22 = vmul.f32 %v4646_v59, %v1632_v12  ;;  %v1677_v63 = vmul.f32 %v4646_v59, %v1667_v18  ;;  %v1712_v0 = vmul.f32 %v4646_v59, %v1702_v19  ;;  %v1747_v23 = vmul.f32 %v4646_v59, %v1737_v20 }
 0x859   : > { %v3712_v24 = vsel %vm1625_vm11, 1.0, %v4188_v6  ;;  %v3716_v26 = vsel %vm1660_vm14, 1.0, %v4188_v6  ;;  %v3720_v28 = vsel %vm1695_vm9, 1.0, %v4188_v6  ;;  %v3724_v29 = vsel %vm1730_vm8, 1.0, %v4188_v6 }
 0x85a   : > { %v1631_v31 = vmul.f32 %v3712_v24, %v3702_v30  ;;  %v1666_v32 = vmul.f32 %v3716_v26, %v3702_v30  ;;  %v1701_v33 = vmul.f32 %v3720_v28, %v3702_v30  ;;  %v1736_v34 = vmul.f32 %v3724_v29, %v3702_v30 }
 0x85b   : > { %v1644_v35 = vsel %vm724_vm7, %v1642_v22, 0.0  ;;  %v1679_v59 = vsel %vm724_vm7, %v1677_v63, 0.0  ;;  %v1714_v36 = vsel %vm724_vm7, %v1712_v0, 0.0  ;;  %v1749_v38 = vsel %vm724_vm7, %v1747_v23, 0.0 }
 0x85c   : > { %v1641_v39 = vmul.f32 %v4648_v60, %v1631_v31  ;;  %v1676_v40 = vmul.f32 %v4648_v60, %v1666_v32  ;;  %v1711_v42 = vmul.f32 %v4648_v60, %v1701_v33  ;;  %v1746_v43 = vmul.f32 %v4648_v60, %v1736_v34  ;;  %v3728_v31 = vld [vmem:[%s5691_s3 + $0x30] sm:$0xff]  ;;  %v3729_v32 = vld [vmem:[%s5691_s3 + $0x38] sm:$0xff] }
 0x85d   : > { %vm5743_vm9 = vcmask 1043456   ;;  %v4017_v33 = vpack.c.bf16 %v3729_v32, %v3728_v31  ;;  %vm5745_vm4 = vcmask 179200   ;;  %v1901_v32 = vld [vmem:[%s5690_s2] sm:$0xff] }
 0x85e   : > { %v1643_v44 = vsel %vm503_vm3, %v1641_v39, 0.0  ;;  %v1678_v45 = vsel %vm503_vm3, %v1676_v40, 0.0  ;;  %v1713_v46 = vsel %vm503_vm3, %v1711_v42, 0.0  ;;  %v1748_v21 = vsel %vm503_vm3, %v1746_v43, 0.0  ;;  %vm5746_vm11 = vmmov %vm5745_vm4  ;;  %3965 = vmatprep.mubr.msk.f32.mxu1 %vm503_vm3, %v1901_v32 }
 0x85f   : > { %v1645_v47 = vadd.f32 %v1644_v35, %v1643_v44  ;;  %v1680_v48 = vadd.f32 %v1679_v59, %v1678_v45  ;;  %v1715_v49 = vadd.f32 %v1714_v36, %v1713_v46  ;;  %v1750_v50 = vadd.f32 %v1749_v38, %v1748_v21  ;;  %4018 = vmatprep.subr.bf16.mxu0 %v4017_v33  ;;  %v3730_v38 = vld [vmem:[%s5691_s3 + $0x40] sm:$0x3f] }
 0x861   : > { %v1646_v51 = vrot.slane %v1645_v47, 4  ;;  %v1681_v41 = vrot.slane %v1680_v48, 4  ;;  %v1716_v4 = vrot.slane %v1715_v49, 4  ;;  %v1751_v3 = vrot.slane %v1750_v50, 4 }
 0x863   : > { %v1647_v13 = vadd.f32 %v1646_v51, %v1645_v47  ;;  %v1682_v52 = vadd.f32 %v1681_v41, %v1680_v48  ;;  %v1717_v53 = vadd.f32 %v1716_v4, %v1715_v49  ;;  %v1752_v60 = vadd.f32 %v1751_v3, %v1750_v50 }
 0x865   : > { %v1648_v27 = vrot.slane %v1647_v13, 2  ;;  %v1683_v54 = vrot.slane %v1682_v52, 2  ;;  %v1718_v2 = vrot.slane %v1717_v53, 2  ;;  %v1753_v55 = vrot.slane %v1752_v60, 2 }
 0x867   : > { %v1649_v56 = vadd.f32 %v1648_v27, %v1647_v13  ;;  %v1684_v16 = vadd.f32 %v1683_v54, %v1682_v52  ;;  %v1719_v25 = vadd.f32 %v1718_v2, %v1717_v53  ;;  %v1754_v61 = vadd.f32 %v1753_v55, %v1752_v60  ;;  %v3732_v2 = vld [vmem:[%s5693_s5 + $0x2] ss:$0 sm:$0xff] }
 0x869   : > { %v1650_v62 = vrot.slane %v1649_v56, 1  ;;  %v1685_v1 = vrot.slane %v1684_v16, 1  ;;  %v1720_v5 = vrot.slane %v1719_v25, 1  ;;  %v1755_v8 = vrot.slane %v1754_v61, 1 }
 0x86b   : > { %v1651_v9 = vadd.f32 %v1650_v62, %v1649_v56  ;;  %v1686_v14 = vadd.f32 %v1685_v1, %v1684_v16  ;;  %v1721_v12 = vadd.f32 %v1720_v5, %v1719_v25  ;;  %v1756_v18 = vadd.f32 %v1755_v8, %v1754_v61 }
 0x86d   : > { %v1765_v19 = vsel %vm5715_vm1, %v1651_v9, %v1686_v14 }
 0x86e   : > { %v1766_v20 = vsel %vm5716_vm6, %v1765_v19, %v1721_v12 }
 0x86f   : > { %v1767_v22 = vsel %vm616_vm10, %v1766_v20, %v1756_v18 }
 0x870   : > { %v1781_v29 = vrot.slane %v1767_v22, 4 }
 0x872   : > { %v1783_v30 = vsel %vm5743_vm9, 0.0, %v1781_v29 }
 0x8e0   : > { %v1421_v63 = vpop.xlane.xlu1 %1420 }
 0x8e1   : > { %vm1423_vm5 = vcmp.ge.f32.partialorder %v4679_v17, %v1421_v63  ;;  %v1418_v0 = vpop.xlane.xlu0 %1417 }
 0x8e2   : > { %vm1422_vm8 = vcmp.ge.f32.partialorder %v4683_v58, %v1418_v0  ;;  %v1425_v23 = vsel %vm1423_vm5, -inf, %v4679_v17  ;;  %v1785_v17 = vrot.slane %v1783_v30, 1 }
 0x8e3   : > { %v1442_v24 = vsel %vm724_vm7, %v1425_v23, -inf  ;;  %v1424_v26 = vsel %vm1422_vm8, -inf, %v4683_v58 }
 0x8e4   : > { %1443 = vmax.xlane.f32.xlu1 %v1442_v24  ;;  %v1439_v28 = vsel %vm503_vm3, %v1424_v26, -inf  ;;  %v1786_v58 = vsel %vm5744_vm12, %v1785_v17, %v4338_v7 }
 0x8e5   : > { %1440 = vmax.xlane.f32.xlu0 %v1439_v28 }
 0x8fb   : > { %1787 = vrot.lane.b32.xlu0 %v1786_v58, %s4189_s14  ;;  %s4842_s14 = sld [smem:[#allocation4 + $0x281]] }
 0x971   : > { %v1444_v34 = vpop.xlane.xlu1 %1443 }
 0x972   : > { %vm1455_vm13 = vcmp.ge.f32.partialorder %v4638_v57, %v1444_v34  ;;  %v1441_v35 = vpop.xlane.xlu0 %1440 }
 0x973   : > { %vm1454_vm2 = vcmp.ge.f32.partialorder %v4640_v11, %v1441_v35  ;;  %v3701_v36 = vsel %vm1455_vm13, 1.0, %v4188_v6 }
 0x974   : > { %v3700_v59 = vsel %vm1454_vm2, 1.0, %v4188_v6 }
 0x975   : > { %3942 = vmatprep.mubr.msk.f32.mxu0 %vm503_vm3, %v3700_v59 }
 0x976   : > { %v1788_v39 = vpop.permute.xlu0 %1787  ;;  %3943 = vmatmul.mubr.msk.f32.vlgmr.msra.gmra.mrb[6].mxu0 %vm503_vm3, %v3701_v36 }
 0x977   : > { %v1790_v7 = vsel %vm503_vm3, %v1783_v30, %v1788_v39  ;;  %4020 = vmatpush3.bf16.msra.mxu0 %v4017_v33 }
 0x978   : > { %3958 = vmatprep.mubr.msk.f32.mxu0 %vm5745_vm4, %v1790_v7  ;;  %3956 = vmatprep.subr.msk.mxu0 %vm519_vm0, %v3730_v38 }
 0x97b   : > { %3957 = vmatpush3.msk.msra.mxu0 %vm519_vm0, %v3730_v38 }
 0x97c   : > { %3959 = vmatmul.mubr.msk.f32.vlgmr.msra.gmra.mrb[8].mxu0 %vm5746_vm11, %v4358_v15 }
 0xa49   : > { %v3944_v40 = vpop.f32.mrb[6].mxu0 }
 0xa4a   : > { %vm1634_vm14 = vcmp.eq.f32.partialorder %v3944_v40, 0.0  ;;  %vm1704_vm5 = vcmp.eq.f32.partialorder %v3944_v40, 2.0  ;;  %v1538_v42 = vpop.f32.mrb[7].mxu0  ;;  %vm1669_vm12 = vcmp.eq.f32.partialorder %v3944_v40, 1.0  ;;  %vm1739_vm4 = vcmp.eq.f32.partialorder %v3944_v40, 3.0 }
 0xa4b   : > { %vm1633_vm8 = vcmp.eq.f32.partialorder %v1538_v42, 0.0  ;;  %vm1668_vm9 = vcmp.eq.f32.partialorder %v1538_v42, 1.0  ;;  %v3723_v43 = vsel %vm1704_vm5, 1.0, %v4188_v6  ;;  %v3715_v45 = vsel %vm1634_vm14, 1.0, %v4188_v6 }
 0xa4c   : > { %v3714_v44 = vsel %vm1633_vm8, 1.0, %v4188_v6  ;;  %v1710_v46 = vmul.f32 %v3723_v43, %v3701_v36  ;;  %v1640_v47 = vmul.f32 %v3715_v45, %v3701_v36  ;;  %v3718_v48 = vsel %vm1668_vm9, 1.0, %v4188_v6 }
 0xa4d   : > { %v1639_v21 = vmul.f32 %v3714_v44, %v3700_v59  ;;  %v1674_v13 = vmul.f32 %v3718_v48, %v3700_v59  ;;  %v3719_v52 = vsel %vm1669_vm12, 1.0, %v4188_v6  ;;  %vm1703_vm13 = vcmp.eq.f32.partialorder %v1538_v42, 2.0  ;;  %v4136_v44 = vld [vmem:[%s4349_s17] sm:$0xff] }
 0xa4e   : > { %v1723_v15 = vmul.f32 %v4638_v57, %v1710_v46  ;;  %v1653_v3 = vmul.f32 %v4638_v57, %v1640_v47  ;;  %v1675_v27 = vmul.f32 %v3719_v52, %v3701_v36  ;;  %v3722_v54 = vsel %vm1703_vm13, 1.0, %v4188_v6  ;;  %v4137_v46 = vld [vmem:[%s4349_s17 + $0x8] sm:$0x7]  ;;  %s1903_s17 = sld [smem:[#allocation2]] }
 0xa4f   : > { %v3960_v49 = vpop.f32.mrb[8].mxu0  ;;  %v1652_v50 = vmul.f32 %v4640_v11, %v1639_v21  ;;  %v1687_v60 = vmul.f32 %v4640_v11, %v1674_v13  ;;  %vm1738_vm2 = vcmp.eq.f32.partialorder %v1538_v42, 3.0  ;;  %v1709_v16 = vmul.f32 %v3722_v54, %v3700_v59 }
 0xa50   : > { %v1869_v51 = vpop.f32.mrb[9].mxu0  ;;  %v1727_v41 = vsel %vm724_vm7, %v1723_v15, 0.0  ;;  %v1657_v53 = vsel %vm724_vm7, %v1653_v3, 0.0  ;;  %v1688_v56 = vmul.f32 %v4638_v57, %v1675_v27  ;;  %v3726_v25 = vsel %vm1738_vm2, 1.0, %v4188_v6 }
 0xa51   : > { %v1654_v4 = vsel %vm503_vm3, %v1652_v50, 0.0  ;;  %1728 = vadd.xlane.f32.xlu0 %v1727_v41  ;;  %v1689_v55 = vsel %vm503_vm3, %v1687_v60, 0.0  ;;  %v1875_v61 = vadd.f32 %v3960_v49, %v3732_v2  ;;  %v1722_v1 = vmul.f32 %v4640_v11, %v1709_v16 }
 0xa52   : > { %1655 = vadd.xlane.f32.xlu1 %v1654_v4  ;;  %v1692_v62 = vsel %vm724_vm7, %v1688_v56, 0.0  ;;  %v1744_v5 = vmul.f32 %v3726_v25, %v3700_v59  ;;  %v3727_v8 = vsel %vm1739_vm4, 1.0, %v4188_v6  ;;  %v1870_v9 = vadd.f32 %v3732_v2, %v1869_v51 }
 0xa53   : > { %4092 = vtanh.f32 %v1875_v61  ;;  %v1724_v14 = vsel %vm503_vm3, %v1722_v1, 0.0  ;;  %v1745_v18 = vmul.f32 %v3727_v8, %v3701_v36  ;;  %vm5749_vm14 = vcmask 23552  }
 0xa54   : > { %v1757_v12 = vmul.f32 %v4640_v11, %v1744_v5  ;;  %4094 = vtanh.f32 %v1870_v9  ;;  %vm5750_vm5 = vmmov %vm5749_vm14  ;;  %vm5711_vm8 = vcmask 97280   ;;  %vm5751_vm9 = vcmask 31744  }
 0xa55   : > { %v1758_v20 = vmul.f32 %v4638_v57, %v1745_v18  ;;  %v1894_v45 = vsel %vm5751_vm9, %v4136_v44, %v4584_v10  ;;  %vm5752_vm12 = vmmov %vm5751_vm9  ;;  %vm5753_vm13 = vcmask 64512   ;;  %vm5755_vm4 = vmmov 1   ;;  %v1902_v10 = vld [vmem:[%s5690_s2 + $0x8] sm:$0x1f] }
 0xa56   : > { %1658 = vadd.xlane.f32.xlu1 %v1657_v53  ;;  %v1759_v19 = vsel %vm503_vm3, %v1757_v12, 0.0  ;;  %v1895_v21 = vsel %vm5752_vm12, %v4137_v46, %v4599_v37  ;;  %vm5754_vm2 = vmmov %vm5753_vm13  ;;  %v1904_v37 = vstv %s1903_s17  ;;  %vm2025_vm9 = vcmask 104452   ;;  %s4860_s17 = sld [smem:[#allocation4 + $0x282]] }
 0xa57   : > { %v1762_v22 = vsel %vm724_vm7, %v1758_v20, 0.0  ;;  %vm2033_vm12 = vcmask 105478  }
 0xa5a   : > { %1690 = vadd.xlane.f32.xlu1 %v1689_v55 }
 0xa5d   : > { %v4093_v63 = vpop.eup %4092 }
 0xa5e   : > { %1693 = vadd.xlane.f32.xlu1 %v1692_v62  ;;  %v1883_v0 = vsel %vm724_vm7, %v4093_v63, -inf  ;;  %v4095_v23 = vpop.eup %4094  ;;  %vm5747_vm7 = vcmask 15360  }
 0xa5f   : > { %v1880_v24 = vsel %vm503_vm3, %v4095_v23, -inf  ;;  %vm5748_vm11 = vmmov %vm5747_vm7 }
 0xa62   : > { %1725 = vadd.xlane.f32.xlu1 %v1724_v14 }
 0xa66   : > { %1760 = vadd.xlane.f32.xlu1 %v1759_v19 }
 0xa6a   : > { %1763 = vadd.xlane.f32.xlu1 %v1762_v22 }
 0xa6e   : > { %1884 = vmax.xlane.f32.xlu1 %v1883_v0 }
 0xa72   : > { %1881 = vmax.xlane.f32.xlu1 %v1880_v24 }
 0xade   : > { %v1729_v17 = vpop.xlane.xlu0 %1728 }
 0xadf   : > { %v1656_v11 = vpop.xlane.xlu1 %1655 }
 0xae3   : > { %v1659_v26 = vpop.xlane.xlu1 %1658 }
 0xae7   : > { %v1691_v28 = vpop.xlane.xlu1 %1690 }
 0xae8   : > { %v1768_v33 = vsel %vm5722_vm15, %v1656_v11, %v1691_v28 }
 0xaeb   : > { %v1694_v29 = vpop.xlane.xlu1 %1693 }
 0xaec   : > { %v1769_v57 = vsel %vm5722_vm15, %v1659_v26, %v1694_v29 }
 0xaed   : > { %v1771_v34 = vsel %vm5748_vm11, %v1769_v57, %v1729_v17  ;;  %vm2001_vm11 = vcmask 99328  }
 0xaef   : > { %v1726_v30 = vpop.xlane.xlu1 %1725 }
 0xaf0   : > { %v1770_v58 = vsel %vm5747_vm7, %v1768_v33, %v1726_v30  ;;  %vm4022_vm7 = vmpackc.low %vm616_vm10, %vm5755_vm4  ;;  %vm2076_vm4 = vcmask 31752  }
 0xaf3   : > { %v1761_v31 = vpop.xlane.xlu1 %1760 }
 0xaf4   : > { %v1772_v59 = vsel %vm5749_vm14, %v1770_v58, %v1761_v31  ;;  %vm2009_vm14 = vcmask 101377  }
 0xaf7   : > { %v1764_v35 = vpop.xlane.xlu1 %1763 }
 0xaf8   : > { %v1773_v36 = vsel %vm5750_vm5, %v1771_v34, %v1764_v35  ;;  %vm2017_vm5 = vcmask 102403  }
 0xaf9   : > { %v4071_v38 = vpack.i.bf16 %v1773_v36, %v1772_v59 }
 0xafb   : > { %4072 = vrot.lane.b32.xlu1 %v4071_v38, %s4195_s7  ;;  %v1885_v39 = vpop.xlane.xlu1 %1884  ;;  %s4852_s7 = sld [smem:[#allocation4 + $0x182]] }
 0xaff   : > { %v1882_v7 = vpop.xlane.xlu1 %1881 }
 0xb6d   : > { %v4073_v40 = vpop.permute.xlu1 %4072 }
 0xb6e   : > { %v4075_v42 = vunpack.i.h.bf16 %v4073_v40  ;;  %v4074_v43 = vunpack.i.l.bf16 %v4073_v40 }
 0xb70   : > { %v1897_v47 = vsel %vm5753_vm13, %v1895_v21, %v4075_v42  ;;  %v1896_v48 = vsel %vm5754_vm2, %v1894_v45, %v4074_v43  ;;  %vm5718_vm13 = vcmask 1044480   ;;  %vm5756_vm2 = vcmask 1043456  }
 0xb71   : > { %v1899_v49 = vsel %vm5711_vm8, %v1896_v48, %v1882_v7  ;;  %v1900_v15 = vsel %vm5711_vm8, %v1897_v47, %v1885_v39 }
 0xb72   : > { %v4021_v50 = vpack.c.bf16 %v1900_v15, %v1899_v49 }
 0xb74   : > { %4023 = vmatprep.subr.msk.bf16.mxu1 %vm4022_vm7, %v4021_v50 }
 0xb75   : > { %4026 = vmatpush3.bf16.msk.msra.mxu1 %vm4022_vm7, %v4021_v50  ;;  %vm5757_vm7 = vcmask 1046528  }
 0xb76   : > { %3968 = vmatprep.subr.mxu1 %v4188_v6 }
 0xb78   : > { %3966 = vmatmul.mubr.msk.f32.vlgmr.msra.gmra.mrb[8].mxu1 %vm503_vm3, %v1902_v10  ;;  %vm2035_vm3 = vcmask 98304  }
 0xc4b   : > { %v3967_v51 = vpop.f32.mrb[8].mxu1 }
 0xc4c   : > { %v1986_v41 = vadd.f32 %v3967_v51, %v1904_v37  ;;  %v1980_v4 = vpop.f32.mrb[9].mxu1 }
 0xc4d   : > { %v1981_v3 = vadd.f32 %v1980_v4, %v1904_v37 }
 0xc4e   : > { %v3740_v13 = vmul.f32 -1.442695, %v1986_v41 }
 0xc4f   : > { %v3739_v52 = vmul.f32 -1.442695, %v1981_v3 }
 0xc50   : > { %4096 = vpow2.f32 %v3740_v13 }
 0xc51   : > { %4098 = vpow2.f32 %v3739_v52 }
 0xc5a   : > { %v4097_v53 = vpop.eup %4096 }
 0xc5b   : > { %v4099_v60 = vpop.eup %4098  ;;  %v1996_v27 = vadd.f32 1.0, %v4097_v53 }
 0xc5c   : > { %v1995_v54 = vadd.f32 1.0, %v4099_v60 }
 0xc5d   : > { %4100 = vrcp.f32 %v1996_v27 }
 0xc5e   : > { %4102 = vrcp.f32 %v1995_v54 }
 0xc67   : > { %v4101_v2 = vpop.eup %4100 }
 0xc68   : > { %v4103_v55 = vpop.eup %4102  ;;  %v2036_v56 = vsel %vm2035_vm3, %v4101_v2, -inf  ;;  %v2044_v16 = vsel %vm2001_vm11, %v4101_v2, -inf  ;;  %v2051_v25 = vsel %vm2009_vm14, %v4101_v2, -inf  ;;  %v2058_v61 = vsel %vm2017_vm5, %v4101_v2, -inf }
 0xc69   : > { %v2002_v62 = vsel %vm2001_vm11, %v4103_v55, -inf  ;;  %v2010_v1 = vsel %vm2009_vm14, %v4103_v55, -inf  ;;  %v2018_v5 = vsel %vm2017_vm5, %v4103_v55, -inf  ;;  %v2026_v8 = vsel %vm2025_vm9, %v4103_v55, -inf }
 0xc6a   : > { %v2003_v9 = vrot.slane %v2002_v62, 4  ;;  %v2011_v14 = vrot.slane %v2010_v1, 4  ;;  %v2019_v12 = vrot.slane %v2018_v5, 4  ;;  %v2027_v18 = vrot.slane %v2026_v8, 4 }
 0xc6b   : > { %v2034_v19 = vsel %vm2033_vm12, %v4103_v55, -inf  ;;  %v2045_v20 = vrot.slane %v2044_v16, 4  ;;  %v2052_v22 = vrot.slane %v2051_v25, 4  ;;  %v2059_v63 = vrot.slane %v2058_v61, 4 }
 0xc6c   : > { %v2004_v0 = vmax.f32 %v2002_v62, %v2003_v9  ;;  %v2012_v23 = vmax.f32 %v2010_v1, %v2011_v14  ;;  %v2020_v24 = vmax.f32 %v2018_v5, %v2019_v12  ;;  %v2028_v11 = vmax.f32 %v2026_v8, %v2027_v18 }
 0xc6d   : > { %v2037_v26 = vmax.f32 %v2034_v19, %v2036_v56  ;;  %v2046_v28 = vmax.f32 %v2044_v16, %v2045_v20  ;;  %v2053_v29 = vmax.f32 %v2051_v25, %v2052_v22  ;;  %v2060_v30 = vmax.f32 %v2058_v61, %v2059_v63 }
 0xc6e   : > { %v2005_v31 = vrot.slane %v2004_v0, 2  ;;  %v2013_v57 = vrot.slane %v2012_v23, 2  ;;  %v2021_v32 = vrot.slane %v2020_v24, 2  ;;  %v2029_v17 = vrot.slane %v2028_v11, 2 }
 0xc6f   : > { %v2038_v33 = vrot.slane %v2037_v26, 4  ;;  %v2047_v58 = vrot.slane %v2046_v28, 2  ;;  %v2054_v34 = vrot.slane %v2053_v29, 2  ;;  %v2061_v35 = vrot.slane %v2060_v30, 2 }
 0xc70   : > { %v2006_v59 = vmax.f32 %v2004_v0, %v2005_v31  ;;  %v2014_v36 = vmax.f32 %v2012_v23, %v2013_v57  ;;  %v2022_v38 = vmax.f32 %v2020_v24, %v2021_v32  ;;  %v2030_v39 = vmax.f32 %v2028_v11, %v2029_v17 }
 0xc71   : > { %v2039_v7 = vmax.f32 %v2037_v26, %v2038_v33  ;;  %v2048_v40 = vmax.f32 %v2046_v28, %v2047_v58  ;;  %v2055_v21 = vmax.f32 %v2053_v29, %v2054_v34  ;;  %v2062_v15 = vmax.f32 %v2060_v30, %v2061_v35 }
 0xc72   : > { %v2007_v42 = vrot.slane %v2006_v59, 1  ;;  %v2015_v43 = vrot.slane %v2014_v36, 1  ;;  %v2023_v44 = vrot.slane %v2022_v38, 1  ;;  %v2031_v45 = vrot.slane %v2030_v39, 1 }
 0xc73   : > { %v2040_v46 = vrot.slane %v2039_v7, 2  ;;  %v2049_v37 = vrot.slane %v2048_v40, 1  ;;  %v2056_v4 = vrot.slane %v2055_v21, 1  ;;  %v2063_v13 = vrot.slane %v2062_v15, 1 }
 0xc74   : > { %v2008_v47 = vmax.f32 %v2006_v59, %v2007_v42  ;;  %v2016_v48 = vmax.f32 %v2014_v36, %v2015_v43  ;;  %v2024_v49 = vmax.f32 %v2022_v38, %v2023_v44  ;;  %v2032_v10 = vmax.f32 %v2030_v39, %v2031_v45 }
 0xc75   : > { %v2041_v50 = vmax.f32 %v2039_v7, %v2040_v46  ;;  %v2050_v60 = vmax.f32 %v2048_v40, %v2049_v37  ;;  %v2057_v27 = vmax.f32 %v2055_v21, %v2056_v4  ;;  %v2064_v2 = vmax.f32 %v2062_v15, %v2063_v13 }
 0xc76   : > { %v2065_v51 = vsel %vm5715_vm1, %v2008_v47, %v2016_v48  ;;  %vm5758_vm11 = vcmask 15360   ;;  %vm2080_vm14 = vcmask 39960   ;;  %vm2084_vm5 = vcmask 56352  }
 0xc77   : > { %v2042_v41 = vrot.slane %v2041_v50, 1  ;;  %v2066_v3 = vsel %vm5716_vm6, %v2065_v51, %v2024_v49  ;;  %vm2088_vm3 = vcmask 72752   ;;  %vm2092_vm9 = vcmask 80960  }
 0xc78   : > { %v2067_v52 = vsel %vm616_vm10, %v2066_v3, %v2032_v10  ;;  %vm2096_vm12 = vcmask 97352   ;;  %v2182_v58 = vstv %s3745_s30  ;;  %v2130_v34 = vstv %s3741_s13  ;;  %s3762_s30 = sld [smem:[#allocation4 + $0x203]] }
 0xc79   : > { %v2043_v53 = vmax.f32 %v2041_v50, %v2042_v41  ;;  %v2236_v40 = vstv %s3750_s15  ;;  %v2290_v44 = vstv %s4824_s16  ;;  %v2209_v45 = vstv %s4829_s20  ;;  %s3767_s13 = sld [smem:[#allocation4 + $0x283]]  ;;  %s5002_s15 = sld [smem:[#allocation4 + $0x80]] }
 0xc7a   : > { %v2344_v46 = vstv %s4831_s21  ;;  %v2263_v21 = vstv %s4835_s22  ;;  %v2196_v47 = vstv %s4844_s24  ;;  %v2317_v48 = vstv %s4837_s23  ;;  %s5004_s16 = sld [smem:[#allocation4]]  ;;  %s5037_s24 = sld [smem:[#allocation6 + $0x1]] }
 0xc7b   : > { %v2068_v54 = vsel %vm5756_vm2, %v2067_v52, %v2043_v53  ;;  %vm2100_vm2 = vcmask 105560   ;;  %v2250_v49 = vstv %s4850_s27  ;;  %v2398_v15 = vstv %s4842_s14  ;;  %s5008_s20 = sld [smem:[#allocation4 + $0x100]]  ;;  %s5048_s27 = sld [smem:[#allocation6 + $0x3]] }
 0xc7c   : > { %v2070_v55 = vsel %vm5718_vm13, %v2068_v54, %v2050_v60  ;;  %v2157_v50 = vstv %s4848_s26  ;;  %v2304_v10 = vstv %s4852_s7  ;;  %v2144_v37 = vstv %s4854_s11  ;;  %s5012_s21 = sld [smem:[#allocation4 + $0x180]]  ;;  %s5040_s26 = sld [smem:[#allocation6 + $0x2]] }
 0xc7d   : > { %v2071_v56 = vsel %vm519_vm0, %v2070_v55, %v2057_v27  ;;  %v2358_v53 = vstv %s4858_s29  ;;  %v2412_v60 = vstv %s4860_s17  ;;  %s5017_s22 = sld [smem:[#allocation4 + $0x200]]  ;;  %s5055_s7 = sld [smem:[#allocation6 + $0x4]] }
 0xc7e   : > { %v2072_v16 = vsel %vm5757_vm7, %v2071_v56, %v2064_v2  ;;  %vm5759_vm7 = vmmov %vm5758_vm11  ;;  %s5024_s23 = sld [smem:[#allocation4 + $0x280]]  ;;  %s5061_s11 = sld [smem:[#allocation6 + $0x5]] }
 0xc7f   : > { %v2077_v25 = vsel %vm2076_vm4, %v2072_v16, -inf  ;;  %v2073_v61 = vsel %vm5758_vm11, %v2072_v16, -inf  ;;  %v2081_v62 = vsel %vm2080_vm14, %v2072_v16, -inf  ;;  %v2085_v1 = vsel %vm2084_vm5, %v2072_v16, -inf  ;;  %s5033_s14 = sld [smem:[#allocation6]]  ;;  %s3777_s29 = sld [smem:[#allocation4 + $0x381]] }
 0xc80   : > { %2078 = vmax.xlane.f32.xlu1 %v2077_v25  ;;  %2074 = vmax.xlane.f32.xlu0 %v2073_v61  ;;  %v2089_v5 = vsel %vm2088_vm3, %v2072_v16, -inf  ;;  %v2093_v8 = vsel %vm2092_vm9, %v2072_v16, -inf  ;;  %v2097_v9 = vsel %vm2096_vm12, %v2072_v16, -inf  ;;  %v2101_v14 = vsel %vm2100_vm2, %v2072_v16, -inf  ;;  %s3772_s17 = sld [smem:[#allocation4 + $0x301]] }
 0xc81   : > { %vm2108_vm11 = vcmask 39936   ;;  %vm5760_vm14 = vcmask 23552   ;;  %vm2110_vm5 = vcmask 48128   ;;  %vm5761_vm3 = vcmask 31744  }
 0xc82   : > { %vm5712_vm9 = vcmask 56320   ;;  %vm5762_vm2 = vmmov %vm5761_vm3 }
 0xc84   : > { %2082 = vmax.xlane.f32.xlu0 %v2081_v62 }
 0xc88   : > { %2086 = vmax.xlane.f32.xlu0 %v2085_v1 }
 0xc8c   : > { %2090 = vmax.xlane.f32.xlu0 %v2089_v5 }
 0xc90   : > { %2094 = vmax.xlane.f32.xlu0 %v2093_v8 }
 0xc94   : > { %2098 = vmax.xlane.f32.xlu0 %v2097_v9 }
 0xc98   : > { %2102 = vmax.xlane.f32.xlu0 %v2101_v14 }
 0xd0d   : > { %v2075_v12 = vpop.xlane.xlu0 %2074  ;;  %v2079_v22 = vpop.xlane.xlu1 %2078 }
 0xd0e   : > { %v2104_v0 = vsel %vm5722_vm15, %v2075_v12, %v2079_v22 }
 0xd11   : > { %v2083_v18 = vpop.xlane.xlu0 %2082 }
 0xd12   : > { %v2105_v23 = vsel %vm5759_vm7, %v2104_v0, %v2083_v18  ;;  %vm5763_vm7 = vcmask 1043456  }
 0xd15   : > { %v2087_v19 = vpop.xlane.xlu0 %2086 }
 0xd16   : > { %v2106_v11 = vsel %vm5760_vm14, %v2105_v23, %v2087_v19  ;;  %vm5764_vm14 = vmmov %vm5763_vm7 }
 0xd19   : > { %v2091_v20 = vpop.xlane.xlu0 %2090 }
 0xd1a   : > { %v2107_v26 = vsel %vm5761_vm3, %v2106_v11, %v2091_v20  ;;  %vm5765_vm3 = vcmask 1046528  }
 0xd1d   : > { %v2095_v63 = vpop.xlane.xlu0 %2094 }
 0xd1e   : > { %v2109_v28 = vsel %vm2108_vm11, %v2107_v26, %v2095_v63 }
 0xd21   : > { %v2099_v24 = vpop.xlane.xlu0 %2098 }
 0xd22   : > { %v2111_v29 = vsel %vm2110_vm5, %v2109_v28, %v2099_v24 }
 0xd25   : > { %v2103_v30 = vpop.xlane.xlu0 %2102 }
 0xd26   : > { %v2113_v31 = vsel %vm5712_vm9, %v2111_v29, %v2103_v30  ;;  %vm5713_vm9 = vcmask 120837  }
 0xd27   : > { %2115 = vrot.lane.b32.xlu0 %v2113_v31, %s4190_s18 }
 0xd99   : > { %v2116_v57 = vpop.permute.xlu0 %2115 }
 0xd9a   : > { %v2118_v32 = vsel %vm5762_vm2, 0.0, %v2116_v57  ;;  %vm5766_vm2 = vmmov %vm5765_vm3 }
 0xd9b   : > { %v2119_v17 = vsel %vm5711_vm8, %v2118_v32, 0.0  ;;  %vm5714_vm8 = vcmask 121863  }
 0xd9c   : > { %v2121_v33 = vrot.slane %v2119_v17, 4 }
 0xd9e   : > { %v4827_v35 = vsel %vm5763_vm7, 0.0, %v2121_v33  ;;  %v4840_v38 = vsel %vm5764_vm14, %v2121_v33, 0.0  ;;  %vm5767_vm7 = vmmov %vm5766_vm2 }
 0xd9f   : > { %v2183_v59 = vmul.f32 %v2182_v58, %v4827_v35  ;;  %v2131_v36 = vmul.f32 %v2130_v34, %v4827_v35  ;;  %v2132_v39 = vmul.f32 %v2130_v34, %v4840_v38  ;;  %v2184_v7 = vmul.f32 %v2182_v58, %v4840_v38  ;;  %vm5768_vm14 = vmmov %vm5766_vm2 }
 0xda0   : > { %v2237_v42 = vmul.f32 %v2236_v40, %v4827_v35  ;;  %v2238_v43 = vmul.f32 %v2236_v40, %v4840_v38  ;;  %v2291_v51 = vmul.f32 %v2290_v44, %v4827_v35  ;;  %v2292_v41 = vmul.f32 %v2290_v44, %v4840_v38 }
 0xda1   : > { %2187 = vrot.lane.b32.xlu0 %v2183_v59, %s4191_s19  ;;  %2135 = vrot.lane.b32.xlu1 %v2131_v36, %s4191_s19  ;;  %v4884_v4 = vmul.f32 %v2209_v45, %v4840_v38  ;;  %v2197_v3 = vmul.f32 %v2196_v47, %v4827_v35  ;;  %v4888_v13 = vmul.f32 %v2196_v47, %v4840_v38 }
 0xda2   : > { %v2251_v52 = vmul.f32 %v2250_v49, %v4827_v35  ;;  %v2345_v27 = vmul.f32 %v2344_v46, %v4827_v35  ;;  %v2265_v54 = vmul.f32 %v2263_v21, %v4840_v38  ;;  %v4900_v55 = vmul.f32 %v2250_v49, %v4840_v38 }
 0xda3   : > { %v2201_v2 = vrot.slane %v2197_v3, 1  ;;  %v2202_v56 = vrot.slane %v4888_v13, 1  ;;  %v2305_v25 = vmul.f32 %v2304_v10, %v4827_v35  ;;  %v4905_v61 = vmul.f32 %v2304_v10, %v4840_v38 }
 0xda4   : > { %v2255_v16 = vrot.slane %v2251_v52, 1  ;;  %v2215_v62 = vrot.slane %v4884_v4, 1  ;;  %v2256_v1 = vrot.slane %v4900_v55, 1  ;;  %v4910_v5 = vmul.f32 %v2144_v37, %v4840_v38 }
 0xda5   : > { %2137 = vrot.lane.b32.xlu0 %v2132_v39, %s4191_s19  ;;  %2189 = vrot.lane.b32.xlu1 %v2184_v7, %s4191_s19  ;;  %v2145_v8 = vmul.f32 %v2144_v37, %v4827_v35  ;;  %v2346_v9 = vmul.f32 %v2344_v46, %v4840_v38  ;;  %v2309_v14 = vrot.slane %v2305_v25, 1  ;;  %v2310_v12 = vrot.slane %v4905_v61, 1 }
 0xda6   : > { %v4918_v18 = vsel %vm5765_vm3, %v2201_v2, %v2202_v56  ;;  %v2319_v19 = vmul.f32 %v2317_v48, %v4840_v38  ;;  %v2150_v20 = vrot.slane %v4910_v5, 1  ;;  %v4929_v63 = vsel %vm5766_vm2, %v2255_v16, %v2256_v1  ;;  %vm5769_vm3 = vmmov %vm5766_vm2 }
 0xda7   : > { %v2149_v22 = vrot.slane %v2145_v8, 1  ;;  %v4934_v0 = vsel %vm5767_vm7, %v2309_v14, %v2310_v12  ;;  %v2359_v23 = vmul.f32 %v2358_v53, %v4827_v35  ;;  %v4938_v24 = vmul.f32 %v2358_v53, %v4840_v38  ;;  %vm5770_vm7 = vmmov %vm5766_vm2 }
 0xda8   : > { %v2413_v11 = vmul.f32 %v2412_v60, %v4827_v35  ;;  %v2269_v26 = vrot.slane %v2265_v54, 1  ;;  %v2158_v28 = vmul.f32 %v2157_v50, %v4827_v35  ;;  %v4948_v30 = vmul.f32 %v2412_v60, %v4840_v38 }
 0xda9   : > { %2241 = vrot.lane.b32.xlu0 %v2237_v42, %s4191_s19  ;;  %2243 = vrot.lane.b32.xlu1 %v2238_v43, %s4191_s19  ;;  %v4945_v29 = vsel %vm5768_vm14, %v2149_v22, %v2150_v20  ;;  %v2159_v31 = vmul.f32 %v2157_v50, %v4840_v38  ;;  %v2363_v57 = vrot.slane %v2359_v23, 1  ;;  %v2364_v32 = vrot.slane %v4938_v24, 1  ;;  %vm5771_vm14 = vmmov %vm5766_vm2 }
 0xdaa   : > { %v2417_v17 = vrot.slane %v2413_v11, 1  ;;  %v2418_v33 = vrot.slane %v4948_v30, 1  ;;  %v2323_v34 = vrot.slane %v2319_v19, 1  ;;  %v2399_v59 = vmul.f32 %v2398_v15, %v4827_v35 }
 0xdab   : > { %v4958_v58 = vsel %vm5769_vm3, %v2363_v57, %v2364_v32  ;;  %v2210_v39 = vmul.f32 %v2209_v45, %v4827_v35  ;;  %v2264_v7 = vmul.f32 %v2263_v21, %v4827_v35  ;;  %v2162_v40 = vrot.slane %v2158_v28, 1  ;;  %vm5772_vm3 = vmmov %vm5766_vm2 }
 0xdac   : > { %v4966_v36 = vsel %vm5766_vm2, %v2417_v17, %v2418_v33  ;;  %v2163_v42 = vrot.slane %v2159_v31, 1  ;;  %v2318_v43 = vmul.f32 %v2317_v48, %v4827_v35  ;;  %v2371_v45 = vstv %s3762_s30  ;;  %s3782_s30 = sld [smem:[#allocation4 + $0x401]] }
 0xdad   : > { %2295 = vrot.lane.b32.xlu0 %v2291_v51, %s4191_s19  ;;  %2297 = vrot.lane.b32.xlu1 %v2292_v41, %s4191_s19  ;;  %v2268_v46 = vrot.slane %v2264_v7, 1  ;;  %v2214_v47 = vrot.slane %v2210_v39, 1  ;;  %v2372_v10 = vmul.f32 %v2371_v45, %v4827_v35  ;;  %v2373_v37 = vmul.f32 %v2371_v45, %v4840_v38 }
 0xdae   : > { %v2164_v44 = vsel %vm5770_vm7, %v2162_v40, %v2163_v42  ;;  %v2322_v21 = vrot.slane %v2318_v43, 1  ;;  %v2425_v48 = vstv %s3767_s13  ;;  %v2400_v41 = vmul.f32 %v2398_v15, %v4840_v38  ;;  %vm5773_vm7 = vmmov %vm5766_vm2  ;;  %s5105_s13 = sld [smem:[#allocation4 + $0x481]] }
 0xdaf   : > { %v2270_v49 = vsel %vm5771_vm14, %v2268_v46, %v2269_v26  ;;  %v2216_v50 = vsel %vm5772_vm3, %v2214_v47, %v2215_v62  ;;  %v2376_v4 = vrot.slane %v2372_v10, 1  ;;  %v2377_v3 = vrot.slane %v2373_v37, 1  ;;  %vm5774_vm14 = vmmov %vm5766_vm2 }
 0xdb0   : > { %v2324_v51 = vsel %vm5766_vm2, %v2322_v21, %v2323_v34  ;;  %v2426_v52 = vmul.f32 %v2425_v48, %v4827_v35  ;;  %v2427_v53 = vmul.f32 %v2425_v48, %v4840_v38  ;;  %v2178_v2 = vstv %s5002_s15  ;;  %s5110_s15 = sld [smem:[#allocation4 + $0x383]] }
 0xdb1   : > { %2219 = vrot.lane.b32.xlu0 %v2215_v62, %s4191_s19  ;;  %2349 = vrot.lane.b32.xlu1 %v2345_v27, %s4191_s19  ;;  %v2378_v60 = vsel %vm5773_vm7, %v2376_v4, %v2377_v3  ;;  %v2126_v16 = vstv %s5004_s16  ;;  %v2179_v25 = vmul.f32 %v2178_v2, %v4827_v35  ;;  %v2232_v28 = vstv %s5008_s20  ;;  %s5112_s16 = sld [smem:[#allocation4 + $0x501]]  ;;  %s5116_s20 = sld [smem:[#allocation4 + $0x403]] }
 0xdb2   : > { %v2430_v27 = vrot.slane %v2426_v52, 1  ;;  %v2431_v54 = vrot.slane %v2427_v53, 1  ;;  %v2127_v62 = vmul.f32 %v2126_v16, %v4827_v35  ;;  %v2233_v31 = vmul.f32 %v2232_v28, %v4827_v35 }
 0xdb3   : > { %v2128_v10 = vmul.f32 %v2126_v16, %v4840_v38  ;;  %v2180_v48 = vmul.f32 %v2178_v2, %v4840_v38  ;;  %v2174_v16 = vstv %s5033_s14  ;;  %v2226_v5 = vstv %s5037_s24  ;;  %s5129_s14 = sld [smem:[#allocation4 + $0x303]]  ;;  %s5131_s24 = sld [smem:[#allocation4 + $0x402]] }
 0xdb4   : > { %v2432_v15 = vsel %vm5774_vm14, %v2430_v27, %v2431_v54  ;;  %vm2459_vm3 = vcmask 115712   ;;  %vm2467_vm2 = vcmask 117761   ;;  %vm2475_vm7 = vcmask 119811  }
 0xdb5   : > { %2273 = vrot.lane.b32.xlu0 %v2269_v26, %s4191_s19  ;;  %2351 = vrot.lane.b32.xlu1 %v2346_v9, %s4191_s19  ;;  %vm5717_vm14 = vcmask 121861  }
 0xdb9   : > { %2327 = vrot.lane.b32.xlu0 %v2323_v34, %s4191_s19  ;;  %2403 = vrot.lane.b32.xlu1 %v2399_v59, %s4191_s19  ;;  %v2286_v34 = vstv %s5012_s21  ;;  %s5118_s21 = sld [smem:[#allocation4 + $0x483]] }
 0xdba   : > { %v2287_v39 = vmul.f32 %v2286_v34, %v4827_v35  ;;  %v2288_v2 = vmul.f32 %v2286_v34, %v4840_v38 }
 0xdbd   : > { %2165 = vrot.lane.b32.xlu0 %v2164_v44, %s4191_s19  ;;  %2167 = vrot.lane.b32.xlu1 %v2163_v42, %s4191_s19  ;;  %v2340_v42 = vstv %s5017_s22  ;;  %s5123_s22 = sld [smem:[#allocation4 + $0x581]] }
 0xdbe   : > { %v2341_v43 = vmul.f32 %v2340_v42, %v4827_v35 }
 0xdc1   : > { %2271 = vrot.lane.b32.xlu0 %v2270_v49, %s4191_s19  ;;  %2217 = vrot.lane.b32.xlu1 %v2216_v50, %s4191_s19 }
 0xdc5   : > { %2325 = vrot.lane.b32.xlu0 %v2324_v51, %s4191_s19  ;;  %2405 = vrot.lane.b32.xlu1 %v2400_v41, %s4191_s19 }
 0xdc9   : > { %2379 = vrot.lane.b32.xlu0 %v2378_v60, %s4191_s19  ;;  %2381 = vrot.lane.b32.xlu1 %v2377_v3, %s4191_s19  ;;  %v2234_v3 = vmul.f32 %v2232_v28, %v4840_v38 }
 0xdcd   : > { %2433 = vrot.lane.b32.xlu0 %v2432_v15, %s4191_s19  ;;  %2435 = vrot.lane.b32.xlu1 %v2431_v54, %s4191_s19 }
 0xe13   : > { %v2188_v8 = vpop.permute.xlu0 %2187  ;;  %v2136_v9 = vpop.permute.xlu1 %2135 }
 0xe14   : > { %v2193_v14 = vadd.f32 %v2188_v8, %v2179_v25  ;;  %v2141_v19 = vadd.f32 %v2136_v9, %v2127_v62 }
 0xe16   : > { %v2154_v22 = vadd.f32 %v4945_v29, %v2141_v19  ;;  %v2206_v23 = vadd.f32 %v4918_v18, %v2193_v14 }
 0xe17   : > { %v2138_v11 = vpop.permute.xlu0 %2137  ;;  %v2190_v26 = vpop.permute.xlu1 %2189 }
 0xe18   : > { %v2142_v37 = vadd.f32 %v2138_v11, %v2128_v10  ;;  %v2194_v4 = vadd.f32 %v2190_v26, %v2180_v48 }
 0xe1a   : > { %v2155_v52 = vadd.f32 %v2150_v20, %v2142_v37  ;;  %v2207_v54 = vadd.f32 %v2202_v56, %v2194_v4 }
 0xe1b   : > { %v2242_v57 = vpop.permute.xlu0 %2241  ;;  %v2244_v17 = vpop.permute.xlu1 %2243 }
 0xe1c   : > { %v2247_v59 = vadd.f32 %v2242_v57, %v2233_v31  ;;  %v2248_v60 = vadd.f32 %v2244_v17, %v2234_v3  ;;  %v2280_v31 = vstv %s5040_s26  ;;  %s5133_s26 = sld [smem:[#allocation4 + $0x482]] }
 0xe1e   : > { %v2260_v7 = vadd.f32 %v4929_v63, %v2247_v59  ;;  %v2394_v63 = vstv %s5024_s23  ;;  %v2261_v20 = vadd.f32 %v2256_v1, %v2248_v60  ;;  %s5125_s23 = sld [smem:[#allocation4 + $0x382]] }
 0xe1f   : > { %v2296_v40 = vpop.permute.xlu0 %2295  ;;  %v2298_v29 = vpop.permute.xlu1 %2297  ;;  %v2395_v51 = vmul.f32 %v2394_v63, %v4827_v35  ;;  %v2396_v17 = vmul.f32 %v2394_v63, %v4840_v38 }
 0xe20   : > { %v2301_v18 = vadd.f32 %v2296_v40, %v2287_v39  ;;  %v2302_v8 = vadd.f32 %v2298_v29, %v2288_v2  ;;  %v2334_v29 = vstv %s5048_s27  ;;  %s5135_s27 = sld [smem:[#allocation4 + $0x302]] }
 0xe22   : > { %v2314_v44 = vadd.f32 %v4934_v0, %v2301_v18  ;;  %v2315_v55 = vadd.f32 %v2310_v12, %v2302_v8 }
 0xe23   : > { %v2220_v46 = vpop.permute.xlu0 %2219  ;;  %v2350_v47 = vpop.permute.xlu1 %2349 }
 0xe24   : > { %v2355_v45 = vadd.f32 %v2350_v47, %v2341_v43  ;;  %v2224_v25 = vadd.f32 %v2220_v46, %v2207_v54  ;;  %v2388_v46 = vstv %s5055_s7  ;;  %s5139_s7 = sld [smem:[#allocation4 + $0x502]] }
 0xe26   : > { %v5029_v21 = vadd.f32 %v4958_v58, %v2355_v45  ;;  %v2228_v28 = vadd.f32 %v2226_v5, %v2224_v25 }
 0xe27   : > { %v2274_v49 = vpop.permute.xlu0 %2273  ;;  %v2352_v50 = vpop.permute.xlu1 %2351 }
 0xe28   : > { %v2278_v11 = vadd.f32 %v2274_v49, %v2261_v20 }
 0xe2a   : > { %v2282_v40 = vadd.f32 %v2280_v31, %v2278_v11 }
 0xe2b   : > { %v2328_v0 = vpop.permute.xlu0 %2327  ;;  %v2404_v41 = vpop.permute.xlu1 %2403 }
 0xe2c   : > { %v2409_v58 = vadd.f32 %v2404_v41, %v2395_v51  ;;  %v2332_v18 = vadd.f32 %v2328_v0, %v2315_v55 }
 0xe2e   : > { %v2422_v53 = vadd.f32 %v4966_v36, %v2409_v58  ;;  %v2342_v36 = vmul.f32 %v2340_v42, %v4840_v38  ;;  %v2336_v10 = vadd.f32 %v2334_v29, %v2332_v18 }
 0xe2f   : > { %v2166_v27 = vpop.permute.xlu0 %2165  ;;  %v2168_v35 = vpop.permute.xlu1 %2167 }
 0xe30   : > { %v2172_v15 = vadd.f32 %v2168_v35, %v2155_v52  ;;  %v2171_v62 = vadd.f32 %v2166_v27, %v2154_v22  ;;  %v2356_v26 = vadd.f32 %v2352_v50, %v2342_v36 }
 0xe32   : > { %v2176_v13 = vadd.f32 %v2174_v16, %v2172_v15  ;;  %v2175_v22 = vadd.f32 %v2174_v16, %v2171_v62  ;;  %v2369_v42 = vadd.f32 %v2364_v32, %v2356_v26  ;;  %v2442_v32 = vstv %s5061_s11  ;;  %s5141_s11 = sld [smem:[#allocation4 + $0x582]] }
 0xe33   : > { %v2272_v9 = vpop.permute.xlu0 %2271  ;;  %v2218_v14 = vpop.permute.xlu1 %2217 }
 0xe34   : > { %v2277_v56 = vadd.f32 %v2272_v9, %v2260_v7  ;;  %v2223_v19 = vadd.f32 %v2218_v14, %v2206_v23  ;;  %v2230_v59 = vmax.f32 %v2176_v13, %v2228_v28 }
 0xe36   : > { %v2227_v57 = vadd.f32 %v2226_v5, %v2223_v19  ;;  %v2281_v39 = vadd.f32 %v2280_v31, %v2277_v56  ;;  %v2284_v45 = vmax.f32 %v2230_v59, %v2282_v40 }
 0xe37   : > { %v2326_v1 = vpop.permute.xlu0 %2325  ;;  %v2406_v34 = vpop.permute.xlu1 %2405 }
 0xe38   : > { %v2229_v23 = vmax.f32 %v2175_v22, %v2227_v57  ;;  %v2331_v7 = vadd.f32 %v2326_v1, %v2314_v44  ;;  %v2410_v43 = vadd.f32 %v2406_v34, %v2396_v17  ;;  %v2338_v41 = vmax.f32 %v2284_v45, %v2336_v10 }
 0xe3a   : > { %v2283_v61 = vmax.f32 %v2229_v23, %v2281_v39  ;;  %v2335_v12 = vadd.f32 %v2334_v29, %v2331_v7  ;;  %v2423_v24 = vadd.f32 %v2418_v33, %v2410_v43 }
 0xe3b   : > { %v2380_v47 = vpop.permute.xlu0 %2379  ;;  %v2382_v38 = vpop.permute.xlu1 %2381 }
 0xe3c   : > { %v2337_v49 = vmax.f32 %v2283_v61, %v2335_v12  ;;  %v2385_v50 = vadd.f32 %v2380_v47, %v5029_v21  ;;  %v2386_v63 = vadd.f32 %v2382_v38, %v2369_v42 }
 0xe3e   : > { %v2389_v44 = vadd.f32 %v2388_v46, %v2385_v50  ;;  %v2390_v37 = vadd.f32 %v2388_v46, %v2386_v63 }
 0xe3f   : > { %v2434_v48 = vpop.permute.xlu0 %2433  ;;  %v2436_v51 = vpop.permute.xlu1 %2435 }
 0xe40   : > { %v2391_v0 = vmax.f32 %v2337_v49, %v2389_v44  ;;  %v2439_v4 = vadd.f32 %v2434_v48, %v2422_v53  ;;  %v2440_v58 = vadd.f32 %v2436_v51, %v2423_v24  ;;  %v2392_v3 = vmax.f32 %v2338_v41, %v2390_v37 }
 0xe42   : > { %v2443_v52 = vadd.f32 %v2442_v32, %v2439_v4  ;;  %v2444_v60 = vadd.f32 %v2442_v32, %v2440_v58 }
 0xe44   : > { %v2445_v27 = vmax.f32 %v2391_v0, %v2443_v52  ;;  %v2446_v35 = vmax.f32 %v2392_v3, %v2444_v60 }
 0xe46   : > { %v3769_v21 = vmul.f32 -1.442695, %v2445_v27  ;;  %v3770_v54 = vmul.f32 -1.442695, %v2446_v35 }
 0xe48   : > { %4104 = vpow2.f32 %v3769_v21 }
 0xe49   : > { %4106 = vpow2.f32 %v3770_v54 }
 0xe52   : > { %v4105_v15 = vpop.eup %4104 }
 0xe53   : > { %v4107_v2 = vpop.eup %4106  ;;  %v2453_v30 = vadd.f32 1.0, %v4105_v15 }
 0xe54   : > { %v2454_v33 = vadd.f32 1.0, %v4107_v2 }
 0xe55   : > { %4108 = vrcp.f32 %v2453_v30 }
 0xe56   : > { %4110 = vrcp.f32 %v2454_v33 }
 0xe5f   : > { %v4109_v53 = vpop.eup %4108 }
 0xe60   : > { %v4111_v16 = vpop.eup %4110  ;;  %v2460_v25 = vsel %vm2459_vm3, %v4109_v53, -inf  ;;  %v2468_v62 = vsel %vm2467_vm2, %v4109_v53, -inf  ;;  %v2476_v8 = vsel %vm2475_vm7, %v4109_v53, -inf  ;;  %v2484_v5 = vsel %vm5717_vm14, %v4109_v53, -inf }
 0xe61   : > { %v2461_v20 = vrot.slane %v2460_v25, 4  ;;  %v2469_v36 = vrot.slane %v2468_v62, 4  ;;  %v2477_v9 = vrot.slane %v2476_v8, 4  ;;  %v2485_v14 = vrot.slane %v2484_v5, 4 }
 0xe62   : > { %v2492_v13 = vsel %vm5714_vm8, %v4109_v53, -inf  ;;  %v2493_v56 = vsel %vm2459_vm3, %v4111_v16, -inf  ;;  %v2501_v19 = vsel %vm2467_vm2, %v4111_v16, -inf  ;;  %v2508_v11 = vsel %vm2475_vm7, %v4111_v16, -inf }
 0xe63   : > { %v2462_v26 = vmax.f32 %v2460_v25, %v2461_v20  ;;  %v2470_v28 = vmax.f32 %v2468_v62, %v2469_v36  ;;  %v2478_v31 = vmax.f32 %v2476_v8, %v2477_v9  ;;  %v2486_v22 = vmax.f32 %v2484_v5, %v2485_v14 }
 0xe64   : > { %v2494_v57 = vmax.f32 %v2492_v13, %v2493_v56  ;;  %v2502_v55 = vrot.slane %v2501_v19, 4  ;;  %v2509_v1 = vrot.slane %v2508_v11, 4  ;;  %v2516_v17 = vsel %vm5713_vm9, %v4111_v16, -inf }
 0xe65   : > { %v2463_v34 = vrot.slane %v2462_v26, 2  ;;  %v2471_v59 = vrot.slane %v2470_v28, 2  ;;  %v2479_v39 = vrot.slane %v2478_v31, 2  ;;  %v2487_v23 = vrot.slane %v2486_v22, 2 }
 0xe66   : > { %v2495_v7 = vrot.slane %v2494_v57, 4  ;;  %v2503_v40 = vmax.f32 %v2501_v19, %v2502_v55  ;;  %v2510_v29 = vmax.f32 %v2508_v11, %v2509_v1  ;;  %v2517_v42 = vrot.slane %v2516_v17, 4 }
 0xe67   : > { %v2464_v18 = vmax.f32 %v2462_v26, %v2463_v34  ;;  %v2472_v61 = vmax.f32 %v2470_v28, %v2471_v59  ;;  %v2480_v12 = vmax.f32 %v2478_v31, %v2479_v39  ;;  %v2488_v43 = vmax.f32 %v2486_v22, %v2487_v23 }
 0xe68   : > { %v2496_v46 = vmax.f32 %v2494_v57, %v2495_v7  ;;  %v2504_v47 = vrot.slane %v2503_v40, 2  ;;  %v2511_v38 = vrot.slane %v2510_v29, 2  ;;  %v2518_v45 = vmax.f32 %v2516_v17, %v2517_v42 }
 0xe69   : > { %v2465_v49 = vrot.slane %v2464_v18, 1  ;;  %v2473_v50 = vrot.slane %v2472_v61, 1  ;;  %v2481_v63 = vrot.slane %v2480_v12, 1  ;;  %v2489_v10 = vrot.slane %v2488_v43, 1 }
 0xe6a   : > { %v2497_v44 = vrot.slane %v2496_v46, 2  ;;  %v2505_v37 = vmax.f32 %v2503_v40, %v2504_v47  ;;  %v2512_v24 = vmax.f32 %v2510_v29, %v2511_v38  ;;  %v2519_v32 = vrot.slane %v2518_v45, 2 }
 0xe6b   : > { %v2466_v48 = vmax.f32 %v2464_v18, %v2465_v49  ;;  %v2474_v51 = vmax.f32 %v2472_v61, %v2473_v50  ;;  %v2482_v0 = vmax.f32 %v2480_v12, %v2481_v63  ;;  %v2490_v52 = vmax.f32 %v2488_v43, %v2489_v10 }
 0xe6c   : > { %v2498_v41 = vmax.f32 %v2496_v46, %v2497_v44  ;;  %v2520_v4 = vmax.f32 %v2518_v45, %v2519_v32  ;;  %v2506_v58 = vrot.slane %v2505_v37, 1  ;;  %v2513_v27 = vrot.slane %v2512_v24, 1 }
 0xe6d   : > { %v2523_v3 = vsel %vm5715_vm1, %v2466_v48, %v2474_v51  ;;  %vm5775_vm9 = vcmask 1043456   ;;  %vm5776_vm8 = vcmask 1046528   ;;  %vm5777_vm1 = vcmask 15360  }
 0xe6e   : > { %v2499_v60 = vrot.slane %v2498_v41, 1  ;;  %v2521_v35 = vrot.slane %v2520_v4, 1  ;;  %v2524_v21 = vsel %vm5716_vm6, %v2523_v3, %v2482_v0  ;;  %v2507_v2 = vmax.f32 %v2505_v37, %v2506_v58 }
 0xe6f   : > { %v2525_v15 = vsel %vm616_vm10, %v2524_v21, %v2490_v52  ;;  %v2514_v30 = vmax.f32 %v2512_v24, %v2513_v27  ;;  %vm5720_vm6 = vcmask 80952   ;;  %vm2536_vm14 = vcmask 48152  }
 0xe70   : > { %v2500_v54 = vmax.f32 %v2498_v41, %v2499_v60  ;;  %v2522_v53 = vmax.f32 %v2520_v4, %v2521_v35  ;;  %v2634_v61 = vstv %s3777_s29  ;;  %v2582_v12 = vstv %s3772_s17  ;;  %s5223_s29 = sld [smem:[#allocation4 + $0x503]] }
 0xe71   : > { %v2688_v50 = vstv %s3782_s30  ;;  %v2742_v44 = vstv %s5105_s13  ;;  %v2661_v37 = vstv %s5110_s15  ;;  %v2796_v24 = vstv %s5112_s16  ;;  %s3799_s17 = sld [smem:[#allocation4 + $0x583]]  ;;  %s5286_s30 = sld [smem:[#allocation4 + $0x380]] }
 0xe72   : > { %v2526_v33 = vsel %vm5775_vm9, %v2525_v15, %v2500_v54  ;;  %vm5719_vm9 = vcmask 113752   ;;  %v2715_v32 = vstv %s5116_s20  ;;  %v2648_v48 = vstv %s5125_s23  ;;  %s5288_s13 = sld [smem:[#allocation4 + $0x300]]  ;;  %s5321_s23 = sld [smem:[#allocation6 + $0x7]] }
 0xe73   : > { %v2527_v16 = vsel %vm5718_vm13, %v2526_v33, %v2507_v2  ;;  %vm5723_vm13 = vcmask 64552   ;;  %v2769_v51 = vstv %s5118_s21  ;;  %v2702_v0 = vstv %s5131_s24  ;;  %s5292_s15 = sld [smem:[#allocation4 + $0x400]]  ;;  %s5332_s24 = sld [smem:[#allocation6 + $0x9]] }
 0xe74   : > { %v2528_v25 = vsel %vm519_vm0, %v2527_v16, %v2514_v30  ;;  %v2850_v41 = vstv %s5123_s22  ;;  %v2609_v4 = vstv %s5129_s14  ;;  %v2756_v58 = vstv %s5133_s26  ;;  %s5296_s16 = sld [smem:[#allocation4 + $0x480]]  ;;  %s5317_s22 = sld [smem:[#allocation6 + $0x6]] }
 0xe75   : > { %v2529_v62 = vsel %vm5776_vm8, %v2528_v25, %v2522_v53  ;;  %vm5778_vm8 = vcmask 15360   ;;  %v2596_v3 = vstv %s5135_s27  ;;  %v2810_v15 = vstv %s5139_s7  ;;  %s5301_s20 = sld [smem:[#allocation4 + $0x500]]  ;;  %s5339_s26 = sld [smem:[#allocation6 + $0xa]] }
 0xe76   : > { %v2533_v8 = vsel %vm2076_vm4, %v2529_v62, -inf  ;;  %v2530_v5 = vsel %vm5777_vm1, %v2529_v62, -inf  ;;  %v2545_v20 = vsel %vm5720_vm6, %v2529_v62, -inf  ;;  %v2537_v36 = vsel %vm2536_vm14, %v2529_v62, -inf  ;;  %s5308_s21 = sld [smem:[#allocation4 + $0x580]]  ;;  %s5345_s27 = sld [smem:[#allocation6 + $0xb]] }
 0xe77   : > { %2534 = vmax.xlane.f32.xlu1 %v2533_v8  ;;  %2531 = vmax.xlane.f32.xlu0 %v2530_v5  ;;  %v2552_v9 = vsel %vm5719_vm9, %v2529_v62, -inf  ;;  %v2541_v14 = vsel %vm5723_vm13, %v2529_v62, -inf  ;;  %v2548_v13 = vsel %vm2096_vm12, %v2529_v62, -inf  ;;  %vm5721_vm1 = vcmask 121960   ;;  %s5324_s14 = sld [smem:[#allocation6 + $0x8]]  ;;  %s3804_s7 = sld [smem:[#allocation4 + $0x601]] }
 0xe78   : > { %v2556_v56 = vsel %vm5721_vm1, %v2529_v62, -inf  ;;  %vm5779_vm9 = vcmask 23552   ;;  %vm5780_vm6 = vcmask 31744   ;;  %vm5781_vm1 = vcmask 56320  }
 0xe79   : > { %v2864_v2 = vstv %s5141_s11  ;;  %s5387_s11 = sld [smem:[#allocation4 + $0x701]] }
 0xe7b   : > { %2546 = vmax.xlane.f32.xlu1 %v2545_v20  ;;  %2538 = vmax.xlane.f32.xlu0 %v2537_v36 }
 0xe7f   : > { %2553 = vmax.xlane.f32.xlu1 %v2552_v9  ;;  %2542 = vmax.xlane.f32.xlu0 %v2541_v14 }
 0xe83   : > { %2549 = vmax.xlane.f32.xlu0 %v2548_v13 }
 0xe87   : > { %2557 = vmax.xlane.f32.xlu0 %v2556_v56 }
 0xf04   : > { %v2532_v19 = vpop.xlane.xlu0 %2531  ;;  %v2535_v11 = vpop.xlane.xlu1 %2534 }
 0xf05   : > { %v2559_v28 = vsel %vm5722_vm15, %v2532_v19, %v2535_v11  ;;  %vm5783_vm15 = vcmask 97280  }
 0xf08   : > { %v2539_v26 = vpop.xlane.xlu0 %2538  ;;  %v2547_v57 = vpop.xlane.xlu1 %2546 }
 0xf09   : > { %v2560_v31 = vsel %vm5778_vm8, %v2559_v28, %v2539_v26  ;;  %vm5782_vm8 = vmmov %vm5780_vm6 }
 0xf0c   : > { %v2543_v22 = vpop.xlane.xlu0 %2542  ;;  %v2554_v59 = vpop.xlane.xlu1 %2553 }
 0xf0d   : > { %v2561_v55 = vsel %vm5779_vm9, %v2560_v31, %v2543_v22  ;;  %vm5786_vm9 = vcmask 1046528  }
 0xf0e   : > { %v2562_v1 = vsel %vm5780_vm6, %v2561_v55, %v2547_v57  ;;  %vm5784_vm6 = vcmask 1043456  }
 0xf10   : > { %v2550_v17 = vpop.xlane.xlu0 %2549 }
 0xf11   : > { %v2563_v34 = vsel %vm2108_vm11, %v2562_v1, %v2550_v17 }
 0xf12   : > { %v2564_v23 = vsel %vm2110_vm5, %v2563_v34, %v2554_v59 }
 0xf14   : > { %v2558_v39 = vpop.xlane.xlu0 %2557 }
 0xf15   : > { %v2565_v7 = vsel %vm5781_vm1, %v2564_v23, %v2558_v39  ;;  %vm5787_vm1 = vmmov %vm5786_vm9 }
 0xf16   : > { %2567 = vrot.lane.b32.xlu1 %v2565_v7, %s4190_s18 }
 0xf88   : > { %v2568_v40 = vpop.permute.xlu1 %2567 }
 0xf89   : > { %v2570_v29 = vsel %vm5782_vm8, 0.0, %v2568_v40  ;;  %vm5788_vm8 = vmmov %vm5787_vm1 }
 0xf8a   : > { %v2571_v42 = vsel %vm5783_vm15, %v2570_v29, 0.0  ;;  %vm5785_vm15 = vmmov %vm5784_vm6 }
 0xf8b   : > { %v2573_v18 = vrot.slane %v2571_v42, 4 }
 0xf8d   : > { %v5108_v43 = vsel %vm5784_vm6, 0.0, %v2573_v18  ;;  %v5121_v38 = vsel %vm5785_vm15, %v2573_v18, 0.0  ;;  %vm5789_vm6 = vmmov %vm5787_vm1 }
 0xf8e   : > { %v2635_v46 = vmul.f32 %v2634_v61, %v5108_v43  ;;  %v2583_v47 = vmul.f32 %v2582_v12, %v5108_v43  ;;  %v2636_v45 = vmul.f32 %v2634_v61, %v5121_v38  ;;  %v2584_v49 = vmul.f32 %v2582_v12, %v5121_v38  ;;  %vm5790_vm15 = vmmov %vm5787_vm1 }
 0xf8f   : > { %v2689_v63 = vmul.f32 %v2688_v50, %v5108_v43  ;;  %v2690_v10 = vmul.f32 %v2688_v50, %v5121_v38  ;;  %v2743_v52 = vmul.f32 %v2742_v44, %v5108_v43  ;;  %v2744_v60 = vmul.f32 %v2742_v44, %v5121_v38 }
 0xf90   : > { %2639 = vrot.lane.b32.xlu1 %v2635_v46, %s4191_s19  ;;  %2587 = vrot.lane.b32.xlu0 %v2583_v47, %s4191_s19  ;;  %v5165_v27 = vmul.f32 %v2661_v37, %v5121_v38  ;;  %v2649_v35 = vmul.f32 %v2648_v48, %v5108_v43  ;;  %v5169_v21 = vmul.f32 %v2648_v48, %v5121_v38 }
 0xf91   : > { %v2703_v54 = vmul.f32 %v2702_v0, %v5108_v43  ;;  %v2797_v30 = vmul.f32 %v2796_v24, %v5108_v43  ;;  %v2717_v33 = vmul.f32 %v2715_v32, %v5121_v38  ;;  %v5181_v16 = vmul.f32 %v2702_v0, %v5121_v38 }
 0xf92   : > { %v2653_v53 = vrot.slane %v2649_v35, 1  ;;  %v2654_v25 = vrot.slane %v5169_v21, 1  ;;  %v2757_v8 = vmul.f32 %v2756_v58, %v5108_v43  ;;  %v5186_v5 = vmul.f32 %v2756_v58, %v5121_v38 }
 0xf93   : > { %v2707_v62 = vrot.slane %v2703_v54, 1  ;;  %v2667_v20 = vrot.slane %v5165_v27, 1  ;;  %v2708_v36 = vrot.slane %v5181_v16, 1  ;;  %v5191_v9 = vmul.f32 %v2596_v3, %v5121_v38 }
 0xf94   : > { %2589 = vrot.lane.b32.xlu1 %v2584_v49, %s4191_s19  ;;  %2641 = vrot.lane.b32.xlu0 %v2636_v45, %s4191_s19  ;;  %v2597_v14 = vmul.f32 %v2596_v3, %v5108_v43  ;;  %v2798_v13 = vmul.f32 %v2796_v24, %v5121_v38  ;;  %v2761_v56 = vrot.slane %v2757_v8, 1  ;;  %v2762_v19 = vrot.slane %v5186_v5, 1 }
 0xf95   : > { %v5199_v11 = vsel %vm5786_vm9, %v2653_v53, %v2654_v25  ;;  %v2771_v26 = vmul.f32 %v2769_v51, %v5121_v38  ;;  %v2602_v28 = vrot.slane %v5191_v9, 1  ;;  %v5210_v22 = vsel %vm5787_vm1, %v2707_v62, %v2708_v36  ;;  %vm5791_vm9 = vmmov %vm5787_vm1 }
 0xf96   : > { %v2601_v31 = vrot.slane %v2597_v14, 1  ;;  %v5215_v57 = vsel %vm5788_vm8, %v2761_v56, %v2762_v19  ;;  %v2811_v55 = vmul.f32 %v2810_v15, %v5108_v43  ;;  %v5219_v1 = vmul.f32 %v2810_v15, %v5121_v38  ;;  %vm5792_vm8 = vmmov %vm5787_vm1 }
 0xf97   : > { %v2865_v17 = vmul.f32 %v2864_v2, %v5108_v43  ;;  %v2721_v34 = vrot.slane %v2717_v33, 1  ;;  %v2610_v59 = vmul.f32 %v2609_v4, %v5108_v43  ;;  %v5231_v23 = vmul.f32 %v2864_v2, %v5121_v38 }
 0xf98   : > { %2693 = vrot.lane.b32.xlu1 %v2689_v63, %s4191_s19  ;;  %2695 = vrot.lane.b32.xlu0 %v2690_v10, %s4191_s19  ;;  %v5228_v39 = vsel %vm5789_vm6, %v2601_v31, %v2602_v28  ;;  %v2611_v7 = vmul.f32 %v2609_v4, %v5121_v38  ;;  %v2815_v40 = vrot.slane %v2811_v55, 1  ;;  %v2816_v29 = vrot.slane %v5219_v1, 1  ;;  %vm5793_vm6 = vmmov %vm5787_vm1 }
 0xf99   : > { %v2869_v42 = vrot.slane %v2865_v17, 1  ;;  %v2870_v18 = vrot.slane %v5231_v23, 1  ;;  %v2775_v12 = vrot.slane %v2771_v26, 1  ;;  %v2851_v46 = vmul.f32 %v2850_v41, %v5108_v43 }
 0xf9a   : > { %v5241_v61 = vsel %vm5790_vm15, %v2815_v40, %v2816_v29  ;;  %v2614_v45 = vrot.slane %v2610_v59, 1  ;;  %v2615_v49 = vrot.slane %v2611_v7, 1  ;;  %v2716_v50 = vmul.f32 %v2715_v32, %v5108_v43  ;;  %vm5794_vm15 = vmmov %vm5787_vm1 }
 0xf9b   : > { %v5249_v47 = vsel %vm5791_vm9, %v2869_v42, %v2870_v18  ;;  %v2662_v63 = vmul.f32 %v2661_v37, %v5108_v43  ;;  %v2823_v10 = vstv %s5223_s29  ;;  %v2770_v0 = vmul.f32 %v2769_v51, %v5108_v43  ;;  %vm5795_vm9 = vmmov %vm5787_vm1  ;;  %s5389_s29 = sld [smem:[#allocation4 + $0x681]] }
 0xf9c   : > { %2747 = vrot.lane.b32.xlu1 %v2743_v52, %s4191_s19  ;;  %2749 = vrot.lane.b32.xlu0 %v2744_v60, %s4191_s19  ;;  %v2616_v44 = vsel %vm5787_vm1, %v2614_v45, %v2615_v49  ;;  %v2720_v24 = vrot.slane %v2716_v50, 1  ;;  %v2824_v32 = vmul.f32 %v2823_v10, %v5108_v43  ;;  %v2877_v37 = vstv %s3799_s17  ;;  %s5393_s17 = sld [smem:[#allocation4 + $0x781]] }
 0xf9d   : > { %v2666_v48 = vrot.slane %v2662_v63, 1  ;;  %v2774_v3 = vrot.slane %v2770_v0, 1  ;;  %v2825_v52 = vmul.f32 %v2823_v10, %v5121_v38  ;;  %v2852_v51 = vmul.f32 %v2850_v41, %v5121_v38 }
 0xf9e   : > { %v2722_v4 = vsel %vm5792_vm8, %v2720_v24, %v2721_v34  ;;  %v2878_v60 = vmul.f32 %v2877_v37, %v5108_v43  ;;  %v2828_v35 = vrot.slane %v2824_v32, 1  ;;  %v2879_v15 = vmul.f32 %v2877_v37, %v5121_v38 }
 0xf9f   : > { %v2668_v58 = vsel %vm5793_vm6, %v2666_v48, %v2667_v20  ;;  %v2776_v27 = vsel %vm5794_vm15, %v2774_v3, %v2775_v12  ;;  %v2829_v54 = vrot.slane %v2825_v52, 1  ;;  %v2630_v53 = vstv %s5286_s30  ;;  %s5395_s30 = sld [smem:[#allocation4 + $0x683]] }
 0xfa0   : > { %2671 = vrot.lane.b32.xlu1 %v2667_v20, %s4191_s19  ;;  %2801 = vrot.lane.b32.xlu0 %v2797_v30, %s4191_s19  ;;  %v2882_v30 = vrot.slane %v2878_v60, 1  ;;  %v2883_v33 = vrot.slane %v2879_v15, 1  ;;  %v2578_v62 = vstv %s5288_s13  ;;  %v2631_v8 = vmul.f32 %v2630_v53, %v5108_v43  ;;  %s5407_s13 = sld [smem:[#allocation4 + $0x783]] }
 0xfa1   : > { %v2830_v2 = vsel %vm5795_vm9, %v2828_v35, %v2829_v54  ;;  %v2579_v20 = vmul.f32 %v2578_v62, %v5108_v43  ;;  %v2684_v59 = vstv %s5292_s15  ;;  %v2792_v63 = vstv %s5301_s20  ;;  %s5409_s15 = sld [smem:[#allocation4 + $0x801]]  ;;  %s5415_s20 = sld [smem:[#allocation4 + $0x682]] }
 0xfa2   : > { %v2884_v41 = vsel %vm5787_vm1, %v2882_v30, %v2883_v33  ;;  %v2685_v7 = vmul.f32 %v2684_v59, %v5108_v43  ;;  %v2793_v10 = vmul.f32 %v2792_v63, %v5108_v43  ;;  %v2632_v52 = vmul.f32 %v2630_v53, %v5121_v38 }
 0xfa3   : > { %v2686_v35 = vmul.f32 %v2684_v59, %v5121_v38  ;;  %v2678_v9 = vstv %s5321_s23  ;;  %vm5796_vm8 = vcmask 121861   ;;  %vm5797_vm6 = vcmask 121863   ;;  %s5423_s23 = sld [smem:[#allocation4 + $0x602]] }
 0xfa4   : > { %2725 = vrot.lane.b32.xlu1 %v2721_v34, %s4191_s19  ;;  %2803 = vrot.lane.b32.xlu0 %v2798_v13, %s4191_s19  ;;  %vm5798_vm15 = vcmask 120837   ;;  %vm5799_vm9 = vcmask 1040384   ;;  %vm5800_vm1 = vcmask 1041408  }
 0xfa8   : > { %2779 = vrot.lane.b32.xlu1 %v2775_v12, %s4191_s19  ;;  %2855 = vrot.lane.b32.xlu0 %v2851_v46, %s4191_s19  ;;  %v2738_v12 = vstv %s5296_s16  ;;  %s5413_s16 = sld [smem:[#allocation4 + $0x603]] }
 0xfa9   : > { %v2739_v45 = vmul.f32 %v2738_v12, %v5108_v43  ;;  %v2740_v53 = vmul.f32 %v2738_v12, %v5121_v38 }
 0xfac   : > { %2617 = vrot.lane.b32.xlu1 %v2616_v44, %s4191_s19  ;;  %2619 = vrot.lane.b32.xlu0 %v2615_v49, %s4191_s19 }
 0xfb0   : > { %2723 = vrot.lane.b32.xlu1 %v2722_v4, %s4191_s19  ;;  %2669 = vrot.lane.b32.xlu0 %v2668_v58, %s4191_s19  ;;  %v2580_v58 = vmul.f32 %v2578_v62, %v5121_v38  ;;  %v2626_v62 = vstv %s5317_s22  ;;  %s5421_s22 = sld [smem:[#allocation4 + $0x782]] }
 0xfb4   : > { %2777 = vrot.lane.b32.xlu1 %v2776_v27, %s4191_s19  ;;  %2857 = vrot.lane.b32.xlu0 %v2852_v51, %s4191_s19 }
 0xfb8   : > { %2831 = vrot.lane.b32.xlu1 %v2830_v2, %s4191_s19  ;;  %2833 = vrot.lane.b32.xlu0 %v2829_v54, %s4191_s19 }
 0xfbc   : > { %2885 = vrot.lane.b32.xlu1 %v2884_v41, %s4191_s19  ;;  %2887 = vrot.lane.b32.xlu0 %v2883_v33, %s4191_s19 }
0x1002   : > { %v2640_v14 = vpop.permute.xlu1 %2639  ;;  %v2588_v13 = vpop.permute.xlu0 %2587 }
0x1003   : > { %v2645_v56 = vadd.f32 %v2640_v14, %v2631_v8  ;;  %v2593_v26 = vadd.f32 %v2588_v13, %v2579_v20 }
0x1005   : > { %v2606_v31 = vadd.f32 %v5228_v39, %v2593_v26  ;;  %v2658_v55 = vadd.f32 %v5199_v11, %v2645_v56 }
0x1006   : > { %v2590_v17 = vpop.permute.xlu1 %2589  ;;  %v2642_v34 = vpop.permute.xlu0 %2641 }
0x1007   : > { %v2594_v3 = vadd.f32 %v2590_v17, %v2580_v58  ;;  %v2646_v27 = vadd.f32 %v2642_v34, %v2632_v52 }
0x1009   : > { %v2607_v54 = vadd.f32 %v2602_v28, %v2594_v3  ;;  %v2659_v33 = vadd.f32 %v2654_v25, %v2646_v27 }
0x100a   : > { %v2694_v40 = vpop.permute.xlu1 %2693  ;;  %v2696_v42 = vpop.permute.xlu0 %2695 }
0x100b   : > { %v2699_v46 = vadd.f32 %v2694_v40, %v2685_v7  ;;  %v2700_v2 = vadd.f32 %v2696_v42, %v2686_v35  ;;  %v2732_v7 = vstv %s5324_s14  ;;  %s5425_s14 = sld [smem:[#allocation4 + $0x802]] }
0x100d   : > { %v2712_v49 = vadd.f32 %v5210_v22, %v2699_v46  ;;  %v2846_v22 = vstv %s5308_s21  ;;  %v2713_v28 = vadd.f32 %v2708_v36, %v2700_v2  ;;  %s5419_s21 = sld [smem:[#allocation4 + $0x702]] }
0x100e   : > { %v2748_v50 = vpop.permute.xlu1 %2747  ;;  %v2750_v39 = vpop.permute.xlu0 %2749  ;;  %v2847_v51 = vmul.f32 %v2846_v22, %v5108_v43  ;;  %v2848_v42 = vmul.f32 %v2846_v22, %v5121_v38 }
0x100f   : > { %v2753_v11 = vadd.f32 %v2748_v50, %v2739_v45  ;;  %v2754_v14 = vadd.f32 %v2750_v39, %v2740_v53  ;;  %v2786_v39 = vstv %s5332_s24  ;;  %s5431_s24 = sld [smem:[#allocation4 + $0x882]] }
0x1011   : > { %v2766_v44 = vadd.f32 %v5215_v57, %v2753_v11  ;;  %v2767_v16 = vadd.f32 %v2762_v19, %v2754_v14 }
0x1012   : > { %v2672_v24 = vpop.permute.xlu1 %2671  ;;  %v2802_v48 = vpop.permute.xlu0 %2801 }
0x1013   : > { %v2807_v0 = vadd.f32 %v2802_v48, %v2793_v10  ;;  %v2676_v8 = vadd.f32 %v2672_v24, %v2659_v33  ;;  %v2840_v24 = vstv %s5339_s26  ;;  %s5485_s26 = sld [smem:[#allocation4 + $0x881]] }
0x1015   : > { %v5313_v32 = vadd.f32 %v5241_v61, %v2807_v0  ;;  %v2680_v59 = vadd.f32 %v2678_v9, %v2676_v8 }
0x1016   : > { %v2726_v37 = vpop.permute.xlu1 %2725  ;;  %v2804_v4 = vpop.permute.xlu0 %2803 }
0x1017   : > { %v2730_v17 = vadd.f32 %v2726_v37, %v2713_v28 }
0x1019   : > { %v2734_v50 = vadd.f32 %v2732_v7, %v2730_v17 }
0x101a   : > { %v2780_v57 = vpop.permute.xlu1 %2779  ;;  %v2856_v60 = vpop.permute.xlu0 %2855 }
0x101b   : > { %v2861_v61 = vadd.f32 %v2856_v60, %v2847_v51  ;;  %v2784_v11 = vadd.f32 %v2780_v57, %v2767_v16 }
0x101d   : > { %v2874_v15 = vadd.f32 %v5249_v47, %v2861_v61  ;;  %v2794_v47 = vmul.f32 %v2792_v63, %v5121_v38  ;;  %v2788_v58 = vadd.f32 %v2786_v39, %v2784_v11 }
0x101e   : > { %v2618_v30 = vpop.permute.xlu1 %2617  ;;  %v2620_v43 = vpop.permute.xlu0 %2619 }
0x101f   : > { %v2624_v41 = vadd.f32 %v2620_v43, %v2607_v54  ;;  %v2623_v20 = vadd.f32 %v2618_v30, %v2606_v31  ;;  %v2808_v34 = vadd.f32 %v2804_v4, %v2794_v47 }
0x1021   : > { %v2628_v21 = vadd.f32 %v2626_v62, %v2624_v41  ;;  %v2627_v31 = vadd.f32 %v2626_v62, %v2623_v20  ;;  %v2821_v63 = vadd.f32 %v2816_v29, %v2808_v34  ;;  %v2894_v29 = vstv %s5345_s27  ;;  %s5493_s27 = sld [smem:[#allocation4 + $0x803]] }
0x1022   : > { %v2724_v13 = vpop.permute.xlu1 %2723  ;;  %v2670_v56 = vpop.permute.xlu0 %2669 }
0x1023   : > { %v2729_v25 = vadd.f32 %v2724_v13, %v2712_v49  ;;  %v2675_v26 = vadd.f32 %v2670_v56, %v2658_v55  ;;  %v2682_v46 = vmax.f32 %v2628_v21, %v2680_v59 }
0x1025   : > { %v2679_v40 = vadd.f32 %v2678_v9, %v2675_v26  ;;  %v2733_v45 = vadd.f32 %v2732_v7, %v2729_v25  ;;  %v2736_v0 = vmax.f32 %v2682_v46, %v2734_v50 }
0x1026   : > { %v2778_v36 = vpop.permute.xlu1 %2777  ;;  %v2858_v12 = vpop.permute.xlu0 %2857 }
0x1027   : > { %v2681_v55 = vmax.f32 %v2627_v31, %v2679_v40  ;;  %v2783_v49 = vadd.f32 %v2778_v36, %v2766_v44  ;;  %v2862_v10 = vadd.f32 %v2858_v12, %v2848_v42  ;;  %v2790_v60 = vmax.f32 %v2736_v0, %v2788_v58 }
0x1029   : > { %v2735_v5 = vmax.f32 %v2681_v55, %v2733_v45  ;;  %v2787_v19 = vadd.f32 %v2786_v39, %v2783_v49  ;;  %v2875_v1 = vadd.f32 %v2870_v18, %v2862_v10 }
0x102a   : > { %v2832_v48 = vpop.permute.xlu1 %2831  ;;  %v2834_v38 = vpop.permute.xlu0 %2833 }
0x102b   : > { %v2789_v37 = vmax.f32 %v2735_v5, %v2787_v19  ;;  %v2837_v4 = vadd.f32 %v2832_v48, %v5313_v32  ;;  %v2838_v22 = vadd.f32 %v2834_v38, %v2821_v63 }
0x102d   : > { %v2841_v44 = vadd.f32 %v2840_v24, %v2837_v4  ;;  %v2842_v3 = vadd.f32 %v2840_v24, %v2838_v22 }
0x102e   : > { %v2886_v52 = vpop.permute.xlu1 %2885  ;;  %v2888_v51 = vpop.permute.xlu0 %2887 }
0x102f   : > { %v2843_v57 = vmax.f32 %v2789_v37, %v2841_v44  ;;  %v2891_v27 = vadd.f32 %v2886_v52, %v2874_v15  ;;  %v2892_v61 = vadd.f32 %v2888_v51, %v2875_v1  ;;  %v2844_v35 = vmax.f32 %v2790_v60, %v2842_v3 }
0x1031   : > { %v2895_v54 = vadd.f32 %v2894_v29, %v2891_v27  ;;  %v2896_v2 = vadd.f32 %v2894_v29, %v2892_v61 }
0x1033   : > { %v2897_v30 = vmax.f32 %v2843_v57, %v2895_v54  ;;  %v2898_v43 = vmax.f32 %v2844_v35, %v2896_v2 }
0x1035   : > { %v3801_v32 = vmul.f32 -1.442695, %v2897_v30  ;;  %v3802_v33 = vmul.f32 -1.442695, %v2898_v43 }
0x1037   : > { %4112 = vpow2.f32 %v3801_v32 }
0x1038   : > { %4114 = vpow2.f32 %v3802_v33 }
0x1041   : > { %v4113_v41 = vpop.eup %4112 }
0x1042   : > { %v4115_v53 = vpop.eup %4114  ;;  %v2905_v23 = vadd.f32 1.0, %v4113_v41 }
0x1043   : > { %v2906_v18 = vadd.f32 1.0, %v4115_v53 }
0x1044   : > { %4116 = vrcp.f32 %v2905_v23 }
0x1045   : > { %4118 = vrcp.f32 %v2906_v18 }
0x104e   : > { %v4117_v62 = vpop.eup %4116 }
0x104f   : > { %v4119_v8 = vpop.eup %4118  ;;  %v2911_v15 = vsel %vm2459_vm3, %v4117_v62, -inf  ;;  %v2918_v20 = vsel %vm2467_vm2, %v4117_v62, -inf  ;;  %v2925_v14 = vsel %vm2475_vm7, %v4117_v62, -inf  ;;  %v2932_v9 = vsel %vm5796_vm8, %v4117_v62, -inf }
0x1050   : > { %v2912_v28 = vrot.slane %v2911_v15, 4  ;;  %v2919_v47 = vrot.slane %v2918_v20, 4  ;;  %v2926_v13 = vrot.slane %v2925_v14, 4  ;;  %v2933_v56 = vrot.slane %v2932_v9, 4 }
0x1051   : > { %v2939_v21 = vsel %vm5797_vm6, %v4117_v62, -inf  ;;  %v2940_v25 = vsel %vm2459_vm3, %v4119_v8, -inf  ;;  %v2948_v26 = vsel %vm2467_vm2, %v4119_v8, -inf  ;;  %v2955_v17 = vsel %vm2475_vm7, %v4119_v8, -inf }
0x1052   : > { %v2913_v34 = vmax.f32 %v2911_v15, %v2912_v28  ;;  %v2920_v59 = vmax.f32 %v2918_v20, %v2919_v47  ;;  %v2927_v7 = vmax.f32 %v2925_v14, %v2926_v13  ;;  %v2934_v31 = vmax.f32 %v2932_v9, %v2933_v56 }
0x1053   : > { %v2941_v40 = vmax.f32 %v2939_v21, %v2940_v25  ;;  %v2949_v16 = vrot.slane %v2948_v26, 4  ;;  %v2956_v36 = vrot.slane %v2955_v17, 4  ;;  %v2962_v42 = vsel %vm5798_vm15, %v4119_v8, -inf }
0x1054   : > { %v2914_v12 = vrot.slane %v2913_v34, 2  ;;  %v2921_v46 = vrot.slane %v2920_v59, 2  ;;  %v2928_v45 = vrot.slane %v2927_v7, 2  ;;  %v2935_v55 = vrot.slane %v2934_v31, 2 }
0x1055   : > { %v2942_v49 = vrot.slane %v2941_v40, 4  ;;  %v2950_v50 = vmax.f32 %v2948_v26, %v2949_v16  ;;  %v2957_v39 = vmax.f32 %v2955_v17, %v2956_v36  ;;  %v2963_v63 = vrot.slane %v2962_v42, 4 }
0x1056   : > { %v2915_v11 = vmax.f32 %v2913_v34, %v2914_v12  ;;  %v2922_v5 = vmax.f32 %v2920_v59, %v2921_v46  ;;  %v2929_v19 = vmax.f32 %v2927_v7, %v2928_v45  ;;  %v2936_v10 = vmax.f32 %v2934_v31, %v2935_v55 }
0x1057   : > { %v2943_v24 = vmax.f32 %v2941_v40, %v2942_v49  ;;  %v2951_v48 = vrot.slane %v2950_v50, 2  ;;  %v2958_v38 = vrot.slane %v2957_v39, 2  ;;  %v2964_v0 = vmax.f32 %v2962_v42, %v2963_v63 }
0x1058   : > { %v2916_v37 = vrot.slane %v2915_v11, 1  ;;  %v2923_v4 = vrot.slane %v2922_v5, 1  ;;  %v2930_v22 = vrot.slane %v2929_v19, 1  ;;  %v2937_v58 = vrot.slane %v2936_v10, 1 }
0x1059   : > { %v2944_v44 = vrot.slane %v2943_v24, 2  ;;  %v2952_v3 = vmax.f32 %v2950_v50, %v2951_v48  ;;  %v2959_v1 = vmax.f32 %v2957_v39, %v2958_v38  ;;  %v2965_v29 = vrot.slane %v2964_v0, 2 }
0x105a   : > { %v2917_v52 = vmax.f32 %v2915_v11, %v2916_v37  ;;  %v2924_v51 = vmax.f32 %v2922_v5, %v2923_v4  ;;  %v2931_v57 = vmax.f32 %v2929_v19, %v2930_v22  ;;  %v2938_v54 = vmax.f32 %v2936_v10, %v2937_v58 }
0x105b   : > { %v2945_v60 = vmax.f32 %v2943_v24, %v2944_v44  ;;  %v2966_v27 = vmax.f32 %v2964_v0, %v2965_v29  ;;  %v2953_v61 = vrot.slane %v2952_v3, 1  ;;  %v2960_v30 = vrot.slane %v2959_v1, 1 }
0x105c   : > { %v2969_v35 = vsel %vm5799_vm9, %v2917_v52, %v2924_v51  ;;  %vm5801_vm8 = vcmask 1043456   ;;  %vm5802_vm6 = vcmask 1044480   ;;  %vm5803_vm15 = vcmask 1046528  }
0x105d   : > { %v2946_v2 = vrot.slane %v2945_v60, 1  ;;  %v2967_v43 = vrot.slane %v2966_v27, 1  ;;  %v2970_v32 = vsel %vm5800_vm1, %v2969_v35, %v2931_v57  ;;  %v2954_v53 = vmax.f32 %v2952_v3, %v2953_v61 }
0x105e   : > { %v2971_v41 = vsel %vm616_vm10, %v2970_v32, %v2938_v54  ;;  %v2961_v23 = vmax.f32 %v2959_v1, %v2960_v30  ;;  %vm5804_vm9 = vcmask 15360   ;;  %vm5805_vm1 = vcmask 80952  }
0x105f   : > { %v2947_v33 = vmax.f32 %v2945_v60, %v2946_v2  ;;  %v2968_v62 = vmax.f32 %v2966_v27, %v2967_v43  ;;  %v3023_v5 = vstv %s3804_s7  ;;  %v3129_v38 = vstv %s5387_s11  ;;  %s5521_s7 = sld [smem:[#allocation4 + $0x883]]  ;;  %s5579_s11 = sld [smem:[#allocation4 + $0x600]] }
0x1060   : > { %v3075_v0 = vstv %s5389_s29  ;;  %v3183_v22 = vstv %s5393_s17  ;;  %v3102_v58 = vstv %s5395_s30  ;;  %v3210_v52 = vstv %s5407_s13  ;;  %s5581_s29 = sld [smem:[#allocation4 + $0x700]]  ;;  %s5609_s13 = sld [smem:[#allocation6 + $0xd]] }
0x1061   : > { %v2972_v18 = vsel %vm5801_vm8, %v2971_v41, %v2947_v33  ;;  %vm5806_vm8 = vcmask 113752   ;;  %v3237_v51 = vstv %s5409_s15  ;;  %v3089_v57 = vstv %s5415_s20  ;;  %s5583_s17 = sld [smem:[#allocation4 + $0x680]]  ;;  %s5612_s15 = sld [smem:[#allocation6 + $0xc]] }
0x1062   : > { %v2973_v8 = vsel %vm5802_vm6, %v2972_v18, %v2954_v53  ;;  %vm5807_vm6 = vcmask 121960   ;;  %v3050_v60 = vstv %s5413_s16  ;;  %v3143_v27 = vstv %s5419_s21  ;;  %s5586_s30 = sld [smem:[#allocation4 + $0x780]]  ;;  %s5614_s16 = sld [smem:[#allocation6 + $0xe]] }
0x1063   : > { %v2974_v15 = vsel %vm519_vm0, %v2973_v8, %v2961_v23  ;;  %v3197_v35 = vstv %s5421_s22  ;;  %v3037_v54 = vstv %s5423_s23  ;;  %v3251_v2 = vstv %s5425_s14  ;;  %s5622_s20 = sld [smem:[#allocation6 + $0xf]]  ;;  %s5626_s21 = sld [smem:[#allocation6 + $0x10]] }
0x1064   : > { %v2975_v20 = vsel %vm5803_vm15, %v2974_v15, %v2968_v62  ;;  %vm5808_vm15 = vcmask 7168   ;;  %v3305_v18 = vstv %s5431_s24  ;;  %s5631_s22 = sld [smem:[#allocation6 + $0x11]]  ;;  %s3449_s24 = sld [smem:[#allocation3]] }
0x1065   : > { %v2979_v14 = vsel %vm2076_vm4, %v2975_v20, -inf  ;;  %v2976_v9 = vsel %vm5804_vm9, %v2975_v20, -inf  ;;  %v2982_v28 = vsel %vm2536_vm14, %v2975_v20, -inf  ;;  %v2985_v47 = vsel %vm5723_vm13, %v2975_v20, -inf }
0x1066   : > { %2980 = vmax.xlane.f32.xlu0 %v2979_v14  ;;  %2977 = vmax.xlane.f32.xlu1 %v2976_v9  ;;  %v2988_v13 = vsel %vm5805_vm1, %v2975_v20, -inf  ;;  %v2991_v56 = vsel %vm2096_vm12, %v2975_v20, -inf  ;;  %v2994_v21 = vsel %vm5806_vm8, %v2975_v20, -inf  ;;  %v2997_v25 = vsel %vm5807_vm6, %v2975_v20, -inf }
0x1067   : > { %vm5809_vm13 = vcmask 23552   ;;  %vm5810_vm1 = vcmask 31744   ;;  %vm5811_vm8 = vcmask 56320   ;;  %vm5813_vm6 = vcmask 97280  }
0x106a   : > { %2983 = vmax.xlane.f32.xlu0 %v2982_v28  ;;  %2986 = vmax.xlane.f32.xlu1 %v2985_v47 }
0x106e   : > { %2989 = vmax.xlane.f32.xlu0 %v2988_v13  ;;  %2992 = vmax.xlane.f32.xlu1 %v2991_v56 }
0x1072   : > { %2995 = vmax.xlane.f32.xlu0 %v2994_v21  ;;  %2998 = vmax.xlane.f32.xlu1 %v2997_v25 }
0x10f3   : > { %v2981_v26 = vpop.xlane.xlu0 %2980  ;;  %v2978_v17 = vpop.xlane.xlu1 %2977 }
0x10f4   : > { %v3000_v34 = vsel %vm5808_vm15, %v2978_v17, %v2981_v26  ;;  %vm5814_vm15 = vcmask 1043456  }
0x10f7   : > { %v2984_v59 = vpop.xlane.xlu0 %2983  ;;  %v2987_v7 = vpop.xlane.xlu1 %2986 }
0x10f8   : > { %v3001_v31 = vsel %vm5804_vm9, %v3000_v34, %v2984_v59  ;;  %vm5815_vm9 = vmmov %vm5814_vm15 }
0x10f9   : > { %v3002_v40 = vsel %vm5809_vm13, %v3001_v31, %v2987_v7  ;;  %vm5812_vm13 = vmmov %vm5810_vm1 }
0x10fb   : > { %v2990_v16 = vpop.xlane.xlu0 %2989  ;;  %v2993_v36 = vpop.xlane.xlu1 %2992 }
0x10fc   : > { %v3003_v42 = vsel %vm5810_vm1, %v3002_v40, %v2990_v16  ;;  %vm5816_vm1 = vcmask 1046528  }
0x10fd   : > { %v3004_v12 = vsel %vm2108_vm11, %v3003_v42, %v2993_v36 }
0x10ff   : > { %v2996_v46 = vpop.xlane.xlu0 %2995  ;;  %v2999_v45 = vpop.xlane.xlu1 %2998 }
0x1100   : > { %v3005_v55 = vsel %vm2110_vm5, %v3004_v12, %v2996_v46 }
0x1101   : > { %v3006_v49 = vsel %vm5811_vm8, %v3005_v55, %v2999_v45  ;;  %vm5817_vm8 = vmmov %vm5816_vm1 }
0x1102   : > { %3008 = vrot.lane.b32.xlu0 %v3006_v49, %s4190_s18  ;;  %s5403_s18 = sld [smem:[#allocation4 + $0x703]] }
0x1108   : > { %v3156_v29 = vstv %s5403_s18  ;;  %s5601_s18 = sld [smem:[#allocation4 + $0x880]] }
0x1174   : > { %v3009_v50 = vpop.permute.xlu0 %3008 }
0x1175   : > { %v3011_v39 = vsel %vm5812_vm13, 0.0, %v3009_v50  ;;  %vm5818_vm13 = vmmov %vm5816_vm1 }
0x1176   : > { %v3012_v63 = vsel %vm5813_vm6, %v3011_v39, 0.0  ;;  %vm5819_vm6 = vmmov %vm5816_vm1 }
0x1177   : > { %v3014_v11 = vrot.slane %v3012_v63, 4 }
0x1179   : > { %v5398_v19 = vsel %vm5814_vm15, 0.0, %v3014_v11  ;;  %v5401_v10 = vsel %vm5815_vm9, %v3014_v11, 0.0  ;;  %vm5820_vm15 = vmmov %vm5816_vm1 }
0x117a   : > { %v3025_v24 = vmul.f32 %v3023_v5, %v5401_v10  ;;  %v3024_v48 = vmul.f32 %v3023_v5, %v5398_v19  ;;  %v3130_v37 = vmul.f32 %v3129_v38, %v5398_v19  ;;  %v3076_v4 = vmul.f32 %v3075_v0, %v5398_v19  ;;  %vm5821_vm9 = vmmov %vm5816_vm1 }
0x117b   : > { %v3184_v44 = vmul.f32 %v3183_v22, %v5398_v19  ;;  %v3077_v3 = vmul.f32 %v3075_v0, %v5401_v10  ;;  %v5440_v1 = vmul.f32 %v3102_v58, %v5401_v10  ;;  %v3131_v61 = vmul.f32 %v3129_v38, %v5401_v10 }
0x117c   : > { %3030 = vrot.lane.b32.xlu0 %v3025_v24, %s4191_s19  ;;  %3028 = vrot.lane.b32.xlu1 %v3024_v48, %s4191_s19  ;;  %v5456_v43 = vmul.f32 %v3156_v29, %v5401_v10  ;;  %v5459_v32 = vmul.f32 %v3089_v57, %v5401_v10  ;;  %v3090_v33 = vmul.f32 %v3089_v57, %v5398_v19  ;;  %v3291_v0 = vstv %s5485_s26 }
0x117d   : > { %v3108_v30 = vrot.slane %v5440_v1, 1  ;;  %v3185_v41 = vmul.f32 %v3183_v22, %v5401_v10  ;;  %v3144_v53 = vmul.f32 %v3143_v27, %v5398_v19  ;;  %v5465_v23 = vmul.f32 %v3143_v27, %v5401_v10 }
0x117e   : > { %v5475_v62 = vmul.f32 %v3210_v52, %v5401_v10  ;;  %v3238_v8 = vmul.f32 %v3237_v51, %v5398_v19  ;;  %v3095_v15 = vrot.slane %v5459_v32, 1  ;;  %v3198_v20 = vmul.f32 %v3197_v35, %v5398_v19 }
0x117f   : > { %v3094_v14 = vrot.slane %v3090_v33, 1  ;;  %v3148_v9 = vrot.slane %v3144_v53, 1  ;;  %v3149_v28 = vrot.slane %v5465_v23, 1  ;;  %v5482_v47 = vmul.f32 %v3197_v35, %v5401_v10 }
0x1180   : > { %3134 = vrot.lane.b32.xlu0 %v3130_v37, %s4191_s19  ;;  %3080 = vrot.lane.b32.xlu1 %v3076_v4, %s4191_s19  ;;  %v3162_v13 = vrot.slane %v5456_v43, 1  ;;  %v3202_v56 = vrot.slane %v3198_v20, 1  ;;  %v5488_v21 = vmul.f32 %v3037_v54, %v5401_v10  ;;  %v3038_v25 = vmul.f32 %v3037_v54, %v5398_v19 }
0x1181   : > { %v3051_v26 = vmul.f32 %v3050_v60, %v5398_v19  ;;  %v3052_v17 = vmul.f32 %v3050_v60, %v5401_v10  ;;  %v3203_v34 = vrot.slane %v5482_v47, 1  ;;  %v5499_v59 = vsel %vm5816_vm1, %v3148_v9, %v3149_v28 }
0x1182   : > { %v3216_v7 = vrot.slane %v5475_v62, 1  ;;  %v3043_v31 = vrot.slane %v5488_v21, 1  ;;  %v3042_v40 = vrot.slane %v3038_v25, 1  ;;  %v3252_v16 = vmul.f32 %v3251_v2, %v5398_v19 }
0x1183   : > { %v5509_v36 = vsel %vm5817_vm8, %v3202_v56, %v3203_v34  ;;  %v5512_v42 = vmul.f32 %v3251_v2, %v5401_v10  ;;  %v5517_v12 = vsel %vm5818_vm13, %v3094_v14, %v3095_v15  ;;  %v3306_v46 = vmul.f32 %v3305_v18, %v5398_v19  ;;  %vm5822_vm8 = vmmov %vm5816_vm1 }
0x1184   : > { %3188 = vrot.lane.b32.xlu0 %v3184_v44, %s4191_s19  ;;  %3082 = vrot.lane.b32.xlu1 %v3077_v3, %s4191_s19  ;;  %v3157_v45 = vmul.f32 %v3156_v29, %v5398_v19  ;;  %v3044_v55 = vsel %vm5819_vm6, %v3042_v40, %v3043_v31  ;;  %v3256_v49 = vrot.slane %v3252_v16, 1  ;;  %v5527_v50 = vmul.f32 %v3305_v18, %v5401_v10  ;;  %vm5823_vm13 = vmmov %vm5816_vm1 }
0x1185   : > { %v3055_v39 = vrot.slane %v3051_v26, 1  ;;  %v3056_v63 = vrot.slane %v3052_v17, 1  ;;  %v3257_v11 = vrot.slane %v5512_v42, 1  ;;  %v3310_v5 = vrot.slane %v3306_v46, 1  ;;  %vm5824_vm6 = vmmov %vm5816_vm1 }
0x1186   : > { %v3311_v24 = vrot.slane %v5527_v50, 1  ;;  %v3239_v38 = vmul.f32 %v3237_v51, %v5401_v10  ;;  %v3161_v22 = vrot.slane %v3157_v45, 1  ;;  %v3211_v44 = vmul.f32 %v3210_v52, %v5398_v19 }
0x1187   : > { %v5536_v48 = vsel %vm5820_vm15, %v3256_v49, %v3257_v11  ;;  %v3057_v4 = vsel %vm5816_vm1, %v3055_v39, %v3056_v63  ;;  %v3264_v3 = vstv %s5493_s27  ;;  %v3292_v29 = vmul.f32 %v3291_v0, %v5398_v19  ;;  %vm5825_vm15 = vmmov %vm5816_vm1 }
0x1188   : > { %3112 = vrot.lane.b32.xlu0 %v3108_v30, %s4191_s19  ;;  %3136 = vrot.lane.b32.xlu1 %v3131_v61, %s4191_s19  ;;  %v5543_v37 = vsel %vm5821_vm9, %v3310_v5, %v3311_v24  ;;  %v3265_v51 = vmul.f32 %v3264_v3, %v5398_v19  ;;  %v3318_v57 = vstv %s5521_s7  ;;  %v3163_v60 = vsel %vm5822_vm8, %v3161_v22, %v3162_v13  ;;  %vm5826_vm9 = vmmov %vm5816_vm1 }
0x1189   : > { %v3215_v27 = vrot.slane %v3211_v44, 1  ;;  %v3266_v61 = vmul.f32 %v3264_v3, %v5401_v10  ;;  %v3103_v35 = vmul.f32 %v3102_v58, %v5398_v19  ;;  %v3319_v52 = vmul.f32 %v3318_v57, %v5398_v19 }
0x118a   : > { %v3320_v54 = vmul.f32 %v3318_v57, %v5401_v10  ;;  %v3269_v43 = vrot.slane %v3265_v51, 1  ;;  %v3019_v1 = vstv %s5579_s11  ;;  %v3071_v56 = vstv %s5583_s17  ;;  %s457_s11 = scalar_lea.vmem %s5700_s12, %s5848_s28 }
0x118b   : > { %v3217_v2 = vsel %vm5823_vm13, %v3215_v27, %v3216_v7  ;;  %v3270_v33 = vrot.slane %v3266_v61, 1  ;;  %v3323_v18 = vrot.slane %v3319_v52, 1  ;;  %v3072_v17 = vmul.f32 %v3071_v56, %v5398_v19 }
0x118c   : > { %3166 = vrot.lane.b32.xlu0 %v3162_v13, %s4191_s19  ;;  %3190 = vrot.lane.b32.xlu1 %v3185_v41, %s4191_s19  ;;  %v3107_v41 = vrot.slane %v3103_v35, 1  ;;  %v3324_v62 = vrot.slane %v3320_v54, 1  ;;  %v3125_v13 = vstv %s5581_s29  ;;  %v3179_v46 = vstv %s5586_s30 }
0x118d   : > { %v3271_v53 = vsel %vm5824_vm6, %v3269_v43, %v3270_v33  ;;  %v3126_v26 = vmul.f32 %v3125_v13, %v5398_v19  ;;  %v3180_v39 = vmul.f32 %v3179_v46, %v5398_v19  ;;  %v3287_v52 = vstv %s5601_s18 }
0x118e   : > { %v3109_v58 = vsel %vm5825_vm15, %v3107_v41, %v3108_v30  ;;  %v3325_v20 = vsel %vm5826_vm9, %v3323_v18, %v3324_v62  ;;  %v3020_v30 = vmul.f32 %v3019_v1, %v5398_v19  ;;  %v3073_v54 = vmul.f32 %v3071_v56, %v5401_v10  ;;  %vm5834_vm15 = vmmov %vm5826_vm9 }
0x118f   : > { %v3127_v41 = vmul.f32 %v3125_v13, %v5401_v10  ;;  %v3119_v21 = vstv %s5609_s13  ;;  %v3281_v47 = vstv %s5626_s21  ;;  %vm5827_vm1 = vcmask 121861  }
0x1190   : > { %3220 = vrot.lane.b32.xlu0 %v3216_v7, %s4191_s19  ;;  %3242 = vrot.lane.b32.xlu1 %v3238_v8, %s4191_s19  ;;  %v3293_v8 = vmul.f32 %v3291_v0, %v5401_v10  ;;  %vm5828_vm8 = vcmask 121863   ;;  %vm5829_vm13 = vcmask 120837   ;;  %vm5833_vm6 = vcmask 1044480  }
0x1191   : > { %vm5835_vm9 = vcmask 15360  }
0x1194   : > { %3058 = vrot.lane.b32.xlu0 %v3057_v4, %s4191_s19  ;;  %3244 = vrot.lane.b32.xlu1 %v3239_v38, %s4191_s19 }
0x1198   : > { %3164 = vrot.lane.b32.xlu0 %v3163_v60, %s4191_s19  ;;  %3296 = vrot.lane.b32.xlu1 %v3292_v29, %s4191_s19 }
0x119c   : > { %3218 = vrot.lane.b32.xlu0 %v3217_v2, %s4191_s19  ;;  %3060 = vrot.lane.b32.xlu1 %v3056_v63, %s4191_s19 }
0x11a0   : > { %3272 = vrot.lane.b32.xlu0 %v3271_v53, %s4191_s19  ;;  %3110 = vrot.lane.b32.xlu1 %v3109_v58, %s4191_s19 }
0x11a4   : > { %3326 = vrot.lane.b32.xlu0 %v3325_v20, %s4191_s19  ;;  %3298 = vrot.lane.b32.xlu1 %v3293_v8, %s4191_s19  ;;  %v3181_v20 = vmul.f32 %v3179_v46, %v5401_v10 }
0x11a8   : > { %3274 = vrot.lane.b32.xlu1 %v3270_v33, %s4191_s19  ;;  %v3288_v33 = vmul.f32 %v3287_v52, %v5398_v19 }
0x11ac   : > { %3328 = vrot.lane.b32.xlu1 %v3324_v62, %s4191_s19  ;;  %s5597_s19 = sld [smem:[#allocation4 + $0x800]] }
0x11b2   : > { %v3233_v51 = vstv %s5597_s19 }
0x11ee   : > { %v3031_v14 = vpop.permute.xlu0 %3030  ;;  %v3029_v9 = vpop.permute.xlu1 %3028 }
0x11ef   : > { %v3034_v25 = vadd.f32 %v3029_v9, %v3020_v30 }
0x11f1   : > { %v3047_v7 = vadd.f32 %v3044_v55, %v3034_v25 }
0x11f2   : > { %v3135_v40 = vpop.permute.xlu0 %3134  ;;  %v3081_v16 = vpop.permute.xlu1 %3080 }
0x11f3   : > { %v3140_v45 = vadd.f32 %v3135_v40, %v3126_v26  ;;  %v3086_v49 = vadd.f32 %v3081_v16, %v3072_v17  ;;  %v3173_v16 = vstv %s5614_s16 }
0x11f5   : > { %v3153_v63 = vadd.f32 %v5499_v59, %v3140_v45  ;;  %v3099_v5 = vadd.f32 %v5517_v12, %v3086_v49  ;;  %v3234_v59 = vmul.f32 %v3233_v51, %v5398_v19 }
0x11f6   : > { %v3189_v38 = vpop.permute.xlu0 %3188  ;;  %v3083_v0 = vpop.permute.xlu1 %3082 }
0x11f7   : > { %v3194_v4 = vadd.f32 %v3189_v38, %v3180_v39  ;;  %v3087_v43 = vadd.f32 %v3083_v0, %v3073_v54  ;;  %v3227_v38 = vstv %s5622_s20 }
0x11f9   : > { %v3207_v22 = vadd.f32 %v5509_v36, %v3194_v4  ;;  %v3021_v36 = vmul.f32 %v3019_v1, %v5401_v10  ;;  %v3100_v62 = vadd.f32 %v3095_v15, %v3087_v43  ;;  %v3289_v4 = vmul.f32 %v3287_v52, %v5401_v10 }
0x11fa   : > { %v3113_v55 = vpop.permute.xlu0 %3112  ;;  %v3137_v44 = vpop.permute.xlu1 %3136 }
0x11fb   : > { %v3035_v2 = vadd.f32 %v3031_v14, %v3021_v36  ;;  %v3141_v18 = vadd.f32 %v3137_v44, %v3127_v41  ;;  %v3117_v32 = vadd.f32 %v3113_v55, %v3100_v62 }
0x11fd   : > { %v3048_v19 = vadd.f32 %v3043_v31, %v3035_v2  ;;  %v3154_v9 = vadd.f32 %v3149_v28, %v3141_v18  ;;  %v3067_v31 = vstv %s5612_s15 }
0x11fe   : > { %v3167_v3 = vpop.permute.xlu0 %3166  ;;  %v3191_v29 = vpop.permute.xlu1 %3190 }
0x11ff   : > { %v3195_v13 = vadd.f32 %v3191_v29, %v3181_v20  ;;  %v3171_v23 = vadd.f32 %v3167_v3, %v3154_v9 }
0x1201   : > { %v3208_v28 = vadd.f32 %v3203_v34, %v3195_v13  ;;  %v3175_v3 = vadd.f32 %v3173_v16, %v3171_v23 }
0x1202   : > { %v3221_v57 = vpop.permute.xlu0 %3220  ;;  %v3243_v12 = vpop.permute.xlu1 %3242 }
0x1203   : > { %v3248_v60 = vadd.f32 %v3243_v12, %v3234_v59 }
0x1205   : > { %v3261_v27 = vadd.f32 %v5536_v48, %v3248_v60 }
0x1206   : > { %v3059_v61 = vpop.permute.xlu0 %3058  ;;  %v3245_v35 = vpop.permute.xlu1 %3244 }
0x1207   : > { %v3064_v15 = vadd.f32 %v3059_v61, %v3047_v7  ;;  %v3121_v7 = vadd.f32 %v3119_v21, %v3117_v32  ;;  %v3335_v61 = vstv %s5631_s22 }
0x1209   : > { %v3068_v45 = vadd.f32 %v3067_v31, %v3064_v15 }
0x120a   : > { %v3165_v53 = vpop.permute.xlu0 %3164  ;;  %v3297_v58 = vpop.permute.xlu1 %3296 }
0x120b   : > { %v3302_v48 = vadd.f32 %v3297_v58, %v3288_v33  ;;  %v3170_v26 = vadd.f32 %v3165_v53, %v3153_v63 }
0x120d   : > { %v3315_v8 = vadd.f32 %v5543_v37, %v3302_v48  ;;  %v3235_v37 = vmul.f32 %v3233_v51, %v5401_v10  ;;  %v3174_v63 = vadd.f32 %v3173_v16, %v3170_v26  ;;  %v3225_v51 = vadd.f32 %v3221_v57, %v3208_v28 }
0x120e   : > { %v3219_v1 = vpop.permute.xlu0 %3218  ;;  %v3061_v30 = vpop.permute.xlu1 %3060 }
0x120f   : > { %v3065_v14 = vadd.f32 %v3061_v30, %v3048_v19  ;;  %v3249_v46 = vadd.f32 %v3245_v35, %v3235_v37  ;;  %v3224_v49 = vadd.f32 %v3219_v1, %v3207_v22  ;;  %v3229_v2 = vadd.f32 %v3227_v38, %v3225_v51 }
0x1211   : > { %v3069_v17 = vadd.f32 %v3067_v31, %v3065_v14  ;;  %v3262_v34 = vadd.f32 %v3257_v11, %v3249_v46  ;;  %v3228_v59 = vadd.f32 %v3227_v38, %v3224_v49 }
0x1212   : > { %v3273_v56 = vpop.permute.xlu0 %3272  ;;  %v3111_v25 = vpop.permute.xlu1 %3110 }
0x1213   : > { %v3116_v40 = vadd.f32 %v3111_v25, %v3099_v5  ;;  %v3123_v44 = vmax.f32 %v3069_v17, %v3121_v7  ;;  %v3278_v5 = vadd.f32 %v3273_v56, %v3261_v27 }
0x1215   : > { %v3120_v39 = vadd.f32 %v3119_v21, %v3116_v40  ;;  %v3177_v36 = vmax.f32 %v3123_v44, %v3175_v3  ;;  %v3282_v54 = vadd.f32 %v3281_v47, %v3278_v5 }
0x1216   : > { %v3327_v0 = vpop.permute.xlu0 %3326  ;;  %v3299_v55 = vpop.permute.xlu1 %3298 }
0x1217   : > { %v3122_v29 = vmax.f32 %v3068_v45, %v3120_v39  ;;  %v3332_v22 = vadd.f32 %v3327_v0, %v3315_v8  ;;  %v3303_v60 = vadd.f32 %v3299_v55, %v3289_v4  ;;  %v3231_v11 = vmax.f32 %v3177_v36, %v3229_v2 }
0x1219   : > { %v3176_v12 = vmax.f32 %v3122_v29, %v3174_v63  ;;  %v3336_v27 = vadd.f32 %v3335_v61, %v3332_v22  ;;  %v3316_v57 = vadd.f32 %v3311_v24, %v3303_v60 }
0x121a   : > { %v3275_v35 = vpop.permute.xlu1 %3274 }
0x121b   : > { %v3230_v10 = vmax.f32 %v3176_v12, %v3228_v59  ;;  %v3279_v52 = vadd.f32 %v3275_v35, %v3262_v34 }
0x121d   : > { %v3284_v43 = vmax.f32 %v3230_v10, %v3282_v54  ;;  %v3283_v33 = vadd.f32 %v3281_v47, %v3279_v52 }
0x121e   : > { %v3329_v41 = vpop.permute.xlu1 %3328 }
0x121f   : > { %v3338_v42 = vmax.f32 %v3284_v43, %v3336_v27  ;;  %v3333_v53 = vadd.f32 %v3329_v41, %v3316_v57  ;;  %v3285_v48 = vmax.f32 %v3231_v11, %v3283_v33 }
0x1221   : > { %v3833_v58 = vmul.f32 -1.442695, %v3338_v42  ;;  %v3337_v18 = vadd.f32 %v3335_v61, %v3333_v53 }
0x1223   : > { %4120 = vpow2.f32 %v3833_v58  ;;  %v3339_v62 = vmax.f32 %v3285_v48, %v3337_v18 }
0x1225   : > { %v3834_v19 = vmul.f32 -1.442695, %v3339_v62 }
0x1227   : > { %4122 = vpow2.f32 %v3834_v19 }
0x122d   : > { %v4121_v8 = vpop.eup %4120 }
0x122e   : > { %v3346_v20 = vadd.f32 1.0, %v4121_v8 }
0x1230   : > { %4124 = vrcp.f32 %v3346_v20 }
0x1231   : > { %v4123_v1 = vpop.eup %4122 }
0x1232   : > { %v3347_v30 = vadd.f32 1.0, %v4123_v1 }
0x1234   : > { %4126 = vrcp.f32 %v3347_v30 }
0x123a   : > { %v4125_v14 = vpop.eup %4124 }
0x123b   : > { %v3352_v50 = vsel %vm2459_vm3, %v4125_v14, -inf  ;;  %v3359_v24 = vsel %vm2467_vm2, %v4125_v14, -inf  ;;  %v3366_v9 = vsel %vm2475_vm7, %v4125_v14, -inf  ;;  %v3373_v13 = vsel %vm5827_vm1, %v4125_v14, -inf }
0x123c   : > { %v3353_v32 = vrot.slane %v3352_v50, 4  ;;  %v3360_v15 = vrot.slane %v3359_v24, 4  ;;  %v3367_v21 = vrot.slane %v3366_v9, 4  ;;  %v3374_v31 = vrot.slane %v3373_v13, 4 }
0x123d   : > { %v3380_v37 = vsel %vm5828_vm8, %v4125_v14, -inf  ;;  %vm5836_vm1 = vcmask 80952   ;;  %vm5838_vm8 = vcmask 64552  }
0x123e   : > { %v4127_v56 = vpop.eup %4126  ;;  %v3354_v25 = vmax.f32 %v3352_v50, %v3353_v32  ;;  %v3361_v26 = vmax.f32 %v3359_v24, %v3360_v15  ;;  %v3368_v17 = vmax.f32 %v3366_v9, %v3367_v21  ;;  %v3375_v40 = vmax.f32 %v3373_v13, %v3374_v31 }
0x123f   : > { %v3381_v16 = vsel %vm2459_vm3, %v4127_v56, -inf  ;;  %v3389_v23 = vsel %vm2467_vm2, %v4127_v56, -inf  ;;  %v3396_v28 = vsel %vm2475_vm7, %v4127_v56, -inf  ;;  %v3403_v46 = vsel %vm5829_vm13, %v4127_v56, -inf  ;;  %vm5841_vm13 = vmmov %vm5835_vm9 }
0x1240   : > { %v3355_v7 = vrot.slane %v3354_v25, 2  ;;  %v3362_v45 = vrot.slane %v3361_v26, 2  ;;  %v3369_v49 = vrot.slane %v3368_v17, 2  ;;  %v3376_v39 = vrot.slane %v3375_v40, 2 }
0x1241   : > { %v3382_v38 = vmax.f32 %v3380_v37, %v3381_v16  ;;  %v3390_v0 = vrot.slane %v3389_v23, 4  ;;  %v3397_v4 = vrot.slane %v3396_v28, 4  ;;  %v3404_v55 = vrot.slane %v3403_v46, 4 }
0x1242   : > { %v3356_v63 = vmax.f32 %v3354_v25, %v3355_v7  ;;  %v3363_v44 = vmax.f32 %v3361_v26, %v3362_v45  ;;  %v3370_v5 = vmax.f32 %v3368_v17, %v3369_v49  ;;  %v3377_v22 = vmax.f32 %v3375_v40, %v3376_v39  ;;  %v3448_v26 = vld [vmem:[%s5698_s10] sm:$0xff] }
0x1243   : > { %v3383_v29 = vrot.slane %v3382_v38, 4  ;;  %v3391_v3 = vmax.f32 %v3389_v23, %v3390_v0  ;;  %v3398_v51 = vmax.f32 %v3396_v28, %v3397_v4  ;;  %v3405_v47 = vmax.f32 %v3403_v46, %v3404_v55  ;;  %3969 = vmatpush3.msra.mxu1 %v3448_v26 }
0x1244   : > { %v3357_v34 = vrot.slane %v3356_v63, 1  ;;  %v3364_v59 = vrot.slane %v3363_v44, 1  ;;  %v3371_v12 = vrot.slane %v3370_v5, 1  ;;  %v3378_v33 = vrot.slane %v3377_v22, 1 }
0x1245   : > { %v3384_v60 = vmax.f32 %v3382_v38, %v3383_v29  ;;  %v3392_v61 = vrot.slane %v3391_v3, 2  ;;  %v3399_v35 = vrot.slane %v3398_v51, 2  ;;  %v3406_v36 = vrot.slane %v3405_v47, 2 }
0x1246   : > { %v3358_v54 = vmax.f32 %v3356_v63, %v3357_v34  ;;  %v3365_v10 = vmax.f32 %v3363_v44, %v3364_v59  ;;  %v3372_v52 = vmax.f32 %v3370_v5, %v3371_v12  ;;  %vm5830_vm3 = vcmask 1040384  }
0x1247   : > { %v3385_v2 = vrot.slane %v3384_v60, 2  ;;  %v3393_v43 = vmax.f32 %v3391_v3, %v3392_v61  ;;  %v3400_v27 = vmax.f32 %v3398_v51, %v3399_v35  ;;  %v3407_v57 = vmax.f32 %v3405_v47, %v3406_v36 }
0x1248   : > { %v3410_v41 = vsel %vm5830_vm3, %v3358_v54, %v3365_v10  ;;  %vm5831_vm2 = vcmask 1041408   ;;  %v3379_v18 = vmax.f32 %v3377_v22, %v3378_v33  ;;  %vm5832_vm7 = vcmask 1043456  }
0x1249   : > { %v3386_v42 = vmax.f32 %v3384_v60, %v3385_v2  ;;  %v3394_v11 = vrot.slane %v3393_v43, 1  ;;  %v3401_v58 = vrot.slane %v3400_v27, 1  ;;  %v3411_v48 = vsel %vm5831_vm2, %v3410_v41, %v3372_v52 }
0x124a   : > { %v3408_v62 = vrot.slane %v3407_v57, 1  ;;  %v3412_v20 = vsel %vm616_vm10, %v3411_v48, %v3379_v18  ;;  %vm5837_vm10 = vcmask 113752   ;;  %vm5843_vm3 = vcmask 31744  }
0x124b   : > { %v3387_v53 = vrot.slane %v3386_v42, 1  ;;  %v3395_v8 = vmax.f32 %v3393_v43, %v3394_v11  ;;  %v3402_v1 = vmax.f32 %v3400_v27, %v3401_v58  ;;  %vm5844_vm2 = vcmask 56320  }
0x124c   : > { %v3409_v14 = vmax.f32 %v3407_v57, %v3408_v62  ;;  %v3450_v63 = vstv %s3449_s24 }
0x124d   : > { %v3388_v19 = vmax.f32 %v3386_v42, %v3387_v53 }
0x124f   : > { %v3413_v30 = vsel %vm5832_vm7, %v3412_v20, %v3388_v19  ;;  %vm5845_vm7 = vcmask 64512  }
0x1250   : > { %v3414_v50 = vsel %vm5833_vm6, %v3413_v30, %v3395_v8 }
0x1251   : > { %v3415_v24 = vsel %vm519_vm0, %v3414_v50, %v3402_v1  ;;  %vm5839_vm0 = vcmask 121960  }
0x1252   : > { %v3416_v9 = vsel %vm5834_vm15, %v3415_v24, %v3409_v14 }
0x1253   : > { %v3420_v13 = vsel %vm2076_vm4, %v3416_v9, -inf  ;;  %v3417_v32 = vsel %vm5835_vm9, %v3416_v9, -inf  ;;  %v3429_v15 = vsel %vm5836_vm1, %v3416_v9, -inf  ;;  %v3423_v21 = vsel %vm2536_vm14, %v3416_v9, -inf }
0x1254   : > { %3421 = vmax.xlane.f32.xlu1 %v3420_v13  ;;  %3418 = vmax.xlane.f32.xlu0 %v3417_v32  ;;  %v3435_v31 = vsel %vm5837_vm10, %v3416_v9, -inf  ;;  %v3426_v37 = vsel %vm5838_vm8, %v3416_v9, -inf  ;;  %v3432_v56 = vsel %vm2096_vm12, %v3416_v9, -inf  ;;  %v3438_v25 = vsel %vm5839_vm0, %v3416_v9, -inf }
0x1255   : > { %vm4196_vm4 = vmmov 0   ;;  %vm5840_vm14 = vcmask 7168   ;;  %vm5842_vm12 = vcmask 23552  }
0x1256   : > { %3970 = vmatprep.mubr.msk.f32.mxu1 %vm4196_vm4, %v4188_v6 }
0x1258   : > { %3430 = vmax.xlane.f32.xlu1 %v3429_v15  ;;  %3424 = vmax.xlane.f32.xlu0 %v3423_v21 }
0x125c   : > { %3436 = vmax.xlane.f32.xlu1 %v3435_v31  ;;  %3427 = vmax.xlane.f32.xlu0 %v3426_v37 }
0x1260   : > { %3433 = vmax.xlane.f32.xlu0 %v3432_v56 }
0x1264   : > { %3439 = vmax.xlane.f32.xlu0 %v3438_v25 }
0x12e1   : > { %v3419_v17 = vpop.xlane.xlu0 %3418  ;;  %v3422_v40 = vpop.xlane.xlu1 %3421 }
0x12e2   : > { %v3441_v23 = vsel %vm5840_vm14, %v3419_v17, %v3422_v40 }
0x12e5   : > { %v3425_v16 = vpop.xlane.xlu0 %3424  ;;  %v3431_v7 = vpop.xlane.xlu1 %3430 }
0x12e6   : > { %v3442_v28 = vsel %vm5841_vm13, %v3441_v23, %v3425_v16 }
0x12e9   : > { %v3428_v46 = vpop.xlane.xlu0 %3427  ;;  %v3437_v0 = vpop.xlane.xlu1 %3436 }
0x12ea   : > { %v3443_v45 = vsel %vm5842_vm12, %v3442_v28, %v3428_v46 }
0x12eb   : > { %v3444_v49 = vsel %vm5843_vm3, %v3443_v45, %v3431_v7 }
0x12ed   : > { %v3434_v39 = vpop.xlane.xlu0 %3433 }
0x12ee   : > { %v3445_v38 = vsel %vm2108_vm11, %v3444_v49, %v3434_v39  ;;  %vm5846_vm11 = vmmov %vm5840_vm14 }
0x12ef   : > { %v3446_v4 = vsel %vm2110_vm5, %v3445_v38, %v3437_v0  ;;  %vm3549_vm5 = vcmask 0  }
0x12f1   : > { %v3440_v6 = vpop.xlane.xlu0 %3439 }
0x12f2   : > { %v3447_v55 = vsel %vm5844_vm2, %v3446_v4, %v3440_v6 }
0x12f3   : > { %3971 = vmatmul.mubr.msk.f32.vlgmr.msra.gmra.mrb[10].mxu1 %vm5845_vm7, %v3447_v55 }
0x13c6   : > { %v3520_v44 = vpop.f32.mrb[10].mxu1 }
0x13c7   : > { %v3521_v5 = vadd.f32 %v3520_v44, %v3450_v63  ;;  %v3972_v29 = vpop.f32.mrb[11].mxu1 }
0x13c9   : > { %v3836_v3 = vmul.f32 -1.442695, %v3521_v5 }
0x13cb   : > { %4128 = vpow2.f32 %v3836_v3 }
0x13d5   : > { %v4129_v51 = vpop.eup %4128 }
0x13d6   : > { %v3527_v47 = vadd.f32 1.0, %v4129_v51 }
0x13d8   : > { %4130 = vrcp.f32 %v3527_v47 }
0x13e2   : > { %v4131_v34 = vpop.eup %4130 }
0x13e3   : > { %v3530_v59 = vmul.f32 %v4131_v34, %v3448_v26 }
0x13e5   : > { %v3531_v12 = vsel %vm5846_vm11, %v3530_v59, 0.0 }
0x13e6   : > { %3532 = vadd.xlane.f32.xlu1 %v3531_v12 }
0x1473   : > { %v3533_v22 = vpop.xlane.xlu1 %3532 }
0x1474   : > { %v3534_v60 = vrot.slane %v3533_v22, 4 }
0x1476   : > { %v3535_v61 = vadd.f32 %v3534_v60, %v3533_v22 }
0x1478   : > { %v3536_v35 = vrot.slane %v3535_v61, 2 }
0x147a   : > { %v3537_v36 = vadd.f32 %v3536_v35, %v3535_v61 }
0x147c   : > { %v3538_v54 = vrot.slane %v3537_v36, 1 }
0x147e   : > { %v3539_v10 = vadd.f32 %v3538_v54, %v3537_v36 }
0x1480   : > { %4027 = vpush %v3539_v10 }
0x14b1   : > { %s4028_s26 = spop %4027 }
0x14b2   : > { %v3541_v52 = vstv %s4028_s26 }
0x14b3   : > { %v3542_v2 = vadd.f32 %v3541_v52, %v3450_v63 }
0x14b5   : > { %v3837_v43 = vmul.f32 -1.442695, %v3542_v2 }
0x14b7   : > { %4132 = vpow2.f32 %v3837_v43 }
0x14c1   : > { %v4133_v27 = vpop.eup %4132 }
0x14c2   : > { %v3546_v33 = vadd.f32 1.0, %v4133_v27 }
0x14c4   : > { %4134 = vrcp.f32 %v3546_v33 }
0x14ce   : > { %v4135_v57 = vpop.eup %4134 }
0x14cf   : > { %3550 = vst.msk [vmem:[%s457_s11] sm:$0x1] %vm3549_vm5, %v4135_v57 }
0x14d0 PF: > { %s26_s25 = sadd.s32 1, %s4182_s25  }
0x14d1   : > { %p23_p3 = scmp.ge.s32.totalorder %s26_s25, 7  }
0x14d3   :  { %25 = sbr.rel (!%p23_p3) target bundleno = 5 (0x5), region = 116 }
0x14da   :  { %3568 = vsyncpa [#allocation5], 1 }
0x14db   :  { %3570 = vsyncpa [#allocation5 + $0x1], 1 }
0x14dc   :  { %3571 = vsyncpa [#allocation7], 1 }

</bundles_post_ra>
